<compile_context>
chip_gen: v7x
topology: tpu7x:2x2x1
jax: 0.10.0
libtpu: 0.0.40
codegen_flags: <defaults>
</compile_context>

<pallas_src>
import math

import jax
import jax.numpy as jnp
from jax.experimental import pallas as pl
from jax.experimental.pallas import tpu as pltpu


def _cross_attn_kernel(slab_ref, qf_ref,
                       wqg_ref, wslab_ref, bslab_ref,
                       wpos_ref, bpos_ref, bg1_ref,
                       wg2s_ref, bg2s_ref, w2_ref, b2_ref,
                       out_ref, attn_ref):
    TM, K, Dpp = slab_ref.shape          # Dpp = d_points + 3 (rel xyz lane-packed)
    Dm = wg2s_ref.shape[1]
    f32 = jnp.float32
    mmdt = wslab_ref.dtype               # matmul operand dtype (f32 or bf16)

    qf = qf_ref[...]                                                     # (TM, Dp) f32 (residual)
    # w_qs @ fc_gamma_w1 folded offline: q itself is never materialized.
    q_g = jnp.dot(qf.astype(mmdt), wqg_ref[...], preferred_element_type=f32)   # (TM, Dm)

    # (TM, K, Dp+3) -> (TM*K, Dp+3): K folds into the sublane axis (layout no-op).
    slab = slab_ref[...].reshape(TM * K, Dpp)

    # ONE slab MXU pass (N = 3*Dm): [ v | k @ fc_gamma_w1 | fc_delta-layer-1 pre-act ]
    # (fc1 folded into w_ks / w_vs; fc_delta layer-1 block-diagonal on the rel-xyz lanes.)
    sout = jnp.dot(slab, wslab_ref[...], preferred_element_type=f32) + bslab_ref[...]
    vv   = sout[:, :Dm]                                                  # v
    kk_g = sout[:, Dm:2 * Dm]                                            # k @ wg1
    h    = jnp.maximum(sout[:, 2 * Dm:], 0.0)                            # relu(fc_delta[0](rel))

    # ONE MXU pass (N = 2*Dm): [ pos | pos @ fc_gamma_w1 ]
    pb = jnp.dot(h.astype(mmdt), wpos_ref[...], preferred_element_type=f32) + bpos_ref[...]
    pos   = pb[:, :Dm]
    pos_g = pb[:, Dm:]

    # fc_gamma layer-1 with wg1 distributed over (q - k + pos): no extra matmul.
    g_pre = (q_g[:, None, :] +
             (pos_g - kk_g + bg1_ref[...]).reshape(TM, K, Dm)).reshape(TM * K, Dm)
    g = jnp.maximum(g_pre, 0.0)

    # fc_gamma layer-2; weight & bias pre-scaled by 1/sqrt(d_model).
    logits = jnp.dot(g.astype(mmdt), wg2s_ref[...], preferred_element_type=f32) + bg2s_ref[...]

    # softmax over the neighbour (K) axis
    logits3 = logits.reshape(TM, K, Dm)
    logits3 = logits3 - jnp.max(logits3, axis=1, keepdims=True)
    e = jnp.exp(logits3)
    attn3 = e * pl.reciprocal(jnp.sum(e, axis=1, keepdims=True), approx=False)   # (TM, K, Dm)

    # einsum('bmnf,bmnf->bmf', attn, v + pos_enc)
    vp3 = (vv + pos).reshape(TM, K, Dm)
    res = jnp.sum(attn3 * vp3, axis=1)                                   # (TM, Dm)

    # fc2(res) + pre (residual)
    out_ref[...] = (jnp.dot(res.astype(mmdt), w2_ref[...], preferred_element_type=f32)
                    + b2_ref[...] + qf)
    # Lane-dense attn store: (TM, K*Dm) = full-width unmasked vst; wrapper undoes it.
    attn_ref[...] = attn3.reshape(TM, K * Dm)


def init_params(key, d_points, d_model):
    ks = jax.random.split(key, 20)

    def lin_w(k, fan_in, fan_out):
        lim = 1.0 / math.sqrt(fan_in)
        return jax.random.uniform(k, (fan_in, fan_out), jnp.float32, -lim, lim)

    def lin_b(k, fan_in, fan_out):
        lim = 1.0 / math.sqrt(fan_in)
        return jax.random.uniform(k, (1, fan_out), jnp.float32, -lim, lim)

    p = {
        "fc1_w": lin_w(ks[0], d_points, d_model), "fc1_b": lin_b(ks[1], d_points, d_model),
        "fc2_w": lin_w(ks[2], d_model, d_points), "fc2_b": lin_b(ks[3], d_model, d_points),
        "fc_delta_w1": lin_w(ks[4], 3, d_model), "fc_delta_b1": lin_b(ks[5], 3, d_model),
        "fc_delta_w2": lin_w(ks[6], d_model, d_model), "fc_delta_b2": lin_b(ks[7], d_model, d_model),
        "fc_gamma_w1": lin_w(ks[8], d_model, d_model), "fc_gamma_b1": lin_b(ks[9], d_model, d_model),
        "fc_gamma_w2": lin_w(ks[10], d_model, d_model), "fc_gamma_b2": lin_b(ks[11], d_model, d_model),
        "w_qs": lin_w(ks[12], d_points, d_model),
        "w_ks": lin_w(ks[13], d_model, d_model),
        "w_vs": lin_w(ks[14], d_model, d_model),
    }
    return p


def _knn_and_gather(xyz, features, query_xyz, K):
    # pytorch3d.knn_points equivalent: squared distance + top-k (nearest first).
    # TODO(synk): top-k neighbor selection + gather has no clean Pallas TPU equivalent; kept in plain JAX glue.
    d2 = (jnp.sum(query_xyz * query_xyz, axis=-1, keepdims=True)
          + jnp.sum(xyz * xyz, axis=-1)[:, None, :]
          - 2.0 * jnp.einsum('bmd,bnd->bmn', query_xyz, xyz))
    _, idx = jax.lax.top_k(-d2, K)                         # (B, M, K)
    gather = jax.vmap(lambda t, i: t[i])
    local_xyz = gather(xyz, idx)                           # (B, M, K, 3)
    knn_feat = gather(features, idx)                       # (B, M, K, d_points)
    return local_xyz, knn_feat


def _round_up(a, b):
    return -(-a // b) * b


def _fold_weights(params, mm_dtype):
    """Offline algebraic weight folding (one-time cost, outside the kernel)."""
    f32 = jnp.float32
    Dp, Dm = params["fc1_w"].shape
    wg1 = params["fc_gamma_w1"]
    fc1k = params["fc1_w"] @ params["w_ks"]                 # fc1 folded into w_ks
    fc1v = params["fc1_w"] @ params["w_vs"]                 # fc1 folded into w_vs
    z3 = jnp.zeros((3, Dm), f32)
    zp = jnp.zeros((Dp, Dm), f32)
    # slab weight -> [ v | k@wg1 | fc_delta layer-1 ] over [knn_feat | rel_xyz] lanes
    wslab = jnp.concatenate(
        [jnp.concatenate([fc1v, z3], axis=0),
         jnp.concatenate([fc1k @ wg1, z3], axis=0),
         jnp.concatenate([zp, params["fc_delta_w1"]], axis=0)], axis=1)       # (Dp+3, 3*Dm)
    bslab = jnp.concatenate(
        [params["fc1_b"] @ params["w_vs"],
         params["fc1_b"] @ params["w_ks"] @ wg1,
         params["fc_delta_b1"]], axis=1)                                      # (1, 3*Dm)
    # [ pos | pos@wg1 ] from relu(fc_delta layer-1) in a single matmul
    wpos = jnp.concatenate([params["fc_delta_w2"], params["fc_delta_w2"] @ wg1], axis=1)
    bpos = jnp.concatenate([params["fc_delta_b2"], params["fc_delta_b2"] @ wg1], axis=1)
    inv = 1.0 / math.sqrt(Dm)
    w = dict(
        wqg=params["w_qs"] @ wg1,                        # q path: w_qs @ fc_gamma_w1
        wslab=wslab, bslab=bslab,
        wpos=wpos, bpos=bpos,
        bg1=params["fc_gamma_b1"],
        wg2s=params["fc_gamma_w2"] * inv, bg2s=params["fc_gamma_b2"] * inv,   # 1/sqrt(Dm) folded
        w2=params["fc2_w"], b2=params["fc2_b"])
    # matmul operands in mm_dtype (bf16 on v6e/v7x); biases stay f32 (added to f32 acc)
    for name in ("wqg", "wslab", "wpos", "wg2s", "w2"):
        w[name] = w[name].astype(mm_dtype)
    return w


def pt_transformer_block_cross_attn(xyz, features, query, params, *, k,
                                    tm=256, mm_dtype=jnp.float32):
    B, N, _ = xyz.shape
    M = query.shape[1]
    Dp = features.shape[-1]
    Dm = params["w_qs"].shape[1]
    K = k
    f32 = jnp.float32

    query_xyz = query[:, :, :3]
    query_f = query[:, :, 3:]

    local_xyz, knn_feat = _knn_and_gather(xyz, features, query_xyz, K)
    rel_xyz = query_xyz[:, :, None, :] - local_xyz          # (B, M, K, 3)

    BM = B * M
    # Lane-pack rel xyz onto the gathered features: one (BM, K, Dp+3) slab.
    slab = jnp.concatenate([knn_feat, rel_xyz], axis=-1).reshape(BM, K, Dp + 3).astype(mm_dtype)
    qf = query_f.reshape(BM, Dp).astype(f32)

    # Row tile: as large as requested, clamped to the problem, rows padded so every
    # grid step is full-width, and split so the "parallel" grid has >= 2 steps
    # (keeps both v7x TensorCores / megacore pipelining busy).
    tm_eff = min(_round_up(tm, 8), _round_up(BM, 8))
    if BM >= 16:
        tm_eff = min(tm_eff, _round_up(-(-BM // 2), 8))
    BM_pad = _round_up(BM, tm_eff)
    if BM_pad != BM:
        slab = jnp.pad(slab, ((0, BM_pad - BM), (0, 0), (0, 0)))
        qf = jnp.pad(qf, ((0, BM_pad - BM), (0, 0)))

    w = _fold_weights(params, mm_dtype)
    weight_args = (w["wqg"], w["wslab"], w["bslab"], w["wpos"], w["bpos"],
                   w["bg1"], w["wg2s"], w["bg2s"], w["w2"], w["b2"])
    weight_specs = [pl.BlockSpec(a.shape, lambda i: (0, 0)) for a in weight_args]

    # VMEM budget: Dm(=32)-wide intermediates live lane-padded to 128 lanes, so allow
    # ~128 KiB per query row. Default tm=256 -> 32 MiB (safe on v7x's 64 MiB VMEM);
    # larger tiles on v5e/v6e (128 MiB physical VMEM) scale up to a 96 MiB cap.
    vmem_limit = int(min(max(tm_eff * 128 * 1024, 32 << 20), 96 << 20))

    grid = (BM_pad // tm_eff,)
    out, attn = pl.pallas_call(
        _cross_attn_kernel,
        out_shape=(jax.ShapeDtypeStruct((BM_pad, Dp), f32),
                   jax.ShapeDtypeStruct((BM_pad, K * Dm), f32)),
        grid_spec=pltpu.PrefetchScalarGridSpec(
            num_scalar_prefetch=0,
            grid=grid,
            in_specs=[pl.BlockSpec((tm_eff, K, Dp + 3), lambda i: (i, 0, 0)),
                      pl.BlockSpec((tm_eff, Dp), lambda i: (i, 0))] + weight_specs,
            out_specs=(pl.BlockSpec((tm_eff, Dp), lambda i: (i, 0)),
                       pl.BlockSpec((tm_eff, K * Dm), lambda i: (i, 0))),
        ),
        compiler_params=pltpu.CompilerParams(
            dimension_semantics=("parallel",),
            vmem_limit_bytes=vmem_limit),
    )(slab, qf, *weight_args)

    out = out[:BM].reshape(B, M, Dp)
    attn = attn[:BM].reshape(B, M, K, Dm)
    return out, attn


def reference_forward(xyz, features, query, params, *, k):
    """Pure-JAX mirror of the PyTorch _forward (eval path) for verification."""
    query_xyz = query[:, :, :3]
    query_f = query[:, :, 3:]
    local_xyz, knn_feat = _knn_and_gather(xyz, features, query_xyz, k)

    def lin(x, w, b=None):
        y = jnp.einsum('...i,io->...o', x, w)
        return y if b is None else y + b[0]

    pre = query_f
    q = lin(query_f, params["w_qs"])
    x = lin(knn_feat, params["fc1_w"], params["fc1_b"])
    kk = lin(x, params["w_ks"])
    vv = lin(x, params["w_vs"])
    rel = query_xyz[:, :, None, :] - local_xyz
    pos = lin(jax.nn.relu(lin(rel, params["fc_delta_w1"], params["fc_delta_b1"])),
              params["fc_delta_w2"], params["fc_delta_b2"])
    g_in = q[:, :, None, :] - kk + pos
    attn = lin(jax.nn.relu(lin(g_in, params["fc_gamma_w1"], params["fc_gamma_b1"])),
               params["fc_gamma_w2"], params["fc_gamma_b2"])
    attn = jax.nn.softmax(attn / math.sqrt(kk.shape[-1]), axis=-2)
    res = jnp.einsum('bmnf,bmnf->bmf', attn, vv + pos)
    res = lin(res, params["fc2_w"], params["fc2_b"]) + pre
    return res, attn


if __name__ == "__main__":
    B, N, M, K = 2, 64, 100, 8
    d_points, d_model = 16, 32

    key = jax.random.PRNGKey(0)
    k_xyz, k_feat, k_qxyz, k_qf, k_par = jax.random.split(key, 5)

    xyz = jax.random.normal(k_xyz, (B, N, 3), jnp.float32)
    features = jax.random.normal(k_feat, (B, N, d_points), jnp.float32)
    query_xyz = jax.random.normal(k_qxyz, (B, M, 3), jnp.float32)
    query_f = jax.random.normal(k_qf, (B, M, d_points), jnp.float32)
    query = jnp.concatenate([query_xyz, query_f], axis=-1)       # (B, M, 3 + d_points)

    params = init_params(k_par, d_points, d_model)
    res_ref, attn_ref = reference_forward(xyz, features, query, params, k=K)

    # f32 MXU operands: strict 1e-4 check against the pure-JAX reference.
    res, attn = pt_transformer_block_cross_attn(xyz, features, query, params, k=K)
    res = jax.block_until_ready(res)
    attn = jax.block_until_ready(attn)
    assert res.shape == (B, M, d_points) and attn.shape == (B, M, K, d_model)
    assert jnp.allclose(res, res_ref, atol=1e-4, rtol=1e-4), "res mismatch vs reference"
    assert jnp.allclose(attn, attn_ref, atol=1e-4, rtol=1e-4), "attn mismatch vs reference"

    # bf16 MXU operands (recommended on v6e/v7x): loose statistical check only
    # (bf16 rounding exceeds the 1e-4 tolerance by design).
    res_bf, attn_bf = pt_transformer_block_cross_attn(
        xyz, features, query, params, k=K, mm_dtype=jnp.bfloat16)
    res_bf = jax.block_until_ready(res_bf)
    attn_bf = jax.block_until_ready(attn_bf)
    assert bool(jnp.all(jnp.isfinite(res_bf))) and bool(jnp.all(jnp.isfinite(attn_bf)))
    assert float(jnp.mean(jnp.abs(res_bf - res_ref))) < 0.1, "bf16 path diverged"

    print("KERNEL_OK")
</pallas_src>

<mosaic_0001>
module attributes {stable_mosaic.version = 11 : i64} {
  func.func @_cross_attn_kernel(%arg0: i32, %arg1: memref<104x8x19xf32, #tpu.memory_space<vmem>>, %arg2: memref<104x16xf32, #tpu.memory_space<vmem>>, %arg3: memref<16x32xf32, #tpu.memory_space<vmem>>, %arg4: memref<19x96xf32, #tpu.memory_space<vmem>>, %arg5: memref<1x96xf32, #tpu.memory_space<vmem>>, %arg6: memref<32x64xf32, #tpu.memory_space<vmem>>, %arg7: memref<1x64xf32, #tpu.memory_space<vmem>>, %arg8: memref<1x32xf32, #tpu.memory_space<vmem>>, %arg9: memref<32x32xf32, #tpu.memory_space<vmem>>, %arg10: memref<1x32xf32, #tpu.memory_space<vmem>>, %arg11: memref<32x16xf32, #tpu.memory_space<vmem>>, %arg12: memref<1x16xf32, #tpu.memory_space<vmem>>, %arg13: memref<104x16xf32, #tpu.memory_space<vmem>>, %arg14: memref<104x256xf32, #tpu.memory_space<vmem>>) attributes {dimension_semantics = [#tpu.dimension_semantics<parallel>], iteration_bounds = array<i64: 2>, scalar_prefetch = 0 : i64, scratch_operands = 0 : i64, tpu.core_type = #tpu.core_type<tc>, window_params = [{transform_indices = @transform_0, window_bounds = array<i64: 104, 8, 19>}, {transform_indices = @transform_1, window_bounds = array<i64: 104, 16>}, {pipeline_mode = #tpu.pipeline_mode<synchronous>, transform_indices = @transform_2, window_bounds = array<i64: 16, 32>}, {pipeline_mode = #tpu.pipeline_mode<synchronous>, transform_indices = @transform_3, window_bounds = array<i64: 19, 96>}, {pipeline_mode = #tpu.pipeline_mode<synchronous>, transform_indices = @transform_4, window_bounds = array<i64: 1, 96>}, {pipeline_mode = #tpu.pipeline_mode<synchronous>, transform_indices = @transform_5, window_bounds = array<i64: 32, 64>}, {pipeline_mode = #tpu.pipeline_mode<synchronous>, transform_indices = @transform_6, window_bounds = array<i64: 1, 64>}, {pipeline_mode = #tpu.pipeline_mode<synchronous>, transform_indices = @transform_7, window_bounds = array<i64: 1, 32>}, {pipeline_mode = #tpu.pipeline_mode<synchronous>, transform_indices = @transform_8, window_bounds = array<i64: 32, 32>}, {pipeline_mode = #tpu.pipeline_mode<synchronous>, transform_indices = @transform_9, window_bounds = array<i64: 1, 32>}, {pipeline_mode = #tpu.pipeline_mode<synchronous>, transform_indices = @transform_10, window_bounds = array<i64: 32, 16>}, {pipeline_mode = #tpu.pipeline_mode<synchronous>, transform_indices = @transform_11, window_bounds = array<i64: 1, 16>}, {transform_indices = @transform_12, window_bounds = array<i64: 104, 16>}, {transform_indices = @transform_13, window_bounds = array<i64: 104, 256>}]} {
    %c0 = arith.constant 0 : index
    %c0_0 = arith.constant 0 : index
    %0 = vector.load %arg2[%c0, %c0_0] : memref<104x16xf32, #tpu.memory_space<vmem>>, vector<104x16xf32>
    %c0_1 = arith.constant 0 : index
    %c0_2 = arith.constant 0 : index
    %1 = vector.load %arg3[%c0_1, %c0_2] : memref<16x32xf32, #tpu.memory_space<vmem>>, vector<16x32xf32>
    %cst = arith.constant dense<0.000000e+00> : vector<104x32xf32>
    %2 = tpu.matmul %0, %1, %cst {dimension_numbers = #tpu.dot_dimension_numbers<[1], [0], [0], [1], [0, 0, 1, 1], [], []>} : vector<104x16xf32>, vector<16x32xf32>, vector<104x32xf32> -> vector<104x32xf32>
    %c0_3 = arith.constant 0 : index
    %c0_4 = arith.constant 0 : index
    %c0_5 = arith.constant 0 : index
    %3 = vector.load %arg1[%c0_3, %c0_4, %c0_5] : memref<104x8x19xf32, #tpu.memory_space<vmem>>, vector<104x8x19xf32>
    %4 = vector.shape_cast %3 : vector<104x8x19xf32> to vector<832x19xf32>
    %c0_6 = arith.constant 0 : index
    %c0_7 = arith.constant 0 : index
    %5 = vector.load %arg4[%c0_6, %c0_7] : memref<19x96xf32, #tpu.memory_space<vmem>>, vector<19x96xf32>
    %cst_8 = arith.constant dense<0.000000e+00> : vector<832x96xf32>
    %6 = tpu.matmul %4, %5, %cst_8 {dimension_numbers = #tpu.dot_dimension_numbers<[1], [0], [0], [1], [0, 0, 1, 1], [], []>} : vector<832x19xf32>, vector<19x96xf32>, vector<832x96xf32> -> vector<832x96xf32>
    %c0_9 = arith.constant 0 : index
    %c0_10 = arith.constant 0 : index
    %7 = vector.load %arg5[%c0_9, %c0_10] : memref<1x96xf32, #tpu.memory_space<vmem>>, vector<1x96xf32>
    %8 = vector.broadcast %7 : vector<1x96xf32> to vector<832x96xf32>
    %9 = arith.addf %6, %8 : vector<832x96xf32>
    %10 = vector.extract_strided_slice %9 {offsets = [0, 0], sizes = [832, 32], strides = [1, 1]} : vector<832x96xf32> to vector<832x32xf32>
    %11 = vector.extract_strided_slice %9 {offsets = [0, 32], sizes = [832, 32], strides = [1, 1]} : vector<832x96xf32> to vector<832x32xf32>
    %12 = vector.extract_strided_slice %9 {offsets = [0, 64], sizes = [832, 32], strides = [1, 1]} : vector<832x96xf32> to vector<832x32xf32>
    %cst_11 = arith.constant 0.000000e+00 : f32
    %13 = vector.broadcast %cst_11 : f32 to vector<832x32xf32>
    %14 = arith.maximumf %12, %13 : vector<832x32xf32>
    %c0_12 = arith.constant 0 : index
    %c0_13 = arith.constant 0 : index
    %15 = vector.load %arg6[%c0_12, %c0_13] : memref<32x64xf32, #tpu.memory_space<vmem>>, vector<32x64xf32>
    %cst_14 = arith.constant dense<0.000000e+00> : vector<832x64xf32>
    %16 = tpu.matmul %14, %15, %cst_14 {dimension_numbers = #tpu.dot_dimension_numbers<[1], [0], [0], [1], [0, 0, 1, 1], [], []>} : vector<832x32xf32>, vector<32x64xf32>, vector<832x64xf32> -> vector<832x64xf32>
    %c0_15 = arith.constant 0 : index
    %c0_16 = arith.constant 0 : index
    %17 = vector.load %arg7[%c0_15, %c0_16] : memref<1x64xf32, #tpu.memory_space<vmem>>, vector<1x64xf32>
    %18 = vector.broadcast %17 : vector<1x64xf32> to vector<832x64xf32>
    %19 = arith.addf %16, %18 : vector<832x64xf32>
    %20 = vector.extract_strided_slice %19 {offsets = [0, 0], sizes = [832, 32], strides = [1, 1]} : vector<832x64xf32> to vector<832x32xf32>
    %21 = vector.extract_strided_slice %19 {offsets = [0, 32], sizes = [832, 32], strides = [1, 1]} : vector<832x64xf32> to vector<832x32xf32>
    %22 = vector.shape_cast %2 : vector<104x32xf32> to vector<104x1x32xf32>
    %23 = arith.subf %21, %11 : vector<832x32xf32>
    %c0_17 = arith.constant 0 : index
    %c0_18 = arith.constant 0 : index
    %24 = vector.load %arg8[%c0_17, %c0_18] : memref<1x32xf32, #tpu.memory_space<vmem>>, vector<1x32xf32>
    %25 = vector.broadcast %24 : vector<1x32xf32> to vector<832x32xf32>
    %26 = arith.addf %23, %25 : vector<832x32xf32>
    %27 = vector.shape_cast %26 : vector<832x32xf32> to vector<104x8x32xf32>
    %28 = vector.broadcast %22 : vector<104x1x32xf32> to vector<104x8x32xf32>
    %29 = arith.addf %28, %27 : vector<104x8x32xf32>
    %30 = vector.shape_cast %29 : vector<104x8x32xf32> to vector<832x32xf32>
    %cst_19 = arith.constant 0.000000e+00 : f32
    %31 = vector.broadcast %cst_19 : f32 to vector<832x32xf32>
    %32 = arith.maximumf %30, %31 : vector<832x32xf32>
    %c0_20 = arith.constant 0 : index
    %c0_21 = arith.constant 0 : index
    %33 = vector.load %arg9[%c0_20, %c0_21] : memref<32x32xf32, #tpu.memory_space<vmem>>, vector<32x32xf32>
    %cst_22 = arith.constant dense<0.000000e+00> : vector<832x32xf32>
    %34 = tpu.matmul %32, %33, %cst_22 {dimension_numbers = #tpu.dot_dimension_numbers<[1], [0], [0], [1], [0, 0, 1, 1], [], []>} : vector<832x32xf32>, vector<32x32xf32>, vector<832x32xf32> -> vector<832x32xf32>
    %c0_23 = arith.constant 0 : index
    %c0_24 = arith.constant 0 : index
    %35 = vector.load %arg10[%c0_23, %c0_24] : memref<1x32xf32, #tpu.memory_space<vmem>>, vector<1x32xf32>
    %36 = vector.broadcast %35 : vector<1x32xf32> to vector<832x32xf32>
    %37 = arith.addf %34, %36 : vector<832x32xf32>
    %38 = vector.shape_cast %37 : vector<832x32xf32> to vector<104x8x32xf32>
    %cst_25 = arith.constant dense<0xFF800000> : vector<104x32xf32>
    %39 = vector.multi_reduction <maximumf>, %38, %cst_25 [1] : vector<104x8x32xf32> to vector<104x32xf32>
    %40 = vector.shape_cast %39 : vector<104x32xf32> to vector<104x1x32xf32>
    %41 = vector.broadcast %40 : vector<104x1x32xf32> to vector<104x8x32xf32>
    %42 = arith.subf %38, %41 : vector<104x8x32xf32>
    %43 = math.exp %42 : vector<104x8x32xf32>
    %cst_26 = arith.constant dense<0.000000e+00> : vector<104x32xf32>
    %44 = vector.multi_reduction <add>, %43, %cst_26 [1] : vector<104x8x32xf32> to vector<104x32xf32>
    %45 = vector.shape_cast %44 : vector<104x32xf32> to vector<104x1x32xf32>
    %46 = tpu.reciprocal %45 : vector<104x1x32xf32> -> vector<104x1x32xf32>
    %47 = vector.broadcast %46 : vector<104x1x32xf32> to vector<104x8x32xf32>
    %48 = arith.mulf %43, %47 : vector<104x8x32xf32>
    %49 = arith.addf %10, %20 : vector<832x32xf32>
    %50 = vector.shape_cast %49 : vector<832x32xf32> to vector<104x8x32xf32>
    %51 = arith.mulf %48, %50 : vector<104x8x32xf32>
    %cst_27 = arith.constant dense<0.000000e+00> : vector<104x32xf32>
    %52 = vector.multi_reduction <add>, %51, %cst_27 [1] : vector<104x8x32xf32> to vector<104x32xf32>
    %c0_28 = arith.constant 0 : index
    %c0_29 = arith.constant 0 : index
    %53 = vector.load %arg11[%c0_28, %c0_29] : memref<32x16xf32, #tpu.memory_space<vmem>>, vector<32x16xf32>
    %cst_30 = arith.constant dense<0.000000e+00> : vector<104x16xf32>
    %54 = tpu.matmul %52, %53, %cst_30 {dimension_numbers = #tpu.dot_dimension_numbers<[1], [0], [0], [1], [0, 0, 1, 1], [], []>} : vector<104x32xf32>, vector<32x16xf32>, vector<104x16xf32> -> vector<104x16xf32>
    %c0_31 = arith.constant 0 : index
    %c0_32 = arith.constant 0 : index
    %55 = vector.load %arg12[%c0_31, %c0_32] : memref<1x16xf32, #tpu.memory_space<vmem>>, vector<1x16xf32>
    %56 = vector.broadcast %55 : vector<1x16xf32> to vector<104x16xf32>
    %57 = arith.addf %54, %56 : vector<104x16xf32>
    %58 = arith.addf %57, %0 : vector<104x16xf32>
    %c0_33 = arith.constant 0 : index
    %c0_34 = arith.constant 0 : index
    %59 = vector.load %arg13[%c0_33, %c0_34] : memref<104x16xf32, #tpu.memory_space<vmem>>, vector<104x16xf32>
    tpu.vector_store %arg13[%c0_33, %c0_34], %58 {strides = array<i32>} : memref<104x16xf32, #tpu.memory_space<vmem>>, vector<104x16xf32>,
    %60 = vector.shape_cast %48 : vector<104x8x32xf32> to vector<104x256xf32>
    %c0_35 = arith.constant 0 : index
    %c0_36 = arith.constant 0 : index
    %61 = vector.load %arg14[%c0_35, %c0_36] : memref<104x256xf32, #tpu.memory_space<vmem>>, vector<104x256xf32>
    tpu.vector_store %arg14[%c0_35, %c0_36], %60 {strides = array<i32>} : memref<104x256xf32, #tpu.memory_space<vmem>>, vector<104x256xf32>,
    return
  }
  func.func @transform_0(%arg0: i32) -> (i32, i32, i32) {
    %c0_i32 = arith.constant 0 : i32
    %c0_i32_0 = arith.constant 0 : i32
    %c0_i32_1 = arith.constant 0 : i32
    return %arg0, %c0_i32, %c0_i32_0 : i32, i32, i32
  }
  func.func @transform_1(%arg0: i32) -> (i32, i32) {
    %c0_i32 = arith.constant 0 : i32
    %c0_i32_0 = arith.constant 0 : i32
    return %arg0, %c0_i32 : i32, i32
  }
  func.func @transform_2(%arg0: i32) -> (i32, i32) {
    %c0_i32 = arith.constant 0 : i32
    %c0_i32_0 = arith.constant 0 : i32
    %c0_i32_1 = arith.constant 0 : i32
    return %c0_i32, %c0_i32_0 : i32, i32
  }
  func.func @transform_3(%arg0: i32) -> (i32, i32) {
    %c0_i32 = arith.constant 0 : i32
    %c0_i32_0 = arith.constant 0 : i32
    %c0_i32_1 = arith.constant 0 : i32
    return %c0_i32, %c0_i32_0 : i32, i32
  }
  func.func @transform_4(%arg0: i32) -> (i32, i32) {
    %c0_i32 = arith.constant 0 : i32
    %c0_i32_0 = arith.constant 0 : i32
    %c0_i32_1 = arith.constant 0 : i32
    return %c0_i32, %c0_i32_0 : i32, i32
  }
  func.func @transform_5(%arg0: i32) -> (i32, i32) {
    %c0_i32 = arith.constant 0 : i32
    %c0_i32_0 = arith.constant 0 : i32
    %c0_i32_1 = arith.constant 0 : i32
    return %c0_i32, %c0_i32_0 : i32, i32
  }
  func.func @transform_6(%arg0: i32) -> (i32, i32) {
    %c0_i32 = arith.constant 0 : i32
    %c0_i32_0 = arith.constant 0 : i32
    %c0_i32_1 = arith.constant 0 : i32
    return %c0_i32, %c0_i32_0 : i32, i32
  }
  func.func @transform_7(%arg0: i32) -> (i32, i32) {
    %c0_i32 = arith.constant 0 : i32
    %c0_i32_0 = arith.constant 0 : i32
    %c0_i32_1 = arith.constant 0 : i32
    return %c0_i32, %c0_i32_0 : i32, i32
  }
  func.func @transform_8(%arg0: i32) -> (i32, i32) {
    %c0_i32 = arith.constant 0 : i32
    %c0_i32_0 = arith.constant 0 : i32
    %c0_i32_1 = arith.constant 0 : i32
    return %c0_i32, %c0_i32_0 : i32, i32
  }
  func.func @transform_9(%arg0: i32) -> (i32, i32) {
    %c0_i32 = arith.constant 0 : i32
    %c0_i32_0 = arith.constant 0 : i32
    %c0_i32_1 = arith.constant 0 : i32
    return %c0_i32, %c0_i32_0 : i32, i32
  }
  func.func @transform_10(%arg0: i32) -> (i32, i32) {
    %c0_i32 = arith.constant 0 : i32
    %c0_i32_0 = arith.constant 0 : i32
    %c0_i32_1 = arith.constant 0 : i32
    return %c0_i32, %c0_i32_0 : i32, i32
  }
  func.func @transform_11(%arg0: i32) -> (i32, i32) {
    %c0_i32 = arith.constant 0 : i32
    %c0_i32_0 = arith.constant 0 : i32
    %c0_i32_1 = arith.constant 0 : i32
    return %c0_i32, %c0_i32_0 : i32, i32
  }
  func.func @transform_12(%arg0: i32) -> (i32, i32) {
    %c0_i32 = arith.constant 0 : i32
    %c0_i32_0 = arith.constant 0 : i32
    return %arg0, %c0_i32 : i32, i32
  }
  func.func @transform_13(%arg0: i32) -> (i32, i32) {
    %c0_i32 = arith.constant 0 : i32
    %c0_i32_0 = arith.constant 0 : i32
    return %arg0, %c0_i32 : i32, i32
  }
}

</mosaic_0001>

<bundles_post_ra>
// kernel: tpu_custom_call.1
= control target key start
LH: loop header
LB: loop body
LE: loop exit
PB: predicated region body
PF: predicated region fallthrough
CT: control target
= control target key end

     0   :  { %s20171_s0 = inlined_call_operand.vmem [shape: f32[208,8,19], index: 0, kind: input, shape index: {}]   ;;  %s20172_s1 = inlined_call_operand.vmem [shape: f32[208,16], index: 1, kind: input, shape index: {}]   ;;  %s20173_s2 = inlined_call_operand.vmem [shape: f32[16,32], index: 2, kind: input, shape index: {}]   ;;  %s20174_s3 = inlined_call_operand.vmem [shape: f32[19,96], index: 3, kind: input, shape index: {}]   ;;  %s20175_s4 = inlined_call_operand.vmem [shape: f32[1,96], index: 4, kind: input, shape index: {}]   ;;  %s20176_s5 = inlined_call_operand.vmem [shape: f32[32,64], index: 5, kind: input, shape index: {}]   ;;  %s20177_s6 = inlined_call_operand.vmem [shape: f32[1,64], index: 6, kind: input, shape index: {}]   ;;  %s20178_s7 = inlined_call_operand.vmem [shape: f32[1,32], index: 7, kind: input, shape index: {}]   ;;  %s20179_s8 = inlined_call_operand.vmem [shape: f32[32,32], index: 8, kind: input, shape index: {}]   ;;  %s20180_s9 = inlined_call_operand.vmem [shape: f32[1,32], index: 9, kind: input, shape index: {}]   ;;  %s20181_s10 = inlined_call_operand.vmem [shape: f32[32,16], index: 10, kind: input, shape index: {}]   ;;  %s20182_s11 = inlined_call_operand.vmem [shape: f32[1,16], index: 11, kind: input, shape index: {}]   ;;  %s20183_s12 = inlined_call_operand.vmem [shape: f32[208,16], index: 12, kind: output, shape index: {0}]   ;;  %s20184_s13 = inlined_call_operand.hbm [shape: f32[208,256], index: 13, kind: output, shape index: {1}]  }
   0x1   :  { %20704 = sst [smem:[#allocation186_spill]] %s20171_s0 }
   0x2   :  { %20705 = sst [smem:[#allocation187_spill]] %s20172_s1 }
   0x3   :  { %20706 = sst [smem:[#allocation188_spill]] %s20173_s2 }
   0x4   :  { %20707 = sst [smem:[#allocation189_spill]] %s20174_s3 }
   0x5   :  { %19 = vsyncpa [#allocation3], 0 }
   0x6   :  { %21 = vsyncpa [#allocation3 + $0x1], 0  ;;  %s13394_s25 = smov 0   ;;  %s13396_s26 = smov 0  }
   0x7   :  { %s13398_s27 = smov 0   ;;  %s13400_s28 = smov 0  }
   0x8 LB: > { %s13415_s29 = sadd.s32 4294967295, %s13310_s28   ;;  %s11435_s30 = sadd.s32 4294967294, %s13310_s28   ;;  %s13310_s28 = sphi %s13400_s28, %s21797_s28   ;;  %s13306_s27 = sphi %s13398_s27, %s21796_s27   ;;  %s13302_s26 = sphi %s13396_s26, %s21795_s26   ;;  %s13298_s25 = sphi %s13394_s25, %s21794_s25  }
   0x9   : > { %s13419_s14 = sadd.s32 1, %s13310_s28   ;;  %s322_s15 = sadd.s32 1, %s13306_s27 }
   0xa   : > { %s319_s16 = ssub.s32 %s13310_s28, %s13419_s14  ;;  %p332_p0 = scmp.ne.s32.totalorder %s13306_s27, %s13302_s26 }
   0xb   : > { %p320_p1 = scmp.eq.s32.totalorder %s319_s16, 0  ;;  %p333_p2 = scmp.eq.s32.totalorder %s13415_s29, 1 }
   0xc   : > { %p338_p3 = scmp.ne.s32.totalorder %s13302_s26, %s13298_s25  ;;  %p339_p4 = scmp.eq.s32.totalorder %s11435_s30, 1 }
   0xd   : > { %s13430_s17 = scalar_select %p320_p1, %s13306_s27, %s322_s15  }
   0xe   : > { %p13432_p5 = por %p333_p2, %p332_p0  ;;  %p13436_p6 = por %p339_p4, %p338_p3 }
   0xf   : > { %p11438_p7 = scmp.ge.s32.totalorder %s13310_s28, 1  ;;  %p405_p8 = scmp.lt.s32.totalorder %s13310_s28, 3 }
  0x11   : > { %p406_p9 = pnand %p11438_p7, %p405_p8 }
  0x13   : > { %409 = sbr.rel (%p406_p9) target bundleno = 2130 (0x852), region = 68 }
  0x1a   : > { %s20710_s2 = sld [smem:[#allocation188_spill]]  ;;  %s20711_s3 = sld [smem:[#allocation189_spill]]  ;;  %v20185_v3 = vmov 0.0|0.0   ;;  %vm13313_vm0 = vmmov 0   ;;  %v20186_v5 = vmov 0.0   ;;  %vm1090_vm1 = vcmask 1042432  }
  0x1b   : > { %12728 = vmatprep.subr.bf16.mxu0 %v20185_v3  ;;  %12152 = vmatprep.mubr.msk.f32.mxu0 %vm13313_vm0, %v20186_v5  ;;  %s465_s20 = smul.u32 13, %s13415_s29  ;;  %vm493_vm2 = vcmask 130048   ;;  %s20712_s1 = sld [smem:[#allocation187_spill]]  ;;  %vm777_vm3 = vcmask 154624   ;;  %vm2106_vm4 = vcmask 261120   ;;  %vm8846_vm5 = vcmask 1041409  }
  0x1c   : > { %s459_s23 = smul.u32 104, %s13415_s29  ;;  %s20713_s0 = sld [smem:[#allocation186_spill]]  ;;  %vm8848_vm6 = vcmask 1042434   ;;  %vm8850_vm7 = vcmask 1043459   ;;  %vm8852_vm8 = vcmask 1044484   ;;  %vm8854_vm9 = vcmask 1045509  }
  0x1d   : > { %p466_p10 = scmp.lt.s32.totalorder %s465_s20, 25  ;;  %s13316_s30 = smov 32   ;;  %vm8856_vm10 = vcmask 1046534   ;;  %vm8858_vm11 = vcmask 1047559   ;;  %vm11219_vm12 = vcmask 523264   ;;  %vm11233_vm13 = vcmask 785408  }
  0x1e   : > { %p460_p11 = scmp.lt.s32.totalorder %s459_s23, 207  ;;  %s21364_s22 = smov 96  }
  0x1f   : > { %s21799_s20 = smov (!%p466_p10, %s465_s20), 25 }
  0x20   : > { %v491_v0 = vld [vmem:[%s20710_s2] sm:$0xff]  ;;  %v492_v1 = vld [vmem:[%s20710_s2 + $0x8] sm:$0xff]  ;;  %v769_v8 = vld [vmem:[%s20711_s3 + $0x10] sm:$0x7]  ;;  %s20303_s24 = sshll.u32 %s21799_s20, 3  ;;  %s21801_s23 = smov (!%p460_p11, %s459_s23), 207 }
  0x21   : > { %v767_v2 = vld [vmem:[%s20711_s3] sm:$0xff]  ;;  %v12729_v4 = vpack.c.bf16 %v492_v1, %v491_v0  ;;  %v768_v6 = vld [vmem:[%s20711_s3 + $0x8] sm:$0xff]  ;;  %s13471_s16 = scalar_lea.vmem %s20712_s1, %s20303_s24  ;;  %s11439_s21 = sshll.u32 %s21801_s23, 3 }
  0x22   : > { %v12731_v7 = vpack.c.bf16 %v768_v6, %v767_v2  ;;  %v478_v9 = vld [vmem:[%s13471_s16] sm:$0xff]  ;;  %v479_v10 = vld [vmem:[%s13471_s16 + $0x8] sm:$0xff]  ;;  %v480_v11 = vld [vmem:[%s13471_s16 + $0x10] sm:$0xff]  ;;  %s13492_s15 = scalar_lea.vmem %s20713_s0, %s11439_s21  ;;  %s13315_s23 = smov 64  }
  0x23   : > { %12730 = vmatpush3.bf16.msra.mxu0 %v12729_v4  ;;  %v481_v12 = vld [vmem:[%s13471_s16 + $0x18] sm:$0xff]  ;;  %v689_v13 = vld [vmem:[%s13492_s15 + $0xd0] sm:$0xff]  ;;  %v691_v15 = vld [vmem:[%s13492_s15 + $0xe0] sm:$0xff]  ;;  %s20446_s21 = smov 96   ;;  %s20684_s24 = sand.u32 1, %s13302_s26  }
  0x24   : > { %12732 = vmatprep.subr.bf16.mxu0 %v12731_v7  ;;  %12757 = vmatprep.subr.bf16.mxu1 %v12731_v7  ;;  %v690_v14 = vld [vmem:[%s13492_s15 + $0xd8] sm:$0xff]  ;;  %v482_v16 = vld [vmem:[%s13471_s16 + $0x20] sm:$0xff]  ;;  %v692_v17 = vld [vmem:[%s13492_s15 + $0xe8] sm:$0xff] }
  0x25   : > { %12759 = vmatpush3.bf16.msra.mxu1 %v12731_v7  ;;  %12236 = vmatprep.mubr.msk.f32.mxu1 %vm777_vm3, %v689_v13  ;;  %v693_v18 = vld [vmem:[%s13492_s15 + $0xf0] sm:$0xff]  ;;  %v483_v19 = vld [vmem:[%s13471_s16 + $0x28] sm:$0xff]  ;;  %v694_v20 = vld [vmem:[%s13492_s15 + $0xf8] sm:$0xff] }
  0x26   : > { %12758 = vmatprep.subr.msk.mxu1 %vm1090_vm1, %v769_v8  ;;  %12153 = vmatmul.mubr.msk.f32.vlgmr.msra.gmra.mrb[0].mxu0 %vm493_vm2, %v478_v9  ;;  %v695_v21 = vld [vmem:[%s13492_s15 + $0x100] sm:$0xff]  ;;  %v484_v22 = vld [vmem:[%s13471_s16 + $0x30] sm:$0xff]  ;;  %v696_v23 = vld [vmem:[%s13492_s15 + $0x108] sm:$0xff] }
  0x27   : > { %12734 = vmatpush3.bf16.msra.mxu0 %v12731_v7  ;;  %12155 = vmatprep.mubr.msk.f32.mxu0 %vm13313_vm0, %v20186_v5  ;;  %v697_v24 = vld [vmem:[%s13492_s15 + $0x110] sm:$0xff]  ;;  %v485_v25 = vld [vmem:[%s13471_s16 + $0x38] sm:$0xff]  ;;  %v699_v27 = vld [vmem:[%s13492_s15 + $0x120] sm:$0xff] }
  0x28   : > { %12195 = vmatprep.subr.msk.mxu0 %vm1090_vm1, %v769_v8  ;;  %v698_v26 = vld [vmem:[%s13492_s15 + $0x118] sm:$0xff]  ;;  %v486_v28 = vld [vmem:[%s13471_s16 + $0x40] sm:$0xff]  ;;  %v700_v29 = vld [vmem:[%s13492_s15 + $0x128] sm:$0xff] }
  0x29   : > { %12760 = vmatpush3.msk.msra.mxu1 %vm1090_vm1, %v769_v8  ;;  %v701_v30 = vld [vmem:[%s13492_s15 + $0x130] sm:$0xff]  ;;  %v487_v31 = vld [vmem:[%s13471_s16 + $0x48] sm:$0xff]  ;;  %v702_v32 = vld [vmem:[%s13492_s15 + $0x138] sm:$0xff] }
  0x2a   : > { %12156 = vmatmul.mubr.msk.f32.gmra.mrb[2].mxu0 %vm493_vm2, %v479_v10  ;;  %12237 = vmatmul.mubr.msk.f32.vlgmr.msra.gmra.mrb[0].mxu1 %vm777_vm3, %v690_v14  ;;  %v703_v33 = vld [vmem:[%s13492_s15 + $0x140] sm:$0xff]  ;;  %v488_v34 = vld [vmem:[%s13471_s16 + $0x50] sm:$0xff]  ;;  %v704_v35 = vld [vmem:[%s13492_s15 + $0x148] sm:$0xff] }
  0x2b   : > { %12158 = vmatprep.mubr.msk.f32.mxu0 %vm13313_vm0, %v20186_v5  ;;  %12196 = vmatpush3.msk.msra.mxu0 %vm1090_vm1, %v769_v8  ;;  %v705_v36 = vld [vmem:[%s13492_s15 + $0x150] sm:$0xff]  ;;  %v489_v37 = vld [vmem:[%s13471_s16 + $0x58] sm:$0xff]  ;;  %v707_v39 = vld [vmem:[%s13492_s15 + $0x160] sm:$0xff] }
  0x2c   : > { %12239 = vmatprep.mubr.msk.f32.mxu1 %vm777_vm3, %v691_v15  ;;  %v706_v38 = vld [vmem:[%s13492_s15 + $0x158] sm:$0xff]  ;;  %v490_v40 = vld [vmem:[%s13471_s16 + $0x60] sm:$0xff]  ;;  %v708_v42 = vld [vmem:[%s13492_s15 + $0x168] sm:$0xff] }
  0x2d   : > { %v663_v41 = vld [vmem:[%s13492_s15] sm:$0xff]  ;;  %v709_v43 = vld [vmem:[%s13492_s15 + $0x170] sm:$0xff]  ;;  %v664_v44 = vld [vmem:[%s13492_s15 + $0x8] sm:$0xff] }
  0x2e   : > { %12159 = vmatmul.mubr.msk.f32.gmra.mrb[4].mxu0 %vm493_vm2, %v480_v11  ;;  %12240 = vmatmul.mubr.msk.f32.gmra.mrb[2].mxu1 %vm777_vm3, %v692_v17  ;;  %v665_v45 = vld [vmem:[%s13492_s15 + $0x10] sm:$0xff]  ;;  %v710_v46 = vld [vmem:[%s13492_s15 + $0x178] sm:$0xff]  ;;  %v711_v47 = vld [vmem:[%s13492_s15 + $0x180] sm:$0xff] }
  0x2f   : > { %12161 = vmatprep.mubr.msk.f32.mxu0 %vm13313_vm0, %v20186_v5  ;;  %12242 = vmatprep.mubr.msk.f32.mxu1 %vm777_vm3, %v693_v18  ;;  %v666_v48 = vld [vmem:[%s13492_s15 + $0x18] sm:$0xff]  ;;  %v667_v49 = vld [vmem:[%s13492_s15 + $0x20] sm:$0xff]  ;;  %v712_v50 = vld [vmem:[%s13492_s15 + $0x188] sm:$0xff] }
  0x30   : > { %v713_v51 = vld [vmem:[%s13492_s15 + $0x190] sm:$0xff]  ;;  %v668_v52 = vld [vmem:[%s13492_s15 + $0x28] sm:$0xff]  ;;  %v714_v54 = vld [vmem:[%s13492_s15 + $0x198] sm:$0xff] }
  0x31   : > { %v669_v53 = vld [vmem:[%s13492_s15 + $0x30] sm:$0xff]  ;;  %v715_v55 = vld [vmem:[%s13492_s15 + $0x1a0] sm:$0xff]  ;;  %v670_v56 = vld [vmem:[%s13492_s15 + $0x38] sm:$0xff] }
  0x32   : > { %12162 = vmatmul.mubr.msk.f32.gmra.mrb[6].mxu0 %vm493_vm2, %v481_v12  ;;  %12243 = vmatmul.mubr.msk.f32.gmra.mrb[4].mxu1 %vm777_vm3, %v694_v20  ;;  %v671_v57 = vld [vmem:[%s13492_s15 + $0x40] sm:$0xff]  ;;  %v716_v58 = vld [vmem:[%s13492_s15 + $0x1a8] sm:$0xff]  ;;  %v717_v59 = vld [vmem:[%s13492_s15 + $0x1b0] sm:$0xff] }
  0x33   : > { %12164 = vmatprep.mubr.msk.f32.mxu0 %vm13313_vm0, %v20186_v5  ;;  %12245 = vmatprep.mubr.msk.f32.mxu1 %vm777_vm3, %v695_v21  ;;  %v672_v60 = vld [vmem:[%s13492_s15 + $0x48] sm:$0xff]  ;;  %v673_v61 = vld [vmem:[%s13492_s15 + $0x50] sm:$0xff]  ;;  %v718_v62 = vld [vmem:[%s13492_s15 + $0x1b8] sm:$0xff] }
  0x34   : > { %v719_v63 = vld [vmem:[%s13492_s15 + $0x1c0] sm:$0xff]  ;;  %v674_v0 = vld [vmem:[%s13492_s15 + $0x58] sm:$0xff]  ;;  %v720_v2 = vld [vmem:[%s13492_s15 + $0x1c8] sm:$0xff] }
  0x35   : > { %v675_v1 = vld [vmem:[%s13492_s15 + $0x60] sm:$0xff]  ;;  %v721_v4 = vld [vmem:[%s13492_s15 + $0x1d0] sm:$0xff]  ;;  %v676_v6 = vld [vmem:[%s13492_s15 + $0x68] sm:$0xff] }
  0x36   : > { %12165 = vmatmul.mubr.msk.f32.gmra.mrb[8].mxu0 %vm493_vm2, %v482_v16  ;;  %12246 = vmatmul.mubr.msk.f32.gmra.mrb[6].mxu1 %vm777_vm3, %v696_v23  ;;  %v677_v7 = vld [vmem:[%s13492_s15 + $0x70] sm:$0xff]  ;;  %v722_v8 = vld [vmem:[%s13492_s15 + $0x1d8] sm:$0xff]  ;;  %v723_v9 = vld [vmem:[%s13492_s15 + $0x1e0] sm:$0xff] }
  0x37   : > { %12167 = vmatprep.mubr.msk.f32.mxu0 %vm13313_vm0, %v20186_v5  ;;  %12248 = vmatprep.mubr.msk.f32.mxu1 %vm777_vm3, %v697_v24  ;;  %v678_v10 = vld [vmem:[%s13492_s15 + $0x78] sm:$0xff]  ;;  %v679_v11 = vld [vmem:[%s13492_s15 + $0x80] sm:$0xff]  ;;  %v724_v12 = vld [vmem:[%s13492_s15 + $0x1e8] sm:$0xff] }
  0x38   : > { %v725_v13 = vld [vmem:[%s13492_s15 + $0x1f0] sm:$0xff]  ;;  %v680_v14 = vld [vmem:[%s13492_s15 + $0x88] sm:$0xff]  ;;  %v726_v16 = vld [vmem:[%s13492_s15 + $0x1f8] sm:$0xff] }
  0x39   : > { %v681_v15 = vld [vmem:[%s13492_s15 + $0x90] sm:$0xff]  ;;  %v727_v17 = vld [vmem:[%s13492_s15 + $0x200] sm:$0xff]  ;;  %v682_v18 = vld [vmem:[%s13492_s15 + $0x98] sm:$0xff] }
  0x3a   : > { %12168 = vmatmul.mubr.msk.f32.gmra.mrb[10].mxu0 %vm493_vm2, %v483_v19  ;;  %12249 = vmatmul.mubr.msk.f32.gmra.mrb[8].mxu1 %vm777_vm3, %v698_v26  ;;  %v683_v19 = vld [vmem:[%s13492_s15 + $0xa0] sm:$0xff]  ;;  %v728_v20 = vld [vmem:[%s13492_s15 + $0x208] sm:$0xff]  ;;  %v729_v21 = vld [vmem:[%s13492_s15 + $0x210] sm:$0xff] }
  0x3b   : > { %12170 = vmatprep.mubr.msk.f32.mxu0 %vm13313_vm0, %v20186_v5  ;;  %12251 = vmatprep.mubr.msk.f32.mxu1 %vm777_vm3, %v699_v27  ;;  %v685_v23 = vld [vmem:[%s13492_s15 + $0xb0] sm:$0xff]  ;;  %v730_v24 = vld [vmem:[%s13492_s15 + $0x218] sm:$0xff]  ;;  %v687_v27 = vld [vmem:[%s13492_s15 + $0xc0] sm:$0xff] }
  0x3c   : > { %v686_v26 = vld [vmem:[%s13492_s15 + $0xb8] sm:$0xff] }
  0x3e   : > { %12171 = vmatmul.mubr.msk.f32.gmra.mrb[12].mxu0 %vm493_vm2, %v484_v22  ;;  %12252 = vmatmul.mubr.msk.f32.gmra.mrb[10].mxu1 %vm777_vm3, %v700_v29  ;;  %v684_v22 = vld [vmem:[%s13492_s15 + $0xa8] sm:$0xff]  ;;  %v733_v29 = vld [vmem:[%s13492_s15 + $0x230] sm:$0xff] }
  0x3f   : > { %12173 = vmatprep.mubr.msk.f32.mxu0 %vm13313_vm0, %v20186_v5  ;;  %12254 = vmatprep.mubr.msk.f32.mxu1 %vm777_vm3, %v701_v30  ;;  %v688_v30 = vld [vmem:[%s13492_s15 + $0xc8] sm:$0xff] }
  0x42   : > { %12174 = vmatmul.mubr.msk.f32.gmra.mrb[14].mxu0 %vm493_vm2, %v485_v25  ;;  %12255 = vmatmul.mubr.msk.f32.gmra.mrb[12].mxu1 %vm777_vm3, %v702_v32  ;;  %v731_v25 = vld [vmem:[%s13492_s15 + $0x220] sm:$0xff] }
  0x43   : > { %12176 = vmatprep.mubr.msk.f32.mxu0 %vm13313_vm0, %v20186_v5  ;;  %12257 = vmatprep.mubr.msk.f32.mxu1 %vm777_vm3, %v703_v33  ;;  %v735_v32 = vld [vmem:[%s13492_s15 + $0x240] sm:$0xff]  ;;  %v736_v33 = vld [vmem:[%s13492_s15 + $0x248] sm:$0xff] }
  0x46   : > { %12177 = vmatmul.mubr.msk.f32.gmra.mrb[16].mxu0 %vm493_vm2, %v486_v28  ;;  %12258 = vmatmul.mubr.msk.f32.gmra.mrb[14].mxu1 %vm777_vm3, %v704_v35  ;;  %v732_v28 = vld [vmem:[%s13492_s15 + $0x228] sm:$0xff]  ;;  %v738_v35 = vld [vmem:[%s13492_s15 + $0x258] sm:$0xff] }
  0x47   : > { %12179 = vmatprep.mubr.msk.f32.mxu0 %vm13313_vm0, %v20186_v5  ;;  %12260 = vmatprep.mubr.msk.f32.mxu1 %vm777_vm3, %v705_v36  ;;  %v739_v36 = vld [vmem:[%s13492_s15 + $0x260] sm:$0xff] }
  0x4a   : > { %12180 = vmatmul.mubr.msk.f32.gmra.mrb[18].mxu0 %vm493_vm2, %v487_v31  ;;  %12261 = vmatmul.mubr.msk.f32.gmra.mrb[16].mxu1 %vm777_vm3, %v706_v38  ;;  %v734_v31 = vld [vmem:[%s13492_s15 + $0x238] sm:$0xff]  ;;  %v741_v38 = vld [vmem:[%s13492_s15 + $0x270] sm:$0xff] }
  0x4b   : > { %12182 = vmatprep.mubr.msk.f32.mxu0 %vm13313_vm0, %v20186_v5  ;;  %12263 = vmatprep.mubr.msk.f32.mxu1 %vm777_vm3, %v707_v39  ;;  %v742_v39 = vld [vmem:[%s13492_s15 + $0x278] sm:$0xff] }
  0x4e   : > { %12183 = vmatmul.mubr.msk.f32.gmra.mrb[20].mxu0 %vm493_vm2, %v488_v34  ;;  %12264 = vmatmul.mubr.msk.f32.gmra.mrb[18].mxu1 %vm777_vm3, %v708_v42  ;;  %v737_v34 = vld [vmem:[%s13492_s15 + $0x250] sm:$0xff] }
  0x4f   : > { %12185 = vmatprep.mubr.msk.f32.mxu0 %vm13313_vm0, %v20186_v5  ;;  %12266 = vmatprep.mubr.msk.f32.mxu1 %vm777_vm3, %v709_v43  ;;  %v745_v42 = vld [vmem:[%s13492_s15 + $0x290] sm:$0xff]  ;;  %v746_v43 = vld [vmem:[%s13492_s15 + $0x298] sm:$0xff] }
  0x52   : > { %12186 = vmatmul.mubr.msk.f32.gmra.mrb[22].mxu0 %vm493_vm2, %v489_v37  ;;  %12267 = vmatmul.mubr.msk.f32.gmra.mrb[20].mxu1 %vm777_vm3, %v710_v46  ;;  %v740_v37 = vld [vmem:[%s13492_s15 + $0x268] sm:$0xff]  ;;  %v749_v46 = vld [vmem:[%s13492_s15 + $0x2b0] sm:$0xff] }
  0x53   : > { %12188 = vmatprep.mubr.msk.f32.mxu0 %vm13313_vm0, %v20186_v5  ;;  %12269 = vmatprep.mubr.msk.f32.mxu1 %vm777_vm3, %v711_v47  ;;  %v750_v47 = vld [vmem:[%s13492_s15 + $0x2b8] sm:$0xff] }
  0x56   : > { %12189 = vmatmul.mubr.msk.f32.gmra.mrb[24].mxu0 %vm493_vm2, %v490_v40  ;;  %12270 = vmatmul.mubr.msk.f32.gmra.mrb[22].mxu1 %vm777_vm3, %v712_v50  ;;  %v743_v40 = vld [vmem:[%s13492_s15 + $0x280] sm:$0xff]  ;;  %v753_v50 = vld [vmem:[%s13492_s15 + $0x2d0] sm:$0xff] }
  0x57   : > { %12197 = vmatprep.mubr.msk.f32.mxu0 %vm777_vm3, %v663_v41  ;;  %12272 = vmatprep.mubr.msk.f32.mxu1 %vm777_vm3, %v713_v51  ;;  %v744_v41 = vld [vmem:[%s13492_s15 + $0x288] sm:$0xff]  ;;  %v754_v51 = vld [vmem:[%s13492_s15 + $0x2d8] sm:$0xff] }
  0x5a   : > { %12198 = vmatmul.mubr.msk.f32.vlgmr.msra.gmra.mrb[26].mxu0 %vm777_vm3, %v664_v44  ;;  %12273 = vmatmul.mubr.msk.f32.gmra.mrb[24].mxu1 %vm777_vm3, %v714_v54  ;;  %v747_v44 = vld [vmem:[%s13492_s15 + $0x2a0] sm:$0xff]  ;;  %v757_v54 = vld [vmem:[%s13492_s15 + $0x2f0] sm:$0xff] }
  0x5b   : > { %12200 = vmatprep.mubr.msk.f32.mxu0 %vm777_vm3, %v665_v45  ;;  %12275 = vmatprep.mubr.msk.f32.mxu1 %vm777_vm3, %v715_v55  ;;  %v748_v45 = vld [vmem:[%s13492_s15 + $0x2a8] sm:$0xff]  ;;  %v758_v55 = vld [vmem:[%s13492_s15 + $0x2f8] sm:$0xff] }
  0x5e   : > { %12201 = vmatmul.mubr.msk.f32.gmra.mrb[28].mxu0 %vm777_vm3, %v666_v48  ;;  %12276 = vmatmul.mubr.msk.f32.gmra.mrb[26].mxu1 %vm777_vm3, %v716_v58  ;;  %v751_v48 = vld [vmem:[%s13492_s15 + $0x2c0] sm:$0xff]  ;;  %v761_v58 = vld [vmem:[%s13492_s15 + $0x310] sm:$0xff] }
  0x5f   : > { %12203 = vmatprep.mubr.msk.f32.mxu0 %vm777_vm3, %v667_v49  ;;  %12278 = vmatprep.mubr.msk.f32.mxu1 %vm777_vm3, %v717_v59  ;;  %v752_v49 = vld [vmem:[%s13492_s15 + $0x2c8] sm:$0xff]  ;;  %v762_v59 = vld [vmem:[%s13492_s15 + $0x318] sm:$0xff] }
  0x62   : > { %12204 = vmatmul.mubr.msk.f32.gmra.mrb[30].mxu0 %vm777_vm3, %v668_v52  ;;  %12279 = vmatmul.mubr.msk.f32.gmra.mrb[28].mxu1 %vm777_vm3, %v718_v62  ;;  %v755_v52 = vld [vmem:[%s13492_s15 + $0x2e0] sm:$0xff]  ;;  %v765_v62 = vld [vmem:[%s13492_s15 + $0x330] sm:$0xff] }
  0x63   : > { %12206 = vmatprep.mubr.msk.f32.mxu0 %vm777_vm3, %v669_v53  ;;  %12281 = vmatprep.mubr.msk.f32.mxu1 %vm777_vm3, %v719_v63  ;;  %v756_v53 = vld [vmem:[%s13492_s15 + $0x2e8] sm:$0xff]  ;;  %v766_v63 = vld [vmem:[%s13492_s15 + $0x338] sm:$0xff] }
  0x66   : > { %12207 = vmatmul.mubr.msk.f32.gmra.mrb[32].mxu0 %vm777_vm3, %v670_v56  ;;  %12282 = vmatmul.mubr.msk.f32.gmra.mrb[30].mxu1 %vm777_vm3, %v720_v2  ;;  %v759_v56 = vld [vmem:[%s13492_s15 + $0x300] sm:$0xff] }
  0x67   : > { %12209 = vmatprep.mubr.msk.f32.mxu0 %vm777_vm3, %v671_v57  ;;  %12284 = vmatprep.mubr.msk.f32.mxu1 %vm777_vm3, %v721_v4  ;;  %v760_v57 = vld [vmem:[%s13492_s15 + $0x308] sm:$0xff] }
  0x6a   : > { %12210 = vmatmul.mubr.msk.f32.gmra.mrb[34].mxu0 %vm777_vm3, %v672_v60  ;;  %12285 = vmatmul.mubr.msk.f32.gmra.mrb[32].mxu1 %vm777_vm3, %v722_v8  ;;  %v763_v60 = vld [vmem:[%s13492_s15 + $0x320] sm:$0xff] }
  0x6b   : > { %12212 = vmatprep.mubr.msk.f32.mxu0 %vm777_vm3, %v673_v61  ;;  %12287 = vmatprep.mubr.msk.f32.mxu1 %vm777_vm3, %v723_v9  ;;  %v764_v61 = vld [vmem:[%s13492_s15 + $0x328] sm:$0xff] }
  0x6e   : > { %12213 = vmatmul.mubr.msk.f32.gmra.mrb[36].mxu0 %vm777_vm3, %v674_v0  ;;  %12288 = vmatmul.mubr.msk.f32.gmra.mrb[34].mxu1 %vm777_vm3, %v724_v12  ;;  %v1783_v0 = vld [vmem:[%s20176_s5] sm:$0xff] }
  0x6f   : > { %12215 = vmatprep.mubr.msk.f32.mxu0 %vm777_vm3, %v675_v1  ;;  %12290 = vmatprep.mubr.msk.f32.mxu1 %vm777_vm3, %v725_v13  ;;  %v1784_v1 = vld [vmem:[%s20176_s5 + $0x8] sm:$0xff] }
  0x70   : > { %v12735_v2 = vpack.c.bf16 %v1784_v1, %v1783_v0 }
  0x72   : > { %12216 = vmatmul.mubr.msk.f32.gmra.mrb[38].mxu0 %vm777_vm3, %v676_v6  ;;  %12291 = vmatmul.mubr.msk.f32.gmra.mrb[36].mxu1 %vm777_vm3, %v726_v16 }
  0x73   : > { %12218 = vmatprep.mubr.msk.f32.mxu0 %vm777_vm3, %v677_v7  ;;  %12293 = vmatprep.mubr.msk.f32.mxu1 %vm777_vm3, %v727_v17 }
  0x74   : > { %12736 = vmatprep.subr.bf16.mxu0 %v12735_v2 }
  0x75   : > { %12738 = vmatpush3.bf16.msra.mxu0 %v12735_v2 }
  0x76   : > { %12219 = vmatmul.mubr.msk.f32.gmra.mrb[40].mxu0 %vm777_vm3, %v678_v10  ;;  %12294 = vmatmul.mubr.msk.f32.gmra.mrb[38].mxu1 %vm777_vm3, %v728_v20 }
  0x77   : > { %12221 = vmatprep.mubr.msk.f32.mxu0 %vm777_vm3, %v679_v11  ;;  %12296 = vmatprep.mubr.msk.f32.mxu1 %vm777_vm3, %v729_v21 }
  0x7a   : > { %12222 = vmatmul.mubr.msk.f32.gmra.mrb[42].mxu0 %vm777_vm3, %v680_v14  ;;  %12297 = vmatmul.mubr.msk.f32.gmra.mrb[40].mxu1 %vm777_vm3, %v730_v24 }
  0x7b   : > { %12224 = vmatprep.mubr.msk.f32.mxu0 %vm777_vm3, %v681_v15  ;;  %12299 = vmatprep.mubr.msk.f32.mxu1 %vm777_vm3, %v731_v25 }
  0x7e   : > { %12225 = vmatmul.mubr.msk.f32.gmra.mrb[44].mxu0 %vm777_vm3, %v682_v18  ;;  %12300 = vmatmul.mubr.msk.f32.gmra.mrb[42].mxu1 %vm777_vm3, %v732_v28  ;;  %v1785_v18 = vld [vmem:[%s20176_s5 + $0x10] sm:$0xff] }
  0x7f   : > { %12227 = vmatprep.mubr.msk.f32.mxu0 %vm777_vm3, %v683_v19  ;;  %12302 = vmatprep.mubr.msk.f32.mxu1 %vm777_vm3, %v733_v29  ;;  %v1786_v19 = vld [vmem:[%s20176_s5 + $0x18] sm:$0xff] }
  0x82   : > { %12228 = vmatmul.mubr.msk.f32.gmra.mrb[46].mxu0 %vm777_vm3, %v684_v22  ;;  %12303 = vmatmul.mubr.msk.f32.gmra.mrb[44].mxu1 %vm777_vm3, %v734_v31  ;;  %v12739_v22 = vpack.c.bf16 %v1786_v19, %v1785_v18 }
  0x83   : > { %12230 = vmatprep.mubr.msk.f32.mxu0 %vm777_vm3, %v685_v23  ;;  %12305 = vmatprep.mubr.msk.f32.mxu1 %vm777_vm3, %v735_v32 }
  0x84   : > { %12740 = vmatprep.subr.bf16.mxu0 %v12739_v22 }
  0x85   : > { %12742 = vmatpush3.bf16.msra.mxu0 %v12739_v22 }
  0x86   : > { %12231 = vmatmul.mubr.msk.f32.gmra.mrb[48].mxu0 %vm777_vm3, %v686_v26  ;;  %12306 = vmatmul.mubr.msk.f32.gmra.mrb[46].mxu1 %vm777_vm3, %v736_v33 }
  0x87   : > { %12233 = vmatprep.mubr.msk.f32.mxu0 %vm777_vm3, %v687_v27  ;;  %12308 = vmatprep.mubr.msk.f32.mxu1 %vm777_vm3, %v737_v34 }
  0x88   : > { %12751 = vmatprep.subr.bf16.mxu0 %v20185_v3 }
  0x8a   : > { %12234 = vmatmul.mubr.msk.f32.gmra.mrb[50].mxu0 %vm777_vm3, %v688_v30  ;;  %12309 = vmatmul.mubr.msk.f32.gmra.mrb[48].mxu1 %vm777_vm3, %v738_v35 }
  0x8b   : > { %12311 = vmatprep.mubr.msk.f32.mxu1 %vm777_vm3, %v739_v36 }
  0x8e   : > { %12312 = vmatmul.mubr.msk.f32.gmra.mrb[50].mxu1 %vm777_vm3, %v740_v37 }
  0x8f   : > { %12314 = vmatprep.mubr.msk.f32.mxu1 %vm777_vm3, %v741_v38 }
  0x92   : > { %12315 = vmatmul.mubr.msk.f32.gmra.mrb[52].mxu1 %vm777_vm3, %v742_v39 }
  0x93   : > { %12317 = vmatprep.mubr.msk.f32.mxu1 %vm777_vm3, %v743_v40 }
  0x96   : > { %12318 = vmatmul.mubr.msk.f32.gmra.mrb[54].mxu1 %vm777_vm3, %v744_v41 }
  0x97   : > { %12320 = vmatprep.mubr.msk.f32.mxu1 %vm777_vm3, %v745_v42 }
  0x9a   : > { %12321 = vmatmul.mubr.msk.f32.gmra.mrb[56].mxu1 %vm777_vm3, %v746_v43 }
  0x9b   : > { %12323 = vmatprep.mubr.msk.f32.mxu1 %vm777_vm3, %v747_v44 }
  0x9e   : > { %12324 = vmatmul.mubr.msk.f32.gmra.mrb[58].mxu1 %vm777_vm3, %v748_v45 }
  0x9f   : > { %12326 = vmatprep.mubr.msk.f32.mxu1 %vm777_vm3, %v749_v46 }
  0xa2   : > { %12327 = vmatmul.mubr.msk.f32.gmra.mrb[60].mxu1 %vm777_vm3, %v750_v47 }
  0xa3   : > { %12329 = vmatprep.mubr.msk.f32.mxu1 %vm777_vm3, %v751_v48 }
  0xa6   : > { %12330 = vmatmul.mubr.msk.f32.gmra.mrb[62].mxu1 %vm777_vm3, %v752_v49 }
  0xa7   : > { %12332 = vmatprep.mubr.msk.f32.mxu1 %vm777_vm3, %v753_v50 }
  0xaa   : > { %12333 = vmatmul.mubr.msk.f32.gmra.mrb[64].mxu1 %vm777_vm3, %v754_v51 }
  0xab   : > { %12335 = vmatprep.mubr.msk.f32.mxu1 %vm777_vm3, %v755_v52 }
  0xae   : > { %12336 = vmatmul.mubr.msk.f32.gmra.mrb[66].mxu1 %vm777_vm3, %v756_v53  ;;  %v13819_v53 = vld [vmem:[%s20175_s4] ss:$0 sm:$0xff] }
  0xaf   : > { %12338 = vmatprep.mubr.msk.f32.mxu1 %vm777_vm3, %v757_v54 }
  0xb2   : > { %12339 = vmatmul.mubr.msk.f32.gmra.mrb[68].mxu1 %vm777_vm3, %v758_v55 }
  0xb3   : > { %12341 = vmatprep.mubr.msk.f32.mxu1 %vm777_vm3, %v759_v56 }
  0xb6   : > { %12342 = vmatmul.mubr.msk.f32.gmra.mrb[70].mxu1 %vm777_vm3, %v760_v57 }
  0xb7   : > { %12344 = vmatprep.mubr.msk.f32.mxu1 %vm777_vm3, %v761_v58 }
  0xba   : > { %12345 = vmatmul.mubr.msk.f32.gmra.mrb[72].mxu1 %vm777_vm3, %v762_v59 }
  0xbb   : > { %12347 = vmatprep.mubr.msk.f32.mxu1 %vm777_vm3, %v763_v60 }
  0xbe   : > { %12348 = vmatmul.mubr.msk.f32.gmra.mrb[74].mxu1 %vm777_vm3, %v764_v61 }
  0xbf   : > { %12350 = vmatprep.mubr.msk.f32.mxu1 %vm777_vm3, %v765_v62 }
  0xc2   : > { %12351 = vmatmul.mubr.msk.f32.gmra.mrb[76].mxu1 %vm777_vm3, %v766_v63 }
  0xf9   : > { %v13745_v4 = vpop.f32.mrb[0].mxu0 }
  0xfa   : > { %20714 = vst [vmem:[#allocation5_spill] sm:$0xff] %v13745_v4  ;;  %v12154_v6 = vpop.f32.mrb[1].mxu0 }
  0xfd   : > { %v13747_v7 = vpop.f32.mrb[2].mxu0  ;;  %v13753_v13 = vpop.f32.mrb[0].mxu1 }
  0xfe   : > { %20715 = vst [vmem:[#allocation6_spill] sm:$0xff] %v13747_v7  ;;  %v12157_v8 = vpop.f32.mrb[3].mxu0  ;;  %v13755_v14 = vpop.f32.mrb[1].mxu1 }
 0x101   : > { %v13749_v9 = vpop.f32.mrb[4].mxu0  ;;  %v13759_v17 = vpop.f32.mrb[2].mxu1 }
 0x102   : > { %20716 = vst [vmem:[#allocation7_spill] sm:$0xff] %v13749_v9  ;;  %v12160_v10 = vpop.f32.mrb[5].mxu0  ;;  %v13767_v20 = vpop.f32.mrb[3].mxu1 }
 0x105   : > { %v13751_v11 = vpop.f32.mrb[6].mxu0  ;;  %v13771_v24 = vpop.f32.mrb[4].mxu1 }
 0x106   : > { %20717 = vst [vmem:[#allocation8_spill] sm:$0xff] %v13751_v11  ;;  %v12163_v12 = vpop.f32.mrb[7].mxu0  ;;  %v13773_v25 = vpop.f32.mrb[5].mxu1 }
 0x109   : > { %v13757_v15 = vpop.f32.mrb[8].mxu0  ;;  %v13778_v28 = vpop.f32.mrb[6].mxu1 }
 0x10a   : > { %20718 = vst [vmem:[#allocation9_spill] sm:$0xff] %v13757_v15  ;;  %v12166_v16 = vpop.f32.mrb[9].mxu0  ;;  %v13780_v29 = vpop.f32.mrb[7].mxu1 }
 0x10d   : > { %v13769_v21 = vpop.f32.mrb[10].mxu0  ;;  %v13784_v32 = vpop.f32.mrb[8].mxu1 }
 0x10e   : > { %20719 = vst [vmem:[#allocation10_spill] sm:$0xff] %v13769_v21  ;;  %v12169_v23 = vpop.f32.mrb[11].mxu0  ;;  %v13786_v33 = vpop.f32.mrb[9].mxu1 }
 0x111   : > { %v13775_v26 = vpop.f32.mrb[12].mxu0  ;;  %v13790_v36 = vpop.f32.mrb[10].mxu1 }
 0x112   : > { %20720 = vst [vmem:[#allocation11_spill] sm:$0xff] %v13775_v26  ;;  %v12172_v27 = vpop.f32.mrb[13].mxu0  ;;  %v13792_v37 = vpop.f32.mrb[11].mxu1 }
 0x115   : > { %v13782_v30 = vpop.f32.mrb[14].mxu0  ;;  %v13796_v40 = vpop.f32.mrb[12].mxu1 }
 0x116   : > { %20721 = vst [vmem:[#allocation12_spill] sm:$0xff] %v13782_v30  ;;  %v12175_v31 = vpop.f32.mrb[15].mxu0  ;;  %v13798_v41 = vpop.f32.mrb[13].mxu1 }
 0x119   : > { %v13788_v34 = vpop.f32.mrb[16].mxu0  ;;  %v13802_v44 = vpop.f32.mrb[14].mxu1 }
 0x11a   : > { %20722 = vst [vmem:[#allocation13_spill] sm:$0xff] %v13788_v34  ;;  %v12178_v35 = vpop.f32.mrb[17].mxu0  ;;  %v13804_v45 = vpop.f32.mrb[15].mxu1 }
 0x11d   : > { %v13794_v38 = vpop.f32.mrb[18].mxu0  ;;  %v13808_v48 = vpop.f32.mrb[16].mxu1 }
 0x11e   : > { %20723 = vst [vmem:[#allocation14_spill] sm:$0xff] %v13794_v38  ;;  %v12181_v39 = vpop.f32.mrb[19].mxu0  ;;  %v13810_v49 = vpop.f32.mrb[17].mxu1 }
 0x121   : > { %v13800_v42 = vpop.f32.mrb[20].mxu0  ;;  %v13814_v52 = vpop.f32.mrb[18].mxu1 }
 0x122   : > { %20724 = vst [vmem:[#allocation15_spill] sm:$0xff] %v13800_v42  ;;  %v12184_v43 = vpop.f32.mrb[21].mxu0  ;;  %v13821_v54 = vpop.f32.mrb[19].mxu1 }
 0x125   : > { %v13806_v46 = vpop.f32.mrb[22].mxu0  ;;  %v13826_v58 = vpop.f32.mrb[20].mxu1 }
 0x126   : > { %20725 = vst [vmem:[#allocation16_spill] sm:$0xff] %v13806_v46  ;;  %v12187_v47 = vpop.f32.mrb[23].mxu0  ;;  %v13828_v59 = vpop.f32.mrb[21].mxu1 }
 0x129   : > { %v13812_v50 = vpop.f32.mrb[24].mxu0  ;;  %v13838_v1 = vpop.f32.mrb[22].mxu1 }
 0x12a   : > { %20726 = vst [vmem:[#allocation17_spill] sm:$0xff] %v13812_v50  ;;  %v12190_v51 = vpop.f32.mrb[25].mxu0  ;;  %v13840_v2 = vpop.f32.mrb[23].mxu1 }
 0x12d   : > { %v12199_v55 = vpop.f32.mrb[26].mxu0  ;;  %v13852_v19 = vpop.f32.mrb[24].mxu1 }
 0x12e   : > { %v1160_v56 = vpop.f32.mrb[27].mxu0  ;;  %v13831_v60 = vadd.f32 %v12199_v55, %v13819_v53  ;;  %v13854_v22 = vpop.f32.mrb[25].mxu1 }
 0x12f   : > { %v13824_v57 = vadd.f32 %v13819_v53, %v1160_v56 }
 0x130   : > { %20728 = vst [vmem:[#allocation19_spill] sm:$0xff] %v13831_v60  ;;  %v1680_v12 = vmax.f32 %v13831_v60, 0.0 }
 0x131   : > { %20727 = vst [vmem:[#allocation18_spill] sm:$0xff] %v13824_v57  ;;  %v12202_v61 = vpop.f32.mrb[28].mxu0  ;;  %v1679_v62 = vmax.f32 %v13824_v57, 0.0  ;;  %v13866_v47 = vpop.f32.mrb[26].mxu1 }
 0x132   : > { %v1170_v63 = vpop.f32.mrb[29].mxu0  ;;  %v13843_v6 = vadd.f32 %v12202_v61, %v13819_v53  ;;  %v13868_v51 = vpop.f32.mrb[27].mxu1 }
 0x133   : > { %v13835_v0 = vadd.f32 %v13819_v53, %v1170_v63  ;;  %1898 = vrot.lane.b32.xlu0 %v1679_v62, %s13315_s23 }
 0x134   : > { %20730 = vst [vmem:[#allocation21_spill] sm:$0xff] %v13843_v6  ;;  %v1682_v31 = vmax.f32 %v13843_v6, 0.0 }
 0x135   : > { %20729 = vst [vmem:[#allocation20_spill] sm:$0xff] %v13835_v0  ;;  %v12205_v8 = vpop.f32.mrb[30].mxu0  ;;  %v1681_v10 = vmax.f32 %v13835_v0, 0.0 }
 0x136   : > { %v1180_v16 = vpop.f32.mrb[31].mxu0  ;;  %v13857_v23 = vadd.f32 %v12205_v8, %v13819_v53 }
 0x137   : > { %1902 = vrot.lane.b32.xlu1 %v1681_v10, %s13315_s23  ;;  %1900 = vrot.lane.b32.xlu0 %v1680_v12, %s13315_s23  ;;  %v13850_v18 = vadd.f32 %v13819_v53, %v1180_v16  ;;  %v13880_v10 = vpop.f32.mrb[28].mxu1 }
 0x138   : > { %20732 = vst [vmem:[#allocation23_spill] sm:$0xff] %v13857_v23  ;;  %v1684_v61 = vmax.f32 %v13857_v23, 0.0  ;;  %v13882_v12 = vpop.f32.mrb[29].mxu1 }
 0x139   : > { %20731 = vst [vmem:[#allocation22_spill] sm:$0xff] %v13850_v18  ;;  %v12208_v27 = vpop.f32.mrb[32].mxu0  ;;  %v1683_v35 = vmax.f32 %v13850_v18, 0.0 }
 0x13a   : > { %v1190_v39 = vpop.f32.mrb[33].mxu0  ;;  %v13871_v55 = vadd.f32 %v12208_v27, %v13819_v53 }
 0x13b   : > { %1904 = vrot.lane.b32.xlu1 %v1682_v31, %s13315_s23  ;;  %v13863_v43 = vadd.f32 %v13819_v53, %v1190_v39  ;;  %1906 = vrot.lane.b32.xlu0 %v1683_v35, %s13315_s23 }
 0x13c   : > { %20734 = vst [vmem:[#allocation25_spill] sm:$0xff] %v13871_v55  ;;  %v1686_v31 = vmax.f32 %v13871_v55, 0.0 }
 0x13d   : > { %20733 = vst [vmem:[#allocation24_spill] sm:$0xff] %v13863_v43  ;;  %v12211_v56 = vpop.f32.mrb[34].mxu0  ;;  %v1685_v62 = vmax.f32 %v13863_v43, 0.0 }
 0x13e   : > { %v1200_v63 = vpop.f32.mrb[35].mxu0  ;;  %v13885_v16 = vadd.f32 %v12211_v56, %v13819_v53 }
 0x13f   : > { %1908 = vrot.lane.b32.xlu1 %v1684_v61, %s13315_s23  ;;  %v13877_v8 = vadd.f32 %v13819_v53, %v1200_v63  ;;  %1910 = vrot.lane.b32.xlu0 %v1685_v62, %s13315_s23  ;;  %v13894_v62 = vpop.f32.mrb[30].mxu1 }
 0x140   : > { %20736 = vst [vmem:[#allocation27_spill] sm:$0xff] %v13885_v16  ;;  %v13896_v63 = vpop.f32.mrb[31].mxu1  ;;  %v1688_v5 = vmax.f32 %v13885_v16, 0.0 }
 0x141   : > { %20735 = vst [vmem:[#allocation26_spill] sm:$0xff] %v13877_v8  ;;  %v12214_v27 = vpop.f32.mrb[36].mxu0  ;;  %v1687_v35 = vmax.f32 %v13877_v8, 0.0 }
 0x142   : > { %v1210_v39 = vpop.f32.mrb[37].mxu0  ;;  %v13899_v56 = vadd.f32 %v12214_v27, %v13819_v53 }
 0x143   : > { %1912 = vrot.lane.b32.xlu1 %v1686_v31, %s13315_s23  ;;  %v13891_v61 = vadd.f32 %v13819_v53, %v1210_v39  ;;  %1914 = vrot.lane.b32.xlu0 %v1687_v35, %s13315_s23  ;;  %v13908_v35 = vpop.f32.mrb[32].mxu1 }
 0x144   : > { %20738 = vst [vmem:[#allocation29_spill] sm:$0xff] %v13899_v56  ;;  %v13910_v39 = vpop.f32.mrb[33].mxu1  ;;  %v1690_v38 = vmax.f32 %v13899_v56, 0.0 }
 0x145   : > { %20737 = vst [vmem:[#allocation28_spill] sm:$0xff] %v13891_v61  ;;  %v12217_v3 = vpop.f32.mrb[38].mxu0  ;;  %v1689_v50 = vmax.f32 %v13891_v61, 0.0 }
 0x146   : > { %v1220_v46 = vpop.f32.mrb[39].mxu0  ;;  %v13913_v27 = vadd.f32 %v12217_v3, %v13819_v53 }
 0x147   : > { %1916 = vrot.lane.b32.xlu1 %v1688_v5, %s13315_s23  ;;  %v13905_v31 = vadd.f32 %v13819_v53, %v1220_v46  ;;  %1918 = vrot.lane.b32.xlu0 %v1689_v50, %s13315_s23  ;;  %v13922_v46 = vpop.f32.mrb[34].mxu1 }
 0x148   : > { %20740 = vst [vmem:[#allocation31_spill] sm:$0xff] %v13913_v27  ;;  %v13924_v50 = vpop.f32.mrb[35].mxu1  ;;  %v1692_v21 = vmax.f32 %v13913_v27, 0.0 }
 0x149   : > { %20739 = vst [vmem:[#allocation30_spill] sm:$0xff] %v13905_v31  ;;  %v12220_v42 = vpop.f32.mrb[40].mxu0  ;;  %v1691_v34 = vmax.f32 %v13905_v31, 0.0 }
 0x14a   : > { %v1230_v30 = vpop.f32.mrb[41].mxu0  ;;  %v13927_v3 = vadd.f32 %v12220_v42, %v13819_v53 }
 0x14b   : > { %1920 = vrot.lane.b32.xlu1 %v1690_v38, %s13315_s23  ;;  %v13919_v5 = vadd.f32 %v13819_v53, %v1230_v30  ;;  %1922 = vrot.lane.b32.xlu0 %v1691_v34, %s13315_s23  ;;  %v13936_v34 = vpop.f32.mrb[36].mxu1 }
 0x14c   : > { %20742 = vst [vmem:[#allocation33_spill] sm:$0xff] %v13927_v3  ;;  %v13938_v38 = vpop.f32.mrb[37].mxu1  ;;  %v1694_v7 = vmax.f32 %v13927_v3, 0.0 }
 0x14d   : > { %20741 = vst [vmem:[#allocation32_spill] sm:$0xff] %v13919_v5  ;;  %v12223_v26 = vpop.f32.mrb[42].mxu0  ;;  %v1693_v15 = vmax.f32 %v13919_v5, 0.0 }
 0x14e   : > { %v1240_v11 = vpop.f32.mrb[43].mxu0  ;;  %v13941_v42 = vadd.f32 %v12223_v26, %v13819_v53 }
 0x14f   : > { %1924 = vrot.lane.b32.xlu1 %v1692_v21, %s13315_s23  ;;  %v13933_v30 = vadd.f32 %v13819_v53, %v1240_v11  ;;  %1926 = vrot.lane.b32.xlu0 %v1693_v15, %s13315_s23  ;;  %v13950_v15 = vpop.f32.mrb[38].mxu1 }
 0x150   : > { %20744 = vst [vmem:[#allocation35_spill] sm:$0xff] %v13941_v42  ;;  %v13952_v21 = vpop.f32.mrb[39].mxu1  ;;  %v1696_v3 = vmax.f32 %v13941_v42, 0.0 }
 0x151   : > { %20743 = vst [vmem:[#allocation34_spill] sm:$0xff] %v13933_v30  ;;  %v12226_v9 = vpop.f32.mrb[44].mxu0  ;;  %v1695_v4 = vmax.f32 %v13933_v30, 0.0 }
 0x152   : > { %v1250_v5 = vpop.f32.mrb[45].mxu0  ;;  %v13955_v26 = vadd.f32 %v12226_v9, %v13819_v53 }
 0x153   : > { %1928 = vrot.lane.b32.xlu1 %v1694_v7, %s13315_s23  ;;  %v13947_v11 = vadd.f32 %v13819_v53, %v1250_v5  ;;  %1930 = vrot.lane.b32.xlu0 %v1695_v4, %s13315_s23  ;;  %v13964_v4 = vpop.f32.mrb[40].mxu1 }
 0x154   : > { %20746 = vst [vmem:[#allocation37_spill] sm:$0xff] %v13955_v26  ;;  %v13966_v5 = vpop.f32.mrb[41].mxu1  ;;  %v1698_v42 = vmax.f32 %v13955_v26, 0.0 }
 0x155   : > { %20745 = vst [vmem:[#allocation36_spill] sm:$0xff] %v13947_v11  ;;  %v12229_v31 = vpop.f32.mrb[46].mxu0  ;;  %v1697_v30 = vmax.f32 %v13947_v11, 0.0 }
 0x156   : > { %v1260_v27 = vpop.f32.mrb[47].mxu0  ;;  %v13969_v9 = vadd.f32 %v12229_v31, %v13819_v53 }
 0x157   : > { %1932 = vrot.lane.b32.xlu1 %v1696_v3, %s13315_s23  ;;  %v13961_v7 = vadd.f32 %v13819_v53, %v1260_v27  ;;  %1934 = vrot.lane.b32.xlu0 %v1697_v30, %s13315_s23  ;;  %v13978_v3 = vpop.f32.mrb[42].mxu1 }
 0x158   : > { %20748 = vst [vmem:[#allocation39_spill] sm:$0xff] %v13969_v9  ;;  %v13980_v30 = vpop.f32.mrb[43].mxu1  ;;  %v1700_v26 = vmax.f32 %v13969_v9, 0.0 }
 0x159   : > { %20747 = vst [vmem:[#allocation38_spill] sm:$0xff] %v13961_v7  ;;  %v12232_v61 = vpop.f32.mrb[48].mxu0  ;;  %v1699_v11 = vmax.f32 %v13961_v7, 0.0 }
 0x15a   : > { %v1270_v56 = vpop.f32.mrb[49].mxu0  ;;  %v13983_v31 = vadd.f32 %v12232_v61, %v13819_v53 }
 0x15b   : > { %1936 = vrot.lane.b32.xlu1 %v1698_v42, %s13315_s23  ;;  %v13975_v27 = vadd.f32 %v13819_v53, %v1270_v56  ;;  %1938 = vrot.lane.b32.xlu0 %v1699_v11, %s13315_s23  ;;  %v13994_v42 = vadd.f32 %v13819_v53, %v13755_v14  ;;  %v13996_v11 = vpop.f32.mrb[44].mxu1 }
 0x15c   : > { %20750 = vst [vmem:[#allocation41_spill] sm:$0xff] %v13983_v31  ;;  %v13998_v61 = vpop.f32.mrb[45].mxu1 }
 0x15d   : > { %20749 = vst [vmem:[#allocation40_spill] sm:$0xff] %v13975_v27  ;;  %v12235_v8 = vpop.f32.mrb[50].mxu0  ;;  %v1701_v7 = vmax.f32 %v13975_v27, 0.0  ;;  %20752 = vst [vmem:[#allocation43_spill] sm:$0xff] %v13994_v42  ;;  %v1702_v27 = vmax.f32 %v13983_v31, 0.0  ;;  %v1705_v14 = vmax.f32 %v13994_v42, 0.0 }
 0x15e   : > { %v1280_v16 = vpop.f32.mrb[51].mxu0  ;;  %v14001_v9 = vadd.f32 %v12235_v8, %v13819_v53  ;;  %v14018_v8 = vadd.f32 %v13753_v13, %v13819_v53  ;;  %v14034_v13 = vadd.f32 %v13759_v17, %v13819_v53  ;;  %v14050_v17 = vadd.f32 %v13771_v24, %v13819_v53 }
 0x15f   : > { %1940 = vrot.lane.b32.xlu1 %v1700_v26, %s13315_s23  ;;  %v13989_v56 = vadd.f32 %v13819_v53, %v1280_v16  ;;  %1942 = vrot.lane.b32.xlu0 %v1701_v7, %s13315_s23  ;;  %v14009_v16 = vadd.f32 %v13819_v53, %v13767_v20  ;;  %v14012_v7 = vpop.f32.mrb[46].mxu1  ;;  %v14025_v20 = vadd.f32 %v13819_v53, %v13773_v25 }
 0x160   : > { %20753 = vst [vmem:[#allocation44_spill] sm:$0xff] %v14001_v9  ;;  %v14014_v43 = vpop.f32.mrb[47].mxu1  ;;  %20755 = vst [vmem:[#allocation46_spill] sm:$0xff] %v14018_v8  ;;  %v14041_v25 = vadd.f32 %v13819_v53, %v13780_v29  ;;  %v14057_v29 = vadd.f32 %v13819_v53, %v13786_v33  ;;  %v14066_v24 = vadd.f32 %v13778_v28, %v13819_v53 }
 0x161   : > { %20751 = vst [vmem:[#allocation42_spill] sm:$0xff] %v13989_v56  ;;  %v1703_v26 = vmax.f32 %v13989_v56, 0.0  ;;  %20754 = vst [vmem:[#allocation45_spill] sm:$0xff] %v14009_v16  ;;  %v1704_v56 = vmax.f32 %v14001_v9, 0.0  ;;  %v1706_v9 = vmax.f32 %v14018_v8, 0.0  ;;  %v1708_v8 = vmax.f32 %v14034_v13, 0.0 }
 0x162   : > { %20756 = vst [vmem:[#allocation47_spill] sm:$0xff] %v14025_v20  ;;  %20757 = vst [vmem:[#allocation48_spill] sm:$0xff] %v14034_v13  ;;  %v1710_v13 = vmax.f32 %v14050_v17, 0.0  ;;  %v14073_v33 = vadd.f32 %v13819_v53, %v13792_v37  ;;  %v14082_v28 = vadd.f32 %v13784_v32, %v13819_v53  ;;  %v14089_v37 = vadd.f32 %v13819_v53, %v13798_v41 }
 0x163   : > { %1944 = vrot.lane.b32.xlu1 %v1702_v27, %s13315_s23  ;;  %1946 = vrot.lane.b32.xlu0 %v1703_v26, %s13315_s23  ;;  %v1707_v27 = vmax.f32 %v14009_v16, 0.0  ;;  %v14028_v26 = vpop.f32.mrb[48].mxu1  ;;  %20758 = vst [vmem:[#allocation49_spill] sm:$0xff] %v14041_v25  ;;  %20759 = vst [vmem:[#allocation50_spill] sm:$0xff] %v14050_v17  ;;  %v1712_v17 = vmax.f32 %v14066_v24, 0.0  ;;  %v14098_v32 = vadd.f32 %v13790_v36, %v13819_v53 }
 0x164   : > { %v14030_v42 = vpop.f32.mrb[49].mxu1  ;;  %20760 = vst [vmem:[#allocation51_spill] sm:$0xff] %v14057_v29  ;;  %20761 = vst [vmem:[#allocation52_spill] sm:$0xff] %v14066_v24  ;;  %v1714_v24 = vmax.f32 %v14082_v28, 0.0  ;;  %v14105_v41 = vadd.f32 %v13819_v53, %v13804_v45  ;;  %v14114_v36 = vadd.f32 %v13796_v40, %v13819_v53  ;;  %v14121_v45 = vadd.f32 %v13819_v53, %v13810_v49 }
 0x165   : > { %20762 = vst [vmem:[#allocation53_spill] sm:$0xff] %v14073_v33  ;;  %20763 = vst [vmem:[#allocation54_spill] sm:$0xff] %v14082_v28  ;;  %v1716_v28 = vmax.f32 %v14098_v32, 0.0  ;;  %v14130_v40 = vadd.f32 %v13802_v44, %v13819_v53  ;;  %v14137_v49 = vadd.f32 %v13819_v53, %v13821_v54  ;;  %v14146_v44 = vadd.f32 %v13808_v48, %v13819_v53 }
 0x166   : > { %20764 = vst [vmem:[#allocation55_spill] sm:$0xff] %v14089_v37  ;;  %20765 = vst [vmem:[#allocation56_spill] sm:$0xff] %v14098_v32  ;;  %v1718_v32 = vmax.f32 %v14114_v36, 0.0  ;;  %v14153_v54 = vadd.f32 %v13819_v53, %v13828_v59  ;;  %v14162_v48 = vadd.f32 %v13814_v52, %v13819_v53  ;;  %v14169_v59 = vadd.f32 %v13819_v53, %v13840_v2 }
 0x167   : > { %1948 = vrot.lane.b32.xlu1 %v1704_v56, %s13315_s23  ;;  %1950 = vrot.lane.b32.xlu0 %v1705_v14, %s13315_s23  ;;  %v1709_v56 = vmax.f32 %v14025_v20, 0.0  ;;  %v14044_v14 = vpop.f32.mrb[50].mxu1  ;;  %20766 = vst [vmem:[#allocation57_spill] sm:$0xff] %v14105_v41  ;;  %20767 = vst [vmem:[#allocation58_spill] sm:$0xff] %v14114_v36  ;;  %v1720_v36 = vmax.f32 %v14130_v40, 0.0  ;;  %v14178_v52 = vadd.f32 %v13826_v58, %v13819_v53 }
 0x168   : > { %v14046_v16 = vpop.f32.mrb[51].mxu1  ;;  %20768 = vst [vmem:[#allocation59_spill] sm:$0xff] %v14121_v45  ;;  %20769 = vst [vmem:[#allocation60_spill] sm:$0xff] %v14130_v40  ;;  %v1722_v40 = vmax.f32 %v14146_v44, 0.0  ;;  %v14185_v2 = vadd.f32 %v13819_v53, %v13854_v22  ;;  %v14194_v58 = vadd.f32 %v13838_v1, %v13819_v53  ;;  %v14201_v22 = vadd.f32 %v13819_v53, %v13868_v51 }
 0x169   : > { %20770 = vst [vmem:[#allocation61_spill] sm:$0xff] %v14137_v49  ;;  %20771 = vst [vmem:[#allocation62_spill] sm:$0xff] %v14146_v44  ;;  %v1724_v44 = vmax.f32 %v14162_v48, 0.0  ;;  %v14210_v1 = vadd.f32 %v13852_v19, %v13819_v53  ;;  %v14217_v51 = vadd.f32 %v13819_v53, %v13882_v12  ;;  %v14226_v19 = vadd.f32 %v13866_v47, %v13819_v53 }
 0x16a   : > { %20772 = vst [vmem:[#allocation63_spill] sm:$0xff] %v14153_v54  ;;  %20773 = vst [vmem:[#allocation64_spill] sm:$0xff] %v14162_v48  ;;  %v1726_v48 = vmax.f32 %v14178_v52, 0.0  ;;  %v14233_v12 = vadd.f32 %v13819_v53, %v13896_v63  ;;  %v14242_v47 = vadd.f32 %v13880_v10, %v13819_v53  ;;  %v14249_v63 = vadd.f32 %v13819_v53, %v13910_v39 }
 0x16b   : > { %1952 = vrot.lane.b32.xlu1 %v1706_v9, %s13315_s23  ;;  %1954 = vrot.lane.b32.xlu0 %v1707_v27, %s13315_s23  ;;  %v1711_v9 = vmax.f32 %v14041_v25, 0.0  ;;  %v14060_v27 = vpop.f32.mrb[52].mxu1  ;;  %20774 = vst [vmem:[#allocation65_spill] sm:$0xff] %v14169_v59  ;;  %20775 = vst [vmem:[#allocation66_spill] sm:$0xff] %v14178_v52  ;;  %v1728_v52 = vmax.f32 %v14194_v58, 0.0  ;;  %v14258_v10 = vadd.f32 %v13894_v62, %v13819_v53 }
 0x16c   : > { %v14062_v20 = vpop.f32.mrb[53].mxu1  ;;  %20776 = vst [vmem:[#allocation67_spill] sm:$0xff] %v14185_v2  ;;  %20777 = vst [vmem:[#allocation68_spill] sm:$0xff] %v14194_v58  ;;  %v1730_v58 = vmax.f32 %v14210_v1, 0.0  ;;  %v1737_v39 = vmax.f32 %v14249_v63, 0.0 }
 0x16d   : > { %20778 = vst [vmem:[#allocation69_spill] sm:$0xff] %v14201_v22  ;;  %20779 = vst [vmem:[#allocation70_spill] sm:$0xff] %v14210_v1  ;;  %v1732_v1 = vmax.f32 %v14226_v19, 0.0  ;;  %v1736_v62 = vmax.f32 %v14258_v10, 0.0 }
 0x16e   : > { %20780 = vst [vmem:[#allocation71_spill] sm:$0xff] %v14217_v51  ;;  %20781 = vst [vmem:[#allocation72_spill] sm:$0xff] %v14226_v19  ;;  %v1734_v19 = vmax.f32 %v14242_v47, 0.0 }
 0x16f   : > { %1956 = vrot.lane.b32.xlu1 %v1708_v8, %s13315_s23  ;;  %1958 = vrot.lane.b32.xlu0 %v1709_v56, %s13315_s23  ;;  %v1713_v8 = vmax.f32 %v14057_v29, 0.0  ;;  %v14076_v56 = vpop.f32.mrb[54].mxu1  ;;  %20782 = vst [vmem:[#allocation73_spill] sm:$0xff] %v14233_v12  ;;  %20783 = vst [vmem:[#allocation74_spill] sm:$0xff] %v14242_v47 }
 0x170   : > { %v14078_v25 = vpop.f32.mrb[55].mxu1  ;;  %20784 = vst [vmem:[#allocation75_spill] sm:$0xff] %v14249_v63  ;;  %20785 = vst [vmem:[#allocation76_spill] sm:$0xff] %v14258_v10 }
 0x173   : > { %1960 = vrot.lane.b32.xlu1 %v1710_v13, %s13315_s23  ;;  %1962 = vrot.lane.b32.xlu0 %v1711_v9, %s13315_s23  ;;  %v1715_v13 = vmax.f32 %v14073_v33, 0.0  ;;  %v14092_v9 = vpop.f32.mrb[56].mxu1 }
 0x174   : > { %v14094_v29 = vpop.f32.mrb[57].mxu1 }
 0x177   : > { %1964 = vrot.lane.b32.xlu1 %v1712_v17, %s13315_s23  ;;  %1966 = vrot.lane.b32.xlu0 %v1713_v8, %s13315_s23  ;;  %v1717_v17 = vmax.f32 %v14089_v37, 0.0  ;;  %v14108_v8 = vpop.f32.mrb[58].mxu1 }
 0x178   : > { %v14110_v33 = vpop.f32.mrb[59].mxu1 }
 0x17b   : > { %1968 = vrot.lane.b32.xlu1 %v1714_v24, %s13315_s23  ;;  %1970 = vrot.lane.b32.xlu0 %v1715_v13, %s13315_s23  ;;  %v1719_v24 = vmax.f32 %v14105_v41, 0.0  ;;  %v14124_v13 = vpop.f32.mrb[60].mxu1 }
 0x17c   : > { %v14126_v37 = vpop.f32.mrb[61].mxu1 }
 0x17f   : > { %1972 = vrot.lane.b32.xlu1 %v1716_v28, %s13315_s23  ;;  %1974 = vrot.lane.b32.xlu0 %v1717_v17, %s13315_s23  ;;  %v1721_v28 = vmax.f32 %v14121_v45, 0.0  ;;  %v14140_v17 = vpop.f32.mrb[62].mxu1 }
 0x180   : > { %v14142_v41 = vpop.f32.mrb[63].mxu1 }
 0x183   : > { %1976 = vrot.lane.b32.xlu1 %v1718_v32, %s13315_s23  ;;  %1978 = vrot.lane.b32.xlu0 %v1719_v24, %s13315_s23  ;;  %v1723_v32 = vmax.f32 %v14137_v49, 0.0  ;;  %v14156_v24 = vpop.f32.mrb[64].mxu1 }
 0x184   : > { %v14158_v45 = vpop.f32.mrb[65].mxu1 }
 0x187   : > { %1980 = vrot.lane.b32.xlu1 %v1720_v36, %s13315_s23  ;;  %1982 = vrot.lane.b32.xlu0 %v1721_v28, %s13315_s23  ;;  %v1725_v36 = vmax.f32 %v14153_v54, 0.0  ;;  %v14172_v28 = vpop.f32.mrb[66].mxu1 }
 0x188   : > { %v14174_v49 = vpop.f32.mrb[67].mxu1 }
 0x18b   : > { %1984 = vrot.lane.b32.xlu1 %v1722_v40, %s13315_s23  ;;  %1986 = vrot.lane.b32.xlu0 %v1723_v32, %s13315_s23  ;;  %v1727_v40 = vmax.f32 %v14169_v59, 0.0  ;;  %v14188_v32 = vpop.f32.mrb[68].mxu1 }
 0x18c   : > { %v14190_v54 = vpop.f32.mrb[69].mxu1 }
 0x18f   : > { %1988 = vrot.lane.b32.xlu1 %v1724_v44, %s13315_s23  ;;  %1990 = vrot.lane.b32.xlu0 %v1725_v36, %s13315_s23  ;;  %v1729_v44 = vmax.f32 %v14185_v2, 0.0  ;;  %v14204_v36 = vpop.f32.mrb[70].mxu1 }
 0x190   : > { %v14206_v59 = vpop.f32.mrb[71].mxu1 }
 0x193   : > { %1992 = vrot.lane.b32.xlu1 %v1726_v48, %s13315_s23  ;;  %1994 = vrot.lane.b32.xlu0 %v1727_v40, %s13315_s23  ;;  %v1731_v48 = vmax.f32 %v14201_v22, 0.0  ;;  %v14220_v40 = vpop.f32.mrb[72].mxu1 }
 0x194   : > { %v14222_v2 = vpop.f32.mrb[73].mxu1 }
 0x197   : > { %1996 = vrot.lane.b32.xlu1 %v1728_v52, %s13315_s23  ;;  %1998 = vrot.lane.b32.xlu0 %v1729_v44, %s13315_s23  ;;  %v1733_v52 = vmax.f32 %v14217_v51, 0.0  ;;  %v14236_v44 = vpop.f32.mrb[74].mxu1 }
 0x198   : > { %v14238_v22 = vpop.f32.mrb[75].mxu1 }
 0x19b   : > { %2000 = vrot.lane.b32.xlu1 %v1730_v58, %s13315_s23  ;;  %2002 = vrot.lane.b32.xlu0 %v1731_v48, %s13315_s23  ;;  %v1735_v58 = vmax.f32 %v14233_v12, 0.0  ;;  %v14252_v48 = vpop.f32.mrb[76].mxu1 }
 0x19c   : > { %v14254_v51 = vpop.f32.mrb[77].mxu1 }
 0x19f   : > { %2004 = vrot.lane.b32.xlu1 %v1732_v1, %s13315_s23  ;;  %2006 = vrot.lane.b32.xlu0 %v1733_v52, %s13315_s23  ;;  %v14266_v1 = vadd.f32 %v13819_v53, %v13924_v50  ;;  %v14270_v52 = vadd.f32 %v13908_v35, %v13819_v53 }
 0x1a1   : > { %20786 = vst [vmem:[#allocation77_spill] sm:$0xff] %v14266_v1  ;;  %20787 = vst [vmem:[#allocation78_spill] sm:$0xff] %v14270_v52  ;;  %v1739_v50 = vmax.f32 %v14266_v1, 0.0  ;;  %v1738_v10 = vmax.f32 %v14270_v52, 0.0 }
 0x1a3   : > { %2008 = vrot.lane.b32.xlu1 %v1734_v19, %s13315_s23  ;;  %2010 = vrot.lane.b32.xlu0 %v1735_v58, %s13315_s23  ;;  %v14278_v19 = vadd.f32 %v13819_v53, %v13938_v38  ;;  %v14283_v58 = vadd.f32 %v13922_v46, %v13819_v53  ;;  %v14292_v38 = vadd.f32 %v13819_v53, %v13952_v21 }
 0x1a4   : > { %v14297_v46 = vadd.f32 %v13936_v34, %v13819_v53  ;;  %v14306_v21 = vadd.f32 %v13819_v53, %v13966_v5  ;;  %v14311_v34 = vadd.f32 %v13950_v15, %v13819_v53  ;;  %v14320_v5 = vadd.f32 %v13819_v53, %v13980_v30 }
 0x1a5   : > { %v1899_v12 = vpop.permute.xlu0 %1898  ;;  %20788 = vst [vmem:[#allocation79_spill] sm:$0xff] %v14283_v58  ;;  %v14325_v15 = vadd.f32 %v13964_v4, %v13819_v53  ;;  %v14334_v30 = vadd.f32 %v13819_v53, %v13998_v61  ;;  %v14339_v4 = vadd.f32 %v13978_v3, %v13819_v53  ;;  %v14348_v61 = vadd.f32 %v13819_v53, %v14014_v43 }
 0x1a6   : > { %12361 = vmatprep.mubr.msk.f32.mxu0 %vm2106_vm4, %v1899_v12  ;;  %v1741_v12 = vmax.f32 %v14278_v19, 0.0  ;;  %20789 = vst [vmem:[#allocation80_spill] sm:$0xff] %v14306_v21  ;;  %v14353_v3 = vadd.f32 %v13996_v11, %v13819_v53  ;;  %v14362_v43 = vadd.f32 %v13819_v53, %v14030_v42  ;;  %v14367_v11 = vadd.f32 %v14012_v7, %v13819_v53 }
 0x1a7   : > { %2012 = vrot.lane.b32.xlu1 %v1736_v62, %s13315_s23  ;;  %2014 = vrot.lane.b32.xlu0 %v1737_v39, %s13315_s23  ;;  %v1740_v62 = vmax.f32 %v14283_v58, 0.0  ;;  %20790 = vst [vmem:[#allocation81_spill] sm:$0xff] %v14334_v30  ;;  %20791 = vst [vmem:[#allocation82_spill] sm:$0xff] %v14348_v61  ;;  %v14376_v42 = vadd.f32 %v13819_v53, %v14046_v16  ;;  %v14381_v7 = vadd.f32 %v14028_v26, %v13819_v53 }
 0x1a8   : > { %v14390_v16 = vadd.f32 %v13819_v53, %v14062_v20  ;;  %v14395_v26 = vadd.f32 %v14044_v14, %v13819_v53  ;;  %v14404_v20 = vadd.f32 %v13819_v53, %v14078_v25  ;;  %v14409_v14 = vadd.f32 %v14060_v27, %v13819_v53 }
 0x1a9   : > { %v1903_v35 = vpop.permute.xlu1 %1902  ;;  %v1901_v63 = vpop.permute.xlu0 %1900  ;;  %20792 = vst [vmem:[#allocation83_spill] sm:$0xff] %v14376_v42  ;;  %v14418_v25 = vadd.f32 %v13819_v53, %v14094_v29  ;;  %v14423_v27 = vadd.f32 %v14076_v56, %v13819_v53  ;;  %v14432_v29 = vadd.f32 %v13819_v53, %v14110_v33  ;;  %v14437_v56 = vadd.f32 %v14092_v9, %v13819_v53 }
 0x1aa   : > { %12362 = vmatmul.mubr.msk.f32.vlgmr.msra.gmra.mrb[52].mxu0 %vm2106_vm4, %v1901_v63  ;;  %20793 = vst [vmem:[#allocation84_spill] sm:$0xff] %v14390_v16  ;;  %v14446_v33 = vadd.f32 %v13819_v53, %v14126_v37  ;;  %v14451_v9 = vadd.f32 %v14108_v8, %v13819_v53  ;;  %v14460_v37 = vadd.f32 %v13819_v53, %v14142_v41  ;;  %v4911_v41 = vld [vmem:[%s20179_s8] sm:$0xff] }
 0x1ab   : > { %2016 = vrot.lane.b32.xlu1 %v1738_v10, %s13315_s23  ;;  %12364 = vmatprep.mubr.msk.f32.mxu0 %vm2106_vm4, %v1903_v35  ;;  %v1743_v10 = vmax.f32 %v14292_v38, 0.0  ;;  %v1742_v35 = vmax.f32 %v14297_v46, 0.0  ;;  %v14465_v8 = vadd.f32 %v14124_v13, %v13819_v53  ;;  %v14480_v13 = vadd.f32 %v13819_v53, %v14158_v45 }
 0x1ac   : > { %2018 = vrot.lane.b32.xlu0 %v1739_v50, %s13315_s23  ;;  %20794 = vst [vmem:[#allocation85_spill] sm:$0xff] %v14446_v33  ;;  %v14494_v45 = vadd.f32 %v13819_v53, %v14174_v49  ;;  %v14508_v49 = vadd.f32 %v13819_v53, %v14190_v54  ;;  %v14522_v54 = vadd.f32 %v13819_v53, %v14206_v59 }
 0x1ad   : > { %v1905_v39 = vpop.permute.xlu1 %1904  ;;  %v1907_v63 = vpop.permute.xlu0 %1906  ;;  %20795 = vst [vmem:[#allocation86_spill] sm:$0xff] %v14465_v8  ;;  %20796 = vst [vmem:[#allocation87_spill] sm:$0xff] %v14480_v13  ;;  %v14536_v59 = vadd.f32 %v13819_v53, %v14222_v2  ;;  %v14551_v2 = vadd.f32 %v13819_v53, %v14238_v22  ;;  %v14565_v22 = vadd.f32 %v13819_v53, %v14254_v51 }
 0x1ae   : > { %12365 = vmatmul.mubr.msk.f32.gmra.mrb[54].mxu0 %vm2106_vm4, %v1905_v39  ;;  %20797 = vst [vmem:[#allocation88_spill] sm:$0xff] %v14494_v45  ;;  %20799 = vst [vmem:[#allocation90_spill] sm:$0xff] %v14508_v49 }
 0x1af   : > { %2020 = vrot.lane.b32.xlu1 %v1740_v62, %s13315_s23  ;;  %12367 = vmatprep.mubr.msk.f32.mxu0 %vm2106_vm4, %v1907_v63  ;;  %v1744_v63 = vmax.f32 %v14311_v34, 0.0  ;;  %20801 = vst [vmem:[#allocation92_spill] sm:$0xff] %v14522_v54  ;;  %20803 = vst [vmem:[#allocation94_spill] sm:$0xff] %v14536_v59 }
 0x1b0   : > { %2022 = vrot.lane.b32.xlu0 %v1741_v12, %s13315_s23  ;;  %v1745_v12 = vmax.f32 %v14306_v21, 0.0  ;;  %20805 = vst [vmem:[#allocation96_spill] sm:$0xff] %v14551_v2  ;;  %20807 = vst [vmem:[#allocation98_spill] sm:$0xff] %v14565_v22 }
 0x1b1   : > { %v1909_v50 = vpop.permute.xlu1 %1908  ;;  %v1911_v39 = vpop.permute.xlu0 %1910 }
 0x1b2   : > { %12368 = vmatmul.mubr.msk.f32.gmra.mrb[56].mxu0 %vm2106_vm4, %v1909_v50 }
 0x1b3   : > { %2024 = vrot.lane.b32.xlu1 %v1742_v35, %s13315_s23  ;;  %12370 = vmatprep.mubr.msk.f32.mxu0 %vm2106_vm4, %v1911_v39  ;;  %v1746_v39 = vmax.f32 %v14325_v15, 0.0 }
 0x1b4   : > { %2026 = vrot.lane.b32.xlu0 %v1743_v10, %s13315_s23  ;;  %v1747_v10 = vmax.f32 %v14320_v5, 0.0 }
 0x1b5   : > { %v1913_v62 = vpop.permute.xlu1 %1912  ;;  %v1915_v50 = vpop.permute.xlu0 %1914 }
 0x1b6   : > { %12371 = vmatmul.mubr.msk.f32.gmra.mrb[58].mxu0 %vm2106_vm4, %v1913_v62 }
 0x1b7   : > { %2028 = vrot.lane.b32.xlu1 %v1744_v63, %s13315_s23  ;;  %12373 = vmatprep.mubr.msk.f32.mxu0 %vm2106_vm4, %v1915_v50  ;;  %v1748_v50 = vmax.f32 %v14339_v4, 0.0 }
 0x1b8   : > { %2030 = vrot.lane.b32.xlu0 %v1745_v12, %s13315_s23  ;;  %v1749_v12 = vmax.f32 %v14334_v30, 0.0 }
 0x1b9   : > { %v1917_v35 = vpop.permute.xlu1 %1916  ;;  %v1919_v62 = vpop.permute.xlu0 %1918 }
 0x1ba   : > { %12374 = vmatmul.mubr.msk.f32.gmra.mrb[60].mxu0 %vm2106_vm4, %v1917_v35 }
 0x1bb   : > { %2032 = vrot.lane.b32.xlu1 %v1746_v39, %s13315_s23  ;;  %12376 = vmatprep.mubr.msk.f32.mxu0 %vm2106_vm4, %v1919_v62  ;;  %v1750_v62 = vmax.f32 %v14353_v3, 0.0 }
 0x1bc   : > { %2034 = vrot.lane.b32.xlu0 %v1747_v10, %s13315_s23  ;;  %v1751_v10 = vmax.f32 %v14348_v61, 0.0 }
 0x1bd   : > { %v1921_v63 = vpop.permute.xlu1 %1920  ;;  %v1923_v35 = vpop.permute.xlu0 %1922 }
 0x1be   : > { %12377 = vmatmul.mubr.msk.f32.gmra.mrb[62].mxu0 %vm2106_vm4, %v1921_v63 }
 0x1bf   : > { %2036 = vrot.lane.b32.xlu1 %v1748_v50, %s13315_s23  ;;  %12379 = vmatprep.mubr.msk.f32.mxu0 %vm2106_vm4, %v1923_v35  ;;  %v1752_v35 = vmax.f32 %v14367_v11, 0.0 }
 0x1c0   : > { %2038 = vrot.lane.b32.xlu0 %v1749_v12, %s13315_s23  ;;  %v1753_v12 = vmax.f32 %v14362_v43, 0.0 }
 0x1c1   : > { %v1925_v39 = vpop.permute.xlu1 %1924  ;;  %v1927_v63 = vpop.permute.xlu0 %1926 }
 0x1c2   : > { %12380 = vmatmul.mubr.msk.f32.gmra.mrb[64].mxu0 %vm2106_vm4, %v1925_v39 }
 0x1c3   : > { %2040 = vrot.lane.b32.xlu1 %v1750_v62, %s13315_s23  ;;  %12382 = vmatprep.mubr.msk.f32.mxu0 %vm2106_vm4, %v1927_v63  ;;  %v1754_v63 = vmax.f32 %v14381_v7, 0.0 }
 0x1c4   : > { %2042 = vrot.lane.b32.xlu0 %v1751_v10, %s13315_s23  ;;  %v1755_v10 = vmax.f32 %v14376_v42, 0.0 }
 0x1c5   : > { %v1929_v50 = vpop.permute.xlu1 %1928  ;;  %v1931_v39 = vpop.permute.xlu0 %1930 }
 0x1c6   : > { %12383 = vmatmul.mubr.msk.f32.gmra.mrb[66].mxu0 %vm2106_vm4, %v1929_v50 }
 0x1c7   : > { %2044 = vrot.lane.b32.xlu1 %v1752_v35, %s13315_s23  ;;  %12385 = vmatprep.mubr.msk.f32.mxu0 %vm2106_vm4, %v1931_v39  ;;  %v1756_v39 = vmax.f32 %v14395_v26, 0.0 }
 0x1c8   : > { %2046 = vrot.lane.b32.xlu0 %v1753_v12, %s13315_s23  ;;  %v1757_v12 = vmax.f32 %v14390_v16, 0.0 }
 0x1c9   : > { %v1933_v62 = vpop.permute.xlu1 %1932  ;;  %v1935_v50 = vpop.permute.xlu0 %1934 }
 0x1ca   : > { %12386 = vmatmul.mubr.msk.f32.gmra.mrb[68].mxu0 %vm2106_vm4, %v1933_v62 }
 0x1cb   : > { %2048 = vrot.lane.b32.xlu1 %v1754_v63, %s13315_s23  ;;  %12388 = vmatprep.mubr.msk.f32.mxu0 %vm2106_vm4, %v1935_v50  ;;  %v1758_v50 = vmax.f32 %v14409_v14, 0.0 }
 0x1cc   : > { %2050 = vrot.lane.b32.xlu0 %v1755_v10, %s13315_s23  ;;  %v1759_v10 = vmax.f32 %v14404_v20, 0.0 }
 0x1cd   : > { %v1937_v35 = vpop.permute.xlu1 %1936  ;;  %v1939_v62 = vpop.permute.xlu0 %1938 }
 0x1ce   : > { %12389 = vmatmul.mubr.msk.f32.gmra.mrb[70].mxu0 %vm2106_vm4, %v1937_v35 }
 0x1cf   : > { %2052 = vrot.lane.b32.xlu1 %v1756_v39, %s13315_s23  ;;  %12391 = vmatprep.mubr.msk.f32.mxu0 %vm2106_vm4, %v1939_v62  ;;  %v1760_v62 = vmax.f32 %v14423_v27, 0.0 }
 0x1d0   : > { %2054 = vrot.lane.b32.xlu0 %v1757_v12, %s13315_s23  ;;  %v1761_v12 = vmax.f32 %v14418_v25, 0.0 }
 0x1d1   : > { %v1941_v63 = vpop.permute.xlu1 %1940  ;;  %v1943_v35 = vpop.permute.xlu0 %1942 }
 0x1d2   : > { %12392 = vmatmul.mubr.msk.f32.gmra.mrb[72].mxu0 %vm2106_vm4, %v1941_v63 }
 0x1d3   : > { %2056 = vrot.lane.b32.xlu1 %v1758_v50, %s13315_s23  ;;  %12394 = vmatprep.mubr.msk.f32.mxu0 %vm2106_vm4, %v1943_v35  ;;  %v1762_v35 = vmax.f32 %v14437_v56, 0.0 }
 0x1d4   : > { %2058 = vrot.lane.b32.xlu0 %v1759_v10, %s13315_s23  ;;  %v1763_v10 = vmax.f32 %v14432_v29, 0.0 }
 0x1d5   : > { %v1945_v39 = vpop.permute.xlu1 %1944  ;;  %v1947_v63 = vpop.permute.xlu0 %1946 }
 0x1d6   : > { %12395 = vmatmul.mubr.msk.f32.gmra.mrb[74].mxu0 %vm2106_vm4, %v1945_v39 }
 0x1d7   : > { %2060 = vrot.lane.b32.xlu1 %v1760_v62, %s13315_s23  ;;  %12397 = vmatprep.mubr.msk.f32.mxu0 %vm2106_vm4, %v1947_v63  ;;  %v1764_v63 = vmax.f32 %v14451_v9, 0.0 }
 0x1d8   : > { %2062 = vrot.lane.b32.xlu0 %v1761_v12, %s13315_s23  ;;  %v1765_v12 = vmax.f32 %v14446_v33, 0.0 }
 0x1d9   : > { %v1949_v50 = vpop.permute.xlu1 %1948  ;;  %v1951_v39 = vpop.permute.xlu0 %1950 }
 0x1da   : > { %12398 = vmatmul.mubr.msk.f32.gmra.mrb[76].mxu0 %vm2106_vm4, %v1949_v50 }
 0x1db   : > { %2064 = vrot.lane.b32.xlu1 %v1762_v35, %s13315_s23  ;;  %12400 = vmatprep.mubr.msk.f32.mxu0 %vm2106_vm4, %v1951_v39  ;;  %v1767_v35 = vmax.f32 %v14460_v37, 0.0 }
 0x1dc   : > { %2066 = vrot.lane.b32.xlu0 %v1763_v10, %s13315_s23  ;;  %v4912_v10 = vld [vmem:[%s20179_s8 + $0x8] sm:$0xff] }
 0x1dd   : > { %v1953_v62 = vpop.permute.xlu1 %1952  ;;  %v1955_v50 = vpop.permute.xlu0 %1954  ;;  %v12743_v39 = vpack.c.bf16 %v4912_v10, %v4911_v41 }
 0x1de   : > { %12401 = vmatmul.mubr.msk.f32.gmra.mrb[78].mxu0 %vm2106_vm4, %v1953_v62  ;;  %v14485_v62 = vadd.f32 %v14140_v17, %v13819_v53  ;;  %v1769_v17 = vmax.f32 %v14480_v13, 0.0  ;;  %v20927_v13 = vld [vmem:[#allocation8_spill] sm:$0xff] }
 0x1df   : > { %2068 = vrot.lane.b32.xlu1 %v1764_v63, %s13315_s23  ;;  %12403 = vmatprep.mubr.msk.f32.mxu0 %vm2106_vm4, %v1955_v50  ;;  %v1766_v50 = vmax.f32 %v14465_v8, 0.0 }
 0x1e0   : > { %2070 = vrot.lane.b32.xlu0 %v1765_v12, %s13315_s23  ;;  %12744 = vmatprep.subr.bf16.mxu1 %v12743_v39  ;;  %v14499_v12 = vadd.f32 %v14156_v24, %v13819_v53  ;;  %v1768_v10 = vmax.f32 %v14485_v62, 0.0  ;;  %v14513_v24 = vadd.f32 %v14172_v28, %v13819_v53  ;;  %v14527_v28 = vadd.f32 %v14188_v32, %v13819_v53 }
 0x1e1   : > { %v1957_v63 = vpop.permute.xlu1 %1956  ;;  %v1959_v33 = vpop.permute.xlu0 %1958  ;;  %12746 = vmatpush3.bf16.msra.mxu1 %v12743_v39  ;;  %v14541_v32 = vadd.f32 %v14204_v36, %v13819_v53  ;;  %v14555_v36 = vadd.f32 %v14220_v40, %v13819_v53 }
 0x1e2   : > { %12404 = vmatmul.mubr.msk.f32.gmra.mrb[80].mxu0 %vm2106_vm4, %v1957_v63  ;;  %20798 = vst [vmem:[#allocation89_spill] sm:$0xff] %v14499_v12  ;;  %20800 = vst [vmem:[#allocation91_spill] sm:$0xff] %v14513_v24  ;;  %v1770_v39 = vmax.f32 %v14499_v12, 0.0 }
 0x1e3   : > { %2072 = vrot.lane.b32.xlu1 %v1766_v50, %s13315_s23  ;;  %12406 = vmatprep.mubr.msk.f32.mxu0 %vm2106_vm4, %v1959_v33  ;;  %v1771_v33 = vmax.f32 %v14494_v45, 0.0  ;;  %20802 = vst [vmem:[#allocation93_spill] sm:$0xff] %v14527_v28  ;;  %20804 = vst [vmem:[#allocation95_spill] sm:$0xff] %v14541_v32  ;;  %v1778_v40 = vmax.f32 %v14555_v36, 0.0 }
 0x1e4   : > { %2074 = vrot.lane.b32.xlu0 %v1767_v35, %s13315_s23  ;;  %20806 = vst [vmem:[#allocation97_spill] sm:$0xff] %v14555_v36  ;;  %v20921_v36 = vld [vmem:[#allocation73_spill] sm:$0xff] }
 0x1e5   : > { %v1961_v41 = vpop.permute.xlu1 %1960  ;;  %v1963_v63 = vpop.permute.xlu0 %1962 }
 0x1e6   : > { %12407 = vmatmul.mubr.msk.f32.gmra.mrb[82].mxu0 %vm2106_vm4, %v1961_v41 }
 0x1e7   : > { %2076 = vrot.lane.b32.xlu1 %v1768_v10, %s13315_s23  ;;  %12409 = vmatprep.mubr.msk.f32.mxu0 %vm2106_vm4, %v1963_v63  ;;  %v1772_v10 = vmax.f32 %v14513_v24, 0.0 }
 0x1e8   : > { %2078 = vrot.lane.b32.xlu0 %v1769_v17, %s13315_s23  ;;  %v1773_v17 = vmax.f32 %v14508_v49, 0.0 }
 0x1e9   : > { %v1965_v35 = vpop.permute.xlu1 %1964  ;;  %v1967_v50 = vpop.permute.xlu0 %1966 }
 0x1ea   : > { %12410 = vmatmul.mubr.msk.f32.gmra.mrb[84].mxu0 %vm2106_vm4, %v1965_v35 }
 0x1eb   : > { %2080 = vrot.lane.b32.xlu1 %v1770_v39, %s13315_s23  ;;  %12412 = vmatprep.mubr.msk.f32.mxu0 %vm2106_vm4, %v1967_v50  ;;  %v1774_v39 = vmax.f32 %v14527_v28, 0.0 }
 0x1ec   : > { %2082 = vrot.lane.b32.xlu0 %v1771_v33, %s13315_s23  ;;  %v1775_v33 = vmax.f32 %v14522_v54, 0.0 }
 0x1ed   : > { %v1969_v41 = vpop.permute.xlu1 %1968  ;;  %v1971_v63 = vpop.permute.xlu0 %1970 }
 0x1ee   : > { %12413 = vmatmul.mubr.msk.f32.gmra.mrb[86].mxu0 %vm2106_vm4, %v1969_v41 }
 0x1ef   : > { %2084 = vrot.lane.b32.xlu1 %v1772_v10, %s13315_s23  ;;  %12415 = vmatprep.mubr.msk.f32.mxu0 %vm2106_vm4, %v1971_v63  ;;  %v1776_v10 = vmax.f32 %v14541_v32, 0.0 }
 0x1f0   : > { %2086 = vrot.lane.b32.xlu0 %v1773_v17, %s13315_s23  ;;  %v1777_v17 = vmax.f32 %v14536_v59, 0.0 }
 0x1f1   : > { %v1973_v35 = vpop.permute.xlu1 %1972  ;;  %v1975_v50 = vpop.permute.xlu0 %1974 }
 0x1f2   : > { %12416 = vmatmul.mubr.msk.f32.gmra.mrb[88].mxu0 %vm2106_vm4, %v1973_v35  ;;  %v14570_v35 = vadd.f32 %v14236_v44, %v13819_v53 }
 0x1f3   : > { %2088 = vrot.lane.b32.xlu1 %v1774_v39, %s13315_s23  ;;  %12418 = vmatprep.mubr.msk.f32.mxu0 %vm2106_vm4, %v1975_v50 }
 0x1f4   : > { %2090 = vrot.lane.b32.xlu0 %v1775_v33, %s13315_s23  ;;  %v1779_v33 = vmax.f32 %v14551_v2, 0.0  ;;  %20808 = vst [vmem:[#allocation99_spill] sm:$0xff] %v14570_v35  ;;  %v1780_v51 = vmax.f32 %v14570_v35, 0.0 }
 0x1f5   : > { %v1977_v41 = vpop.permute.xlu1 %1976  ;;  %v1979_v63 = vpop.permute.xlu0 %1978 }
 0x1f6   : > { %12419 = vmatmul.mubr.msk.f32.gmra.mrb[90].mxu0 %vm2106_vm4, %v1977_v41  ;;  %v14580_v41 = vadd.f32 %v14252_v48, %v13819_v53 }
 0x1f7   : > { %2092 = vrot.lane.b32.xlu1 %v1776_v10, %s13315_s23  ;;  %12421 = vmatprep.mubr.msk.f32.mxu0 %vm2106_vm4, %v1979_v63 }
 0x1f8   : > { %2094 = vrot.lane.b32.xlu0 %v1777_v17, %s13315_s23  ;;  %v1781_v17 = vmax.f32 %v14565_v22, 0.0  ;;  %20809 = vst [vmem:[#allocation100_spill] sm:$0xff] %v14580_v41  ;;  %v1782_v63 = vmax.f32 %v14580_v41, 0.0 }
 0x1f9   : > { %v1981_v39 = vpop.permute.xlu1 %1980  ;;  %v1983_v50 = vpop.permute.xlu0 %1982 }
 0x1fa   : > { %12422 = vmatmul.mubr.msk.f32.gmra.mrb[92].mxu0 %vm2106_vm4, %v1981_v39  ;;  %v11666_v39 = vld [vmem:[%s20178_s7] ss:$0 sm:$0xff] }
 0x1fb   : > { %2096 = vrot.lane.b32.xlu1 %v1778_v40, %s13315_s23  ;;  %12424 = vmatprep.mubr.msk.f32.mxu0 %vm2106_vm4, %v1983_v50 }
 0x1fc   : > { %2098 = vrot.lane.b32.xlu0 %v1779_v33, %s13315_s23 }
 0x1fd   : > { %v1985_v44 = vpop.permute.xlu1 %1984  ;;  %v1987_v10 = vpop.permute.xlu0 %1986 }
 0x1fe   : > { %12425 = vmatmul.mubr.msk.f32.gmra.mrb[94].mxu0 %vm2106_vm4, %v1985_v44 }
 0x1ff   : > { %2100 = vrot.lane.b32.xlu1 %v1780_v51, %s13315_s23  ;;  %12427 = vmatprep.mubr.msk.f32.mxu0 %vm2106_vm4, %v1987_v10 }
 0x200   : > { %2102 = vrot.lane.b32.xlu0 %v1781_v17, %s13315_s23 }
 0x201   : > { %v1989_v40 = vpop.permute.xlu1 %1988  ;;  %v1991_v33 = vpop.permute.xlu0 %1990 }
 0x202   : > { %12428 = vmatmul.mubr.msk.f32.gmra.mrb[96].mxu0 %vm2106_vm4, %v1989_v40 }
 0x203   : > { %2104 = vrot.lane.b32.xlu1 %v1782_v63, %s13315_s23  ;;  %12430 = vmatprep.mubr.msk.f32.mxu0 %vm2106_vm4, %v1991_v33 }
 0x204   : > { %3660 = vrot.lane.b32.xlu0 %v11666_v39, %s13316_s30 }
 0x205   : > { %v1993_v53 = vpop.permute.xlu1 %1992  ;;  %v1995_v48 = vpop.permute.xlu0 %1994 }
 0x206   : > { %12431 = vmatmul.mubr.msk.f32.gmra.mrb[98].mxu0 %vm2106_vm4, %v1993_v53 }
 0x207   : > { %12433 = vmatprep.mubr.msk.f32.mxu0 %vm2106_vm4, %v1995_v48 }
 0x209   : > { %v1997_v50 = vpop.permute.xlu1 %1996  ;;  %v1999_v17 = vpop.permute.xlu0 %1998 }
 0x20a   : > { %12434 = vmatmul.mubr.msk.f32.gmra.mrb[100].mxu0 %vm2106_vm4, %v1997_v50 }
 0x20b   : > { %12436 = vmatprep.mubr.msk.f32.mxu0 %vm2106_vm4, %v1999_v17 }
 0x20d   : > { %v2001_v51 = vpop.permute.xlu1 %2000  ;;  %v2003_v44 = vpop.permute.xlu0 %2002 }
 0x20e   : > { %12437 = vmatmul.mubr.msk.f32.gmra.mrb[102].mxu0 %vm2106_vm4, %v2001_v51 }
 0x20f   : > { %12439 = vmatprep.mubr.msk.f32.mxu0 %vm2106_vm4, %v2003_v44 }
 0x211   : > { %v2005_v10 = vpop.permute.xlu1 %2004  ;;  %v2007_v63 = vpop.permute.xlu0 %2006 }
 0x212   : > { %12440 = vmatmul.mubr.msk.f32.gmra.mrb[104].mxu0 %vm2106_vm4, %v2005_v10 }
 0x213   : > { %12442 = vmatprep.mubr.msk.f32.mxu0 %vm2106_vm4, %v2007_v63 }
 0x215   : > { %v2009_v40 = vpop.permute.xlu1 %2008  ;;  %v2011_v33 = vpop.permute.xlu0 %2010 }
 0x216   : > { %12443 = vmatmul.mubr.msk.f32.gmra.mrb[106].mxu0 %vm2106_vm4, %v2009_v40 }
 0x217   : > { %12445 = vmatprep.mubr.msk.f32.mxu0 %vm2106_vm4, %v2011_v33 }
 0x219   : > { %v2013_v39 = vpop.permute.xlu1 %2012  ;;  %v2015_v53 = vpop.permute.xlu0 %2014 }
 0x21a   : > { %12446 = vmatmul.mubr.msk.f32.gmra.mrb[108].mxu0 %vm2106_vm4, %v2013_v39 }
 0x21b   : > { %12448 = vmatprep.mubr.msk.f32.mxu0 %vm2106_vm4, %v2015_v53 }
 0x21d   : > { %v2017_v48 = vpop.permute.xlu1 %2016 }
 0x21e   : > { %12449 = vmatmul.mubr.msk.f32.gmra.mrb[110].mxu0 %vm2106_vm4, %v2017_v48  ;;  %v2019_v50 = vpop.permute.xlu0 %2018 }
 0x21f   : > { %12451 = vmatprep.mubr.msk.f32.mxu0 %vm2106_vm4, %v2019_v50  ;;  %v4913_v50 = vld [vmem:[%s20179_s8 + $0x10] sm:$0xff] }
 0x221   : > { %v2021_v17 = vpop.permute.xlu1 %2020 }
 0x222   : > { %12452 = vmatmul.mubr.msk.f32.gmra.mrb[112].mxu0 %vm2106_vm4, %v2021_v17  ;;  %v2023_v51 = vpop.permute.xlu0 %2022  ;;  %v4914_v17 = vld [vmem:[%s20179_s8 + $0x18] sm:$0xff] }
 0x223   : > { %12454 = vmatprep.mubr.msk.f32.mxu0 %vm2106_vm4, %v2023_v51  ;;  %v12747_v51 = vpack.c.bf16 %v4914_v17, %v4913_v50 }
 0x225   : > { %v2025_v44 = vpop.permute.xlu1 %2024  ;;  %12748 = vmatprep.subr.bf16.mxu1 %v12747_v51 }
 0x226   : > { %12455 = vmatmul.mubr.msk.f32.gmra.mrb[114].mxu0 %vm2106_vm4, %v2025_v44  ;;  %v2027_v10 = vpop.permute.xlu0 %2026  ;;  %12750 = vmatpush3.bf16.msra.mxu1 %v12747_v51 }
 0x227   : > { %12457 = vmatprep.mubr.msk.f32.mxu0 %vm2106_vm4, %v2027_v10 }
 0x229   : > { %v2029_v63 = vpop.permute.xlu1 %2028 }
 0x22a   : > { %12458 = vmatmul.mubr.msk.f32.gmra.mrb[116].mxu0 %vm2106_vm4, %v2029_v63  ;;  %v2031_v40 = vpop.permute.xlu0 %2030 }
 0x22b   : > { %12460 = vmatprep.mubr.msk.f32.mxu0 %vm2106_vm4, %v2031_v40 }
 0x22d   : > { %v2033_v33 = vpop.permute.xlu1 %2032 }
 0x22e   : > { %12461 = vmatmul.mubr.msk.f32.gmra.mrb[118].mxu0 %vm2106_vm4, %v2033_v33  ;;  %v2035_v39 = vpop.permute.xlu0 %2034 }
 0x22f   : > { %12463 = vmatprep.mubr.msk.f32.mxu0 %vm2106_vm4, %v2035_v39 }
 0x231   : > { %v2037_v53 = vpop.permute.xlu1 %2036 }
 0x232   : > { %12464 = vmatmul.mubr.msk.f32.gmra.mrb[120].mxu0 %vm2106_vm4, %v2037_v53  ;;  %v2039_v48 = vpop.permute.xlu0 %2038 }
 0x233   : > { %12466 = vmatprep.mubr.msk.f32.mxu0 %vm2106_vm4, %v2039_v48 }
 0x235   : > { %v2041_v44 = vpop.permute.xlu1 %2040 }
 0x236   : > { %12467 = vmatmul.mubr.msk.f32.gmra.mrb[122].mxu0 %vm2106_vm4, %v2041_v44  ;;  %v2043_v10 = vpop.permute.xlu0 %2042 }
 0x237   : > { %12469 = vmatprep.mubr.msk.f32.mxu0 %vm2106_vm4, %v2043_v10 }
 0x239   : > { %v2045_v63 = vpop.permute.xlu1 %2044 }
 0x23a   : > { %12470 = vmatmul.mubr.msk.f32.gmra.mrb[124].mxu0 %vm2106_vm4, %v2045_v63  ;;  %v2047_v40 = vpop.permute.xlu0 %2046 }
 0x23b   : > { %12472 = vmatprep.mubr.msk.f32.mxu0 %vm2106_vm4, %v2047_v40 }
 0x23d   : > { %v2049_v33 = vpop.permute.xlu1 %2048 }
 0x23e   : > { %12473 = vmatmul.mubr.msk.f32.gmra.mrb[126].mxu0 %vm2106_vm4, %v2049_v33  ;;  %v2051_v39 = vpop.permute.xlu0 %2050 }
 0x23f   : > { %12475 = vmatprep.mubr.msk.f32.mxu0 %vm2106_vm4, %v2051_v39 }
 0x241   : > { %v2053_v53 = vpop.permute.xlu1 %2052 }
 0x242   : > { %12476 = vmatmul.mubr.msk.f32.gmra.mrb[128].mxu0 %vm2106_vm4, %v2053_v53  ;;  %v2055_v48 = vpop.permute.xlu0 %2054 }
 0x243   : > { %12478 = vmatprep.mubr.msk.f32.mxu0 %vm2106_vm4, %v2055_v48 }
 0x245   : > { %v2057_v50 = vpop.permute.xlu1 %2056 }
 0x246   : > { %12479 = vmatmul.mubr.msk.f32.gmra.mrb[130].mxu0 %vm2106_vm4, %v2057_v50  ;;  %v2059_v17 = vpop.permute.xlu0 %2058 }
 0x247   : > { %12481 = vmatprep.mubr.msk.f32.mxu0 %vm2106_vm4, %v2059_v17 }
 0x249   : > { %v2061_v51 = vpop.permute.xlu1 %2060 }
 0x24a   : > { %12482 = vmatmul.mubr.msk.f32.gmra.mrb[132].mxu0 %vm2106_vm4, %v2061_v51  ;;  %v2063_v44 = vpop.permute.xlu0 %2062 }
 0x24b   : > { %12484 = vmatprep.mubr.msk.f32.mxu0 %vm2106_vm4, %v2063_v44 }
 0x24d   : > { %v2065_v10 = vpop.permute.xlu1 %2064 }
 0x24e   : > { %12485 = vmatmul.mubr.msk.f32.gmra.mrb[134].mxu0 %vm2106_vm4, %v2065_v10  ;;  %v2067_v63 = vpop.permute.xlu0 %2066 }
 0x24f   : > { %12487 = vmatprep.mubr.msk.f32.mxu0 %vm2106_vm4, %v2067_v63 }
 0x251   : > { %v2069_v40 = vpop.permute.xlu1 %2068 }
 0x252   : > { %12488 = vmatmul.mubr.msk.f32.gmra.mrb[136].mxu0 %vm2106_vm4, %v2069_v40  ;;  %v2071_v33 = vpop.permute.xlu0 %2070 }
 0x253   : > { %12490 = vmatprep.mubr.msk.f32.mxu0 %vm2106_vm4, %v2071_v33 }
 0x255   : > { %v2073_v39 = vpop.permute.xlu1 %2072 }
 0x256   : > { %12491 = vmatmul.mubr.msk.f32.gmra.mrb[138].mxu0 %vm2106_vm4, %v2073_v39  ;;  %v2075_v53 = vpop.permute.xlu0 %2074 }
 0x257   : > { %12493 = vmatprep.mubr.msk.f32.mxu0 %vm2106_vm4, %v2075_v53 }
 0x259   : > { %v2077_v48 = vpop.permute.xlu1 %2076 }
 0x25a   : > { %12494 = vmatmul.mubr.msk.f32.gmra.mrb[140].mxu0 %vm2106_vm4, %v2077_v48  ;;  %v2079_v50 = vpop.permute.xlu0 %2078 }
 0x25b   : > { %12496 = vmatprep.mubr.msk.f32.mxu0 %vm2106_vm4, %v2079_v50 }
 0x25d   : > { %v2081_v17 = vpop.permute.xlu1 %2080 }
 0x25e   : > { %12497 = vmatmul.mubr.msk.f32.gmra.mrb[142].mxu0 %vm2106_vm4, %v2081_v17  ;;  %v2083_v51 = vpop.permute.xlu0 %2082 }
 0x25f   : > { %12499 = vmatprep.mubr.msk.f32.mxu0 %vm2106_vm4, %v2083_v51 }
 0x261   : > { %v2085_v44 = vpop.permute.xlu1 %2084 }
 0x262   : > { %12500 = vmatmul.mubr.msk.f32.gmra.mrb[144].mxu0 %vm2106_vm4, %v2085_v44  ;;  %v2087_v10 = vpop.permute.xlu0 %2086  ;;  %v20810_v44 = vmov 0.0  }
 0x263   : > { %12502 = vmatprep.mubr.msk.f32.mxu0 %vm2106_vm4, %v2087_v10  ;;  %v14662_v10 = vld [vmem:[%s20177_s6] ss:$0 sm:$0xff] }
 0x265   : > { %v2089_v63 = vpop.permute.xlu1 %2088 }
 0x266   : > { %12503 = vmatmul.mubr.msk.f32.gmra.mrb[146].mxu0 %vm2106_vm4, %v2089_v63  ;;  %v2091_v40 = vpop.permute.xlu0 %2090 }
 0x267   : > { %12505 = vmatprep.mubr.msk.f32.mxu0 %vm2106_vm4, %v2091_v40 }
 0x269   : > { %v2093_v33 = vpop.permute.xlu1 %2092 }
 0x26a   : > { %12506 = vmatmul.mubr.msk.f32.gmra.mrb[148].mxu0 %vm2106_vm4, %v2093_v33  ;;  %v2095_v39 = vpop.permute.xlu0 %2094 }
 0x26b   : > { %12508 = vmatprep.mubr.msk.f32.mxu0 %vm2106_vm4, %v2095_v39 }
 0x26d   : > { %v2097_v53 = vpop.permute.xlu1 %2096 }
 0x26e   : > { %12509 = vmatmul.mubr.msk.f32.gmra.mrb[150].mxu0 %vm2106_vm4, %v2097_v53  ;;  %v2099_v48 = vpop.permute.xlu0 %2098 }
 0x26f   : > { %12511 = vmatprep.mubr.msk.f32.mxu0 %vm2106_vm4, %v2099_v48 }
 0x271   : > { %v2101_v50 = vpop.permute.xlu1 %2100 }
 0x272   : > { %12512 = vmatmul.mubr.msk.f32.gmra.mrb[152].mxu0 %vm2106_vm4, %v2101_v50  ;;  %v2103_v17 = vpop.permute.xlu0 %2102 }
 0x273   : > { %12514 = vmatprep.mubr.msk.f32.mxu0 %vm2106_vm4, %v2103_v17 }
 0x275   : > { %v2105_v51 = vpop.permute.xlu1 %2104 }
 0x276   : > { %12515 = vmatmul.mubr.msk.f32.gmra.mrb[154].mxu0 %vm2106_vm4, %v2105_v51  ;;  %v14670_v53 = vpop.permute.xlu0 %3660 }
 0x277   : > { %12689 = vmatprep.mubr.msk.f32.mxu0 %vm13313_vm0, %v20810_v44 }
 0x27d   : > { %v12363_v63 = vpop.f32.mrb[52].mxu0 }
 0x27e   : > { %v14665_v40 = vadd.f32 %v12363_v63, %v14662_v10  ;;  %v2381_v33 = vpop.f32.mrb[53].mxu0 }
 0x27f   : > { %v14668_v39 = vadd.f32 %v14662_v10, %v2381_v33 }
 0x280   : > { %20811 = vst [vmem:[#allocation101_spill] sm:$0xff] %v14665_v40  ;;  %v3551_v48 = vsub.f32 %v14665_v40, %v13831_v60 }
 0x281   : > { %20812 = vst [vmem:[#allocation102_spill] sm:$0xff] %v14668_v39  ;;  %v3550_v50 = vsub.f32 %v14668_v39, %v13824_v57  ;;  %v12366_v17 = vpop.f32.mrb[54].mxu0 }
 0x282   : > { %v14677_v51 = vadd.f32 %v12366_v17, %v14662_v10  ;;  %v2391_v44 = vpop.f32.mrb[55].mxu0  ;;  %v3664_v63 = vadd.f32 %v14670_v53, %v3551_v48 }
 0x283   : > { %v14681_v22 = vadd.f32 %v14662_v10, %v2391_v44  ;;  %v3663_v33 = vadd.f32 %v14670_v53, %v3550_v50 }
 0x284   : > { %20813 = vst [vmem:[#allocation103_spill] sm:$0xff] %v14677_v51  ;;  %v3553_v41 = vsub.f32 %v14677_v51, %v13843_v6  ;;  %4393 = vrot.lane.b32.xlu0 %v3664_v63, %s20446_s21 }
 0x285   : > { %20814 = vst [vmem:[#allocation104_spill] sm:$0xff] %v14681_v22  ;;  %v3552_v39 = vsub.f32 %v14681_v22, %v13835_v0  ;;  %v12369_v57 = vpop.f32.mrb[56].mxu0  ;;  %4391 = vrot.lane.b32.xlu1 %v3663_v33, %s20446_s21 }
 0x286   : > { %v14691_v17 = vadd.f32 %v12369_v57, %v14662_v10  ;;  %v2401_v48 = vpop.f32.mrb[57].mxu0  ;;  %v3666_v44 = vadd.f32 %v14670_v53, %v3553_v41 }
 0x287   : > { %v3665_v50 = vadd.f32 %v14670_v53, %v3552_v39  ;;  %v14696_v40 = vadd.f32 %v14662_v10, %v2401_v48 }
 0x288   : > { %20815 = vst [vmem:[#allocation105_spill] sm:$0xff] %v14691_v17  ;;  %v3555_v63 = vsub.f32 %v14691_v17, %v13857_v23  ;;  %4397 = vrot.lane.b32.xlu0 %v3666_v44, %s20446_s21 }
 0x289   : > { %20816 = vst [vmem:[#allocation106_spill] sm:$0xff] %v14696_v40  ;;  %v3554_v22 = vsub.f32 %v14696_v40, %v13850_v18  ;;  %v12372_v33 = vpop.f32.mrb[58].mxu0  ;;  %4395 = vrot.lane.b32.xlu1 %v3665_v50, %s20446_s21  ;;  %v20819_v40 = vld [vmem:[#allocation24_spill] sm:$0xff] }
 0x28a   : > { %v3668_v57 = vadd.f32 %v14670_v53, %v3555_v63  ;;  %v14706_v41 = vadd.f32 %v12372_v33, %v14662_v10  ;;  %v2411_v39 = vpop.f32.mrb[59].mxu0 }
 0x28b   : > { %v3667_v48 = vadd.f32 %v14670_v53, %v3554_v22  ;;  %v14710_v0 = vadd.f32 %v14662_v10, %v2411_v39 }
 0x28c   : > { %20817 = vst [vmem:[#allocation107_spill] sm:$0xff] %v14706_v41  ;;  %v3557_v44 = vsub.f32 %v14706_v41, %v13871_v55  ;;  %4401 = vrot.lane.b32.xlu0 %v3668_v57, %s20446_s21  ;;  %v20822_v41 = vld [vmem:[#allocation27_spill] sm:$0xff] }
 0x28d   : > { %20818 = vst [vmem:[#allocation108_spill] sm:$0xff] %v14710_v0  ;;  %v3556_v18 = vsub.f32 %v14710_v0, %v20819_v40  ;;  %v12375_v50 = vpop.f32.mrb[60].mxu0  ;;  %4399 = vrot.lane.b32.xlu1 %v3667_v48, %s20446_s21  ;;  %v20823_v0 = vld [vmem:[#allocation26_spill] sm:$0xff] }
 0x28e   : > { %v3670_v63 = vadd.f32 %v14670_v53, %v3557_v44  ;;  %v14720_v33 = vadd.f32 %v12375_v50, %v14662_v10  ;;  %v2421_v22 = vpop.f32.mrb[61].mxu0 }
 0x28f   : > { %v3669_v39 = vadd.f32 %v14670_v53, %v3556_v18  ;;  %v14724_v17 = vadd.f32 %v14662_v10, %v2421_v22 }
 0x290   : > { %20820 = vst [vmem:[#allocation109_spill] sm:$0xff] %v14720_v33  ;;  %v3559_v57 = vsub.f32 %v14720_v33, %v20822_v41  ;;  %4405 = vrot.lane.b32.xlu0 %v3670_v63, %s20446_s21  ;;  %v20826_v33 = vld [vmem:[#allocation29_spill] sm:$0xff] }
 0x291   : > { %20821 = vst [vmem:[#allocation110_spill] sm:$0xff] %v14724_v17  ;;  %v3558_v40 = vsub.f32 %v14724_v17, %v20823_v0  ;;  %v12378_v48 = vpop.f32.mrb[62].mxu0  ;;  %4403 = vrot.lane.b32.xlu1 %v3669_v39, %s20446_s21  ;;  %v20827_v17 = vld [vmem:[#allocation28_spill] sm:$0xff] }
 0x292   : > { %v3672_v44 = vadd.f32 %v14670_v53, %v3559_v57  ;;  %v14734_v50 = vadd.f32 %v12378_v48, %v14662_v10  ;;  %v2431_v18 = vpop.f32.mrb[63].mxu0 }
 0x293   : > { %v3671_v22 = vadd.f32 %v14670_v53, %v3558_v40  ;;  %v14738_v55 = vadd.f32 %v14662_v10, %v2431_v18 }
 0x294   : > { %20824 = vst [vmem:[#allocation111_spill] sm:$0xff] %v14734_v50  ;;  %v3561_v63 = vsub.f32 %v14734_v50, %v20826_v33  ;;  %4409 = vrot.lane.b32.xlu0 %v3672_v44, %s20446_s21  ;;  %v20830_v50 = vld [vmem:[#allocation31_spill] sm:$0xff] }
 0x295   : > { %20825 = vst [vmem:[#allocation112_spill] sm:$0xff] %v14738_v55  ;;  %v3560_v0 = vsub.f32 %v14738_v55, %v20827_v17  ;;  %v12381_v39 = vpop.f32.mrb[64].mxu0  ;;  %4407 = vrot.lane.b32.xlu1 %v3671_v22, %s20446_s21  ;;  %v20831_v55 = vld [vmem:[#allocation30_spill] sm:$0xff] }
 0x296   : > { %v3674_v57 = vadd.f32 %v14670_v53, %v3561_v63  ;;  %v14748_v48 = vadd.f32 %v12381_v39, %v14662_v10  ;;  %v2441_v40 = vpop.f32.mrb[65].mxu0 }
 0x297   : > { %v3673_v18 = vadd.f32 %v14670_v53, %v3560_v0  ;;  %v14752_v41 = vadd.f32 %v14662_v10, %v2441_v40 }
 0x298   : > { %20828 = vst [vmem:[#allocation113_spill] sm:$0xff] %v14748_v48  ;;  %v3563_v44 = vsub.f32 %v14748_v48, %v20830_v50  ;;  %4413 = vrot.lane.b32.xlu0 %v3674_v57, %s20446_s21  ;;  %v20834_v48 = vld [vmem:[#allocation33_spill] sm:$0xff] }
 0x299   : > { %20829 = vst [vmem:[#allocation114_spill] sm:$0xff] %v14752_v41  ;;  %v3562_v17 = vsub.f32 %v14752_v41, %v20831_v55  ;;  %v12384_v22 = vpop.f32.mrb[66].mxu0  ;;  %4411 = vrot.lane.b32.xlu1 %v3673_v18, %s20446_s21  ;;  %v20835_v41 = vld [vmem:[#allocation32_spill] sm:$0xff] }
 0x29a   : > { %v3676_v63 = vadd.f32 %v14670_v53, %v3563_v44  ;;  %v14762_v39 = vadd.f32 %v12384_v22, %v14662_v10  ;;  %v2451_v0 = vpop.f32.mrb[67].mxu0 }
 0x29b   : > { %v3675_v40 = vadd.f32 %v14670_v53, %v3562_v17  ;;  %v14766_v33 = vadd.f32 %v14662_v10, %v2451_v0 }
 0x29c   : > { %20832 = vst [vmem:[#allocation115_spill] sm:$0xff] %v14762_v39  ;;  %v3565_v57 = vsub.f32 %v14762_v39, %v20834_v48  ;;  %4417 = vrot.lane.b32.xlu0 %v3676_v63, %s20446_s21  ;;  %v20838_v39 = vld [vmem:[#allocation35_spill] sm:$0xff] }
 0x29d   : > { %20833 = vst [vmem:[#allocation116_spill] sm:$0xff] %v14766_v33  ;;  %v3564_v55 = vsub.f32 %v14766_v33, %v20835_v41  ;;  %v12387_v18 = vpop.f32.mrb[68].mxu0  ;;  %4415 = vrot.lane.b32.xlu1 %v3675_v40, %s20446_s21  ;;  %v20839_v33 = vld [vmem:[#allocation34_spill] sm:$0xff] }
 0x29e   : > { %v3678_v44 = vadd.f32 %v14670_v53, %v3565_v57  ;;  %v14776_v22 = vadd.f32 %v12387_v18, %v14662_v10  ;;  %v2461_v17 = vpop.f32.mrb[69].mxu0 }
 0x29f   : > { %v3677_v0 = vadd.f32 %v14670_v53, %v3564_v55  ;;  %v14780_v50 = vadd.f32 %v14662_v10, %v2461_v17 }
 0x2a0   : > { %20836 = vst [vmem:[#allocation117_spill] sm:$0xff] %v14776_v22  ;;  %v3567_v63 = vsub.f32 %v14776_v22, %v20838_v39  ;;  %4421 = vrot.lane.b32.xlu0 %v3678_v44, %s20446_s21  ;;  %v20842_v22 = vld [vmem:[#allocation37_spill] sm:$0xff] }
 0x2a1   : > { %20837 = vst [vmem:[#allocation118_spill] sm:$0xff] %v14780_v50  ;;  %v3566_v41 = vsub.f32 %v14780_v50, %v20839_v33  ;;  %v12390_v40 = vpop.f32.mrb[70].mxu0  ;;  %4419 = vrot.lane.b32.xlu1 %v3677_v0, %s20446_s21  ;;  %v20843_v50 = vld [vmem:[#allocation36_spill] sm:$0xff] }
 0x2a2   : > { %v3680_v57 = vadd.f32 %v14670_v53, %v3567_v63  ;;  %v14790_v18 = vadd.f32 %v12390_v40, %v14662_v10  ;;  %v2471_v55 = vpop.f32.mrb[71].mxu0 }
 0x2a3   : > { %v3679_v17 = vadd.f32 %v14670_v53, %v3566_v41  ;;  %v14794_v48 = vadd.f32 %v14662_v10, %v2471_v55 }
 0x2a4   : > { %20840 = vst [vmem:[#allocation119_spill] sm:$0xff] %v14790_v18  ;;  %v3569_v44 = vsub.f32 %v14790_v18, %v20842_v22  ;;  %4425 = vrot.lane.b32.xlu0 %v3680_v57, %s20446_s21  ;;  %v20846_v18 = vld [vmem:[#allocation39_spill] sm:$0xff] }
 0x2a5   : > { %20841 = vst [vmem:[#allocation120_spill] sm:$0xff] %v14794_v48  ;;  %v3568_v33 = vsub.f32 %v14794_v48, %v20843_v50  ;;  %v12393_v0 = vpop.f32.mrb[72].mxu0  ;;  %4423 = vrot.lane.b32.xlu1 %v3679_v17, %s20446_s21  ;;  %v20847_v48 = vld [vmem:[#allocation38_spill] sm:$0xff] }
 0x2a6   : > { %v3682_v63 = vadd.f32 %v14670_v53, %v3569_v44  ;;  %v14804_v40 = vadd.f32 %v12393_v0, %v14662_v10  ;;  %v2481_v41 = vpop.f32.mrb[73].mxu0 }
 0x2a7   : > { %v3681_v55 = vadd.f32 %v14670_v53, %v3568_v33  ;;  %v14808_v39 = vadd.f32 %v14662_v10, %v2481_v41 }
 0x2a8   : > { %20844 = vst [vmem:[#allocation121_spill] sm:$0xff] %v14804_v40  ;;  %v3571_v57 = vsub.f32 %v14804_v40, %v20846_v18  ;;  %4429 = vrot.lane.b32.xlu0 %v3682_v63, %s20446_s21  ;;  %v2917_v18 = vlaneseq }
 0x2a9   : > { %20845 = vst [vmem:[#allocation122_spill] sm:$0xff] %v14808_v39  ;;  %v3570_v50 = vsub.f32 %v14808_v39, %v20847_v48  ;;  %v12396_v17 = vpop.f32.mrb[74].mxu0  ;;  %4427 = vrot.lane.b32.xlu1 %v3681_v55, %s20446_s21  ;;  %v20850_v39 = vld [vmem:[#allocation40_spill] sm:$0xff] }
 0x2aa   : > { %v3684_v44 = vadd.f32 %v14670_v53, %v3571_v57  ;;  %v14818_v0 = vadd.f32 %v12396_v17, %v14662_v10  ;;  %v2491_v33 = vpop.f32.mrb[75].mxu0 }
 0x2ab   : > { %v3683_v41 = vadd.f32 %v14670_v53, %v3570_v50  ;;  %v14822_v22 = vadd.f32 %v14662_v10, %v2491_v33 }
 0x2ac   : > { %20848 = vst [vmem:[#allocation123_spill] sm:$0xff] %v14818_v0  ;;  %v3573_v63 = vsub.f32 %v14818_v0, %v13983_v31  ;;  %4433 = vrot.lane.b32.xlu0 %v3684_v44, %s20446_s21  ;;  %v20853_v0 = vld [vmem:[#allocation44_spill] sm:$0xff] }
 0x2ad   : > { %20849 = vst [vmem:[#allocation124_spill] sm:$0xff] %v14822_v22  ;;  %v3572_v48 = vsub.f32 %v14822_v22, %v20850_v39  ;;  %v12399_v55 = vpop.f32.mrb[76].mxu0  ;;  %4431 = vrot.lane.b32.xlu1 %v3683_v41, %s20446_s21  ;;  %v20854_v22 = vld [vmem:[#allocation42_spill] sm:$0xff] }
 0x2ae   : > { %v3686_v57 = vadd.f32 %v14670_v53, %v3573_v63  ;;  %v14832_v17 = vadd.f32 %v12399_v55, %v14662_v10  ;;  %v2501_v50 = vpop.f32.mrb[77].mxu0 }
 0x2af   : > { %v3685_v33 = vadd.f32 %v14670_v53, %v3572_v48  ;;  %v14836_v40 = vadd.f32 %v14662_v10, %v2501_v50 }
 0x2b0   : > { %20851 = vst [vmem:[#allocation125_spill] sm:$0xff] %v14832_v17  ;;  %v3575_v44 = vsub.f32 %v14832_v17, %v20853_v0  ;;  %4437 = vrot.lane.b32.xlu0 %v3686_v57, %s20446_s21  ;;  %v20857_v17 = vld [vmem:[#allocation46_spill] sm:$0xff] }
 0x2b1   : > { %20852 = vst [vmem:[#allocation126_spill] sm:$0xff] %v14836_v40  ;;  %v3574_v39 = vsub.f32 %v14836_v40, %v20854_v22  ;;  %v12402_v41 = vpop.f32.mrb[78].mxu0  ;;  %4435 = vrot.lane.b32.xlu1 %v3685_v33, %s20446_s21  ;;  %v20858_v40 = vld [vmem:[#allocation43_spill] sm:$0xff] }
 0x2b2   : > { %v3688_v63 = vadd.f32 %v14670_v53, %v3575_v44  ;;  %v14846_v55 = vadd.f32 %v12402_v41, %v14662_v10  ;;  %v2511_v48 = vpop.f32.mrb[79].mxu0 }
 0x2b3   : > { %v3687_v50 = vadd.f32 %v14670_v53, %v3574_v39  ;;  %v14850_v31 = vadd.f32 %v14662_v10, %v2511_v48 }
 0x2b4   : > { %20855 = vst [vmem:[#allocation127_spill] sm:$0xff] %v14846_v55  ;;  %v3577_v57 = vsub.f32 %v14846_v55, %v20857_v17  ;;  %4441 = vrot.lane.b32.xlu0 %v3688_v63, %s20446_s21  ;;  %v20861_v55 = vld [vmem:[#allocation48_spill] sm:$0xff] }
 0x2b5   : > { %20856 = vst [vmem:[#allocation128_spill] sm:$0xff] %v14850_v31  ;;  %v3576_v22 = vsub.f32 %v14850_v31, %v20858_v40  ;;  %v12405_v33 = vpop.f32.mrb[80].mxu0  ;;  %4439 = vrot.lane.b32.xlu1 %v3687_v50, %s20446_s21  ;;  %v20862_v31 = vld [vmem:[#allocation45_spill] sm:$0xff] }
 0x2b6   : > { %v3690_v44 = vadd.f32 %v14670_v53, %v3577_v57  ;;  %v14860_v41 = vadd.f32 %v12405_v33, %v14662_v10  ;;  %v2521_v39 = vpop.f32.mrb[81].mxu0 }
 0x2b7   : > { %v3689_v48 = vadd.f32 %v14670_v53, %v3576_v22  ;;  %v14864_v0 = vadd.f32 %v14662_v10, %v2521_v39 }
 0x2b8   : > { %20859 = vst [vmem:[#allocation129_spill] sm:$0xff] %v14860_v41  ;;  %v3579_v63 = vsub.f32 %v14860_v41, %v20861_v55  ;;  %4445 = vrot.lane.b32.xlu0 %v3690_v44, %s20446_s21  ;;  %v20865_v41 = vld [vmem:[#allocation50_spill] sm:$0xff] }
 0x2b9   : > { %20860 = vst [vmem:[#allocation130_spill] sm:$0xff] %v14864_v0  ;;  %v3578_v40 = vsub.f32 %v14864_v0, %v20862_v31  ;;  %v12408_v50 = vpop.f32.mrb[82].mxu0  ;;  %4443 = vrot.lane.b32.xlu1 %v3689_v48, %s20446_s21  ;;  %v20866_v0 = vld [vmem:[#allocation47_spill] sm:$0xff] }
 0x2ba   : > { %v3692_v57 = vadd.f32 %v14670_v53, %v3579_v63  ;;  %v14874_v33 = vadd.f32 %v12408_v50, %v14662_v10  ;;  %v2531_v22 = vpop.f32.mrb[83].mxu0 }
 0x2bb   : > { %v3691_v39 = vadd.f32 %v14670_v53, %v3578_v40  ;;  %v14878_v17 = vadd.f32 %v14662_v10, %v2531_v22 }
 0x2bc   : > { %20863 = vst [vmem:[#allocation131_spill] sm:$0xff] %v14874_v33  ;;  %v3581_v44 = vsub.f32 %v14874_v33, %v20865_v41  ;;  %4449 = vrot.lane.b32.xlu0 %v3692_v57, %s20446_s21  ;;  %v20869_v33 = vld [vmem:[#allocation52_spill] sm:$0xff] }
 0x2bd   : > { %20864 = vst [vmem:[#allocation132_spill] sm:$0xff] %v14878_v17  ;;  %v3580_v31 = vsub.f32 %v14878_v17, %v20866_v0  ;;  %v12411_v48 = vpop.f32.mrb[84].mxu0  ;;  %4447 = vrot.lane.b32.xlu1 %v3691_v39, %s20446_s21  ;;  %v20870_v17 = vld [vmem:[#allocation49_spill] sm:$0xff] }
 0x2be   : > { %v3694_v63 = vadd.f32 %v14670_v53, %v3581_v44  ;;  %v14888_v50 = vadd.f32 %v12411_v48, %v14662_v10  ;;  %v2541_v40 = vpop.f32.mrb[85].mxu0 }
 0x2bf   : > { %v3693_v22 = vadd.f32 %v14670_v53, %v3580_v31  ;;  %v14892_v55 = vadd.f32 %v14662_v10, %v2541_v40 }
 0x2c0   : > { %20867 = vst [vmem:[#allocation133_spill] sm:$0xff] %v14888_v50  ;;  %v3583_v57 = vsub.f32 %v14888_v50, %v20869_v33  ;;  %4453 = vrot.lane.b32.xlu0 %v3694_v63, %s20446_s21  ;;  %v20873_v50 = vld [vmem:[#allocation54_spill] sm:$0xff] }
 0x2c1   : > { %20868 = vst [vmem:[#allocation134_spill] sm:$0xff] %v14892_v55  ;;  %v3582_v0 = vsub.f32 %v14892_v55, %v20870_v17  ;;  %v12414_v39 = vpop.f32.mrb[86].mxu0  ;;  %4451 = vrot.lane.b32.xlu1 %v3693_v22, %s20446_s21  ;;  %v20874_v55 = vld [vmem:[#allocation51_spill] sm:$0xff] }
 0x2c2   : > { %v3696_v44 = vadd.f32 %v14670_v53, %v3583_v57  ;;  %v14902_v48 = vadd.f32 %v12414_v39, %v14662_v10  ;;  %v2551_v31 = vpop.f32.mrb[87].mxu0 }
 0x2c3   : > { %v3695_v40 = vadd.f32 %v14670_v53, %v3582_v0  ;;  %v14906_v41 = vadd.f32 %v14662_v10, %v2551_v31 }
 0x2c4   : > { %20871 = vst [vmem:[#allocation135_spill] sm:$0xff] %v14902_v48  ;;  %v3585_v63 = vsub.f32 %v14902_v48, %v20873_v50  ;;  %4457 = vrot.lane.b32.xlu0 %v3696_v44, %s20446_s21  ;;  %v20877_v48 = vld [vmem:[#allocation56_spill] sm:$0xff] }
 0x2c5   : > { %20872 = vst [vmem:[#allocation136_spill] sm:$0xff] %v14906_v41  ;;  %v3584_v17 = vsub.f32 %v14906_v41, %v20874_v55  ;;  %v12417_v22 = vpop.f32.mrb[88].mxu0  ;;  %4455 = vrot.lane.b32.xlu1 %v3695_v40, %s20446_s21  ;;  %v20878_v41 = vld [vmem:[#allocation53_spill] sm:$0xff] }
 0x2c6   : > { %v3698_v57 = vadd.f32 %v14670_v53, %v3585_v63  ;;  %v14916_v39 = vadd.f32 %v12417_v22, %v14662_v10  ;;  %v2561_v0 = vpop.f32.mrb[89].mxu0 }
 0x2c7   : > { %v3697_v31 = vadd.f32 %v14670_v53, %v3584_v17  ;;  %v14920_v33 = vadd.f32 %v14662_v10, %v2561_v0 }
 0x2c8   : > { %20875 = vst [vmem:[#allocation137_spill] sm:$0xff] %v14916_v39  ;;  %v3587_v44 = vsub.f32 %v14916_v39, %v20877_v48  ;;  %4461 = vrot.lane.b32.xlu0 %v3698_v57, %s20446_s21  ;;  %v20881_v39 = vld [vmem:[#allocation58_spill] sm:$0xff] }
 0x2c9   : > { %20876 = vst [vmem:[#allocation138_spill] sm:$0xff] %v14920_v33  ;;  %v3586_v55 = vsub.f32 %v14920_v33, %v20878_v41  ;;  %v12420_v40 = vpop.f32.mrb[90].mxu0  ;;  %4459 = vrot.lane.b32.xlu1 %v3697_v31, %s20446_s21  ;;  %v20882_v33 = vld [vmem:[#allocation55_spill] sm:$0xff] }
 0x2ca   : > { %v3700_v63 = vadd.f32 %v14670_v53, %v3587_v44  ;;  %v14930_v22 = vadd.f32 %v12420_v40, %v14662_v10  ;;  %v2571_v17 = vpop.f32.mrb[91].mxu0 }
 0x2cb   : > { %v3699_v0 = vadd.f32 %v14670_v53, %v3586_v55  ;;  %v14934_v50 = vadd.f32 %v14662_v10, %v2571_v17 }
 0x2cc   : > { %20879 = vst [vmem:[#allocation139_spill] sm:$0xff] %v14930_v22  ;;  %v3589_v57 = vsub.f32 %v14930_v22, %v20881_v39  ;;  %4465 = vrot.lane.b32.xlu0 %v3700_v63, %s20446_s21  ;;  %v20885_v22 = vld [vmem:[#allocation60_spill] sm:$0xff] }
 0x2cd   : > { %20880 = vst [vmem:[#allocation140_spill] sm:$0xff] %v14934_v50  ;;  %v3588_v41 = vsub.f32 %v14934_v50, %v20882_v33  ;;  %v12423_v31 = vpop.f32.mrb[92].mxu0  ;;  %4463 = vrot.lane.b32.xlu1 %v3699_v0, %s20446_s21  ;;  %v20886_v50 = vld [vmem:[#allocation57_spill] sm:$0xff] }
 0x2ce   : > { %v3702_v44 = vadd.f32 %v14670_v53, %v3589_v57  ;;  %v14944_v40 = vadd.f32 %v12423_v31, %v14662_v10  ;;  %v2581_v55 = vpop.f32.mrb[93].mxu0 }
 0x2cf   : > { %v3701_v17 = vadd.f32 %v14670_v53, %v3588_v41  ;;  %v14948_v48 = vadd.f32 %v14662_v10, %v2581_v55 }
 0x2d0   : > { %20883 = vst [vmem:[#allocation141_spill] sm:$0xff] %v14944_v40  ;;  %v3591_v63 = vsub.f32 %v14944_v40, %v20885_v22  ;;  %4469 = vrot.lane.b32.xlu0 %v3702_v44, %s20446_s21  ;;  %v20889_v40 = vld [vmem:[#allocation62_spill] sm:$0xff]  ;;  %v13318_v22 = vmov 1966171168  }
 0x2d1   : > { %20884 = vst [vmem:[#allocation142_spill] sm:$0xff] %v14948_v48  ;;  %v3590_v33 = vsub.f32 %v14948_v48, %v20886_v50  ;;  %v12426_v0 = vpop.f32.mrb[94].mxu0  ;;  %4467 = vrot.lane.b32.xlu1 %v3701_v17, %s20446_s21  ;;  %v20890_v48 = vld [vmem:[#allocation59_spill] sm:$0xff] }
 0x2d2   : > { %v3704_v57 = vadd.f32 %v14670_v53, %v3591_v63  ;;  %v14958_v31 = vadd.f32 %v12426_v0, %v14662_v10  ;;  %v2591_v41 = vpop.f32.mrb[95].mxu0 }
 0x2d3   : > { %v3703_v55 = vadd.f32 %v14670_v53, %v3590_v33  ;;  %v14962_v39 = vadd.f32 %v14662_v10, %v2591_v41  ;;  %v2915_v41 = vunpack.c.l.s4 %v13318_v22 }
 0x2d4   : > { %20887 = vst [vmem:[#allocation143_spill] sm:$0xff] %v14958_v31  ;;  %v3593_v44 = vsub.f32 %v14958_v31, %v20889_v40  ;;  %4473 = vrot.lane.b32.xlu0 %v3704_v57, %s20446_s21  ;;  %v20893_v57 = vld [vmem:[#allocation64_spill] sm:$0xff] }
 0x2d5   : > { %20888 = vst [vmem:[#allocation144_spill] sm:$0xff] %v14962_v39  ;;  %v3592_v50 = vsub.f32 %v14962_v39, %v20890_v48  ;;  %v12429_v17 = vpop.f32.mrb[96].mxu0  ;;  %4471 = vrot.lane.b32.xlu1 %v3703_v55, %s20446_s21  ;;  %v20894_v55 = vld [vmem:[#allocation61_spill] sm:$0xff]  ;;  %v2916_v40 = vunpack.c.0.s8 %v2915_v41 }
 0x2d6   : > { %v3706_v63 = vadd.f32 %v14670_v53, %v3593_v44  ;;  %v14972_v0 = vadd.f32 %v12429_v17, %v14662_v10  ;;  %v2601_v33 = vpop.f32.mrb[97].mxu0 }
 0x2d7   : > { %v3705_v23 = vadd.f32 %v14670_v53, %v3592_v50  ;;  %v14976_v31 = vadd.f32 %v14662_v10, %v2601_v33  ;;  %v14988_v33 = vshrl.u32 %v2917_v18, 7 }
 0x2d8   : > { %20891 = vst [vmem:[#allocation145_spill] sm:$0xff] %v14972_v0  ;;  %v3595_v39 = vsub.f32 %v14972_v0, %v20893_v57  ;;  %4477 = vrot.lane.b32.xlu0 %v3706_v63, %s20446_s21  ;;  %v20898_v63 = vld [vmem:[#allocation66_spill] sm:$0xff] }
 0x2d9   : > { %20892 = vst [vmem:[#allocation146_spill] sm:$0xff] %v14976_v31  ;;  %v3594_v44 = vsub.f32 %v14976_v31, %v20894_v55  ;;  %v12432_v48 = vpop.f32.mrb[98].mxu0  ;;  %4475 = vrot.lane.b32.xlu1 %v3705_v23, %s20446_s21  ;;  %20896 = vst [vmem:[#allocation148_spill] sm:$0xff] %v14988_v33  ;;  %v20899_v23 = vld [vmem:[#allocation63_spill] sm:$0xff] }
 0x2da   : > { %v3708_v17 = vadd.f32 %v14670_v53, %v3595_v39  ;;  %v14986_v22 = vadd.f32 %v12432_v48, %v14662_v10  ;;  %v2611_v50 = vpop.f32.mrb[99].mxu0 }
 0x2db   : > { %v3707_v51 = vadd.f32 %v14670_v53, %v3594_v44  ;;  %v14992_v0 = vadd.f32 %v14662_v10, %v2611_v50  ;;  %v15005_v44 = vsub.s32 %v2916_v40, %v14988_v33 }
 0x2dc   : > { %20895 = vst [vmem:[#allocation147_spill] sm:$0xff] %v14986_v22  ;;  %v3597_v31 = vsub.f32 %v14986_v22, %v20898_v63  ;;  %4481 = vrot.lane.b32.xlu0 %v3708_v17, %s20446_s21  ;;  %v20902_v17 = vld [vmem:[#allocation68_spill] sm:$0xff] }
 0x2dd   : > { %20897 = vst [vmem:[#allocation149_spill] sm:$0xff] %v14992_v0  ;;  %v3596_v39 = vsub.f32 %v14992_v0, %v20899_v23  ;;  %v12435_v55 = vpop.f32.mrb[100].mxu0  ;;  %4479 = vrot.lane.b32.xlu1 %v3707_v51, %s20446_s21  ;;  %v20903_v51 = vld [vmem:[#allocation65_spill] sm:$0xff] }
 0x2de   : > { %v3710_v48 = vadd.f32 %v14670_v53, %v3597_v31  ;;  %v15002_v18 = vadd.f32 %v12435_v55, %v14662_v10  ;;  %v2621_v41 = vpop.f32.mrb[101].mxu0  ;;  %v20904_v55 = vld [vmem:[#allocation5_spill] sm:$0xff] }
 0x2df   : > { %v3709_v50 = vadd.f32 %v14670_v53, %v3596_v39  ;;  %v15009_v22 = vadd.f32 %v14662_v10, %v2621_v41  ;;  %v2913_v40 = vcombine.high %v20904_v55, %v20904_v55 }
 0x2e0   : > { %20900 = vst [vmem:[#allocation150_spill] sm:$0xff] %v15002_v18  ;;  %v3599_v0 = vsub.f32 %v15002_v18, %v20902_v17  ;;  %4485 = vrot.lane.b32.xlu0 %v3710_v48, %s20446_s21  ;;  %v2920_v18 = vrot.slane %v20904_v55, %v15005_v44 }
 0x2e1   : > { %20901 = vst [vmem:[#allocation151_spill] sm:$0xff] %v15009_v22  ;;  %v3598_v31 = vsub.f32 %v15009_v22, %v20903_v51  ;;  %v12438_v23 = vpop.f32.mrb[102].mxu0  ;;  %4483 = vrot.lane.b32.xlu1 %v3709_v50, %s20446_s21  ;;  %v20907_v22 = vld [vmem:[#allocation70_spill] sm:$0xff]  ;;  %v20908_v51 = vld [vmem:[#allocation67_spill] sm:$0xff] }
 0x2e2   : > { %v3712_v63 = vadd.f32 %v14670_v53, %v3599_v0  ;;  %v15021_v39 = vadd.f32 %v12438_v23, %v14662_v10  ;;  %v2631_v41 = vpop.f32.mrb[103].mxu0  ;;  %v2927_v23 = vrot.slane %v2913_v40, %v15005_v44  ;;  %v2928_v6 = vcombine.high %v2920_v18, %v2920_v18 }
 0x2e3   : > { %v3711_v48 = vadd.f32 %v14670_v53, %v3598_v31  ;;  %v15027_v17 = vadd.f32 %v14662_v10, %v2631_v41  ;;  %v15051_v40 = vsub.s32 0, %v14988_v33 }
 0x2e4   : > { %20905 = vst [vmem:[#allocation5_spill] sm:$0xff] %v15021_v39  ;;  %v3601_v50 = vsub.f32 %v15021_v39, %v20907_v22  ;;  %4489 = vrot.lane.b32.xlu0 %v3712_v63, %s20446_s21  ;;  %v15045_v63 = vrot.slane %v2920_v18, %v15005_v44 }
 0x2e5   : > { %20906 = vst [vmem:[#allocation152_spill] sm:$0xff] %v15027_v17  ;;  %v3600_v0 = vsub.f32 %v15027_v17, %v20908_v51  ;;  %v12441_v57 = vpop.f32.mrb[104].mxu0  ;;  %4487 = vrot.lane.b32.xlu1 %v3711_v48, %s20446_s21  ;;  %v20911_v17 = vld [vmem:[#allocation72_spill] sm:$0xff]  ;;  %v20913_v51 = vld [vmem:[#allocation69_spill] sm:$0xff] }
 0x2e6   : > { %v3714_v55 = vadd.f32 %v14670_v53, %v3601_v50  ;;  %v15038_v31 = vadd.f32 %v12441_v57, %v14662_v10  ;;  %v2641_v41 = vpop.f32.mrb[105].mxu0  ;;  %v20912_v57 = vld [vmem:[#allocation6_spill] sm:$0xff] }
 0x2e7   : > { %v3713_v60 = vadd.f32 %v14670_v53, %v3600_v0  ;;  %v15042_v39 = vadd.f32 %v14662_v10, %v2641_v41  ;;  %v2969_v50 = vrot.slane %v20912_v57, %v15005_v44  ;;  %v2929_v41 = vcombine.high %v2927_v23, %v2927_v23 }
 0x2e8   : > { %20909 = vst [vmem:[#allocation153_spill] sm:$0xff] %v15038_v31  ;;  %v3603_v48 = vsub.f32 %v15038_v31, %v20911_v17  ;;  %4493 = vrot.lane.b32.xlu0 %v3714_v55, %s20446_s21  ;;  %v2962_v18 = vcombine.high %v20912_v57, %v20912_v57  ;;  %v3770_v57 = vrot.slane %v15045_v63, %v15051_v40 }
 0x2e9   : > { %20910 = vst [vmem:[#allocation154_spill] sm:$0xff] %v15042_v39  ;;  %v3602_v0 = vsub.f32 %v15042_v39, %v20913_v51  ;;  %v12444_v22 = vpop.f32.mrb[106].mxu0  ;;  %4491 = vrot.lane.b32.xlu1 %v3713_v60, %s20446_s21  ;;  %v2950_v39 = vrot.slane %v2928_v6, %v15005_v44  ;;  %v20916_v51 = vld [vmem:[#allocation71_spill] sm:$0xff]  ;;  %v15080_v6 = vrot.slane %v2927_v23, %v15005_v44 }
 0x2ea   : > { %v3716_v31 = vadd.f32 %v14670_v53, %v3603_v48  ;;  %v15062_v55 = vadd.f32 %v12444_v22, %v14662_v10  ;;  %v2651_v17 = vpop.f32.mrb[107].mxu0  ;;  %v2977_v48 = vcombine.high %v2969_v50, %v2969_v50 }
 0x2eb   : > { %v3715_v33 = vadd.f32 %v14670_v53, %v3602_v0  ;;  %v15066_v2 = vadd.f32 %v14662_v10, %v2651_v17  ;;  %v2958_v17 = vcombine.high %v15045_v63, %v15045_v63  ;;  %v15083_v0 = vrot.slane %v2962_v18, %v15005_v44  ;;  %v20919_v18 = vld [vmem:[#allocation7_spill] sm:$0xff] }
 0x2ec   : > { %20914 = vst [vmem:[#allocation6_spill] sm:$0xff] %v15062_v55  ;;  %v3605_v60 = vsub.f32 %v15062_v55, %v14242_v47  ;;  %4497 = vrot.lane.b32.xlu0 %v3716_v31, %s20446_s21  ;;  %v3011_v59 = vcombine.high %v20919_v18, %v20919_v18  ;;  %v2959_v32 = vcombine.high %v15080_v6, %v15080_v6 }
 0x2ed   : > { %20915 = vst [vmem:[#allocation155_spill] sm:$0xff] %v15066_v2  ;;  %v3604_v22 = vsub.f32 %v15066_v2, %v20916_v51  ;;  %v12447_v35 = vpop.f32.mrb[108].mxu0  ;;  %4495 = vrot.lane.b32.xlu1 %v3715_v33, %s20446_s21  ;;  %v15090_v2 = vrot.slane %v2929_v41, %v15005_v44  ;;  %v15093_v33 = vrot.slane %v2969_v50, %v15005_v44 }
 0x2ee   : > { %v3718_v31 = vadd.f32 %v14670_v53, %v3605_v60  ;;  %v15087_v55 = vadd.f32 %v12447_v35, %v14662_v10  ;;  %v2661_v47 = vpop.f32.mrb[109].mxu0  ;;  %v2960_v51 = vcombine.high %v2950_v39, %v2950_v39  ;;  %v15103_v35 = vrot.slane %v20919_v18, %v15005_v44  ;;  %v20920_v60 = vld [vmem:[#allocation76_spill] sm:$0xff] }
 0x2ef   : > { %v3717_v63 = vadd.f32 %v14670_v53, %v3604_v22  ;;  %v15097_v23 = vadd.f32 %v14662_v10, %v2661_v47  ;;  %v3774_v50 = vrot.slane %v2950_v39, %v15051_v40  ;;  %v3778_v54 = vrot.slane %v2958_v17, %v15051_v40 }
 0x2f0   : > { %20917 = vst [vmem:[#allocation156_spill] sm:$0xff] %v15087_v55  ;;  %v3607_v41 = vsub.f32 %v15087_v55, %v20920_v60  ;;  %4501 = vrot.lane.b32.xlu0 %v3718_v31, %s20446_s21  ;;  %v15116_v18 = vrot.slane %v2977_v48, %v15005_v44  ;;  %v2978_v17 = vcombine.high %v15083_v0, %v15083_v0 }
 0x2f1   : > { %20918 = vst [vmem:[#allocation157_spill] sm:$0xff] %v15097_v23  ;;  %v3606_v22 = vsub.f32 %v15097_v23, %v20921_v36  ;;  %v12450_v47 = vpop.f32.mrb[110].mxu0  ;;  %4499 = vrot.lane.b32.xlu1 %v3717_v63, %s20446_s21  ;;  %v2961_v63 = vcombine.high %v15090_v2, %v15090_v2  ;;  %v3026_v60 = vcombine.high %v15103_v35, %v15103_v35 }
 0x2f2   : > { %v3720_v55 = vadd.f32 %v14670_v53, %v3607_v41  ;;  %v15120_v31 = vadd.f32 %v12450_v47, %v14662_v10  ;;  %v2671_v39 = vpop.f32.mrb[111].mxu0  ;;  %v3782_v41 = vrot.slane %v2960_v51, %v15051_v40  ;;  %v15134_v47 = vrot.slane %v3011_v59, %v15005_v44 }
 0x2f3   : > { %v3719_v36 = vadd.f32 %v14670_v53, %v3606_v22  ;;  %v15130_v48 = vadd.f32 %v14662_v10, %v2671_v39  ;;  %v3790_v49 = vrot.slane %v15090_v2, %v15051_v40  ;;  %v15145_v22 = vrot.slane %v15103_v35, %v15005_v44  ;;  %v20924_v39 = vld [vmem:[#allocation75_spill] sm:$0xff] }
 0x2f4   : > { %20922 = vst [vmem:[#allocation7_spill] sm:$0xff] %v15120_v31  ;;  %v3609_v23 = vsub.f32 %v15120_v31, %v14270_v52  ;;  %4505 = vrot.lane.b32.xlu0 %v3720_v55, %s20446_s21  ;;  %v15151_v28 = vrot.slane %v2959_v32, %v15051_v40  ;;  %v3009_v31 = vcombine.high %v15116_v18, %v15116_v18 }
 0x2f5   : > { %20923 = vst [vmem:[#allocation158_spill] sm:$0xff] %v15130_v48  ;;  %v3608_v51 = vsub.f32 %v15130_v48, %v20924_v39  ;;  %v12453_v59 = vpop.f32.mrb[112].mxu0  ;;  %4503 = vrot.lane.b32.xlu1 %v3719_v36, %s20446_s21  ;;  %v15160_v45 = vrot.slane %v2961_v63, %v15051_v40  ;;  %v3060_v63 = vcombine.high %v20927_v13, %v20927_v13 }
 0x2f6   : > { %v3722_v55 = vadd.f32 %v14670_v53, %v3609_v23  ;;  %v15157_v2 = vadd.f32 %v12453_v59, %v14662_v10  ;;  %v2681_v52 = vpop.f32.mrb[113].mxu0  ;;  %v4394_v35 = vpop.permute.xlu0 %4393  ;;  %v3007_v59 = vcombine.high %v15093_v33, %v15093_v33 }
 0x2f7   : > { %v3721_v36 = vadd.f32 %v14670_v53, %v3608_v51  ;;  %v15166_v32 = vadd.f32 %v14662_v10, %v2681_v52  ;;  %v4704_v39 = vadd.f32 %v4394_v35, %v3774_v50  ;;  %v4392_v24 = vpop.permute.xlu1 %4391  ;;  %v15179_v52 = vrot.slane %v20927_v13, %v15005_v44 }
 0x2f8   : > { %20925 = vst [vmem:[#allocation159_spill] sm:$0xff] %v15157_v2  ;;  %v3611_v12 = vsub.f32 %v15157_v2, %v14283_v58  ;;  %v4703_v48 = vadd.f32 %v4392_v24, %v3770_v57  ;;  %4509 = vrot.lane.b32.xlu0 %v3722_v55, %s20446_s21  ;;  %v15185_v35 = vrot.slane %v3009_v31, %v15051_v40 }
 0x2f9   : > { %20926 = vst [vmem:[#allocation160_spill] sm:$0xff] %v15166_v32  ;;  %v3610_v50 = vsub.f32 %v15166_v32, %v14266_v1  ;;  %v12456_v51 = vpop.f32.mrb[114].mxu0  ;;  %4507 = vrot.lane.b32.xlu1 %v3721_v36, %s20446_s21  ;;  %v15194_v2 = vrot.slane %v2978_v17, %v15005_v44  ;;  %v4808_v36 = vmax.f32 %v4704_v39, 0.0  ;;  %v15206_v17 = vrot.slane %v15083_v0, %v15005_v44 }
 0x2fa   : > { %v3724_v24 = vadd.f32 %v14670_v53, %v3611_v12  ;;  %v4807_v57 = vmax.f32 %v4703_v48, 0.0  ;;  %v15191_v55 = vadd.f32 %v12456_v51, %v14662_v10  ;;  %v2691_v13 = vpop.f32.mrb[115].mxu0  ;;  %v4398_v23 = vpop.permute.xlu0 %4397 }
 0x2fb   : > { %v3723_v32 = vadd.f32 %v14670_v53, %v3610_v50  ;;  %v15198_v31 = vadd.f32 %v14662_v10, %v2691_v13  ;;  %v4706_v1 = vadd.f32 %v4398_v23, %v3782_v41  ;;  %v4396_v58 = vpop.permute.xlu1 %4395  ;;  %v15209_v50 = vrot.slane %v3060_v63, %v15005_v44 }
 0x2fc   : > { %v3613_v12 = vsub.f32 %v15191_v55, %v14297_v46  ;;  %v4705_v48 = vadd.f32 %v4396_v58, %v3778_v54  ;;  %4513 = vrot.lane.b32.xlu0 %v3724_v24, %s20446_s21  ;;  %12525 = vmatprep.mubr.msk.f32.mxu1 %vm2106_vm4, %v4807_v57  ;;  %v15216_v58 = vrot.slane %v3026_v60, %v15005_v44 }
 0x2fd   : > { %20928 = vst [vmem:[#allocation8_spill] sm:$0xff] %v15198_v31  ;;  %v3612_v39 = vsub.f32 %v15198_v31, %v14278_v19  ;;  %v12459_v41 = vpop.f32.mrb[116].mxu0  ;;  %4511 = vrot.lane.b32.xlu1 %v3723_v32, %s20446_s21  ;;  %12526 = vmatmul.mubr.msk.f32.vlgmr.msra.gmra.mrb[78].mxu1 %vm2106_vm4, %v4808_v36  ;;  %v4810_v13 = vmax.f32 %v4706_v1, 0.0  ;;  %v15230_v31 = vrot.slane %v15179_v52, %v15005_v44 }
 0x2fe   : > { %v3726_v0 = vadd.f32 %v14670_v53, %v3613_v12  ;;  %v4809_v23 = vmax.f32 %v4705_v48, 0.0  ;;  %v15222_v63 = vadd.f32 %v12459_v41, %v14662_v10  ;;  %v2701_v51 = vpop.f32.mrb[117].mxu0  ;;  %v4402_v24 = vpop.permute.xlu0 %4401  ;;  %v20929_v48 = vrot.slane %v15080_v6, %v15051_v40 }
 0x2ff   : > { %v3725_v57 = vadd.f32 %v14670_v53, %v3612_v39  ;;  %v15226_v32 = vadd.f32 %v14662_v10, %v2701_v51  ;;  %v4708_v36 = vadd.f32 %v4402_v24, %v3790_v49  ;;  %v4400_v60 = vpop.permute.xlu1 %4399  ;;  %v3810_v39 = vrot.slane %v3007_v59, %v15051_v40 }
 0x300   : > { %v3615_v12 = vsub.f32 %v15222_v63, %v14311_v34  ;;  %v4707_v41 = vadd.f32 %v4400_v60, %v20929_v48  ;;  %4517 = vrot.lane.b32.xlu0 %v3726_v0, %s20446_s21  ;;  %12528 = vmatprep.mubr.msk.f32.mxu1 %vm2106_vm4, %v4809_v23 }
 0x301   : > { %v3614_v1 = vsub.f32 %v15226_v32, %v14292_v38  ;;  %v12462_v49 = vpop.f32.mrb[118].mxu0  ;;  %4515 = vrot.lane.b32.xlu1 %v3725_v57, %s20446_s21  ;;  %12529 = vmatmul.mubr.msk.f32.gmra.mrb[80].mxu1 %vm2106_vm4, %v4810_v13  ;;  %v4812_v54 = vmax.f32 %v4708_v36, 0.0 }
 0x302   : > { %v3728_v6 = vadd.f32 %v14670_v53, %v3615_v12  ;;  %v4811_v24 = vmax.f32 %v4707_v41, 0.0  ;;  %v15248_v0 = vadd.f32 %v12462_v49, %v14662_v10  ;;  %v2711_v23 = vpop.f32.mrb[119].mxu0  ;;  %v4406_v60 = vpop.permute.xlu0 %4405 }
 0x303   : > { %v3727_v57 = vadd.f32 %v14670_v53, %v3614_v1  ;;  %v15254_v13 = vadd.f32 %v14662_v10, %v2711_v23  ;;  %v4710_v59 = vadd.f32 %v4406_v60, %v15160_v45  ;;  %v4404_v51 = vpop.permute.xlu1 %4403  ;;  %v20932_v1 = vld [vmem:[#allocation9_spill] sm:$0xff] }
 0x304   : > { %20930 = vst [vmem:[#allocation161_spill] sm:$0xff] %v15248_v0  ;;  %v3617_v41 = vsub.f32 %v15248_v0, %v14325_v15  ;;  %v4709_v49 = vadd.f32 %v4404_v51, %v15151_v28  ;;  %4521 = vrot.lane.b32.xlu0 %v3728_v6, %s20446_s21  ;;  %12531 = vmatprep.mubr.msk.f32.mxu1 %vm2106_vm4, %v4811_v24 }
 0x305   : > { %20931 = vst [vmem:[#allocation162_spill] sm:$0xff] %v15254_v13  ;;  %v3109_v36 = vcombine.high %v20932_v1, %v20932_v1  ;;  %v15268_v23 = vrot.slane %v20932_v1, %v15005_v44  ;;  %v3616_v45 = vsub.f32 %v15254_v13, %v14306_v21  ;;  %v12465_v60 = vpop.f32.mrb[120].mxu0  ;;  %4519 = vrot.lane.b32.xlu1 %v3727_v57, %s20446_s21  ;;  %v4814_v0 = vmax.f32 %v4710_v59, 0.0 }
 0x306   : > { %12532 = vmatmul.mubr.msk.f32.gmra.mrb[82].mxu1 %vm2106_vm4, %v4812_v54  ;;  %v3730_v28 = vadd.f32 %v14670_v53, %v3617_v41  ;;  %v4813_v51 = vmax.f32 %v4709_v49, 0.0  ;;  %v15276_v6 = vadd.f32 %v12465_v60, %v14662_v10  ;;  %v2721_v24 = vpop.f32.mrb[121].mxu0  ;;  %v4410_v12 = vpop.permute.xlu0 %4409  ;;  %v3010_v1 = vcombine.high %v15194_v2, %v15194_v2 }
 0x307   : > { %v3729_v48 = vadd.f32 %v14670_v53, %v3616_v45  ;;  %v15282_v13 = vadd.f32 %v14662_v10, %v2721_v24  ;;  %v20934_v54 = vrot.slane %v15116_v18, %v15051_v40  ;;  %v4408_v41 = vpop.permute.xlu1 %4407  ;;  %v20935_v60 = vrot.slane %v15093_v33, %v15051_v40 }
 0x308   : > { %v3619_v49 = vsub.f32 %v15276_v6, %v14339_v4  ;;  %4525 = vrot.lane.b32.xlu0 %v3730_v28, %s20446_s21  ;;  %12534 = vmatprep.mubr.msk.f32.mxu1 %vm2106_vm4, %v4813_v51  ;;  %v3008_v59 = vcombine.high %v15206_v17, %v15206_v17  ;;  %v15297_v45 = vrot.slane %v3109_v36, %v15005_v44 }
 0x309   : > { %20933 = vst [vmem:[#allocation9_spill] sm:$0xff] %v15282_v13  ;;  %v4712_v57 = vadd.f32 %v4410_v12, %v20934_v54  ;;  %v4711_v21 = vadd.f32 %v4408_v41, %v20935_v60  ;;  %v3618_v18 = vsub.f32 %v15282_v13, %v14320_v5  ;;  %v12468_v12 = vpop.f32.mrb[122].mxu0  ;;  %4523 = vrot.lane.b32.xlu1 %v3729_v48, %s20446_s21 }
 0x30a   : > { %12535 = vmatmul.mubr.msk.f32.gmra.mrb[84].mxu1 %vm2106_vm4, %v4814_v0  ;;  %v3732_v51 = vadd.f32 %v14670_v53, %v3619_v49  ;;  %v15309_v36 = vadd.f32 %v12468_v12, %v14662_v10  ;;  %v2731_v54 = vpop.f32.mrb[123].mxu0  ;;  %v4414_v41 = vpop.permute.xlu0 %4413  ;;  %v15318_v28 = vrot.slane %v15268_v23, %v15005_v44  ;;  %v3826_v12 = vrot.slane %v3008_v59, %v15051_v40 }
 0x30b   : > { %v4815_v24 = vmax.f32 %v4711_v21, 0.0  ;;  %v3731_v60 = vadd.f32 %v14670_v53, %v3618_v18  ;;  %v4816_v13 = vmax.f32 %v4712_v57, 0.0  ;;  %v15313_v48 = vadd.f32 %v14662_v10, %v2731_v54  ;;  %v4412_v33 = vpop.permute.xlu1 %4411  ;;  %v20940_v54 = vld [vmem:[#allocation10_spill] sm:$0xff] }
 0x30c   : > { %20936 = vst [vmem:[#allocation163_spill] sm:$0xff] %v15309_v36  ;;  %v4714_v0 = vadd.f32 %v4414_v41, %v15185_v35  ;;  %v3621_v21 = vsub.f32 %v15309_v36, %v14353_v3  ;;  %v4713_v49 = vadd.f32 %v4412_v33, %v3810_v39  ;;  %4529 = vrot.lane.b32.xlu0 %v3732_v51, %s20446_s21 }
 0x30d   : > { %20937 = vst [vmem:[#allocation164_spill] sm:$0xff] %v15313_v48  ;;  %12537 = vmatprep.mubr.msk.f32.mxu1 %vm2106_vm4, %v4815_v24  ;;  %v3620_v57 = vsub.f32 %v15313_v48, %v14334_v30  ;;  %v12471_v18 = vpop.f32.mrb[124].mxu0  ;;  %4527 = vrot.lane.b32.xlu1 %v3731_v60, %s20446_s21  ;;  %v3830_v35 = vrot.slane %v3010_v1, %v15051_v40 }
 0x30e   : > { %12538 = vmatmul.mubr.msk.f32.gmra.mrb[86].mxu1 %vm2106_vm4, %v4816_v13  ;;  %v3734_v39 = vadd.f32 %v14670_v53, %v3621_v21  ;;  %v4817_v33 = vmax.f32 %v4713_v49, 0.0  ;;  %v15334_v51 = vadd.f32 %v12471_v18, %v14662_v10  ;;  %v2741_v24 = vpop.f32.mrb[125].mxu0  ;;  %v4418_v41 = vpop.permute.xlu0 %4417  ;;  %v4818_v60 = vmax.f32 %v4714_v0, 0.0 }
 0x30f   : > { %v3733_v48 = vadd.f32 %v14670_v53, %v3620_v57  ;;  %v15338_v13 = vadd.f32 %v14662_v10, %v2741_v24  ;;  %v20939_v1 = vrot.slane %v15194_v2, %v15051_v40  ;;  %v4416_v30 = vpop.permute.xlu1 %4415  ;;  %v3158_v21 = vcombine.high %v20940_v54, %v20940_v54 }
 0x310   : > { %v3623_v49 = vsub.f32 %v15334_v51, %v14367_v11  ;;  %v20941_v18 = vrot.slane %v15206_v17, %v15051_v40  ;;  %4533 = vrot.lane.b32.xlu0 %v3734_v39, %s20446_s21  ;;  %12540 = vmatprep.mubr.msk.f32.mxu1 %vm2106_vm4, %v4817_v33  ;;  %v15354_v0 = vrot.slane %v20940_v54, %v15005_v44 }
 0x311   : > { %20938 = vst [vmem:[#allocation165_spill] sm:$0xff] %v15338_v13  ;;  %v4716_v59 = vadd.f32 %v4418_v41, %v20939_v1  ;;  %v3622_v2 = vsub.f32 %v15338_v13, %v14348_v61  ;;  %v12474_v57 = vpop.f32.mrb[126].mxu0  ;;  %4531 = vrot.lane.b32.xlu1 %v3733_v48, %s20446_s21  ;;  %v3834_v17 = vrot.slane %v15145_v22, %v15051_v40 }
 0x312   : > { %v4715_v36 = vadd.f32 %v4416_v30, %v20941_v18  ;;  %12541 = vmatmul.mubr.msk.f32.gmra.mrb[88].mxu1 %vm2106_vm4, %v4818_v60  ;;  %v3736_v30 = vadd.f32 %v14670_v53, %v3623_v49  ;;  %v15364_v33 = vadd.f32 %v12474_v57, %v14662_v10  ;;  %v2751_v24 = vpop.f32.mrb[127].mxu0  ;;  %v4422_v54 = vpop.permute.xlu0 %4421  ;;  %v3058_v41 = vcombine.high %v15216_v58, %v15216_v58 }
 0x313   : > { %v3735_v1 = vadd.f32 %v14670_v53, %v3622_v2  ;;  %v4820_v18 = vmax.f32 %v4716_v59, 0.0  ;;  %v15370_v48 = vadd.f32 %v14662_v10, %v2751_v24  ;;  %v4718_v60 = vadd.f32 %v4422_v54, %v3830_v35  ;;  %v4420_v13 = vpop.permute.xlu1 %4419 }
 0x314   : > { %v4819_v39 = vmax.f32 %v4715_v36, 0.0  ;;  %v3625_v49 = vsub.f32 %v15364_v33, %v14381_v7  ;;  %v4717_v36 = vadd.f32 %v4420_v13, %v3826_v12  ;;  %4537 = vrot.lane.b32.xlu0 %v3736_v30, %s20446_s21  ;;  %v3056_v57 = vcombine.high %v15145_v22, %v15145_v22 }
 0x315   : > { %20942 = vst [vmem:[#allocation10_spill] sm:$0xff] %v15370_v48  ;;  %v15379_v61 = vrot.slane %v3158_v21, %v15005_v44  ;;  %v3624_v35 = vsub.f32 %v15370_v48, %v14362_v43  ;;  %v12477_v59 = vpop.f32.mrb[128].mxu0  ;;  %4535 = vrot.lane.b32.xlu1 %v3735_v1, %s20446_s21  ;;  %v15389_v12 = vrot.slane %v15354_v0, %v15005_v44  ;;  %v15395_v21 = vld [vmem:[%s20177_s6] ss:$0 sm:$0xff]  ;;  %v4822_v54 = vmax.f32 %v4718_v60, 0.0 }
 0x316   : > { %12543 = vmatprep.mubr.msk.f32.mxu1 %vm2106_vm4, %v4819_v39  ;;  %v3738_v22 = vadd.f32 %v14670_v53, %v3625_v49  ;;  %v4821_v13 = vmax.f32 %v4717_v36, 0.0  ;;  %v15398_v2 = vadd.f32 %v15395_v21, %v12477_v59  ;;  %v2761_v30 = vpop.f32.mrb[129].mxu0  ;;  %v4426_v39 = vpop.permute.xlu0 %4425  ;;  %v20945_v60 = vcombine.high %v15134_v47, %v15134_v47 }
 0x317   : > { %12544 = vmatmul.mubr.msk.f32.gmra.mrb[90].mxu1 %vm2106_vm4, %v4820_v18  ;;  %v3737_v24 = vadd.f32 %v14670_v53, %v3624_v35  ;;  %v15402_v1 = vadd.f32 %v15395_v21, %v2761_v30  ;;  %v20944_v18 = vrot.slane %v15216_v58, %v15051_v40  ;;  %v4424_v36 = vpop.permute.xlu1 %4423  ;;  %v3846_v58 = vrot.slane %v3058_v41, %v15051_v40 }
 0x318   : > { %v3627_v10 = vsub.f32 %v15398_v2, %v14395_v26  ;;  %v4719_v48 = vadd.f32 %v4424_v36, %v3834_v17  ;;  %4541 = vrot.lane.b32.xlu0 %v3738_v22, %s20446_s21  ;;  %12546 = vmatprep.mubr.msk.f32.mxu1 %vm2106_vm4, %v4821_v13  ;;  %v3055_v35 = vrot.slane %v20945_v60, %v15005_v44 }
 0x319   : > { %20943 = vst [vmem:[#allocation166_spill] sm:$0xff] %v15402_v1  ;;  %v4720_v49 = vadd.f32 %v4426_v39, %v20944_v18  ;;  %v3626_v59 = vsub.f32 %v15402_v1, %v14376_v42  ;;  %v12480_v30 = vpop.f32.mrb[130].mxu0  ;;  %4539 = vrot.lane.b32.xlu1 %v3737_v24, %s20446_s21  ;;  %v3041_v17 = vrot.slane %v15134_v47, %v15005_v44 }
 0x31a   : > { %v3740_v22 = vadd.f32 %v14670_v53, %v3627_v10  ;;  %v4823_v13 = vmax.f32 %v4719_v48, 0.0  ;;  %v15424_v39 = vadd.f32 %v15395_v21, %v12480_v30  ;;  %v2771_v18 = vpop.f32.mrb[131].mxu0  ;;  %v4430_v36 = vpop.permute.xlu0 %4429  ;;  %v3842_v60 = vrot.slane %v3056_v57, %v15051_v40 }
 0x31b   : > { %12547 = vmatmul.mubr.msk.f32.gmra.mrb[92].mxu1 %vm2106_vm4, %v4822_v54  ;;  %v3739_v1 = vadd.f32 %v14670_v53, %v3626_v59  ;;  %v4824_v24 = vmax.f32 %v4720_v49, 0.0  ;;  %v15429_v54 = vadd.f32 %v15395_v21, %v2771_v18  ;;  %v4722_v41 = vadd.f32 %v4430_v36, %v3846_v58  ;;  %v4428_v42 = vpop.permute.xlu1 %4427 }
 0x31c   : > { %v3629_v47 = vsub.f32 %v15424_v39, %v14409_v14  ;;  %v4721_v10 = vadd.f32 %v4428_v42, %v3842_v60  ;;  %4545 = vrot.lane.b32.xlu0 %v3740_v22, %s20446_s21  ;;  %12549 = vmatprep.mubr.msk.f32.mxu1 %vm2106_vm4, %v4823_v13  ;;  %v3854_v48 = vrot.slane %v3055_v35, %v15051_v40 }
 0x31d   : > { %20946 = vst [vmem:[#allocation167_spill] sm:$0xff] %v15429_v54  ;;  %v3628_v57 = vsub.f32 %v15429_v54, %v14390_v16  ;;  %v12483_v59 = vpop.f32.mrb[132].mxu0  ;;  %4543 = vrot.lane.b32.xlu1 %v3739_v1, %s20446_s21  ;;  %v3850_v49 = vrot.slane %v3041_v17, %v15051_v40  ;;  %v3059_v30 = vcombine.high %v3055_v35, %v3055_v35  ;;  %v4826_v54 = vmax.f32 %v4722_v41, 0.0 }
 0x31e   : > { %v3742_v58 = vadd.f32 %v14670_v53, %v3629_v47  ;;  %v4825_v42 = vmax.f32 %v4721_v10, 0.0  ;;  %v15443_v22 = vadd.f32 %v15395_v21, %v12483_v59  ;;  %v2781_v13 = vpop.f32.mrb[133].mxu0  ;;  %v4434_v18 = vpop.permute.xlu0 %4433  ;;  %v3057_v36 = vcombine.high %v3041_v17, %v3041_v17 }
 0x31f   : > { %12550 = vmatmul.mubr.msk.f32.gmra.mrb[94].mxu1 %vm2106_vm4, %v4824_v24  ;;  %v3741_v60 = vadd.f32 %v14670_v53, %v3628_v57  ;;  %v15447_v16 = vadd.f32 %v15395_v21, %v2781_v13  ;;  %v4724_v1 = vadd.f32 %v4434_v18, %v3854_v48  ;;  %v4432_v24 = vpop.permute.xlu1 %4431  ;;  %v3862_v48 = vrot.slane %v3059_v30, %v15051_v40 }
 0x320   : > { %v3631_v47 = vsub.f32 %v15443_v22, %v14423_v27  ;;  %v4723_v10 = vadd.f32 %v4432_v24, %v3850_v49  ;;  %4549 = vrot.lane.b32.xlu0 %v3742_v58, %s20446_s21  ;;  %12552 = vmatprep.mubr.msk.f32.mxu1 %vm2106_vm4, %v4825_v42  ;;  %v20948_v57 = vcombine.high %v15179_v52, %v15179_v52 }
 0x321   : > { %20947 = vst [vmem:[#allocation168_spill] sm:$0xff] %v15447_v16  ;;  %v3630_v17 = vsub.f32 %v15447_v16, %v14404_v20  ;;  %v12486_v41 = vpop.f32.mrb[134].mxu0  ;;  %4547 = vrot.lane.b32.xlu1 %v3741_v60, %s20446_s21  ;;  %v3858_v24 = vrot.slane %v3057_v36, %v15051_v40 }
 0x322   : > { %v3097_v59 = vrot.slane %v20948_v57, %v15005_v44  ;;  %v3744_v49 = vadd.f32 %v14670_v53, %v3631_v47  ;;  %v4827_v58 = vmax.f32 %v4723_v10, 0.0  ;;  %v15466_v42 = vadd.f32 %v15395_v21, %v12486_v41  ;;  %v2791_v13 = vpop.f32.mrb[135].mxu0  ;;  %v4438_v18 = vpop.permute.xlu0 %4437 }
 0x323   : > { %12553 = vmatmul.mubr.msk.f32.gmra.mrb[96].mxu1 %vm2106_vm4, %v4826_v54  ;;  %v3743_v60 = vadd.f32 %v14670_v53, %v3630_v17  ;;  %v4828_v54 = vmax.f32 %v4724_v1, 0.0  ;;  %v15471_v30 = vadd.f32 %v15395_v21, %v2791_v13  ;;  %v4726_v35 = vadd.f32 %v4438_v18, %v3862_v48  ;;  %v4436_v16 = vpop.permute.xlu1 %4435 }
 0x324   : > { %v3633_v52 = vsub.f32 %v15466_v42, %v14437_v56  ;;  %v4725_v47 = vadd.f32 %v4436_v16, %v3858_v24  ;;  %4553 = vrot.lane.b32.xlu0 %v3744_v49, %s20446_s21  ;;  %12555 = vmatprep.mubr.msk.f32.mxu1 %vm2106_vm4, %v4827_v58  ;;  %v3866_v10 = vrot.slane %v15230_v31, %v15051_v40 }
 0x325   : > { %20949 = vst [vmem:[#allocation169_spill] sm:$0xff] %v15471_v30  ;;  %v3632_v36 = vsub.f32 %v15471_v30, %v14418_v25  ;;  %v12489_v1 = vpop.f32.mrb[136].mxu0  ;;  %4551 = vrot.lane.b32.xlu1 %v3743_v60, %s20446_s21  ;;  %v3870_v17 = vrot.slane %v3097_v59, %v15051_v40  ;;  %v3107_v41 = vcombine.high %v3097_v59, %v3097_v59  ;;  %v4830_v24 = vmax.f32 %v4726_v35, 0.0 }
 0x326   : > { %v3746_v16 = vadd.f32 %v14670_v53, %v3633_v52  ;;  %v4829_v48 = vmax.f32 %v4725_v47, 0.0  ;;  %v15486_v57 = vadd.f32 %v15395_v21, %v12489_v1  ;;  %v2801_v49 = vpop.f32.mrb[137].mxu0  ;;  %v4442_v58 = vpop.permute.xlu0 %4441  ;;  %v3105_v13 = vcombine.high %v15230_v31, %v15230_v31 }
 0x327   : > { %12556 = vmatmul.mubr.msk.f32.gmra.mrb[98].mxu1 %vm2106_vm4, %v4828_v54  ;;  %v3745_v18 = vadd.f32 %v14670_v53, %v3632_v36  ;;  %v15492_v60 = vadd.f32 %v15395_v21, %v2801_v49  ;;  %v4728_v54 = vadd.f32 %v4442_v58, %v3870_v17  ;;  %v4440_v30 = vpop.permute.xlu1 %4439  ;;  %v20951_v31 = vcombine.high %v15209_v50, %v15209_v50 }
 0x328   : > { %v3635_v59 = vsub.f32 %v15486_v57, %v14451_v9  ;;  %v4727_v52 = vadd.f32 %v4440_v30, %v3866_v10  ;;  %4557 = vrot.lane.b32.xlu0 %v3746_v16, %s20446_s21  ;;  %12558 = vmatprep.mubr.msk.f32.mxu1 %vm2106_vm4, %v4829_v48  ;;  %v3878_v1 = vrot.slane %v3107_v41, %v15051_v40 }
 0x329   : > { %20950 = vst [vmem:[#allocation170_spill] sm:$0xff] %v15492_v60  ;;  %v3104_v47 = vrot.slane %v20951_v31, %v15005_v44  ;;  %v3634_v35 = vsub.f32 %v15492_v60, %v14432_v29  ;;  %v12492_v36 = vpop.f32.mrb[138].mxu0  ;;  %4555 = vrot.lane.b32.xlu1 %v3745_v18, %s20446_s21  ;;  %v3090_v30 = vrot.slane %v15209_v50, %v15005_v44  ;;  %v4832_v18 = vmax.f32 %v4728_v54, 0.0 }
 0x32a   : > { %v3748_v10 = vadd.f32 %v14670_v53, %v3635_v59  ;;  %v4831_v17 = vmax.f32 %v4727_v52, 0.0  ;;  %v15511_v16 = vadd.f32 %v15395_v21, %v12492_v36  ;;  %v2811_v48 = vpop.f32.mrb[139].mxu0  ;;  %v4446_v49 = vpop.permute.xlu0 %4445  ;;  %v3874_v58 = vrot.slane %v3105_v13, %v15051_v40  ;;  %v20954_v36 = vld [vmem:[#allocation85_spill] sm:$0xff] }
 0x32b   : > { %12559 = vmatmul.mubr.msk.f32.gmra.mrb[100].mxu1 %vm2106_vm4, %v4830_v24  ;;  %v3747_v31 = vadd.f32 %v14670_v53, %v3634_v35  ;;  %v15516_v24 = vadd.f32 %v15395_v21, %v2811_v48  ;;  %v4730_v41 = vadd.f32 %v4446_v49, %v3878_v1  ;;  %v4444_v60 = vpop.permute.xlu1 %4443  ;;  %v3886_v52 = vrot.slane %v3104_v47, %v15051_v40 }
 0x32c   : > { %20952 = vst [vmem:[#allocation171_spill] sm:$0xff] %v15511_v16  ;;  %v3637_v50 = vsub.f32 %v15511_v16, %v14465_v8  ;;  %v4729_v59 = vadd.f32 %v4444_v60, %v3874_v58  ;;  %4561 = vrot.lane.b32.xlu0 %v3748_v10, %s20446_s21  ;;  %12561 = vmatprep.mubr.msk.f32.mxu1 %vm2106_vm4, %v4831_v17  ;;  %v20956_v8 = vld [vmem:[#allocation11_spill] sm:$0xff] }
 0x32d   : > { %20953 = vst [vmem:[#allocation172_spill] sm:$0xff] %v15516_v24  ;;  %v3636_v13 = vsub.f32 %v15516_v24, %v20954_v36  ;;  %v12495_v35 = vpop.f32.mrb[140].mxu0  ;;  %4559 = vrot.lane.b32.xlu1 %v3747_v31, %s20446_s21  ;;  %v3882_v54 = vrot.slane %v3090_v30, %v15051_v40  ;;  %v3108_v1 = vcombine.high %v3104_v47, %v3104_v47  ;;  %v4834_v24 = vmax.f32 %v4730_v41, 0.0 }
 0x32e   : > { %v3750_v48 = vadd.f32 %v14670_v53, %v3637_v50  ;;  %v4833_v60 = vmax.f32 %v4729_v59, 0.0  ;;  %v15530_v10 = vadd.f32 %v15395_v21, %v12495_v35  ;;  %v2821_v17 = vpop.f32.mrb[141].mxu0  ;;  %v4450_v49 = vpop.permute.xlu0 %4449  ;;  %v3106_v58 = vcombine.high %v3090_v30, %v3090_v30 }
 0x32f   : > { %12562 = vmatmul.mubr.msk.f32.gmra.mrb[102].mxu1 %vm2106_vm4, %v4832_v18  ;;  %v3749_v16 = vadd.f32 %v14670_v53, %v3636_v13  ;;  %v15534_v36 = vadd.f32 %v15395_v21, %v2821_v17  ;;  %v4732_v31 = vadd.f32 %v4450_v49, %v3886_v52  ;;  %v4448_v18 = vpop.permute.xlu1 %4447  ;;  %v3894_v52 = vrot.slane %v3108_v1, %v15051_v40 }
 0x330   : > { %v3639_v50 = vsub.f32 %v15530_v10, %v14485_v62  ;;  %v4731_v59 = vadd.f32 %v4448_v18, %v3882_v54  ;;  %4565 = vrot.lane.b32.xlu0 %v3750_v48, %s20446_s21  ;;  %12564 = vmatprep.mubr.msk.f32.mxu1 %vm2106_vm4, %v4833_v60  ;;  %v20957_v13 = vcombine.high %v15268_v23, %v15268_v23  ;;  %v20960_v23 = vld [vmem:[#allocation89_spill] sm:$0xff] }
 0x331   : > { %20955 = vst [vmem:[#allocation173_spill] sm:$0xff] %v15534_v36  ;;  %v3638_v30 = vsub.f32 %v15534_v36, %v14460_v37  ;;  %v12498_v41 = vpop.f32.mrb[142].mxu0  ;;  %4563 = vrot.lane.b32.xlu1 %v3749_v16, %s20446_s21  ;;  %v3890_v18 = vrot.slane %v3106_v58, %v15051_v40  ;;  %v20961_v58 = vld [vmem:[#allocation87_spill] sm:$0xff] }
 0x332   : > { %v3146_v35 = vrot.slane %v20957_v13, %v15005_v44  ;;  %v3752_v54 = vadd.f32 %v14670_v53, %v3639_v50  ;;  %v4835_v48 = vmax.f32 %v4731_v59, 0.0  ;;  %v15553_v60 = vadd.f32 %v15395_v21, %v12498_v41  ;;  %v2831_v17 = vpop.f32.mrb[143].mxu0  ;;  %v4454_v49 = vpop.permute.xlu0 %4453 }
 0x333   : > { %12565 = vmatmul.mubr.msk.f32.gmra.mrb[104].mxu1 %vm2106_vm4, %v4834_v24  ;;  %v3751_v16 = vadd.f32 %v14670_v53, %v3638_v30  ;;  %v4836_v24 = vmax.f32 %v4732_v31, 0.0  ;;  %v15558_v1 = vadd.f32 %v15395_v21, %v2831_v17  ;;  %v4734_v47 = vadd.f32 %v4454_v49, %v3894_v52  ;;  %v4452_v36 = vpop.permute.xlu1 %4451 }
 0x334   : > { %20958 = vst [vmem:[#allocation11_spill] sm:$0xff] %v15553_v60  ;;  %v3641_v13 = vsub.f32 %v15553_v60, %v20960_v23  ;;  %v4733_v50 = vadd.f32 %v4452_v36, %v3890_v18  ;;  %4569 = vrot.lane.b32.xlu0 %v3752_v54, %s20446_s21  ;;  %12567 = vmatprep.mubr.msk.f32.mxu1 %vm2106_vm4, %v4835_v48 }
 0x335   : > { %20959 = vst [vmem:[#allocation174_spill] sm:$0xff] %v15558_v1  ;;  %v3898_v59 = vrot.slane %v15318_v28, %v15051_v40  ;;  %v3640_v30 = vsub.f32 %v15558_v1, %v20961_v58  ;;  %v12501_v31 = vpop.f32.mrb[144].mxu0  ;;  %4567 = vrot.lane.b32.xlu1 %v3751_v16, %s20446_s21  ;;  %v3902_v41 = vrot.slane %v3146_v35, %v15051_v40  ;;  %v4838_v58 = vmax.f32 %v4734_v47, 0.0 }
 0x336   : > { %v3156_v52 = vcombine.high %v3146_v35, %v3146_v35  ;;  %v3754_v36 = vadd.f32 %v14670_v53, %v3641_v13  ;;  %v4837_v17 = vmax.f32 %v4733_v50, 0.0  ;;  %v15573_v54 = vadd.f32 %v15395_v21, %v12501_v31  ;;  %v2841_v48 = vpop.f32.mrb[145].mxu0  ;;  %v4458_v49 = vpop.permute.xlu0 %4457  ;;  %v20964_v35 = vld [vmem:[#allocation91_spill] sm:$0xff] }
 0x337   : > { %12568 = vmatmul.mubr.msk.f32.gmra.mrb[106].mxu1 %vm2106_vm4, %v4836_v24  ;;  %v3154_v18 = vcombine.high %v15318_v28, %v15318_v28  ;;  %v3753_v1 = vadd.f32 %v14670_v53, %v3640_v30  ;;  %v15579_v16 = vadd.f32 %v15395_v21, %v2841_v48  ;;  %v4736_v24 = vadd.f32 %v4458_v49, %v3902_v41  ;;  %v4456_v60 = vpop.permute.xlu1 %4455  ;;  %v20966_v30 = vld [vmem:[#allocation88_spill] sm:$0xff] }
 0x338   : > { %20962 = vst [vmem:[#allocation175_spill] sm:$0xff] %v15573_v54  ;;  %v3643_v13 = vsub.f32 %v15573_v54, %v20964_v35  ;;  %v4735_v50 = vadd.f32 %v4456_v60, %v3898_v59  ;;  %4573 = vrot.lane.b32.xlu0 %v3754_v36, %s20446_s21  ;;  %12570 = vmatprep.mubr.msk.f32.mxu1 %vm2106_vm4, %v4837_v17  ;;  %v20969_v35 = vld [vmem:[#allocation93_spill] sm:$0xff] }
 0x339   : > { %20963 = vst [vmem:[#allocation176_spill] sm:$0xff] %v15579_v16  ;;  %v20965_v28 = vcombine.high %v15297_v45, %v15297_v45  ;;  %v3642_v47 = vsub.f32 %v15579_v16, %v20966_v30  ;;  %v12504_v48 = vpop.f32.mrb[146].mxu0  ;;  %4571 = vrot.lane.b32.xlu1 %v3753_v1, %s20446_s21  ;;  %v3910_v41 = vrot.slane %v3156_v52, %v15051_v40  ;;  %v4840_v1 = vmax.f32 %v4736_v24, 0.0 }
 0x33a   : > { %v3139_v60 = vrot.slane %v15297_v45, %v15005_v44  ;;  %v3756_v59 = vadd.f32 %v14670_v53, %v3643_v13  ;;  %v4839_v36 = vmax.f32 %v4735_v50, 0.0  ;;  %v15598_v17 = vadd.f32 %v15395_v21, %v12504_v48  ;;  %v2851_v49 = vpop.f32.mrb[147].mxu0  ;;  %v20970_v48 = vld [vmem:[#allocation90_spill] sm:$0xff] }
 0x33b   : > { %v3153_v31 = vrot.slane %v20965_v28, %v15005_v44  ;;  %12571 = vmatmul.mubr.msk.f32.gmra.mrb[108].mxu1 %vm2106_vm4, %v4838_v58  ;;  %v4462_v28 = vpop.permute.xlu0 %4461  ;;  %v3906_v16 = vrot.slane %v3154_v18, %v15051_v40  ;;  %v3755_v30 = vadd.f32 %v14670_v53, %v3642_v47  ;;  %v15603_v58 = vadd.f32 %v15395_v21, %v2851_v49  ;;  %v4460_v54 = vpop.permute.xlu1 %4459 }
 0x33c   : > { %20967 = vst [vmem:[#allocation177_spill] sm:$0xff] %v15598_v17  ;;  %v4738_v52 = vadd.f32 %v4462_v28, %v3910_v41  ;;  %v3645_v45 = vsub.f32 %v15598_v17, %v20969_v35  ;;  %4577 = vrot.lane.b32.xlu0 %v3756_v59, %s20446_s21  ;;  %12573 = vmatprep.mubr.msk.f32.mxu1 %vm2106_vm4, %v4839_v36  ;;  %v20973_v35 = vld [vmem:[#allocation95_spill] sm:$0xff] }
 0x33d   : > { %20968 = vst [vmem:[#allocation178_spill] sm:$0xff] %v15603_v58  ;;  %v4737_v13 = vadd.f32 %v4460_v54, %v3906_v16  ;;  %v3918_v50 = vrot.slane %v3153_v31, %v15051_v40  ;;  %v3644_v18 = vsub.f32 %v15603_v58, %v20970_v48  ;;  %v12507_v47 = vpop.f32.mrb[148].mxu0  ;;  %4575 = vrot.lane.b32.xlu1 %v3755_v30, %s20446_s21 }
 0x33e   : > { %v3914_v24 = vrot.slane %v3139_v60, %v15051_v40  ;;  %v3157_v41 = vcombine.high %v3153_v31, %v3153_v31  ;;  %v3758_v49 = vadd.f32 %v14670_v53, %v3645_v45  ;;  %v15617_v16 = vadd.f32 %v15395_v21, %v12507_v47  ;;  %v2861_v59 = vpop.f32.mrb[149].mxu0 }
 0x33f   : > { %12574 = vmatmul.mubr.msk.f32.gmra.mrb[110].mxu1 %vm2106_vm4, %v4840_v1  ;;  %v4841_v54 = vmax.f32 %v4737_v13, 0.0  ;;  %v4466_v36 = vpop.permute.xlu0 %4465  ;;  %v3155_v28 = vcombine.high %v3139_v60, %v3139_v60  ;;  %v3757_v17 = vadd.f32 %v14670_v53, %v3644_v18  ;;  %v4842_v58 = vmax.f32 %v4738_v52, 0.0  ;;  %v4464_v1 = vpop.permute.xlu1 %4463  ;;  %v20975_v13 = vld [vmem:[#allocation92_spill] sm:$0xff] }
 0x340   : > { %20971 = vst [vmem:[#allocation179_spill] sm:$0xff] %v15617_v16  ;;  %v15621_v48 = vadd.f32 %v15395_v21, %v2861_v59  ;;  %v4740_v30 = vadd.f32 %v4466_v36, %v3918_v50  ;;  %v3647_v31 = vsub.f32 %v15617_v16, %v20973_v35  ;;  %v4739_v23 = vadd.f32 %v4464_v1, %v3914_v24 }
 0x341   : > { %4581 = vrot.lane.b32.xlu0 %v3758_v49, %s20446_s21  ;;  %12576 = vmatprep.mubr.msk.f32.mxu1 %vm2106_vm4, %v4841_v54  ;;  %v20974_v60 = vcombine.high %v15354_v0, %v15354_v0  ;;  %v15633_v52 = vrot.slane %v20956_v8, %v15005_v44  ;;  %v12510_v18 = vpop.f32.mrb[150].mxu0  ;;  %v3926_v47 = vrot.slane %v3157_v41, %v15051_v40 }
 0x342   : > { %20972 = vst [vmem:[#allocation180_spill] sm:$0xff] %v15621_v48  ;;  %v3646_v50 = vsub.f32 %v15621_v48, %v20975_v13  ;;  %4579 = vrot.lane.b32.xlu1 %v3757_v17, %s20446_s21  ;;  %v3760_v24 = vadd.f32 %v14670_v53, %v3647_v31  ;;  %v4843_v49 = vmax.f32 %v4739_v23, 0.0  ;;  %v15642_v0 = vadd.f32 %v15395_v21, %v12510_v18  ;;  %v2871_v54 = vpop.f32.mrb[151].mxu0  ;;  %v20978_v13 = vld [vmem:[#allocation97_spill] sm:$0xff]  ;;  %v20979_v18 = vld [vmem:[#allocation94_spill] sm:$0xff] }
 0x343   : > { %v3195_v45 = vrot.slane %v20974_v60, %v15005_v44  ;;  %12577 = vmatmul.mubr.msk.f32.gmra.mrb[112].mxu1 %vm2106_vm4, %v4842_v58  ;;  %v4470_v59 = vpop.permute.xlu0 %4469  ;;  %v3922_v36 = vrot.slane %v3155_v28, %v15051_v40  ;;  %v4844_v60 = vmax.f32 %v4740_v30, 0.0  ;;  %v15647_v48 = vadd.f32 %v15395_v21, %v2871_v54  ;;  %v4468_v58 = vpop.permute.xlu1 %4467 }
 0x344   : > { %20976 = vst [vmem:[#allocation95_spill] sm:$0xff] %v15642_v0  ;;  %v3759_v1 = vadd.f32 %v14670_v53, %v3646_v50  ;;  %v4742_v17 = vadd.f32 %v4470_v59, %v3926_v47  ;;  %v3649_v41 = vsub.f32 %v15642_v0, %v20978_v13  ;;  %12579 = vmatprep.mubr.msk.f32.mxu1 %vm2106_vm4, %v4843_v49  ;;  %v20983_v0 = vld [vmem:[#allocation96_spill] sm:$0xff] }
 0x345   : > { %20977 = vst [vmem:[#allocation181_spill] sm:$0xff] %v15647_v48  ;;  %v4741_v31 = vadd.f32 %v4468_v58, %v3922_v36  ;;  %4585 = vrot.lane.b32.xlu0 %v3760_v24, %s20446_s21  ;;  %v3205_v23 = vcombine.high %v3195_v45, %v3195_v45  ;;  %v3648_v28 = vsub.f32 %v15647_v48, %v20979_v18  ;;  %v12513_v16 = vpop.f32.mrb[152].mxu0  ;;  %v20982_v18 = vld [vmem:[#allocation99_spill] sm:$0xff] }
 0x346   : > { %4583 = vrot.lane.b32.xlu1 %v3759_v1, %s20446_s21  ;;  %v3934_v30 = vrot.slane %v3195_v45, %v15051_v40  ;;  %v3203_v50 = vcombine.high %v15389_v12, %v15389_v12  ;;  %v3762_v47 = vadd.f32 %v14670_v53, %v3649_v41  ;;  %v15662_v24 = vadd.f32 %v15395_v21, %v12513_v16  ;;  %v2881_v49 = vpop.f32.mrb[153].mxu0 }
 0x347   : > { %12580 = vmatmul.mubr.msk.f32.gmra.mrb[114].mxu1 %vm2106_vm4, %v4844_v60  ;;  %v4845_v54 = vmax.f32 %v4741_v31, 0.0  ;;  %v4474_v59 = vpop.permute.xlu0 %4473  ;;  %v3930_v36 = vrot.slane %v15389_v12, %v15051_v40  ;;  %v3761_v1 = vadd.f32 %v14670_v53, %v3648_v28  ;;  %v4846_v58 = vmax.f32 %v4742_v17, 0.0  ;;  %v4472_v48 = vpop.permute.xlu1 %4471 }
 0x348   : > { %20980 = vst [vmem:[#allocation182_spill] sm:$0xff] %v15662_v24  ;;  %v15668_v60 = vadd.f32 %v15395_v21, %v2881_v49  ;;  %v4744_v45 = vadd.f32 %v4474_v59, %v3934_v30  ;;  %v3651_v41 = vsub.f32 %v15662_v24, %v20982_v18  ;;  %v3942_v16 = vrot.slane %v3205_v23, %v15051_v40  ;;  %v21001_v24 = vld [vmem:[#allocation103_spill] sm:$0xff] }
 0x349   : > { %v4743_v31 = vadd.f32 %v4472_v48, %v3930_v36  ;;  %4589 = vrot.lane.b32.xlu0 %v3762_v47, %s20446_s21  ;;  %12582 = vmatprep.mubr.msk.f32.mxu1 %vm2106_vm4, %v4845_v54  ;;  %v12516_v28 = vpop.f32.mrb[154].mxu0  ;;  %v3938_v17 = vrot.slane %v3203_v50, %v15051_v40  ;;  %v20984_v48 = vcombine.high %v15379_v61, %v15379_v61 }
 0x34a   : > { %20981 = vst [vmem:[#allocation183_spill] sm:$0xff] %v15668_v60  ;;  %v3650_v12 = vsub.f32 %v15668_v60, %v20983_v0  ;;  %4587 = vrot.lane.b32.xlu1 %v3761_v1, %s20446_s21  ;;  %v3764_v47 = vadd.f32 %v14670_v53, %v3651_v41  ;;  %v15686_v23 = vadd.f32 %v15395_v21, %v12516_v28  ;;  %v2891_v49 = vpop.f32.mrb[155].mxu0 }
 0x34b   : > { %12583 = vmatmul.mubr.msk.f32.gmra.mrb[116].mxu1 %vm2106_vm4, %v4846_v58  ;;  %v3202_v30 = vrot.slane %v20984_v48, %v15005_v44  ;;  %v4847_v54 = vmax.f32 %v4743_v31, 0.0  ;;  %v4478_v59 = vpop.permute.xlu0 %4477  ;;  %v3188_v36 = vrot.slane %v15379_v61, %v15005_v44  ;;  %v4848_v58 = vmax.f32 %v4744_v45, 0.0  ;;  %v4476_v0 = vpop.permute.xlu1 %4475  ;;  %v20987_v31 = vld [vmem:[#allocation100_spill] sm:$0xff]  ;;  %v20988_v61 = vld [vmem:[#allocation98_spill] sm:$0xff] }
 0x34c   : > { %20985 = vst [vmem:[#allocation184_spill] sm:$0xff] %v15686_v23  ;;  %v3763_v1 = vadd.f32 %v14670_v53, %v3650_v12  ;;  %v15692_v50 = vadd.f32 %v15395_v21, %v2891_v49  ;;  %v4746_v60 = vadd.f32 %v4478_v59, %v3942_v16  ;;  %v3222_v41 = vcombine.high %v15633_v52, %v15633_v52 }
 0x34d   : > { %v3653_v28 = vsub.f32 %v15686_v23, %v20987_v31  ;;  %v4745_v48 = vadd.f32 %v4476_v0, %v3938_v17  ;;  %4593 = vrot.lane.b32.xlu0 %v3764_v47, %s20446_s21  ;;  %12585 = vmatprep.mubr.msk.f32.mxu1 %vm2106_vm4, %v4847_v54  ;;  %v3950_v21 = vrot.slane %v3202_v30, %v15051_v40 }
 0x34e   : > { %20986 = vst [vmem:[#allocation185_spill] sm:$0xff] %v15692_v50  ;;  %v3652_v12 = vsub.f32 %v15692_v50, %v20988_v61  ;;  %4591 = vrot.lane.b32.xlu1 %v3763_v1, %s20446_s21  ;;  %v3206_v45 = vcombine.high %v3202_v30, %v3202_v30  ;;  %v3946_v0 = vrot.slane %v3188_v36, %v15051_v40  ;;  %v4850_v54 = vmax.f32 %v4746_v60, 0.0 }
 0x34f   : > { %12586 = vmatmul.mubr.msk.f32.gmra.mrb[118].mxu1 %vm2106_vm4, %v4848_v58  ;;  %v3766_v16 = vadd.f32 %v14670_v53, %v3653_v28  ;;  %v4849_v49 = vmax.f32 %v4745_v48, 0.0  ;;  %v4482_v59 = vpop.permute.xlu0 %4481  ;;  %v3204_v17 = vcombine.high %v3188_v36, %v3188_v36  ;;  %v4480_v31 = vpop.permute.xlu1 %4479  ;;  %v20989_v30 = vcombine.high %v20956_v8, %v20956_v8 }
 0x350   : > { %v3765_v47 = vadd.f32 %v14670_v53, %v3652_v12  ;;  %v4748_v23 = vadd.f32 %v4482_v59, %v3950_v21  ;;  %v4747_v50 = vadd.f32 %v4480_v31, %v3946_v0  ;;  %v3958_v36 = vrot.slane %v3206_v45, %v15051_v40 }
 0x351   : > { %4597 = vrot.lane.b32.xlu0 %v3766_v16, %s20446_s21  ;;  %12588 = vmatprep.mubr.msk.f32.mxu1 %vm2106_vm4, %v4849_v49  ;;  %v3221_v1 = vrot.slane %v20989_v30, %v15005_v44  ;;  %v3244_v53 = vrot.slane %v3222_v41, %v15005_v44  ;;  %v3230_v60 = vrot.slane %v15633_v52, %v15005_v44 }
 0x352   : > { %4595 = vrot.lane.b32.xlu1 %v3765_v47, %s20446_s21  ;;  %v4851_v58 = vmax.f32 %v4747_v50, 0.0  ;;  %v3954_v28 = vrot.slane %v3204_v17, %v15051_v40  ;;  %v4852_v48 = vmax.f32 %v4748_v23, 0.0  ;;  %s12761_s21 = smul.u32 208, %s20684_s24 }
 0x353   : > { %12589 = vmatmul.mubr.msk.f32.gmra.mrb[120].mxu1 %vm2106_vm4, %v4850_v54  ;;  %v4486_v31 = vpop.permute.xlu0 %4485  ;;  %v4484_v21 = vpop.permute.xlu1 %4483  ;;  %v3223_v16 = vcombine.high %v3221_v1, %v3221_v1  ;;  %v3966_v45 = vrot.slane %v3244_v53, %v15051_v40  ;;  %v3254_v49 = vcombine.high %v3244_v53, %v3244_v53  ;;  %v3962_v52 = vrot.slane %v3230_v60, %v15051_v40  ;;  %v20990_v54 = vld [vmem:[#allocation12_spill] sm:$0xff] }
 0x354   : > { %v4750_v12 = vadd.f32 %v4486_v31, %v3958_v36  ;;  %v4749_v8 = vadd.f32 %v4484_v21, %v3954_v28  ;;  %12591 = vmatprep.mubr.msk.f32.mxu1 %vm2106_vm4, %v4851_v58  ;;  %v3252_v50 = vcombine.high %v3230_v60, %v3230_v60  ;;  %v3263_v30 = vrot.slane %v20990_v54, %v15005_v44  ;;  %s19155_s15 = scalar_lea.vmem [#allocation2], %s12761_s21  ;;  %s21780_s21 = sshll.u32 %s21799_s20, 3 }
 0x355   : > { %v3974_v36 = vrot.slane %v3254_v49, %v15051_v40  ;;  %v3251_v53 = vrot.slane %v3223_v16, %v15005_v44  ;;  %v3237_v60 = vrot.slane %v3221_v1, %v15005_v44  ;;  %s19954_s0 = scalar_lea.vmem %s20183_s12, %s21780_s21  ;;  %s11792_s20 = smul.u32 3328, %s13415_s29 }
 0x356   : > { %v4853_v41 = vmax.f32 %v4749_v8, 0.0  ;;  %v4854_v0 = vmax.f32 %v4750_v12, 0.0  ;;  %v3970_v28 = vrot.slane %v3252_v50, %v15051_v40  ;;  %s13321_s29 = smov [#allocation2]  }
 0x357   : > { %12592 = vmatmul.mubr.msk.f32.gmra.mrb[122].mxu1 %vm2106_vm4, %v4852_v48  ;;  %v4490_v59 = vpop.permute.xlu0 %4489  ;;  %v4488_v17 = vpop.permute.xlu1 %4487  ;;  %v3982_v16 = vrot.slane %v3251_v53, %v15051_v40  ;;  %v3255_v49 = vcombine.high %v3251_v53, %v3251_v53  ;;  %v3978_v50 = vrot.slane %v3237_v60, %v15051_v40  ;;  %v3253_v1 = vcombine.high %v3237_v60, %v3237_v60  ;;  %s20104_s21 = scalar_lea.hbm %s20184_s13, %s11792_s20  ;;  %s13252_s20 = sshll.u32 %s13321_s29, 4  ;;  %s13253_s20 = int_to_ptr.vmem [resolvable:$false] %s13252_s20 }
 0x358   : > { %v4752_v47 = vadd.f32 %v4490_v59, %v3966_v45  ;;  %v4751_v23 = vadd.f32 %v4488_v17, %v3962_v52  ;;  %12594 = vmatprep.mubr.msk.f32.mxu1 %vm2106_vm4, %v4853_v41  ;;  %v3256_v45 = vcombine.high %v20990_v54, %v20990_v54  ;;  %v3271_v41 = vcombine.high %v3263_v30, %v3263_v30 }
 0x359   : > { %v3990_v54 = vrot.slane %v3255_v49, %v15051_v40  ;;  %v3279_v53 = vrot.slane %v3263_v30, %v15005_v44  ;;  %v3986_v60 = vrot.slane %v3253_v1, %v15051_v40 }
 0x35a   : > { %v4855_v58 = vmax.f32 %v4751_v23, 0.0  ;;  %v4856_v48 = vmax.f32 %v4752_v47, 0.0 }
 0x35b   : > { %12595 = vmatmul.mubr.msk.f32.gmra.mrb[124].mxu1 %vm2106_vm4, %v4854_v0  ;;  %v4494_v31 = vpop.permute.xlu0 %4493  ;;  %v4492_v21 = vpop.permute.xlu1 %4491  ;;  %v3994_v30 = vrot.slane %v3279_v53, %v15051_v40 }
 0x35c   : > { %v4754_v12 = vadd.f32 %v4494_v31, %v3974_v36  ;;  %v4753_v8 = vadd.f32 %v4492_v21, %v3970_v28  ;;  %12597 = vmatprep.mubr.msk.f32.mxu1 %vm2106_vm4, %v4855_v58  ;;  %v3270_v36 = vrot.slane %v3256_v45, %v15005_v44  ;;  %v3293_v58 = vrot.slane %v3271_v41, %v15005_v44 }
 0x35e   : > { %v4857_v59 = vmax.f32 %v4753_v8, 0.0  ;;  %v4858_v0 = vmax.f32 %v4754_v12, 0.0  ;;  %v3998_v45 = vrot.slane %v3293_v58, %v15051_v40  ;;  %v3303_v49 = vcombine.high %v3293_v58, %v3293_v58 }
 0x35f   : > { %12598 = vmatmul.mubr.msk.f32.gmra.mrb[126].mxu1 %vm2106_vm4, %v4856_v48  ;;  %v4498_v52 = vpop.permute.xlu0 %4497  ;;  %v4496_v17 = vpop.permute.xlu1 %4495 }
 0x360   : > { %v4756_v47 = vadd.f32 %v4498_v52, %v3982_v16  ;;  %v4755_v23 = vadd.f32 %v4496_v17, %v3978_v50  ;;  %12600 = vmatprep.mubr.msk.f32.mxu1 %vm2106_vm4, %v4857_v59  ;;  %v3272_v16 = vcombine.high %v3270_v36, %v3270_v36  ;;  %v3301_v52 = vcombine.high %v3279_v53, %v3279_v53  ;;  %v20991_v17 = vld [vmem:[#allocation13_spill] sm:$0xff] }
 0x361   : > { %v3286_v53 = vrot.slane %v3270_v36, %v15005_v44 }
 0x362   : > { %v4859_v31 = vmax.f32 %v4755_v23, 0.0  ;;  %v4860_v48 = vmax.f32 %v4756_v47, 0.0  ;;  %v3312_v23 = vrot.slane %v20991_v17, %v15005_v44  ;;  %v3300_v58 = vrot.slane %v3272_v16, %v15005_v44 }
 0x363   : > { %12601 = vmatmul.mubr.msk.f32.gmra.mrb[128].mxu1 %vm2106_vm4, %v4858_v0  ;;  %v4502_v28 = vpop.permute.xlu0 %4501  ;;  %v4500_v21 = vpop.permute.xlu1 %4499  ;;  %v3302_v36 = vcombine.high %v3286_v53, %v3286_v53 }
 0x364   : > { %v4758_v12 = vadd.f32 %v4502_v28, %v3990_v54  ;;  %v4757_v8 = vadd.f32 %v4500_v21, %v3986_v60  ;;  %12603 = vmatprep.mubr.msk.f32.mxu1 %vm2106_vm4, %v4859_v31  ;;  %v4006_v54 = vrot.slane %v3303_v49, %v15051_v40  ;;  %v4002_v60 = vrot.slane %v3301_v52, %v15051_v40 }
 0x365   : > { %v4014_v16 = vrot.slane %v3300_v58, %v15051_v40  ;;  %v3304_v49 = vcombine.high %v3300_v58, %v3300_v58  ;;  %v4010_v52 = vrot.slane %v3286_v53, %v15051_v40  ;;  %v3328_v58 = vrot.slane %v3312_v23, %v15005_v44 }
 0x366   : > { %v4861_v59 = vmax.f32 %v4757_v8, 0.0  ;;  %v4862_v50 = vmax.f32 %v4758_v12, 0.0  ;;  %v4018_v53 = vrot.slane %v3302_v36, %v15051_v40 }
 0x367   : > { %12604 = vmatmul.mubr.msk.f32.gmra.mrb[130].mxu1 %vm2106_vm4, %v4860_v48  ;;  %v4506_v41 = vpop.permute.xlu0 %4505  ;;  %v4504_v1 = vpop.permute.xlu1 %4503 }
 0x368   : > { %v4760_v0 = vadd.f32 %v4506_v41, %v3998_v45  ;;  %v4759_v47 = vadd.f32 %v4504_v1, %v3994_v30  ;;  %12606 = vmatprep.mubr.msk.f32.mxu1 %vm2106_vm4, %v4861_v59  ;;  %v3305_v45 = vcombine.high %v20991_v17, %v20991_v17  ;;  %v3320_v59 = vcombine.high %v3312_v23, %v3312_v23 }
 0x369   : > { %v4022_v17 = vrot.slane %v3304_v49, %v15051_v40  ;;  %v4026_v23 = vrot.slane %v3328_v58, %v15051_v40 }
 0x36a   : > { %v4863_v31 = vmax.f32 %v4759_v47, 0.0  ;;  %v4864_v48 = vmax.f32 %v4760_v0, 0.0 }
 0x36b   : > { %12607 = vmatmul.mubr.msk.f32.gmra.mrb[132].mxu1 %vm2106_vm4, %v4862_v50  ;;  %v4510_v28 = vpop.permute.xlu0 %4509  ;;  %v4508_v21 = vpop.permute.xlu1 %4507 }
 0x36c   : > { %v4762_v12 = vadd.f32 %v4510_v28, %v4006_v54  ;;  %v4761_v8 = vadd.f32 %v4508_v21, %v4002_v60  ;;  %12609 = vmatprep.mubr.msk.f32.mxu1 %vm2106_vm4, %v4863_v31  ;;  %v3319_v54 = vrot.slane %v3305_v45, %v15005_v44  ;;  %v3342_v31 = vrot.slane %v3320_v59, %v15005_v44 }
 0x36e   : > { %v4865_v41 = vmax.f32 %v4761_v8, 0.0  ;;  %v4866_v50 = vmax.f32 %v4762_v12, 0.0  ;;  %v4030_v45 = vrot.slane %v3342_v31, %v15051_v40  ;;  %v3352_v49 = vcombine.high %v3342_v31, %v3342_v31 }
 0x36f   : > { %12610 = vmatmul.mubr.msk.f32.gmra.mrb[134].mxu1 %vm2106_vm4, %v4864_v48  ;;  %v4514_v30 = vpop.permute.xlu0 %4513  ;;  %v4512_v1 = vpop.permute.xlu1 %4511 }
 0x370   : > { %v4764_v0 = vadd.f32 %v4514_v30, %v4014_v16  ;;  %v4763_v47 = vadd.f32 %v4512_v1, %v4010_v52  ;;  %12612 = vmatprep.mubr.msk.f32.mxu1 %vm2106_vm4, %v4865_v41  ;;  %v3321_v16 = vcombine.high %v3319_v54, %v3319_v54  ;;  %v3350_v30 = vcombine.high %v3328_v58, %v3328_v58  ;;  %v20992_v1 = vld [vmem:[#allocation14_spill] sm:$0xff] }
 0x371   : > { %v3335_v58 = vrot.slane %v3319_v54, %v15005_v44 }
 0x372   : > { %v4867_v28 = vmax.f32 %v4763_v47, 0.0  ;;  %v4868_v48 = vmax.f32 %v4764_v0, 0.0  ;;  %v3361_v47 = vrot.slane %v20992_v1, %v15005_v44  ;;  %v3349_v31 = vrot.slane %v3321_v16, %v15005_v44 }
 0x373   : > { %12613 = vmatmul.mubr.msk.f32.gmra.mrb[136].mxu1 %vm2106_vm4, %v4866_v50  ;;  %v4518_v60 = vpop.permute.xlu0 %4517  ;;  %v4516_v21 = vpop.permute.xlu1 %4515  ;;  %v3351_v54 = vcombine.high %v3335_v58, %v3335_v58 }
 0x374   : > { %v4766_v12 = vadd.f32 %v4518_v60, %v4022_v17  ;;  %v4765_v8 = vadd.f32 %v4516_v21, %v4018_v53  ;;  %12615 = vmatprep.mubr.msk.f32.mxu1 %vm2106_vm4, %v4867_v28  ;;  %v4038_v17 = vrot.slane %v3352_v49, %v15051_v40  ;;  %v4034_v53 = vrot.slane %v3350_v30, %v15051_v40 }
 0x375   : > { %v4046_v16 = vrot.slane %v3349_v31, %v15051_v40  ;;  %v3353_v49 = vcombine.high %v3349_v31, %v3349_v31  ;;  %v4042_v30 = vrot.slane %v3335_v58, %v15051_v40  ;;  %v3377_v31 = vrot.slane %v3361_v47, %v15005_v44 }
 0x376   : > { %v4869_v41 = vmax.f32 %v4765_v8, 0.0  ;;  %v4870_v52 = vmax.f32 %v4766_v12, 0.0  ;;  %v4050_v58 = vrot.slane %v3351_v54, %v15051_v40 }
 0x377   : > { %12616 = vmatmul.mubr.msk.f32.gmra.mrb[138].mxu1 %vm2106_vm4, %v4868_v48  ;;  %v4522_v59 = vpop.permute.xlu0 %4521  ;;  %v4520_v36 = vpop.permute.xlu1 %4519 }
 0x378   : > { %v4768_v50 = vadd.f32 %v4522_v59, %v4030_v45  ;;  %v4767_v0 = vadd.f32 %v4520_v36, %v4026_v23  ;;  %12618 = vmatprep.mubr.msk.f32.mxu1 %vm2106_vm4, %v4869_v41  ;;  %v3354_v45 = vcombine.high %v20992_v1, %v20992_v1  ;;  %v3369_v41 = vcombine.high %v3361_v47, %v3361_v47 }
 0x379   : > { %v4054_v1 = vrot.slane %v3353_v49, %v15051_v40  ;;  %v4058_v47 = vrot.slane %v3377_v31, %v15051_v40 }
 0x37a   : > { %v4871_v28 = vmax.f32 %v4767_v0, 0.0  ;;  %v4872_v48 = vmax.f32 %v4768_v50, 0.0 }
 0x37b   : > { %12619 = vmatmul.mubr.msk.f32.gmra.mrb[140].mxu1 %vm2106_vm4, %v4870_v52  ;;  %v4526_v60 = vpop.permute.xlu0 %4525  ;;  %v4524_v21 = vpop.permute.xlu1 %4523 }
 0x37c   : > { %v4770_v12 = vadd.f32 %v4526_v60, %v4038_v17  ;;  %v4769_v8 = vadd.f32 %v4524_v21, %v4034_v53  ;;  %12621 = vmatprep.mubr.msk.f32.mxu1 %vm2106_vm4, %v4871_v28  ;;  %v3368_v17 = vrot.slane %v3354_v45, %v15005_v44  ;;  %v3391_v28 = vrot.slane %v3369_v41, %v15005_v44 }
 0x37e   : > { %v4873_v59 = vmax.f32 %v4769_v8, 0.0  ;;  %v4874_v52 = vmax.f32 %v4770_v12, 0.0  ;;  %v4062_v45 = vrot.slane %v3391_v28, %v15051_v40  ;;  %v3401_v49 = vcombine.high %v3391_v28, %v3391_v28 }
 0x37f   : > { %12622 = vmatmul.mubr.msk.f32.gmra.mrb[142].mxu1 %vm2106_vm4, %v4872_v48  ;;  %v4530_v23 = vpop.permute.xlu0 %4529  ;;  %v4528_v36 = vpop.permute.xlu1 %4527 }
 0x380   : > { %v4772_v50 = vadd.f32 %v4530_v23, %v4046_v16  ;;  %v4771_v0 = vadd.f32 %v4528_v36, %v4042_v30  ;;  %12624 = vmatprep.mubr.msk.f32.mxu1 %vm2106_vm4, %v4873_v59  ;;  %v3370_v16 = vcombine.high %v3368_v17, %v3368_v17  ;;  %v3399_v23 = vcombine.high %v3377_v31, %v3377_v31  ;;  %v20993_v36 = vld [vmem:[#allocation15_spill] sm:$0xff] }
 0x381   : > { %v3384_v31 = vrot.slane %v3368_v17, %v15005_v44 }
 0x382   : > { %v4875_v60 = vmax.f32 %v4771_v0, 0.0  ;;  %v4876_v48 = vmax.f32 %v4772_v50, 0.0  ;;  %v3410_v0 = vrot.slane %v20993_v36, %v15005_v44  ;;  %v3398_v28 = vrot.slane %v3370_v16, %v15005_v44 }
 0x383   : > { %12625 = vmatmul.mubr.msk.f32.gmra.mrb[144].mxu1 %vm2106_vm4, %v4874_v52  ;;  %v4534_v53 = vpop.permute.xlu0 %4533  ;;  %v4532_v21 = vpop.permute.xlu1 %4531  ;;  %v3400_v17 = vcombine.high %v3384_v31, %v3384_v31 }
 0x384   : > { %v4774_v12 = vadd.f32 %v4534_v53, %v4054_v1  ;;  %v4773_v8 = vadd.f32 %v4532_v21, %v4050_v58  ;;  %12627 = vmatprep.mubr.msk.f32.mxu1 %vm2106_vm4, %v4875_v60  ;;  %v4070_v1 = vrot.slane %v3401_v49, %v15051_v40  ;;  %v4066_v58 = vrot.slane %v3399_v23, %v15051_v40 }
 0x385   : > { %v4078_v16 = vrot.slane %v3398_v28, %v15051_v40  ;;  %v3402_v49 = vcombine.high %v3398_v28, %v3398_v28  ;;  %v4074_v23 = vrot.slane %v3384_v31, %v15051_v40  ;;  %v3426_v28 = vrot.slane %v3410_v0, %v15005_v44 }
 0x386   : > { %v4877_v59 = vmax.f32 %v4773_v8, 0.0  ;;  %v4878_v30 = vmax.f32 %v4774_v12, 0.0  ;;  %v4082_v31 = vrot.slane %v3400_v17, %v15051_v40 }
 0x387   : > { %12628 = vmatmul.mubr.msk.f32.gmra.mrb[146].mxu1 %vm2106_vm4, %v4876_v48  ;;  %v4538_v41 = vpop.permute.xlu0 %4537  ;;  %v4536_v54 = vpop.permute.xlu1 %4535 }
 0x388   : > { %v4776_v52 = vadd.f32 %v4538_v41, %v4062_v45  ;;  %v4775_v50 = vadd.f32 %v4536_v54, %v4058_v47  ;;  %12630 = vmatprep.mubr.msk.f32.mxu1 %vm2106_vm4, %v4877_v59  ;;  %v3403_v45 = vcombine.high %v20993_v36, %v20993_v36  ;;  %v3418_v59 = vcombine.high %v3410_v0, %v3410_v0 }
 0x389   : > { %v4086_v36 = vrot.slane %v3402_v49, %v15051_v40  ;;  %v4090_v0 = vrot.slane %v3426_v28, %v15051_v40 }
 0x38a   : > { %v4879_v60 = vmax.f32 %v4775_v50, 0.0  ;;  %v4880_v48 = vmax.f32 %v4776_v52, 0.0 }
 0x38b   : > { %12631 = vmatmul.mubr.msk.f32.gmra.mrb[148].mxu1 %vm2106_vm4, %v4878_v30  ;;  %v4542_v53 = vpop.permute.xlu0 %4541  ;;  %v4540_v21 = vpop.permute.xlu1 %4539 }
 0x38c   : > { %v4778_v12 = vadd.f32 %v4542_v53, %v4070_v1  ;;  %v4777_v8 = vadd.f32 %v4540_v21, %v4066_v58  ;;  %12633 = vmatprep.mubr.msk.f32.mxu1 %vm2106_vm4, %v4879_v60  ;;  %v3417_v1 = vrot.slane %v3403_v45, %v15005_v44  ;;  %v3440_v60 = vrot.slane %v3418_v59, %v15005_v44 }
 0x38e   : > { %v4881_v41 = vmax.f32 %v4777_v8, 0.0  ;;  %v4882_v30 = vmax.f32 %v4778_v12, 0.0  ;;  %v4094_v45 = vrot.slane %v3440_v60, %v15051_v40  ;;  %v3450_v49 = vcombine.high %v3440_v60, %v3440_v60 }
 0x38f   : > { %12634 = vmatmul.mubr.msk.f32.gmra.mrb[150].mxu1 %vm2106_vm4, %v4880_v48  ;;  %v4546_v47 = vpop.permute.xlu0 %4545  ;;  %v4544_v54 = vpop.permute.xlu1 %4543 }
 0x390   : > { %v4780_v52 = vadd.f32 %v4546_v47, %v4078_v16  ;;  %v4779_v50 = vadd.f32 %v4544_v54, %v4074_v23  ;;  %12636 = vmatprep.mubr.msk.f32.mxu1 %vm2106_vm4, %v4881_v41  ;;  %v3419_v16 = vcombine.high %v3417_v1, %v3417_v1  ;;  %v3448_v47 = vcombine.high %v3426_v28, %v3426_v28  ;;  %v20994_v54 = vld [vmem:[#allocation16_spill] sm:$0xff] }
 0x391   : > { %v3433_v28 = vrot.slane %v3417_v1, %v15005_v44 }
 0x392   : > { %v4883_v53 = vmax.f32 %v4779_v50, 0.0  ;;  %v4884_v48 = vmax.f32 %v4780_v52, 0.0  ;;  %v3459_v50 = vrot.slane %v20994_v54, %v15005_v44  ;;  %v3447_v60 = vrot.slane %v3419_v16, %v15005_v44 }
 0x393   : > { %12637 = vmatmul.mubr.msk.f32.gmra.mrb[152].mxu1 %vm2106_vm4, %v4882_v30  ;;  %v4550_v58 = vpop.permute.xlu0 %4549  ;;  %v4548_v21 = vpop.permute.xlu1 %4547  ;;  %v3449_v1 = vcombine.high %v3433_v28, %v3433_v28 }
 0x394   : > { %v4782_v12 = vadd.f32 %v4550_v58, %v4086_v36  ;;  %v4781_v8 = vadd.f32 %v4548_v21, %v4082_v31  ;;  %12639 = vmatprep.mubr.msk.f32.mxu1 %vm2106_vm4, %v4883_v53  ;;  %v4102_v36 = vrot.slane %v3450_v49, %v15051_v40  ;;  %v4098_v31 = vrot.slane %v3448_v47, %v15051_v40 }
 0x395   : > { %v4110_v16 = vrot.slane %v3447_v60, %v15051_v40  ;;  %v3451_v49 = vcombine.high %v3447_v60, %v3447_v60  ;;  %v4106_v47 = vrot.slane %v3433_v28, %v15051_v40  ;;  %v3475_v60 = vrot.slane %v3459_v50, %v15005_v44 }
 0x396   : > { %v4885_v41 = vmax.f32 %v4781_v8, 0.0  ;;  %v4886_v23 = vmax.f32 %v4782_v12, 0.0  ;;  %v3452_v8 = vcombine.high %v20994_v54, %v20994_v54 }
 0x397   : > { %12640 = vmatmul.mubr.msk.f32.gmra.mrb[154].mxu1 %vm2106_vm4, %v4884_v48  ;;  %v4554_v59 = vpop.permute.xlu0 %4553  ;;  %v4552_v17 = vpop.permute.xlu1 %4551 }
 0x398   : > { %v4784_v30 = vadd.f32 %v4554_v59, %v4094_v45  ;;  %v4783_v52 = vadd.f32 %v4552_v17, %v4090_v0  ;;  %12642 = vmatprep.mubr.msk.f32.mxu1 %vm2106_vm4, %v4885_v41  ;;  %v3467_v41 = vcombine.high %v3459_v50, %v3459_v50 }
 0x39a   : > { %v4887_v53 = vmax.f32 %v4783_v52, 0.0  ;;  %v4888_v48 = vmax.f32 %v4784_v30, 0.0  ;;  %v3466_v52 = vrot.slane %v3452_v8, %v15005_v44 }
 0x39b   : > { %12643 = vmatmul.mubr.msk.f32.gmra.mrb[156].mxu1 %vm2106_vm4, %v4886_v23  ;;  %v4558_v58 = vpop.permute.xlu0 %4557  ;;  %v4556_v21 = vpop.permute.xlu1 %4555 }
 0x39c   : > { %v4786_v12 = vadd.f32 %v4558_v58, %v4102_v36  ;;  %v4785_v45 = vadd.f32 %v4556_v21, %v4098_v31  ;;  %12645 = vmatprep.mubr.msk.f32.mxu1 %vm2106_vm4, %v4887_v53  ;;  %v4118_v36 = vrot.slane %v3451_v49, %v15051_v40  ;;  %v3489_v53 = vrot.slane %v3467_v41, %v15005_v44  ;;  %v20995_v58 = vld [vmem:[#allocation17_spill] sm:$0xff] }
 0x39d   : > { %v3501_v31 = vcombine.high %v20995_v58, %v20995_v58  ;;  %v3508_v49 = vrot.slane %v20995_v58, %v15005_v44 }
 0x39e   : > { %v4889_v59 = vmax.f32 %v4785_v45, 0.0  ;;  %v4890_v23 = vmax.f32 %v4786_v12, 0.0  ;;  %v4114_v12 = vrot.slane %v3449_v1, %v15051_v40  ;;  %v4126_v50 = vrot.slane %v3489_v53, %v15051_v40 }
 0x39f   : > { %12646 = vmatmul.mubr.msk.f32.gmra.mrb[158].mxu1 %vm2106_vm4, %v4888_v48  ;;  %v4562_v0 = vpop.permute.xlu0 %4561  ;;  %v4560_v17 = vpop.permute.xlu1 %4559  ;;  %v3499_v41 = vcombine.high %v3489_v53, %v3489_v53  ;;  %v4122_v1 = vrot.slane %v3475_v60, %v15051_v40 }
 0x3a0   : > { %v4788_v30 = vadd.f32 %v4562_v0, %v4110_v16  ;;  %v4787_v54 = vadd.f32 %v4560_v17, %v4106_v47  ;;  %12648 = vmatprep.mubr.msk.f32.mxu1 %vm2106_vm4, %v4889_v59  ;;  %v3468_v16 = vcombine.high %v3466_v52, %v3466_v52  ;;  %v3515_v0 = vrot.slane %v3501_v31, %v15005_v44 }
 0x3a1   : > { %v4134_v53 = vrot.slane %v3499_v41, %v15051_v40  ;;  %v3482_v31 = vrot.slane %v3466_v52, %v15005_v44 }
 0x3a2   : > { %v4891_v28 = vmax.f32 %v4787_v54, 0.0  ;;  %v4892_v21 = vmax.f32 %v4788_v30, 0.0  ;;  %v3497_v30 = vcombine.high %v3475_v60, %v3475_v60  ;;  %v3496_v58 = vrot.slane %v3468_v16, %v15005_v44 }
 0x3a3   : > { %12649 = vmatmul.mubr.msk.f32.gmra.mrb[160].mxu1 %vm2106_vm4, %v4890_v23  ;;  %v4566_v48 = vpop.permute.xlu0 %4565  ;;  %v4564_v45 = vpop.permute.xlu1 %4563  ;;  %v4138_v41 = vrot.slane %v3482_v31, %v15051_v40 }
 0x3a4   : > { %v4790_v8 = vadd.f32 %v4566_v48, %v4118_v36  ;;  %v4789_v59 = vadd.f32 %v4564_v45, %v4114_v12  ;;  %12651 = vmatprep.mubr.msk.f32.mxu1 %vm2106_vm4, %v4891_v28  ;;  %v3516_v28 = vcombine.high %v3508_v49, %v3508_v49  ;;  %v3517_v12 = vcombine.high %v3515_v0, %v3515_v0 }
 0x3a5   : > { %v4130_v60 = vrot.slane %v3497_v30, %v15051_v40  ;;  %v4142_v16 = vrot.slane %v3496_v58, %v15051_v40  ;;  %v3500_v52 = vcombine.high %v3496_v58, %v3496_v58  ;;  %v3498_v30 = vcombine.high %v3482_v31, %v3482_v31 }
 0x3a6   : > { %v4893_v47 = vmax.f32 %v4789_v59, 0.0  ;;  %v4894_v17 = vmax.f32 %v4790_v8, 0.0  ;;  %v13320_v58 = vmov 1934713408  }
 0x3a7   : > { %12652 = vmatmul.mubr.msk.f32.gmra.mrb[162].mxu1 %vm2106_vm4, %v4892_v21  ;;  %v4570_v23 = vpop.permute.xlu0 %4569  ;;  %v4568_v36 = vpop.permute.xlu1 %4567 }
 0x3a8   : > { %v4792_v54 = vadd.f32 %v4570_v23, %v4126_v50  ;;  %v4791_v48 = vadd.f32 %v4568_v36, %v4122_v1  ;;  %12654 = vmatprep.mubr.msk.f32.mxu1 %vm2106_vm4, %v4893_v47  ;;  %v3524_v23 = vrot.slane %v3508_v49, %v15005_v44  ;;  %v3538_v1 = vrot.slane %v3516_v28, %v15005_v44 }
 0x3a9   : > { %v4150_v28 = vrot.slane %v3500_v52, %v15051_v40 }
 0x3aa   : > { %v4895_v21 = vmax.f32 %v4791_v48, 0.0  ;;  %v4896_v8 = vmax.f32 %v4792_v54, 0.0  ;;  %v15868_v54 = vrot.slane %v3517_v12, %v15005_v44  ;;  %v3548_v31 = vcombine.high %v3538_v1, %v3538_v1 }
 0x3ab   : > { %12655 = vmatmul.mubr.msk.f32.gmra.mrb[164].mxu1 %vm2106_vm4, %v4894_v17  ;;  %v4574_v45 = vpop.permute.xlu0 %4573  ;;  %v4572_v50 = vpop.permute.xlu1 %4571  ;;  %v3546_v12 = vcombine.high %v3524_v23, %v3524_v23  ;;  %v4154_v52 = vrot.slane %v3524_v23, %v15051_v40  ;;  %v20996_v23 = vld [vmem:[#allocation19_spill] sm:$0xff] }
 0x3ac   : > { %v4794_v59 = vadd.f32 %v4574_v45, %v4134_v53  ;;  %v4793_v47 = vadd.f32 %v4572_v50, %v4130_v60  ;;  %12657 = vmatprep.mubr.msk.f32.mxu1 %vm2106_vm4, %v4895_v21  ;;  %v15871_v21 = vrot.slane %v3515_v0, %v15005_v44  ;;  %v13319_v45 = vmov 1983009808  }
 0x3ad   : > { %v9129_v60 = vunpack.c.l.s4 %v13319_v45  ;;  %v9193_v50 = vunpack.c.l.s4 %v13320_v58  ;;  %v3549_v44 = vcombine.high %v15868_v54, %v15868_v54 }
 0x3ae   : > { %v4897_v17 = vmax.f32 %v4793_v47, 0.0  ;;  %v4898_v48 = vmax.f32 %v4794_v59, 0.0 }
 0x3af   : > { %12658 = vmatmul.mubr.msk.f32.gmra.mrb[166].mxu1 %vm2106_vm4, %v4896_v8  ;;  %v4578_v36 = vpop.permute.xlu0 %4577  ;;  %v4576_v53 = vpop.permute.xlu1 %4575 }
 0x3b0   : > { %v4796_v49 = vadd.f32 %v4578_v36, %v4142_v16  ;;  %v4795_v8 = vadd.f32 %v4576_v53, %v4138_v41  ;;  %12660 = vmatprep.mubr.msk.f32.mxu1 %vm2106_vm4, %v4897_v17  ;;  %v4146_v16 = vrot.slane %v3498_v30, %v15051_v40  ;;  %v3547_v17 = vcombine.high %v15871_v21, %v15871_v21 }
 0x3b1   : > { %v9130_v53 = vunpack.c.0.s8 %v9129_v60  ;;  %v4158_v30 = vrot.slane %v3538_v1, %v15051_v40  ;;  %v4170_v60 = vrot.slane %v15871_v21, %v15051_v40 }
 0x3b2   : > { %v4899_v47 = vmax.f32 %v4795_v8, 0.0  ;;  %v4900_v0 = vmax.f32 %v4796_v49, 0.0  ;;  %v4166_v8 = vrot.slane %v3548_v31, %v15051_v40  ;;  %v4162_v49 = vrot.slane %v3546_v12, %v15051_v40 }
 0x3b3   : > { %12661 = vmatmul.mubr.msk.f32.gmra.mrb[168].mxu1 %vm2106_vm4, %v4898_v48  ;;  %v4582_v59 = vpop.permute.xlu0 %4581  ;;  %v9194_v48 = vunpack.c.0.s8 %v9193_v50  ;;  %v20997_v50 = vld [vmem:[#allocation101_spill] sm:$0xff]  ;;  %v15899_v12 = vrot.slane %v3547_v17, %v15051_v40 }
 0x3b4   : > { %v4798_v36 = vadd.f32 %v4582_v59, %v4150_v28  ;;  %v4580_v41 = vpop.permute.xlu1 %4579  ;;  %12663 = vmatprep.mubr.msk.f32.mxu1 %vm2106_vm4, %v4899_v47  ;;  %v4174_v59 = vrot.slane %v15868_v54, %v15051_v40  ;;  %v15892_v47 = vrot.slane %v3549_v44, %v15051_v40  ;;  %v21000_v54 = vld [vmem:[#allocation21_spill] sm:$0xff]  ;;  %v21002_v44 = vld [vmem:[#allocation148_spill] sm:$0xff]  ;;  %v21007_v40 = vld [vmem:[#allocation23_spill] sm:$0xff] }
 0x3b5   : > { %v4797_v45 = vadd.f32 %v4580_v41, %v4146_v16  ;;  %v15896_v16 = vadd.f32 %v20997_v50, %v20996_v23  ;;  %v20998_v41 = vld [vmem:[#allocation18_spill] sm:$0xff]  ;;  %v15907_v21 = vadd.f32 %v21001_v24, %v21000_v54  ;;  %v15910_v18 = vsub.s32 %v9130_v53, %v21002_v44  ;;  %v21008_v17 = vld [vmem:[#allocation105_spill] sm:$0xff]  ;;  %v21018_v54 = vld [vmem:[#allocation108_spill] sm:$0xff] }
 0x3b6   : > { %v4902_v1 = vmax.f32 %v4798_v36, 0.0  ;;  %v21004_v36 = vld [vmem:[#allocation20_spill] sm:$0xff]  ;;  %v15919_v23 = vadd.f32 %v21008_v17, %v21007_v40  ;;  %v21010_v50 = vld [vmem:[#allocation22_spill] sm:$0xff]  ;;  %v15926_v24 = vsub.s32 %v9194_v48, %v21002_v44  ;;  %v21014_v53 = vld [vmem:[#allocation25_spill] sm:$0xff] }
 0x3b7   : > { %12664 = vmatmul.mubr.msk.f32.gmra.mrb[170].mxu1 %vm2106_vm4, %v4900_v0  ;;  %v4901_v58 = vmax.f32 %v4797_v45, 0.0  ;;  %v4586_v28 = vpop.permute.xlu0 %4585  ;;  %v20999_v45 = vld [vmem:[#allocation102_spill] sm:$0xff]  ;;  %21003 = vst [vmem:[#allocation12_spill] sm:$0xff] %v15910_v18  ;;  %v21021_v40 = vld [vmem:[#allocation109_spill] sm:$0xff] }
 0x3b8   : > { %v4800_v0 = vadd.f32 %v4586_v28, %v4158_v30  ;;  %v4584_v31 = vpop.permute.xlu1 %4583  ;;  %v15903_v61 = vadd.f32 %v20999_v45, %v20998_v41  ;;  %v21005_v30 = vld [vmem:[#allocation104_spill] sm:$0xff]  ;;  %21009 = vst [vmem:[#allocation14_spill] sm:$0xff] %v15919_v23  ;;  %v21011_v41 = vld [vmem:[#allocation106_spill] sm:$0xff]  ;;  %21013 = vst [vmem:[#allocation16_spill] sm:$0xff] %v15926_v24 }
 0x3b9   : > { %v4799_v13 = vadd.f32 %v4584_v31, %v4154_v52  ;;  %12666 = vmatprep.mubr.msk.f32.mxu1 %vm2106_vm4, %v4901_v58  ;;  %v15915_v28 = vadd.f32 %v21005_v30, %v21004_v36  ;;  %v15923_v45 = vadd.f32 %v21011_v41, %v21010_v50  ;;  %v21015_v52 = vld [vmem:[#allocation107_spill] sm:$0xff]  ;;  %v21017_v31 = vld [vmem:[#allocation24_spill] sm:$0xff]  ;;  %v21023_v41 = vld [vmem:[#allocation26_spill] sm:$0xff] }
 0x3ba   : > { %v15931_v58 = vadd.f32 %v21015_v52, %v21014_v53  ;;  %v15935_v36 = vadd.f32 %v21018_v54, %v21017_v31  ;;  %v21020_v30 = vld [vmem:[#allocation27_spill] sm:$0xff]  ;;  %v21025_v44 = vld [vmem:[#allocation29_spill] sm:$0xff]  ;;  %v4904_v53 = vmax.f32 %v4800_v0, 0.0  ;;  %v21027_v23 = vld [vmem:[#allocation28_spill] sm:$0xff] }
 0x3bb   : > { %21006 = vst [vmem:[#allocation13_spill] sm:$0xff] %v15915_v28  ;;  %21012 = vst [vmem:[#allocation15_spill] sm:$0xff] %v15923_v45  ;;  %12667 = vmatmul.mubr.msk.f32.gmra.mrb[172].mxu1 %vm2106_vm4, %v4902_v1  ;;  %v15939_v17 = vadd.f32 %v21021_v40, %v21020_v30  ;;  %v4903_v18 = vmax.f32 %v4799_v13, 0.0  ;;  %v4590_v50 = vpop.permute.xlu0 %4589  ;;  %v21024_v45 = vld [vmem:[#allocation110_spill] sm:$0xff]  ;;  %v21026_v1 = vld [vmem:[#allocation111_spill] sm:$0xff] }
 0x3bc   : > { %21016 = vst [vmem:[#allocation17_spill] sm:$0xff] %v15931_v58  ;;  %21019 = vst [vmem:[#allocation19_spill] sm:$0xff] %v15935_v36  ;;  %v15943_v48 = vadd.f32 %v21024_v45, %v21023_v41  ;;  %v15947_v24 = vadd.f32 %v21026_v1, %v21025_v44  ;;  %v4802_v52 = vadd.f32 %v4590_v50, %v4166_v8  ;;  %v4588_v58 = vpop.permute.xlu1 %4587  ;;  %v21028_v31 = vld [vmem:[#allocation112_spill] sm:$0xff]  ;;  %v21030_v36 = vld [vmem:[#allocation31_spill] sm:$0xff] }
 0x3bd   : > { %21022 = vst [vmem:[#allocation101_spill] sm:$0xff] %v15939_v17  ;;  %v15951_v54 = vadd.f32 %v21028_v31, %v21027_v23  ;;  %v21031_v30 = vld [vmem:[#allocation113_spill] sm:$0xff]  ;;  %v21033_v13 = vld [vmem:[#allocation30_spill] sm:$0xff]  ;;  %v4801_v45 = vadd.f32 %v4588_v58, %v4162_v49  ;;  %12669 = vmatprep.mubr.msk.f32.mxu1 %vm2106_vm4, %v4903_v18  ;;  %v21037_v44 = vld [vmem:[#allocation115_spill] sm:$0xff] }
 0x3be   : > { %v15955_v40 = vadd.f32 %v21031_v30, %v21030_v36  ;;  %v21034_v17 = vld [vmem:[#allocation114_spill] sm:$0xff]  ;;  %v21036_v41 = vld [vmem:[#allocation33_spill] sm:$0xff]  ;;  %v21039_v8 = vld [vmem:[#allocation32_spill] sm:$0xff] }
 0x3bf   : > { %21029 = vst [vmem:[#allocation18_spill] sm:$0xff] %v15951_v54  ;;  %v15959_v28 = vadd.f32 %v21034_v17, %v21033_v13  ;;  %v15964_v0 = vadd.f32 %v21037_v44, %v21036_v41  ;;  %v21040_v50 = vld [vmem:[#allocation116_spill] sm:$0xff]  ;;  %v21042_v23 = vld [vmem:[#allocation35_spill] sm:$0xff]  ;;  %v21043_v31 = vld [vmem:[#allocation117_spill] sm:$0xff]  ;;  %12670 = vmatmul.mubr.msk.f32.gmra.mrb[174].mxu1 %vm2106_vm4, %v4904_v53 }
 0x3c0   : > { %21032 = vst [vmem:[#allocation102_spill] sm:$0xff] %v15955_v40  ;;  %v15968_v1 = vadd.f32 %v21040_v50, %v21039_v8  ;;  %v15972_v54 = vadd.f32 %v21043_v31, %v21042_v23  ;;  %v21045_v36 = vld [vmem:[#allocation34_spill] sm:$0xff]  ;;  %v21048_v49 = vld [vmem:[#allocation37_spill] sm:$0xff]  ;;  %v21049_v18 = vld [vmem:[#allocation119_spill] sm:$0xff]  ;;  %v4905_v23 = vmax.f32 %v4801_v45, 0.0  ;;  %v4594_v31 = vpop.permute.xlu0 %4593 }
 0x3c1   : > { %21035 = vst [vmem:[#allocation21_spill] sm:$0xff] %v15959_v28  ;;  %21038 = vst [vmem:[#allocation103_spill] sm:$0xff] %v15964_v0  ;;  %v21046_v30 = vld [vmem:[#allocation118_spill] sm:$0xff]  ;;  %v15981_v58 = vadd.f32 %v21049_v18, %v21048_v49  ;;  %v21051_v17 = vld [vmem:[#allocation36_spill] sm:$0xff]  ;;  %v4906_v49 = vmax.f32 %v4802_v52, 0.0  ;;  %v4804_v18 = vadd.f32 %v4594_v31, %v4174_v59 }
 0x3c2   : > { %21041 = vst [vmem:[#allocation148_spill] sm:$0xff] %v15968_v1  ;;  %21044 = vst [vmem:[#allocation20_spill] sm:$0xff] %v15972_v54  ;;  %v15976_v40 = vadd.f32 %v21046_v30, %v21045_v36  ;;  %v21052_v13 = vld [vmem:[#allocation120_spill] sm:$0xff]  ;;  %v21054_v44 = vld [vmem:[#allocation39_spill] sm:$0xff]  ;;  %12672 = vmatprep.mubr.msk.f32.mxu1 %vm2106_vm4, %v4905_v23 }
 0x3c3   : > { %21050 = vst [vmem:[#allocation23_spill] sm:$0xff] %v15981_v58  ;;  %v15985_v41 = vadd.f32 %v21052_v13, %v21051_v17  ;;  %v21055_v8 = vld [vmem:[#allocation121_spill] sm:$0xff]  ;;  %v21057_v0 = vld [vmem:[#allocation38_spill] sm:$0xff]  ;;  %v21060_v53 = vld [vmem:[#allocation123_spill] sm:$0xff]  ;;  %v4592_v58 = vpop.permute.xlu1 %4591  ;;  %12673 = vmatmul.mubr.msk.f32.gmra.mrb[176].mxu1 %vm2106_vm4, %v4906_v49 }
 0x3c4   : > { %21047 = vst [vmem:[#allocation104_spill] sm:$0xff] %v15976_v40  ;;  %v15989_v50 = vadd.f32 %v21055_v8, %v21054_v44  ;;  %v21058_v1 = vld [vmem:[#allocation122_spill] sm:$0xff]  ;;  %v21059_v30 = vld [vmem:[#allocation41_spill] sm:$0xff]  ;;  %v21062_v54 = vld [vmem:[#allocation40_spill] sm:$0xff] }
 0x3c5   : > { %21053 = vst [vmem:[#allocation105_spill] sm:$0xff] %v15985_v41  ;;  %v15993_v36 = vadd.f32 %v21058_v1, %v21057_v0  ;;  %v15997_v40 = vadd.f32 %v21060_v53, %v21059_v30  ;;  %v21063_v17 = vld [vmem:[#allocation124_spill] sm:$0xff]  ;;  %v21066_v44 = vld [vmem:[#allocation125_spill] sm:$0xff]  ;;  %v21067_v45 = vld [vmem:[#allocation42_spill] sm:$0xff]  ;;  %v4803_v0 = vadd.f32 %v4592_v58, %v4170_v60 }
 0x3c6   : > { %21056 = vst [vmem:[#allocation22_spill] sm:$0xff] %v15989_v50  ;;  %v16001_v13 = vadd.f32 %v21063_v17, %v21062_v54  ;;  %v21065_v41 = vld [vmem:[#allocation44_spill] sm:$0xff]  ;;  %v21068_v50 = vld [vmem:[#allocation126_spill] sm:$0xff]  ;;  %v21071_v30 = vld [vmem:[#allocation127_spill] sm:$0xff] }
 0x3c7   : > { %21061 = vst [vmem:[#allocation106_spill] sm:$0xff] %v15997_v40  ;;  %v16005_v8 = vadd.f32 %v21066_v44, %v21065_v41  ;;  %v16009_v28 = vadd.f32 %v21068_v50, %v21067_v45  ;;  %v21070_v1 = vld [vmem:[#allocation46_spill] sm:$0xff]  ;;  %v21073_v59 = vld [vmem:[#allocation43_spill] sm:$0xff]  ;;  %v21074_v31 = vld [vmem:[#allocation128_spill] sm:$0xff] }
 0x3c8   : > { %21064 = vst [vmem:[#allocation25_spill] sm:$0xff] %v16001_v13  ;;  %v16014_v52 = vadd.f32 %v21071_v30, %v21070_v1  ;;  %v16018_v53 = vadd.f32 %v21074_v31, %v21073_v59  ;;  %v21076_v54 = vld [vmem:[#allocation48_spill] sm:$0xff]  ;;  %v21077_v17 = vld [vmem:[#allocation129_spill] sm:$0xff]  ;;  %v21080_v44 = vld [vmem:[#allocation130_spill] sm:$0xff] }
 0x3c9   : > { %21069 = vst [vmem:[#allocation107_spill] sm:$0xff] %v16009_v28  ;;  %v16022_v40 = vadd.f32 %v21077_v17, %v21076_v54  ;;  %v21079_v41 = vld [vmem:[#allocation45_spill] sm:$0xff]  ;;  %v21082_v60 = vld [vmem:[#allocation50_spill] sm:$0xff]  ;;  %v21083_v58 = vld [vmem:[#allocation131_spill] sm:$0xff]  ;;  %v4907_v54 = vmax.f32 %v4803_v0, 0.0  ;;  %v4598_v17 = vpop.permute.xlu0 %4597 }
 0x3ca   : > { %21072 = vst [vmem:[#allocation24_spill] sm:$0xff] %v16014_v52  ;;  %21075 = vst [vmem:[#allocation108_spill] sm:$0xff] %v16018_v53  ;;  %v16026_v13 = vadd.f32 %v21080_v44, %v21079_v41  ;;  %v16031_v50 = vadd.f32 %v21083_v58, %v21082_v60  ;;  %v21085_v23 = vld [vmem:[#allocation47_spill] sm:$0xff]  ;;  %v21086_v45 = vld [vmem:[#allocation132_spill] sm:$0xff] }
 0x3cb   : > { %21078 = vst [vmem:[#allocation27_spill] sm:$0xff] %v16022_v40  ;;  %v16035_v1 = vadd.f32 %v21086_v45, %v21085_v23  ;;  %v21088_v30 = vld [vmem:[#allocation52_spill] sm:$0xff]  ;;  %v21089_v59 = vld [vmem:[#allocation133_spill] sm:$0xff]  ;;  %v8732_v49 = vld [vmem:[%s20181_s10 + $0x8] sm:$0xff]  ;;  %v4908_v23 = vmax.f32 %v4804_v18, 0.0  ;;  %v4806_v45 = vadd.f32 %v4598_v17, %v15892_v47  ;;  %12675 = vmatprep.mubr.msk.f32.mxu1 %vm2106_vm4, %v4907_v54 }
 0x3cc   : > { %21081 = vst [vmem:[#allocation109_spill] sm:$0xff] %v16026_v13  ;;  %21084 = vst [vmem:[#allocation26_spill] sm:$0xff] %v16031_v50  ;;  %v16039_v31 = vadd.f32 %v21089_v59, %v21088_v30  ;;  %v8731_v41 = vld [vmem:[%s20181_s10] sm:$0xff]  ;;  %v21092_v60 = vld [vmem:[#allocation134_spill] sm:$0xff]  ;;  %v4596_v50 = vpop.permute.xlu1 %4595 }
 0x3cd   : > { %21087 = vst [vmem:[#allocation110_spill] sm:$0xff] %v16035_v1  ;;  %v21091_v44 = vld [vmem:[#allocation49_spill] sm:$0xff]  ;;  %v12752_v30 = vpack.c.bf16 %v8732_v49, %v8731_v41  ;;  %v21094_v59 = vld [vmem:[#allocation54_spill] sm:$0xff]  ;;  %v21095_v0 = vld [vmem:[#allocation135_spill] sm:$0xff]  ;;  %12676 = vmatmul.mubr.msk.f32.gmra.mrb[178].mxu1 %vm2106_vm4, %v4908_v23 }
 0x3ce   : > { %21090 = vst [vmem:[#allocation29_spill] sm:$0xff] %v16039_v31  ;;  %v16049_v58 = vadd.f32 %v21092_v60, %v21091_v44  ;;  %v16054_v1 = vadd.f32 %v21095_v0, %v21094_v59  ;;  %v21097_v31 = vld [vmem:[#allocation51_spill] sm:$0xff]  ;;  %v21098_v13 = vld [vmem:[#allocation136_spill] sm:$0xff]  ;;  %v21101_v52 = vld [vmem:[#allocation137_spill] sm:$0xff]  ;;  %v4805_v44 = vadd.f32 %v4596_v50, %v15899_v12 }
 0x3cf   : > { %v16058_v40 = vadd.f32 %v21098_v13, %v21097_v31  ;;  %v21100_v53 = vld [vmem:[#allocation56_spill] sm:$0xff]  ;;  %v21103_v18 = vld [vmem:[#allocation53_spill] sm:$0xff]  ;;  %v21104_v47 = vld [vmem:[#allocation138_spill] sm:$0xff]  ;;  %12753 = vmatpush3.bf16.msra.mxu0 %v12752_v30 }
 0x3d0   : > { %21093 = vst [vmem:[#allocation111_spill] sm:$0xff] %v16049_v58  ;;  %21096 = vst [vmem:[#allocation28_spill] sm:$0xff] %v16054_v1  ;;  %v16062_v28 = vadd.f32 %v21101_v52, %v21100_v53  ;;  %v16068_v17 = vadd.f32 %v21104_v47, %v21103_v18  ;;  %v21106_v41 = vld [vmem:[#allocation58_spill] sm:$0xff]  ;;  %v21107_v49 = vld [vmem:[#allocation139_spill] sm:$0xff] }
 0x3d1   : > { %21099 = vst [vmem:[#allocation112_spill] sm:$0xff] %v16058_v40  ;;  %v16072_v60 = vadd.f32 %v21107_v49, %v21106_v41  ;;  %v21109_v59 = vld [vmem:[#allocation55_spill] sm:$0xff]  ;;  %v21110_v0 = vld [vmem:[#allocation140_spill] sm:$0xff]  ;;  %v21113_v53 = vld [vmem:[#allocation141_spill] sm:$0xff]  ;;  %v4909_v41 = vmax.f32 %v4805_v44, 0.0  ;;  %v21121_v49 = vmov 0.0|0.0  }
 0x3d2   : > { %21102 = vst [vmem:[#allocation31_spill] sm:$0xff] %v16062_v28  ;;  %21105 = vst [vmem:[#allocation113_spill] sm:$0xff] %v16068_v17  ;;  %v16076_v13 = vadd.f32 %v21110_v0, %v21109_v59  ;;  %v21112_v52 = vld [vmem:[#allocation60_spill] sm:$0xff]  ;;  %v21115_v50 = vld [vmem:[#allocation57_spill] sm:$0xff]  ;;  %12754 = vmatprep.subr.bf16.mxu0 %v21121_v49 }
 0x3d3   : > { %21108 = vst [vmem:[#allocation30_spill] sm:$0xff] %v16072_v60  ;;  %v16081_v12 = vadd.f32 %v21113_v53, %v21112_v52  ;;  %v21116_v31 = vld [vmem:[#allocation142_spill] sm:$0xff]  ;;  %v21119_v47 = vld [vmem:[#allocation143_spill] sm:$0xff]  ;;  %v21123_v0 = vld [vmem:[#allocation144_spill] sm:$0xff]  ;;  %12678 = vmatprep.mubr.msk.f32.mxu1 %vm2106_vm4, %v4909_v41 }
 0x3d4   : > { %21111 = vst [vmem:[#allocation114_spill] sm:$0xff] %v16076_v13  ;;  %v16085_v54 = vadd.f32 %v21116_v31, %v21115_v50  ;;  %v21118_v18 = vld [vmem:[#allocation62_spill] sm:$0xff]  ;;  %v21122_v59 = vld [vmem:[#allocation59_spill] sm:$0xff]  ;;  %v21125_v23 = vld [vmem:[#allocation64_spill] sm:$0xff]  ;;  %v4910_v50 = vmax.f32 %v4806_v45, 0.0 }
 0x3d5   : > { %21114 = vst [vmem:[#allocation33_spill] sm:$0xff] %v16081_v12  ;;  %v16089_v17 = vadd.f32 %v21119_v47, %v21118_v18  ;;  %v16094_v60 = vadd.f32 %v21123_v0, %v21122_v59  ;;  %v21126_v30 = vld [vmem:[#allocation145_spill] sm:$0xff]  ;;  %v21129_v53 = vld [vmem:[#allocation146_spill] sm:$0xff]  ;;  %v21134_v44 = vld [vmem:[#allocation63_spill] sm:$0xff] }
 0x3d6   : > { %21117 = vst [vmem:[#allocation115_spill] sm:$0xff] %v16085_v54  ;;  %v16098_v13 = vadd.f32 %v21126_v30, %v21125_v23  ;;  %v21128_v52 = vld [vmem:[#allocation61_spill] sm:$0xff]  ;;  %v21131_v31 = vld [vmem:[#allocation66_spill] sm:$0xff]  ;;  %v21132_v54 = vld [vmem:[#allocation147_spill] sm:$0xff]  ;;  %12679 = vmatmul.mubr.msk.f32.gmra.mrb[180].mxu1 %vm2106_vm4, %v4910_v50 }
 0x3d7   : > { %21120 = vst [vmem:[#allocation32_spill] sm:$0xff] %v16089_v17  ;;  %21124 = vst [vmem:[#allocation116_spill] sm:$0xff] %v16094_v60  ;;  %v16102_v12 = vadd.f32 %v21129_v53, %v21128_v52  ;;  %v16106_v18 = vadd.f32 %v21132_v54, %v21131_v31  ;;  %v21135_v47 = vld [vmem:[#allocation149_spill] sm:$0xff]  ;;  %v21137_v17 = vld [vmem:[#allocation68_spill] sm:$0xff] }
 0x3d8   : > { %21127 = vst [vmem:[#allocation35_spill] sm:$0xff] %v16098_v13  ;;  %v16110_v49 = vadd.f32 %v21135_v47, %v21134_v44  ;;  %v21138_v59 = vld [vmem:[#allocation150_spill] sm:$0xff]  ;;  %v21140_v60 = vld [vmem:[#allocation65_spill] sm:$0xff]  ;;  %v21141_v23 = vld [vmem:[#allocation151_spill] sm:$0xff] }
 0x3d9   : > { %21130 = vst [vmem:[#allocation117_spill] sm:$0xff] %v16102_v12  ;;  %21133 = vst [vmem:[#allocation34_spill] sm:$0xff] %v16106_v18  ;;  %v16114_v0 = vadd.f32 %v21138_v59, %v21137_v17  ;;  %v16118_v30 = vadd.f32 %v21141_v23, %v21140_v60  ;;  %v21143_v52 = vld [vmem:[#allocation70_spill] sm:$0xff]  ;;  %v21144_v45 = vld [vmem:[#allocation5_spill] sm:$0xff] }
 0x3da   : > { %21136 = vst [vmem:[#allocation118_spill] sm:$0xff] %v16110_v49  ;;  %v16123_v53 = vadd.f32 %v21144_v45, %v21143_v52  ;;  %v21146_v54 = vld [vmem:[#allocation67_spill] sm:$0xff]  ;;  %v21147_v31 = vld [vmem:[#allocation152_spill] sm:$0xff]  ;;  %v21150_v47 = vld [vmem:[#allocation153_spill] sm:$0xff] }
 0x3db   : > { %21139 = vst [vmem:[#allocation37_spill] sm:$0xff] %v16114_v0  ;;  %21142 = vst [vmem:[#allocation119_spill] sm:$0xff] %v16118_v30  ;;  %v16127_v18 = vadd.f32 %v21147_v31, %v21146_v54  ;;  %v21149_v44 = vld [vmem:[#allocation72_spill] sm:$0xff]  ;;  %v21152_v17 = vld [vmem:[#allocation69_spill] sm:$0xff] }
 0x3dc   : > { %21145 = vst [vmem:[#allocation36_spill] sm:$0xff] %v16123_v53  ;;  %v16131_v49 = vadd.f32 %v21150_v47, %v21149_v44  ;;  %v21153_v59 = vld [vmem:[#allocation154_spill] sm:$0xff]  ;;  %v21158_v52 = vld [vmem:[#allocation71_spill] sm:$0xff]  ;;  %v21161_v54 = vld [vmem:[#allocation76_spill] sm:$0xff] }
 0x3dd   : > { %21148 = vst [vmem:[#allocation120_spill] sm:$0xff] %v16127_v18  ;;  %v16135_v0 = vadd.f32 %v21153_v59, %v21152_v17  ;;  %v21155_v60 = vld [vmem:[#allocation74_spill] sm:$0xff]  ;;  %v21159_v45 = vld [vmem:[#allocation155_spill] sm:$0xff]  ;;  %v21162_v31 = vld [vmem:[#allocation156_spill] sm:$0xff] }
 0x3de   : > { %21151 = vst [vmem:[#allocation39_spill] sm:$0xff] %v16131_v49  ;;  %v21156_v41 = vld [vmem:[#allocation6_spill] sm:$0xff]  ;;  %v16144_v53 = vadd.f32 %v21159_v45, %v21158_v52  ;;  %v16148_v18 = vadd.f32 %v21162_v31, %v21161_v54  ;;  %v21164_v44 = vld [vmem:[#allocation73_spill] sm:$0xff]  ;;  %v21168_v59 = vld [vmem:[#allocation7_spill] sm:$0xff]  ;;  %v16172_v31 = vadd.f32 %v15191_v55, %v14297_v46 }
 0x3df   : > { %21154 = vst [vmem:[#allocation121_spill] sm:$0xff] %v16135_v0  ;;  %v16140_v23 = vadd.f32 %v21156_v41, %v21155_v60  ;;  %v21165_v47 = vld [vmem:[#allocation157_spill] sm:$0xff]  ;;  %v21167_v17 = vld [vmem:[#allocation78_spill] sm:$0xff]  ;;  %v21170_v50 = vld [vmem:[#allocation75_spill] sm:$0xff] }
 0x3e0   : > { %21160 = vst [vmem:[#allocation122_spill] sm:$0xff] %v16144_v53  ;;  %21163 = vst [vmem:[#allocation41_spill] sm:$0xff] %v16148_v18  ;;  %v16152_v49 = vadd.f32 %v21165_v47, %v21164_v44  ;;  %v16156_v0 = vadd.f32 %v21168_v59, %v21167_v17  ;;  %v21171_v30 = vld [vmem:[#allocation158_spill] sm:$0xff]  ;;  %v21173_v41 = vld [vmem:[#allocation79_spill] sm:$0xff] }
 0x3e1   : > { %21157 = vst [vmem:[#allocation38_spill] sm:$0xff] %v16140_v23  ;;  %v16160_v60 = vadd.f32 %v21171_v30, %v21170_v50  ;;  %v21174_v23 = vld [vmem:[#allocation159_spill] sm:$0xff]  ;;  %v21176_v45 = vld [vmem:[#allocation77_spill] sm:$0xff]  ;;  %v21177_v53 = vld [vmem:[#allocation160_spill] sm:$0xff]  ;;  %v16180_v30 = vadd.f32 %v15222_v63, %v14311_v34 }
 0x3e2   : > { %21166 = vst [vmem:[#allocation123_spill] sm:$0xff] %v16152_v49  ;;  %21169 = vst [vmem:[#allocation40_spill] sm:$0xff] %v16156_v0  ;;  %v16164_v52 = vadd.f32 %v21174_v23, %v21173_v41  ;;  %v16168_v54 = vadd.f32 %v21177_v53, %v21176_v45  ;;  %v21180_v44 = vld [vmem:[#allocation8_spill] sm:$0xff]  ;;  %v16184_v23 = vadd.f32 %v15226_v32, %v14292_v38  ;;  %v21184_v17 = vld [vmem:[#allocation161_spill] sm:$0xff] }
 0x3e3   : > { %21172 = vst [vmem:[#allocation124_spill] sm:$0xff] %v16160_v60  ;;  %21179 = vst [vmem:[#allocation42_spill] sm:$0xff] %v16172_v31  ;;  %v16176_v47 = vadd.f32 %v21180_v44, %v14278_v19  ;;  %v16188_v53 = vadd.f32 %v21184_v17, %v14325_v15  ;;  %v21186_v59 = vld [vmem:[#allocation80_spill] sm:$0xff]  ;;  %v21187_v50 = vld [vmem:[#allocation162_spill] sm:$0xff]  ;;  %v16196_v19 = vadd.f32 %v15276_v6, %v14339_v4 }
 0x3e4   : > { %21175 = vst [vmem:[#allocation44_spill] sm:$0xff] %v16164_v52  ;;  %21178 = vst [vmem:[#allocation125_spill] sm:$0xff] %v16168_v54  ;;  %v16192_v46 = vadd.f32 %v21187_v50, %v21186_v59  ;;  %v21190_v55 = vld [vmem:[#allocation9_spill] sm:$0xff]  ;;  %v21192_v63 = vld [vmem:[#allocation163_spill] sm:$0xff]  ;;  %v16212_v45 = vadd.f32 %v15334_v51, %v14367_v11  ;;  %v16233_v11 = vadd.f32 %v15398_v2, %v14395_v26  ;;  %v12527_v2 = vpop.f32.mrb[78].mxu1 }
 0x3e5   : > { %21181 = vst [vmem:[#allocation126_spill] sm:$0xff] %v16176_v47  ;;  %21182 = vst [vmem:[#allocation46_spill] sm:$0xff] %v16180_v30  ;;  %v16200_v34 = vadd.f32 %v21190_v55, %v14320_v5  ;;  %v16204_v38 = vadd.f32 %v21192_v63, %v14353_v3  ;;  %v21194_v32 = vld [vmem:[#allocation81_spill] sm:$0xff]  ;;  %v21195_v41 = vld [vmem:[#allocation164_spill] sm:$0xff]  ;;  %v16225_v3 = vadd.f32 %v15364_v33, %v14381_v7 }
 0x3e6   : > { %21183 = vst [vmem:[#allocation127_spill] sm:$0xff] %v16184_v23  ;;  %21185 = vst [vmem:[#allocation43_spill] sm:$0xff] %v16188_v53  ;;  %v16208_v15 = vadd.f32 %v21195_v41, %v21194_v32  ;;  %v21198_v44 = vld [vmem:[#allocation82_spill] sm:$0xff]  ;;  %v21199_v17 = vld [vmem:[#allocation165_spill] sm:$0xff]  ;;  %v16241_v63 = vadd.f32 %v15424_v39, %v14409_v14 }
 0x3e7   : > { %21188 = vst [vmem:[#allocation128_spill] sm:$0xff] %v16192_v46  ;;  %21189 = vst [vmem:[#allocation48_spill] sm:$0xff] %v16196_v19  ;;  %v16216_v4 = vadd.f32 %v21199_v17, %v21198_v44  ;;  %v16221_v5 = vld [vmem:[%s20180_s9] ss:$0 sm:$0xff]  ;;  %v21202_v6 = vld [vmem:[#allocation10_spill] sm:$0xff]  ;;  %v16257_v44 = vadd.f32 %v15466_v42, %v14437_v56  ;;  %v16265_v17 = vadd.f32 %v15486_v57, %v14451_v9 }
 0x3e8   : > { %21191 = vst [vmem:[#allocation129_spill] sm:$0xff] %v16200_v34  ;;  %21193 = vst [vmem:[#allocation45_spill] sm:$0xff] %v16204_v38  ;;  %v16229_v59 = vadd.f32 %v21202_v6, %v14362_v43  ;;  %v21205_v51 = vld [vmem:[#allocation83_spill] sm:$0xff]  ;;  %v21206_v50 = vld [vmem:[#allocation166_spill] sm:$0xff]  ;;  %v16249_v43 = vadd.f32 %v15443_v22, %v14423_v27  ;;  %v16268_v27 = vadd.f32 %v12527_v2, %v16221_v5  ;;  %v5300_v22 = vpop.f32.mrb[79].mxu1 }
 0x3e9   : > { %21196 = vst [vmem:[#allocation130_spill] sm:$0xff] %v16208_v15  ;;  %21197 = vst [vmem:[#allocation50_spill] sm:$0xff] %v16212_v45  ;;  %v16237_v55 = vadd.f32 %v21206_v50, %v21205_v51  ;;  %v21209_v32 = vld [vmem:[#allocation84_spill] sm:$0xff]  ;;  %v21210_v41 = vld [vmem:[#allocation167_spill] sm:$0xff]  ;;  %v16287_v9 = vadd.f32 %v15530_v10, %v14485_v62  ;;  %v12530_v10 = vpop.f32.mrb[80].mxu1 }
 0x3ea   : > { %21200 = vst [vmem:[#allocation131_spill] sm:$0xff] %v16216_v4  ;;  %21201 = vst [vmem:[#allocation47_spill] sm:$0xff] %v16225_v3  ;;  %v16245_v7 = vadd.f32 %v21210_v41, %v21209_v32  ;;  %v21213_v33 = vld [vmem:[#allocation168_spill] sm:$0xff]  ;;  %v21216_v14 = vld [vmem:[#allocation169_spill] sm:$0xff]  ;;  %v16283_v41 = vadd.f32 %v16221_v5, %v5300_v22 }
 0x3eb   : > { %21203 = vst [vmem:[#allocation132_spill] sm:$0xff] %v16229_v59  ;;  %21204 = vst [vmem:[#allocation52_spill] sm:$0xff] %v16233_v11  ;;  %v16253_v26 = vadd.f32 %v21213_v33, %v14404_v20  ;;  %v16261_v39 = vadd.f32 %v21216_v14, %v14418_v25  ;;  %v21219_v20 = vld [vmem:[#allocation170_spill] sm:$0xff]  ;;  %v21222_v50 = vld [vmem:[#allocation171_spill] sm:$0xff] }
 0x3ec   : > { %21207 = vst [vmem:[#allocation133_spill] sm:$0xff] %v16237_v55  ;;  %21208 = vst [vmem:[#allocation49_spill] sm:$0xff] %v16241_v63  ;;  %v16272_v6 = vadd.f32 %v21219_v20, %v14432_v29  ;;  %v21221_v51 = vld [vmem:[#allocation86_spill] sm:$0xff]  ;;  %v21224_v42 = vld [vmem:[#allocation85_spill] sm:$0xff]  ;;  %v5826_v20 = vsel %vm2106_vm4, %v16268_v27, -inf }
 0x3ed   : > { %21211 = vst [vmem:[#allocation134_spill] sm:$0xff] %v16245_v7  ;;  %21212 = vst [vmem:[#allocation54_spill] sm:$0xff] %v16249_v43  ;;  %v16276_v56 = vadd.f32 %v21222_v50, %v21221_v51  ;;  %v21225_v32 = vld [vmem:[#allocation172_spill] sm:$0xff]  ;;  %v21228_v57 = vld [vmem:[#allocation173_spill] sm:$0xff]  ;;  %v5827_v62 = vrot.slane %v5826_v20, 4 }
 0x3ee   : > { %21214 = vst [vmem:[#allocation135_spill] sm:$0xff] %v16253_v26  ;;  %21215 = vst [vmem:[#allocation51_spill] sm:$0xff] %v16257_v44  ;;  %v16280_v25 = vadd.f32 %v21225_v32, %v21224_v42  ;;  %v16291_v33 = vadd.f32 %v21228_v57, %v14460_v37  ;;  %v21230_v29 = vld [vmem:[#allocation89_spill] sm:$0xff]  ;;  %v21231_v2 = vld [vmem:[#allocation11_spill] sm:$0xff]  ;;  %v5819_v37 = vsel %vm2106_vm4, %v16283_v41, -inf }
 0x3ef   : > { %21217 = vst [vmem:[#allocation136_spill] sm:$0xff] %v16261_v39  ;;  %21218 = vst [vmem:[#allocation56_spill] sm:$0xff] %v16265_v17  ;;  %v16295_v14 = vadd.f32 %v21231_v2, %v21230_v29  ;;  %v21233_v51 = vld [vmem:[#allocation87_spill] sm:$0xff]  ;;  %v21234_v50 = vld [vmem:[#allocation174_spill] sm:$0xff]  ;;  %v5820_v38 = vrot.slane %v5819_v37, 4  ;;  %v5828_v47 = vmax.f32 %v5826_v20, %v5827_v62 }
 0x3f0   : > { %21220 = vst [vmem:[#allocation137_spill] sm:$0xff] %v16272_v6  ;;  %21223 = vst [vmem:[#allocation53_spill] sm:$0xff] %v16276_v56  ;;  %v16301_v42 = vadd.f32 %v21234_v50, %v21233_v51  ;;  %v21236_v22 = vld [vmem:[#allocation91_spill] sm:$0xff]  ;;  %v21239_v57 = vld [vmem:[#allocation88_spill] sm:$0xff]  ;;  %v16318_v51 = vadd.f32 %v12530_v10, %v16221_v5  ;;  %v5310_v50 = vpop.f32.mrb[81].mxu1 }
 0x3f1   : > { %21226 = vst [vmem:[#allocation138_spill] sm:$0xff] %v16280_v25  ;;  %21227 = vst [vmem:[#allocation58_spill] sm:$0xff] %v16287_v9  ;;  %v21237_v32 = vld [vmem:[#allocation175_spill] sm:$0xff]  ;;  %v21240_v25 = vld [vmem:[#allocation176_spill] sm:$0xff] }
 0x3f2   : > { %21229 = vst [vmem:[#allocation139_spill] sm:$0xff] %v16291_v33  ;;  %21232 = vst [vmem:[#allocation55_spill] sm:$0xff] %v16295_v14  ;;  %v16305_v56 = vadd.f32 %v21237_v32, %v21236_v22  ;;  %v16311_v29 = vadd.f32 %v21240_v25, %v21239_v57  ;;  %v21242_v2 = vld [vmem:[#allocation93_spill] sm:$0xff]  ;;  %v21245_v22 = vld [vmem:[#allocation90_spill] sm:$0xff]  ;;  %v16329_v25 = vadd.f32 %v16221_v5, %v5310_v50  ;;  %v12533_v50 = vpop.f32.mrb[82].mxu1 }
 0x3f3   : > { %21235 = vst [vmem:[#allocation140_spill] sm:$0xff] %v16301_v42  ;;  %v21243_v63 = vld [vmem:[#allocation177_spill] sm:$0xff]  ;;  %v21246_v32 = vld [vmem:[#allocation178_spill] sm:$0xff]  ;;  %v21250_v57 = vld [vmem:[#allocation92_spill] sm:$0xff]  ;;  %v5821_v42 = vmax.f32 %v5819_v37, %v5820_v38  ;;  %v16352_v38 = vadd.f32 %v12533_v50, %v16221_v5  ;;  %v5320_v37 = vpop.f32.mrb[83].mxu1 }
 0x3f4   : > { %21238 = vst [vmem:[#allocation60_spill] sm:$0xff] %v16305_v56  ;;  %21241 = vst [vmem:[#allocation141_spill] sm:$0xff] %v16311_v29  ;;  %v16315_v7 = vadd.f32 %v21243_v63, %v21242_v2  ;;  %v16322_v15 = vadd.f32 %v21246_v32, %v21245_v22  ;;  %v21248_v56 = vld [vmem:[#allocation179_spill] sm:$0xff]  ;;  %v21251_v63 = vld [vmem:[#allocation180_spill] sm:$0xff]  ;;  %v5840_v22 = vsel %vm2106_vm4, %v16318_v51, -inf  ;;  %v5833_v62 = vsel %vm2106_vm4, %v16329_v25, -inf }
 0x3f5   : > { %v16326_v31 = vadd.f32 %v21248_v56, %v20973_v35  ;;  %v16333_v2 = vadd.f32 %v21251_v63, %v21250_v57  ;;  %v21254_v10 = vld [vmem:[#allocation95_spill] sm:$0xff]  ;;  %v21256_v32 = vld [vmem:[#allocation94_spill] sm:$0xff]  ;;  %v5829_v56 = vrot.slane %v5828_v47, 2  ;;  %v5841_v20 = vrot.slane %v5840_v22, 4  ;;  %v21265_v33 = vld [vmem:[#allocation100_spill] sm:$0xff] }
 0x3f6   : > { %21244 = vst [vmem:[#allocation57_spill] sm:$0xff] %v16315_v7  ;;  %21247 = vst [vmem:[#allocation142_spill] sm:$0xff] %v16322_v15  ;;  %v21253_v7 = vld [vmem:[#allocation97_spill] sm:$0xff]  ;;  %v21259_v57 = vld [vmem:[#allocation99_spill] sm:$0xff]  ;;  %v16359_v14 = vadd.f32 %v16221_v5, %v5320_v37  ;;  %v5854_v50 = vsel %vm2106_vm4, %v16352_v38, -inf }
 0x3f7   : > { %21249 = vst [vmem:[#allocation62_spill] sm:$0xff] %v16326_v31  ;;  %21252 = vst [vmem:[#allocation143_spill] sm:$0xff] %v16333_v2  ;;  %v16337_v29 = vadd.f32 %v21254_v10, %v21253_v7  ;;  %v21257_v15 = vld [vmem:[#allocation181_spill] sm:$0xff]  ;;  %v21260_v63 = vld [vmem:[#allocation182_spill] sm:$0xff]  ;;  %v5822_v7 = vrot.slane %v5821_v42, 2  ;;  %v5834_v10 = vrot.slane %v5833_v62, 4 }
 0x3f8   : > { %v16343_v35 = vadd.f32 %v21257_v15, %v21256_v32  ;;  %v16349_v2 = vadd.f32 %v21260_v63, %v21259_v57  ;;  %v21263_v31 = vld [vmem:[#allocation183_spill] sm:$0xff]  ;;  %v5830_v32 = vmax.f32 %v5828_v47, %v5829_v56  ;;  %v21266_v9 = vld [vmem:[#allocation184_spill] sm:$0xff]  ;;  %v5855_v39 = vrot.slane %v5854_v50, 4  ;;  %v12536_v47 = vpop.f32.mrb[84].mxu1 }
 0x3f9   : > { %21255 = vst [vmem:[#allocation59_spill] sm:$0xff] %v16337_v29  ;;  %v21262_v29 = vld [vmem:[#allocation96_spill] sm:$0xff]  ;;  %v16363_v6 = vadd.f32 %v21266_v9, %v21265_v33  ;;  %v5823_v57 = vmax.f32 %v5821_v42, %v5822_v7  ;;  %v5835_v63 = vmax.f32 %v5833_v62, %v5834_v10  ;;  %v5330_v9 = vpop.f32.mrb[85].mxu1 }
 0x3fa   : > { %21258 = vst [vmem:[#allocation144_spill] sm:$0xff] %v16343_v35  ;;  %21261 = vst [vmem:[#allocation64_spill] sm:$0xff] %v16349_v2  ;;  %v16356_v15 = vadd.f32 %v21263_v31, %v21262_v29  ;;  %v5842_v35 = vmax.f32 %v5840_v22, %v5841_v20  ;;  %v5831_v2 = vrot.slane %v5830_v32, 1  ;;  %v5847_v31 = vsel %vm2106_vm4, %v16359_v14, -inf }
 0x3fb   : > { %21267 = vst [vmem:[#allocation61_spill] sm:$0xff] %v16363_v6  ;;  %v5824_v29 = vrot.slane %v5823_v57, 1  ;;  %v5836_v22 = vrot.slane %v5835_v63, 2  ;;  %v5848_v56 = vrot.slane %v5847_v31, 4  ;;  %v16370_v20 = vadd.f32 %v12536_v47, %v16221_v5  ;;  %v12539_v47 = vpop.f32.mrb[86].mxu1 }
 0x3fc   : > { %21264 = vst [vmem:[#allocation145_spill] sm:$0xff] %v16356_v15  ;;  %v5843_v17 = vrot.slane %v5842_v35, 2  ;;  %v5832_v33 = vmax.f32 %v5830_v32, %v5831_v2  ;;  %v5856_v62 = vmax.f32 %v5854_v50, %v5855_v39  ;;  %v16373_v7 = vadd.f32 %v16221_v5, %v5330_v9 }
 0x3fd   : > { %v5825_v10 = vmax.f32 %v5823_v57, %v5824_v29  ;;  %v5837_v37 = vmax.f32 %v5835_v63, %v5836_v22  ;;  %v5849_v6 = vmax.f32 %v5847_v31, %v5848_v56  ;;  %v5868_v15 = vsel %vm2106_vm4, %v16370_v20, -inf }
 0x3fe   : > { %v5844_v42 = vmax.f32 %v5842_v35, %v5843_v17  ;;  %v6548_v44 = vsub.f32 %v16268_v27, %v5832_v33  ;;  %v5857_v43 = vrot.slane %v5856_v62, 2  ;;  %v5869_v55 = vrot.slane %v5868_v15, 4  ;;  %v5340_v35 = vpop.f32.mrb[87].mxu1 }
 0x3ff   : > { %v6547_v11 = vsub.f32 %v16283_v41, %v5825_v10  ;;  %v5838_v2 = vrot.slane %v5837_v37, 1  ;;  %v5850_v17 = vrot.slane %v5849_v6, 2  ;;  %v5861_v39 = vsel %vm2106_vm4, %v16373_v7, -inf  ;;  %v12542_v41 = vpop.f32.mrb[88].mxu1 }
 0x400   : > { %v5845_v26 = vrot.slane %v5844_v42, 1  ;;  %v6653_v32 = vmul.f32 1.442695, %v6548_v44  ;;  %v5858_v63 = vmax.f32 %v5856_v62, %v5857_v43  ;;  %v5870_v50 = vmax.f32 %v5868_v15, %v5869_v55  ;;  %v5350_v4 = vpop.f32.mrb[89].mxu1 }
 0x401   : > { %v6651_v31 = vmul.f32 1.442695, %v6547_v11  ;;  %v5839_v29 = vmax.f32 %v5837_v37, %v5838_v2  ;;  %v5851_v22 = vmax.f32 %v5849_v6, %v5850_v17  ;;  %v5862_v27 = vrot.slane %v5861_v39, 4  ;;  %v12545_v37 = vpop.f32.mrb[90].mxu1 }
 0x402   : > { %v5846_v57 = vmax.f32 %v5844_v42, %v5845_v26  ;;  %12812 = vpow2.f32 %v6653_v32  ;;  %v5859_v9 = vrot.slane %v5858_v63, 1  ;;  %v5871_v33 = vrot.slane %v5870_v50, 2 }
 0x403   : > { %12814 = vpow2.f32 %v6651_v31  ;;  %v6549_v10 = vsub.f32 %v16329_v25, %v5839_v29  ;;  %v5852_v59 = vrot.slane %v5851_v22, 1  ;;  %v5863_v3 = vmax.f32 %v5861_v39, %v5862_v27  ;;  %v16393_v39 = vpop.f32.mrb[91].mxu1 }
 0x404   : > { %v6550_v56 = vsub.f32 %v16318_v51, %v5846_v57  ;;  %v5860_v26 = vmax.f32 %v5858_v63, %v5859_v9  ;;  %v5872_v43 = vmax.f32 %v5870_v50, %v5871_v33  ;;  %v16384_v11 = vadd.f32 %v12539_v47, %v16221_v5 }
 0x405   : > { %v6655_v55 = vmul.f32 1.442695, %v6549_v10  ;;  %v5853_v6 = vmax.f32 %v5851_v22, %v5852_v59  ;;  %v5864_v15 = vrot.slane %v5863_v3, 2  ;;  %v16387_v51 = vadd.f32 %v16221_v5, %v5340_v35  ;;  %v16406_v22 = vpop.f32.mrb[92].mxu1 }
 0x406   : > { %v6657_v44 = vmul.f32 1.442695, %v6550_v56  ;;  %v6552_v42 = vsub.f32 %v16352_v38, %v5860_v26  ;;  %v5873_v62 = vrot.slane %v5872_v43, 1  ;;  %v5882_v25 = vsel %vm2106_vm4, %v16384_v11, -inf  ;;  %v16408_v33 = vpop.f32.mrb[93].mxu1 }
 0x407   : > { %v6551_v2 = vsub.f32 %v16359_v14, %v5853_v6  ;;  %v5865_v17 = vmax.f32 %v5863_v3, %v5864_v15  ;;  %v5883_v47 = vrot.slane %v5882_v25, 4  ;;  %v5875_v35 = vsel %vm2106_vm4, %v16387_v51, -inf }
 0x408   : > { %12816 = vpow2.f32 %v6657_v44  ;;  %v6661_v59 = vmul.f32 1.442695, %v6552_v42  ;;  %v5874_v32 = vmax.f32 %v5872_v43, %v5873_v62  ;;  %v16398_v57 = vadd.f32 %v12542_v41, %v16221_v5 }
 0x409   : > { %12818 = vpow2.f32 %v6655_v55  ;;  %v6659_v38 = vmul.f32 1.442695, %v6551_v2  ;;  %v5866_v63 = vrot.slane %v5865_v17, 1  ;;  %v5884_v50 = vmax.f32 %v5882_v25, %v5883_v47  ;;  %v16424_v2 = vpop.f32.mrb[94].mxu1 }
 0x40a   : > { %v5876_v31 = vrot.slane %v5875_v35, 4  ;;  %12820 = vpow2.f32 %v6661_v59  ;;  %v6554_v29 = vsub.f32 %v16370_v20, %v5874_v32  ;;  %v5896_v3 = vsel %vm2106_vm4, %v16398_v57, -inf  ;;  %v16426_v32 = vpop.f32.mrb[95].mxu1 }
 0x40b   : > { %v16404_v14 = vadd.f32 %v16221_v5, %v5350_v4  ;;  %12822 = vpow2.f32 %v6659_v38  ;;  %v5867_v27 = vmax.f32 %v5865_v17, %v5866_v63  ;;  %v5885_v56 = vrot.slane %v5884_v50, 2 }
 0x40c   : > { %v5877_v9 = vmax.f32 %v5875_v35, %v5876_v31  ;;  %v16410_v41 = vpop.eup %12812  ;;  %v6665_v10 = vmul.f32 1.442695, %v6554_v29  ;;  %v5897_v44 = vrot.slane %v5896_v3, 4  ;;  %v16415_v26 = vadd.f32 %v12545_v37, %v16221_v5 }
 0x40d   : > { %v5889_v20 = vsel %vm2106_vm4, %v16404_v14, -inf  ;;  %v16417_v4 = vpop.eup %12814  ;;  %v6866_v43 = vsel %vm2106_vm4, %v16410_v41, 0.0  ;;  %v6553_v55 = vsub.f32 %v16373_v7, %v5867_v27  ;;  %v5886_v6 = vmax.f32 %v5884_v50, %v5885_v56 }
 0x40e   : > { %v5878_v15 = vrot.slane %v5877_v9, 2  ;;  %v6867_v42 = vrot.slane %v6866_v43, 4  ;;  %v6859_v62 = vsel %vm2106_vm4, %v16417_v4, 0.0  ;;  %12824 = vpow2.f32 %v6665_v10 }
 0x40f   : > { %v5898_v25 = vmax.f32 %v5896_v3, %v5897_v44  ;;  %v6860_v17 = vrot.slane %v6859_v62, 4  ;;  %v6663_v37 = vmul.f32 1.442695, %v6553_v55  ;;  %v5887_v47 = vrot.slane %v5886_v6, 1 }
 0x410   : > { %v5879_v59 = vmax.f32 %v5877_v9, %v5878_v15  ;;  %v6868_v38 = vadd.f32 %v6867_v42, %v6866_v43  ;;  %v5890_v63 = vrot.slane %v5889_v20, 4  ;;  %v16432_v50 = vsel %vm2106_vm4, %v16415_v26, -inf  ;;  %v16440_v43 = vpop.f32.mrb[96].mxu1 }
 0x411   : > { %v5899_v7 = vrot.slane %v5898_v25, 2  ;;  %v6861_v29 = vadd.f32 %v6860_v17, %v6859_v62  ;;  %12826 = vpow2.f32 %v6663_v37  ;;  %v5888_v27 = vmax.f32 %v5886_v6, %v5887_v47  ;;  %v16443_v34 = vpop.f32.mrb[97].mxu1 }
 0x412   : > { %v16428_v35 = vpop.eup %12816  ;;  %v6869_v56 = vrot.slane %v6868_v38, 2  ;;  %v5880_v44 = vrot.slane %v5879_v59, 1  ;;  %v5891_v47 = vmax.f32 %v5889_v20, %v5890_v63 }
 0x413   : > { %v16434_v31 = vpop.eup %12818  ;;  %v6880_v3 = vsel %vm2106_vm4, %v16428_v35, 0.0  ;;  %v6862_v55 = vrot.slane %v6861_v29, 2  ;;  %v6556_v42 = vsub.f32 %v16384_v11, %v5888_v27  ;;  %v5900_v45 = vmax.f32 %v5898_v25, %v5899_v7  ;;  %v16453_v7 = vpop.f32.mrb[98].mxu1 }
 0x414   : > { %v6881_v9 = vrot.slane %v6880_v3, 4  ;;  %v6873_v10 = vsel %vm2106_vm4, %v16434_v31, 0.0  ;;  %v16445_v62 = vpop.eup %12820  ;;  %v6870_v17 = vadd.f32 %v6869_v56, %v6868_v38  ;;  %v5881_v6 = vmax.f32 %v5879_v59, %v5880_v44  ;;  %v16455_v20 = vpop.f32.mrb[99].mxu1 }
 0x415   : > { %v6874_v15 = vrot.slane %v6873_v10, 4  ;;  %v16447_v19 = vpop.eup %12822  ;;  %v6863_v46 = vadd.f32 %v6862_v55, %v6861_v29  ;;  %v6894_v23 = vsel %vm2106_vm4, %v16445_v62, 0.0  ;;  %v6669_v30 = vmul.f32 1.442695, %v6556_v42 }
 0x416   : > { %v6882_v37 = vadd.f32 %v6881_v9, %v6880_v3  ;;  %v6871_v54 = vrot.slane %v6870_v17, 1  ;;  %v6895_v11 = vrot.slane %v6894_v23, 4  ;;  %v6887_v25 = vsel %vm2106_vm4, %v16447_v19, 0.0 }
 0x417   : > { %v6875_v53 = vadd.f32 %v6874_v15, %v6873_v10  ;;  %v6864_v38 = vrot.slane %v6863_v46, 1  ;;  %v6888_v59 = vrot.slane %v6887_v25, 4  ;;  %12828 = vpow2.f32 %v6669_v30  ;;  %v16462_v30 = vpop.f32.mrb[100].mxu1 }
 0x418   : > { %v6883_v52 = vrot.slane %v6882_v37, 2  ;;  %v16457_v63 = vpop.eup %12824  ;;  %v6872_v29 = vadd.f32 %v6871_v54, %v6870_v17  ;;  %v6896_v56 = vadd.f32 %v6895_v11, %v6894_v23  ;;  %v6555_v9 = vsub.f32 %v16387_v51, %v5881_v6  ;;  %v16466_v17 = vpop.f32.mrb[101].mxu1 }
 0x419   : > { %v6876_v3 = vrot.slane %v6875_v53, 2  ;;  %v6865_v10 = vadd.f32 %v6864_v38, %v6863_v46  ;;  %v6889_v55 = vadd.f32 %v6888_v59, %v6887_v25  ;;  %v6908_v15 = vsel %vm2106_vm4, %v16457_v63, 0.0 }
 0x41a   : > { %v6884_v27 = vadd.f32 %v6883_v52, %v6882_v37  ;;  %12830 = vrcp.f32 %v6872_v29  ;;  %v6897_v60 = vrot.slane %v6896_v56, 2  ;;  %v6909_v0 = vrot.slane %v6908_v15, 4  ;;  %v16470_v29 = vpop.f32.mrb[102].mxu1 }
 0x41b   : > { %v6877_v44 = vadd.f32 %v6876_v3, %v6875_v53  ;;  %v16464_v49 = vpop.eup %12826  ;;  %12832 = vrcp.f32 %v6865_v10  ;;  %v6890_v52 = vrot.slane %v6889_v55, 2  ;;  %v6667_v23 = vmul.f32 1.442695, %v6555_v9 }
 0x41c   : > { %v6885_v42 = vrot.slane %v6884_v27, 1  ;;  %v6898_v53 = vadd.f32 %v6897_v60, %v6896_v56  ;;  %v6910_v51 = vadd.f32 %v6909_v0, %v6908_v15  ;;  %v6901_v37 = vsel %vm2106_vm4, %v16464_v49, 0.0 }
 0x41d   : > { %v6878_v54 = vrot.slane %v6877_v44, 1  ;;  %v6891_v11 = vadd.f32 %v6890_v52, %v6889_v55  ;;  %v6902_v25 = vrot.slane %v6901_v37, 4  ;;  %12834 = vpow2.f32 %v6667_v23 }
 0x41e   : > { %v6886_v46 = vadd.f32 %v6885_v42, %v6884_v27  ;;  %v6899_v38 = vrot.slane %v6898_v53, 1  ;;  %v6911_v3 = vrot.slane %v6910_v51, 2  ;;  %v5901_v59 = vrot.slane %v5900_v45, 1  ;;  %v16472_v27 = vpop.f32.mrb[103].mxu1 }
 0x41f   : > { %v6879_v6 = vadd.f32 %v6878_v54, %v6877_v44  ;;  %v6892_v9 = vrot.slane %v6891_v11, 1  ;;  %v6903_v10 = vadd.f32 %v6902_v25, %v6901_v37  ;;  %v5892_v18 = vrot.slane %v5891_v47, 2 }
 0x420   : > { %12836 = vrcp.f32 %v6886_v46  ;;  %v6900_v0 = vadd.f32 %v6899_v38, %v6898_v53  ;;  %v6912_v60 = vadd.f32 %v6911_v3, %v6910_v51  ;;  %v5902_v56 = vmax.f32 %v5900_v45, %v5901_v59  ;;  %v16484_v51 = vpop.f32.mrb[104].mxu1 }
 0x421   : > { %12838 = vrcp.f32 %v6879_v6  ;;  %v5911_v44 = vrot.slane %v16432_v50, 4  ;;  %v16475_v55 = vpop.eup %12828  ;;  %v6893_v15 = vadd.f32 %v6892_v9, %v6891_v11  ;;  %v6904_v42 = vrot.slane %v6903_v10, 2  ;;  %v16486_v11 = vpop.f32.mrb[105].mxu1 }
 0x422   : > { %v5893_v54 = vmax.f32 %v5891_v47, %v5892_v18  ;;  %v16479_v52 = vadd.f32 %v16221_v5, %v16393_v39  ;;  %12840 = vrcp.f32 %v6900_v0  ;;  %v6913_v23 = vrot.slane %v6912_v60, 1  ;;  %v21268_v0 = vld [vmem:[#allocation98_spill] sm:$0xff] }
 0x423   : > { %v6922_v46 = vsel %vm2106_vm4, %v16475_v55, 0.0  ;;  %v6558_v53 = vsub.f32 %v16398_v57, %v5902_v56  ;;  %12842 = vrcp.f32 %v6893_v15  ;;  %v6905_v45 = vadd.f32 %v6904_v42, %v6903_v10  ;;  %v21269_v56 = vld [vmem:[#allocation185_spill] sm:$0xff] }
 0x424   : > { %v6923_v37 = vrot.slane %v6922_v46, 4  ;;  %v5894_v6 = vrot.slane %v5893_v54, 1  ;;  %v12831_v18 = vpop.eup %12830  ;;  %v6914_v47 = vadd.f32 %v6913_v23, %v6912_v60  ;;  %v5912_v39 = vmax.f32 %v16432_v50, %v5911_v44  ;;  %v16503_v44 = vpop.f32.mrb[106].mxu1 }
 0x425   : > { %v6673_v25 = vmul.f32 1.442695, %v6558_v53  ;;  %v16491_v38 = vsel %vm2106_vm4, %v16479_v52, -inf  ;;  %v12833_v3 = vpop.eup %12832  ;;  %v16494_v57 = vmul.f32 %v12831_v18, %v16410_v41  ;;  %v6906_v59 = vrot.slane %v6905_v45, 1 }
 0x426   : > { %v6924_v9 = vadd.f32 %v6923_v37, %v6922_v46  ;;  %v5895_v10 = vmax.f32 %v5893_v54, %v5894_v6  ;;  %v16498_v15 = vadd.f32 %v21269_v56, %v21268_v0  ;;  %v16501_v60 = vmul.f32 %v12833_v3, %v16417_v4  ;;  %v16509_v54 = vpop.f32.mrb[107].mxu1 }
 0x427   : > { %12844 = vrcp.f32 %v6914_v47  ;;  %v5913_v50 = vrot.slane %v5912_v39, 2  ;;  %v16505_v42 = vpop.eup %12834  ;;  %v7900_v41 = vmul.f32 %v15896_v16, %v16494_v57  ;;  %v6907_v23 = vadd.f32 %v6906_v59, %v6905_v45  ;;  %v16525_v56 = vpop.f32.mrb[108].mxu1 }
 0x428   : > { %21270 = vst [vmem:[#allocation146_spill] sm:$0xff] %v16498_v15  ;;  %v6925_v53 = vrot.slane %v6924_v9, 2  ;;  %12846 = vpow2.f32 %v6673_v25  ;;  %v7899_v37 = vmul.f32 %v15903_v61, %v16501_v60  ;;  %v6915_v4 = vsel %vm2106_vm4, %v16505_v42, 0.0  ;;  %v16529_v15 = vpop.f32.mrb[109].mxu1 }
 0x429   : > { %v6557_v6 = vsub.f32 %v16404_v14, %v5895_v10  ;;  %v8010_v3 = vsel %vm2106_vm4, %v7900_v41, 0.0  ;;  %12848 = vrcp.f32 %v6907_v23  ;;  %v6916_v0 = vrot.slane %v6915_v4, 4 }
 0x42a   : > { %v12837_v46 = vpop.eup %12836  ;;  %v6926_v45 = vadd.f32 %v6925_v53, %v6924_v9  ;;  %v8011_v25 = vrot.slane %v8010_v3, 4  ;;  %v8003_v59 = vsel %vm2106_vm4, %v7899_v37, 0.0  ;;  %v5914_v41 = vmax.f32 %v5912_v39, %v5913_v50  ;;  %v21271_v9 = vld [vmem:[#allocation13_spill] sm:$0xff] }
 0x42b   : > { %v12839_v47 = vpop.eup %12838  ;;  %v16519_v16 = vmul.f32 %v12837_v46, %v16428_v35  ;;  %v8004_v14 = vrot.slane %v8003_v59, 4  ;;  %v6917_v46 = vadd.f32 %v6916_v0, %v6915_v4  ;;  %v6671_v37 = vmul.f32 1.442695, %v6557_v6  ;;  %v21274_v6 = vld [vmem:[#allocation14_spill] sm:$0xff] }
 0x42c   : > { %v16523_v61 = vmul.f32 %v12839_v47, %v16434_v31  ;;  %v6927_v18 = vrot.slane %v6926_v45, 1  ;;  %v12841_v35 = vpop.eup %12840  ;;  %v8012_v23 = vadd.f32 %v8011_v25, %v8010_v3  ;;  %v16541_v3 = vpop.f32.mrb[110].mxu1 }
 0x42d   : > { %v7902_v10 = vmul.f32 %v15907_v21, %v16519_v16  ;;  %v12843_v31 = vpop.eup %12842  ;;  %v8005_v47 = vadd.f32 %v8004_v14, %v8003_v59  ;;  %v16535_v13 = vmul.f32 %v12841_v35, %v16445_v62  ;;  %v16545_v0 = vpop.f32.mrb[111].mxu1  ;;  %v6918_v35 = vrot.slane %v6917_v46, 2 }
 0x42e   : > { %v7901_v53 = vmul.f32 %v21271_v9, %v16523_v61  ;;  %v6928_v28 = vadd.f32 %v6927_v18, %v6926_v45  ;;  %v8013_v21 = vrot.slane %v8012_v23, 2  ;;  %v16539_v50 = vmul.f32 %v12843_v31, %v16447_v19  ;;  %v21276_v45 = vld [vmem:[#allocation15_spill] sm:$0xff] }
 0x42f   : > { %v8024_v12 = vsel %vm2106_vm4, %v7902_v10, 0.0  ;;  %21272 = vst [vmem:[#allocation66_spill] sm:$0xff] %v16535_v13  ;;  %v8006_v25 = vrot.slane %v8005_v47, 2  ;;  %v7904_v59 = vmul.f32 %v21274_v6, %v16535_v13 }
 0x430   : > { %v8025_v40 = vrot.slane %v8024_v12, 4  ;;  %v8017_v39 = vsel %vm2106_vm4, %v7901_v53, 0.0  ;;  %21273 = vst [vmem:[#allocation147_spill] sm:$0xff] %v16539_v50  ;;  %12850 = vrcp.f32 %v6928_v28  ;;  %v8014_v14 = vadd.f32 %v8013_v21, %v8012_v23  ;;  %v16561_v23 = vpop.f32.mrb[112].mxu1 }
 0x431   : > { %v8018_v4 = vrot.slane %v8017_v39, 4  ;;  %v12845_v62 = vpop.eup %12844  ;;  %v7903_v10 = vmul.f32 %v21276_v45, %v16539_v50  ;;  %v8007_v9 = vadd.f32 %v8006_v25, %v8005_v47  ;;  %v16554_v31 = vsel %vm2106_vm4, %v7904_v59, 0.0  ;;  %v21279_v47 = vld [vmem:[#allocation17_spill] sm:$0xff]  ;;  %v16567_v25 = vpop.f32.mrb[113].mxu1 }
 0x432   : > { %v16547_v18 = vadd.f32 %v8025_v40, %v8024_v12  ;;  %v16551_v19 = vpop.eup %12846  ;;  %21277 = vst [vmem:[#allocation149_spill] sm:$0xff] %v16554_v31  ;;  %v16557_v6 = vmul.f32 %v12845_v62, %v16457_v63  ;;  %v8015_v28 = vrot.slane %v8014_v14, 1  ;;  %v5915_v12 = vrot.slane %v5914_v41, 1 }
 0x433   : > { %v8019_v53 = vadd.f32 %v8018_v4, %v8017_v39  ;;  %v8031_v40 = vsel %vm2106_vm4, %v7903_v10, 0.0  ;;  %v12849_v21 = vpop.eup %12848  ;;  %v8008_v45 = vrot.slane %v8007_v9, 1  ;;  %v6919_v59 = vadd.f32 %v6918_v35, %v6917_v46 }
 0x434   : > { %21275 = vst [vmem:[#allocation63_spill] sm:$0xff] %v16547_v18  ;;  %21278 = vst [vmem:[#allocation68_spill] sm:$0xff] %v16557_v6  ;;  %v8032_v13 = vrot.slane %v8031_v40, 4  ;;  %v16565_v39 = vmul.f32 %v21279_v47, %v16557_v6  ;;  %v16571_v4 = vmul.f32 %v12849_v21, %v16464_v49  ;;  %v6936_v62 = vsel %vm2106_vm4, %v16551_v19, 0.0  ;;  %v21285_v47 = vld [vmem:[#allocation19_spill] sm:$0xff]  ;;  %v16585_v49 = vpop.f32.mrb[114].mxu1 }
 0x435   : > { %v8020_v58 = vrot.slane %v8019_v53, 2  ;;  %v16575_v10 = vadd.f32 %v8015_v28, %v8014_v14  ;;  %v16577_v1 = vadd.f32 %v8008_v45, %v8007_v9  ;;  %v6937_v50 = vrot.slane %v6936_v62, 4 }
 0x436   : > { %21280 = vst [vmem:[#allocation150_spill] sm:$0xff] %v16565_v39  ;;  %21281 = vst [vmem:[#allocation65_spill] sm:$0xff] %v16571_v4  ;;  %v16583_v39 = vmul.f32 %v21285_v47, %v16571_v4  ;;  %v6920_v6 = vrot.slane %v6919_v59, 1  ;;  %12852 = vpow2.f32 %v6671_v37  ;;  %v5916_v63 = vmax.f32 %v5914_v41, %v5915_v12 }
 0x437   : > { %21282 = vst [vmem:[#allocation151_spill] sm:$0xff] %v16575_v10  ;;  %21283 = vst [vmem:[#allocation70_spill] sm:$0xff] %v16577_v1  ;;  %v16579_v18 = vadd.f32 %v8020_v58, %v8019_v53  ;;  %v16587_v46 = vadd.f32 %v8032_v13, %v8031_v40  ;;  %v6938_v35 = vadd.f32 %v6937_v50, %v6936_v62  ;;  %v21288_v14 = vrot.slane %v16491_v38, 4  ;;  %v16596_v53 = vpop.f32.mrb[115].mxu1 }
 0x438   : > { %21286 = vst [vmem:[#allocation67_spill] sm:$0xff] %v16583_v39  ;;  %v16594_v58 = vadd.f32 %v16406_v22, %v16221_v5  ;;  %v6921_v28 = vadd.f32 %v6920_v6, %v6919_v59  ;;  %v6560_v21 = vsub.f32 %v16415_v26, %v5916_v63  ;;  %v16601_v41 = vadd.f32 %v16221_v5, %v16408_v33  ;;  %v16616_v12 = vpop.f32.mrb[116].mxu1 }
 0x439   : > { %21284 = vst [vmem:[#allocation5_spill] sm:$0xff] %v16579_v18  ;;  %21287 = vst [vmem:[#allocation152_spill] sm:$0xff] %v16587_v46  ;;  %v5905_v9 = vmax.f32 %v16491_v38, %v21288_v14  ;;  %v16605_v13 = vadd.f32 %v16424_v2, %v16221_v5  ;;  %v6939_v50 = vrot.slane %v6938_v35, 2  ;;  %v16611_v40 = vadd.f32 %v16221_v5, %v16426_v32  ;;  %v16622_v62 = vpop.f32.mrb[117].mxu1  ;;  %v21290_v32 = vld [vmem:[#allocation101_spill] sm:$0xff] }
 0x43a   : > { %v12851_v37 = vpop.eup %12850  ;;  %v5924_v22 = vsel %vm2106_vm4, %v16594_v58, -inf  ;;  %12854 = vrcp.f32 %v6921_v28  ;;  %v6677_v33 = vmul.f32 1.442695, %v6560_v21  ;;  %v5917_v63 = vsel %vm2106_vm4, %v16601_v41, -inf }
 0x43b   : > { %v5906_v38 = vrot.slane %v5905_v9, 2  ;;  %v16614_v26 = vmul.f32 %v12851_v37, %v16475_v55  ;;  %v5925_v6 = vrot.slane %v5924_v22, 4  ;;  %v6940_v2 = vadd.f32 %v6939_v50, %v6938_v35 }
 0x43c   : > { %v5938_v59 = vsel %vm2106_vm4, %v16605_v13, -inf  ;;  %12856 = vpow2.f32 %v6677_v33  ;;  %v5918_v14 = vrot.slane %v5917_v63, 4  ;;  %v5931_v35 = vsel %vm2106_vm4, %v16611_v40, -inf }
 0x43d   : > { %21289 = vst [vmem:[#allocation72_spill] sm:$0xff] %v16614_v26  ;;  %v5907_v45 = vmax.f32 %v5905_v9, %v5906_v38  ;;  %v7908_v47 = vmul.f32 %v21290_v32, %v16614_v26  ;;  %v5926_v55 = vmax.f32 %v5924_v22, %v5925_v6  ;;  %v6941_v28 = vrot.slane %v6940_v2, 1 }
 0x43e   : > { %v5939_v37 = vrot.slane %v5938_v59, 4  ;;  %v5919_v38 = vmax.f32 %v5917_v63, %v5918_v14  ;;  %v5932_v10 = vrot.slane %v5931_v35, 4  ;;  %v16633_v32 = vadd.f32 %v16440_v43, %v16221_v5 }
 0x43f   : > { %v5908_v21 = vrot.slane %v5907_v45, 1  ;;  %v8066_v9 = vsel %vm2106_vm4, %v7908_v47, 0.0  ;;  %v5927_v50 = vrot.slane %v5926_v55, 2  ;;  %v6942_v39 = vadd.f32 %v6941_v28, %v6940_v2 }
 0x440   : > { %v8067_v1 = vrot.slane %v8066_v9, 4  ;;  %v5940_v46 = vmax.f32 %v5938_v59, %v5939_v37  ;;  %v16629_v4 = vpop.eup %12852  ;;  %v5920_v22 = vrot.slane %v5919_v38, 2  ;;  %v5933_v6 = vmax.f32 %v5931_v35, %v5932_v10 }
 0x441   : > { %v5909_v31 = vmax.f32 %v5907_v45, %v5908_v21  ;;  %v5928_v33 = vmax.f32 %v5926_v55, %v5927_v50  ;;  %12858 = vrcp.f32 %v6942_v39  ;;  %v6929_v63 = vsel %vm2106_vm4, %v16629_v4, 0.0 }
 0x442   : > { %v6930_v2 = vrot.slane %v6929_v63, 4  ;;  %v5921_v59 = vmax.f32 %v5919_v38, %v5920_v22  ;;  %v5941_v14 = vrot.slane %v5940_v46, 2  ;;  %v16639_v28 = vadd.f32 %v8067_v1, %v8066_v9 }
 0x443   : > { %v6559_v47 = vsub.f32 %v16479_v52, %v5909_v31  ;;  %v5929_v45 = vrot.slane %v5928_v33, 1  ;;  %v5934_v10 = vrot.slane %v5933_v6, 2  ;;  %v5952_v43 = vsel %vm2106_vm4, %v16633_v32, -inf }
 0x444   : > { %21291 = vst [vmem:[#allocation153_spill] sm:$0xff] %v16639_v28  ;;  %v12855_v21 = vpop.eup %12854  ;;  %v6931_v37 = vadd.f32 %v6930_v2, %v6929_v63  ;;  %v5922_v39 = vrot.slane %v5921_v59, 1  ;;  %v5942_v50 = vmax.f32 %v5940_v46, %v5941_v14  ;;  %v5953_v31 = vrot.slane %v5952_v43, 4 }
 0x445   : > { %v6675_v55 = vmul.f32 1.442695, %v6559_v47  ;;  %v5930_v35 = vmax.f32 %v5928_v33, %v5929_v45  ;;  %v16644_v26 = vmul.f32 %v12855_v21, %v16505_v42  ;;  %v5935_v52 = vmax.f32 %v5933_v6, %v5934_v10 }
 0x446   : > { %v16646_v38 = vpop.eup %12856  ;;  %v6932_v1 = vrot.slane %v6931_v37, 2  ;;  %v5923_v22 = vmax.f32 %v5921_v59, %v5922_v39  ;;  %v5943_v47 = vrot.slane %v5942_v50, 1  ;;  %v5954_v63 = vmax.f32 %v5952_v43, %v5953_v31 }
 0x447   : > { %21292 = vst [vmem:[#allocation69_spill] sm:$0xff] %v16644_v26  ;;  %12860 = vpow2.f32 %v6675_v55  ;;  %v6562_v9 = vsub.f32 %v16594_v58, %v5930_v35  ;;  %v7907_v18 = vmul.f32 %v15943_v48, %v16644_v26  ;;  %v6950_v33 = vsel %vm2106_vm4, %v16646_v38, 0.0 }
 0x448   : > { %v5936_v46 = vrot.slane %v5935_v52, 1  ;;  %v6933_v42 = vadd.f32 %v6932_v1, %v6931_v37  ;;  %v6951_v2 = vrot.slane %v6950_v33, 4  ;;  %v6561_v6 = vsub.f32 %v16601_v41, %v5923_v22 }
 0x449   : > { %v6681_v45 = vmul.f32 1.442695, %v6562_v9  ;;  %v8059_v14 = vsel %vm2106_vm4, %v7907_v18, 0.0  ;;  %v5944_v55 = vmax.f32 %v5942_v50, %v5943_v47  ;;  %v5955_v58 = vrot.slane %v5954_v63, 2 }
 0x44a   : > { %v5937_v10 = vmax.f32 %v5935_v52, %v5936_v46  ;;  %v8060_v59 = vrot.slane %v8059_v14, 4  ;;  %v6934_v21 = vrot.slane %v6933_v42, 1  ;;  %v6952_v35 = vadd.f32 %v6951_v2, %v6950_v33 }
 0x44b   : > { %12862 = vpow2.f32 %v6681_v45  ;;  %v12859_v48 = vpop.eup %12858  ;;  %v6679_v39 = vmul.f32 1.442695, %v6561_v6  ;;  %v6564_v26 = vsub.f32 %v16605_v13, %v5944_v55  ;;  %v5956_v37 = vmax.f32 %v5954_v63, %v5955_v58 }
 0x44c   : > { %v6563_v43 = vsub.f32 %v16611_v40, %v5937_v10  ;;  %v16657_v31 = vadd.f32 %v8060_v59, %v8059_v14  ;;  %v16660_v41 = vmul.f32 %v12859_v48, %v16551_v19  ;;  %v6935_v18 = vadd.f32 %v6934_v21, %v6933_v42 }
 0x44d   : > { %v6953_v50 = vrot.slane %v6952_v35, 2  ;;  %12864 = vpow2.f32 %v6679_v39  ;;  %v6685_v52 = vmul.f32 1.442695, %v6564_v26  ;;  %v5957_v9 = vrot.slane %v5956_v37, 1 }
 0x44e   : > { %21293 = vst [vmem:[#allocation154_spill] sm:$0xff] %v16657_v31  ;;  %21294 = vst [vmem:[#allocation74_spill] sm:$0xff] %v16660_v41  ;;  %v6683_v1 = vmul.f32 1.442695, %v6563_v43  ;;  %v7910_v47 = vmul.f32 %v15947_v24, %v16660_v41  ;;  %12866 = vrcp.f32 %v6935_v18  ;;  %v16669_v19 = vadd.f32 %v16221_v5, %v16443_v34 }
 0x44f   : > { %v6954_v13 = vadd.f32 %v6953_v50, %v6952_v35  ;;  %12868 = vpow2.f32 %v6685_v52  ;;  %v5958_v33 = vmax.f32 %v5956_v37, %v5957_v9  ;;  %v16673_v26 = vadd.f32 %v16453_v7, %v16221_v5 }
 0x450   : > { %12870 = vpow2.f32 %v6683_v1  ;;  %v16679_v42 = vsel %vm2106_vm4, %v7910_v47, 0.0  ;;  %v5945_v34 = vsel %vm2106_vm4, %v16669_v19, -inf  ;;  %v16688_v55 = vadd.f32 %v16221_v5, %v16455_v20  ;;  %v16708_v1 = vpop.f32.mrb[118].mxu1 }
 0x451   : > { %v16665_v40 = vpop.eup %12860  ;;  %v6955_v63 = vrot.slane %v6954_v13, 1  ;;  %21295 = vst [vmem:[#allocation6_spill] sm:$0xff] %v16679_v42  ;;  %v6566_v45 = vsub.f32 %v16633_v32, %v5958_v33  ;;  %v5946_v14 = vrot.slane %v5945_v34, 4  ;;  %v5966_v7 = vsel %vm2106_vm4, %v16673_v26, -inf  ;;  %v16714_v33 = vpop.f32.mrb[119].mxu1 }
 0x452   : > { %v6943_v24 = vsel %vm2106_vm4, %v16665_v40, 0.0  ;;  %v5967_v59 = vrot.slane %v5966_v7, 4  ;;  %v16692_v21 = vadd.f32 %v16462_v30, %v16221_v5  ;;  %v5959_v48 = vsel %vm2106_vm4, %v16688_v55, -inf  ;;  %21296 = vst [vmem:[#allocation71_spill] sm:$0xff] %v16714_v33 }
 0x453   : > { %v6944_v2 = vrot.slane %v6943_v24, 4  ;;  %v6956_v6 = vadd.f32 %v6955_v63, %v6954_v13  ;;  %v6689_v58 = vmul.f32 1.442695, %v6566_v45  ;;  %v5947_v35 = vmax.f32 %v5945_v34, %v5946_v14 }
 0x454   : > { %v16700_v39 = vadd.f32 %v16221_v5, %v16466_v17  ;;  %v5968_v37 = vmax.f32 %v5966_v7, %v5967_v59  ;;  %v5960_v50 = vrot.slane %v5959_v48, 4  ;;  %v16706_v52 = vsel %vm2106_vm4, %v16692_v21, -inf }
 0x455   : > { %v6945_v10 = vadd.f32 %v6944_v2, %v6943_v24  ;;  %v16694_v32 = vpop.eup %12862  ;;  %12872 = vrcp.f32 %v6956_v6  ;;  %v5948_v30 = vrot.slane %v5947_v35, 2  ;;  %v5981_v13 = vrot.slane %v16706_v52, 4 }
 0x456   : > { %v6964_v43 = vsel %vm2106_vm4, %v16694_v32, 0.0  ;;  %12874 = vpow2.f32 %v6689_v58  ;;  %v5969_v47 = vrot.slane %v5968_v37, 2  ;;  %v16720_v34 = vsel %vm2106_vm4, %v16700_v39, -inf }
 0x457   : > { %v6946_v20 = vrot.slane %v6945_v10, 2  ;;  %v6965_v18 = vrot.slane %v6964_v43, 4  ;;  %v16710_v9 = vpop.eup %12864  ;;  %v5949_v45 = vmax.f32 %v5947_v35, %v5948_v30  ;;  %v5961_v35 = vmax.f32 %v5959_v48, %v5960_v50  ;;  %v21298_v30 = vld [vmem:[#allocation18_spill] sm:$0xff] }
 0x458   : > { %v12867_v63 = vpop.eup %12866  ;;  %v6957_v2 = vsel %vm2106_vm4, %v16710_v9, 0.0  ;;  %v5970_v58 = vmax.f32 %v5968_v37, %v5969_v47 }
 0x459   : > { %v6947_v17 = vadd.f32 %v6946_v20, %v6945_v10  ;;  %v6966_v24 = vadd.f32 %v6965_v18, %v6964_v43  ;;  %v16722_v6 = vpop.eup %12868  ;;  %v16725_v14 = vmul.f32 %v12867_v63, %v16629_v4  ;;  %v6958_v10 = vrot.slane %v6957_v2, 4 }
 0x45a   : > { %v16727_v59 = vpop.eup %12870  ;;  %v6978_v43 = vsel %vm2106_vm4, %v16722_v6, 0.0  ;;  %v5950_v18 = vrot.slane %v5949_v45, 1  ;;  %v5971_v37 = vrot.slane %v5970_v58, 1 }
 0x45b   : > { %21297 = vst [vmem:[#allocation155_spill] sm:$0xff] %v16725_v14  ;;  %v6948_v7 = vrot.slane %v6947_v17, 1  ;;  %v6967_v20 = vrot.slane %v6966_v24, 2  ;;  %v7909_v5 = vmul.f32 %v21298_v30, %v16725_v14  ;;  %v6959_v46 = vadd.f32 %v6958_v10, %v6957_v2 }
 0x45c   : > { %v6979_v42 = vrot.slane %v6978_v43, 4  ;;  %v6971_v4 = vsel %vm2106_vm4, %v16727_v59, 0.0  ;;  %v5951_v63 = vmax.f32 %v5949_v45, %v5950_v18  ;;  %v5972_v10 = vmax.f32 %v5970_v58, %v5971_v37 }
 0x45d   : > { %v6949_v22 = vadd.f32 %v6948_v7, %v6947_v17  ;;  %v6968_v28 = vadd.f32 %v6967_v20, %v6966_v24  ;;  %v16736_v47 = vsel %vm2106_vm4, %v7909_v5, 0.0  ;;  %v6960_v31 = vrot.slane %v6959_v46, 2 }
 0x45e   : > { %v6980_v41 = vadd.f32 %v6979_v42, %v6978_v43  ;;  %v6972_v50 = vrot.slane %v6971_v4, 4  ;;  %v6565_v30 = vsub.f32 %v16669_v19, %v5951_v63  ;;  %v5962_v17 = vrot.slane %v5961_v35, 2  ;;  %v21300_v43 = vld [vmem:[#allocation102_spill] sm:$0xff] }
 0x45f   : > { %12876 = vrcp.f32 %v6949_v22  ;;  %v12873_v33 = vpop.eup %12872  ;;  %v6969_v48 = vrot.slane %v6968_v28, 1  ;;  %v6961_v7 = vadd.f32 %v6960_v31, %v6959_v46  ;;  %v8074_v5 = vrot.slane %v16736_v47, 4 }
 0x460   : > { %v16739_v2 = vpop.eup %12874  ;;  %v16742_v24 = vmul.f32 %v12873_v33, %v16646_v38  ;;  %v6981_v45 = vrot.slane %v6980_v41, 2  ;;  %v6973_v22 = vadd.f32 %v6972_v50, %v6971_v4  ;;  %v6687_v33 = vmul.f32 1.442695, %v6565_v30 }
 0x461   : > { %v6970_v20 = vadd.f32 %v6969_v48, %v6968_v28  ;;  %v6992_v42 = vsel %vm2106_vm4, %v16739_v2, 0.0  ;;  %v6962_v19 = vrot.slane %v6961_v7, 1  ;;  %v6568_v31 = vsub.f32 %v16673_v26, %v5972_v10 }
 0x462   : > { %21299 = vst [vmem:[#allocation76_spill] sm:$0xff] %v16742_v24  ;;  %v16749_v18 = vmul.f32 %v21300_v43, %v16742_v24  ;;  %v6982_v63 = vadd.f32 %v6981_v45, %v6980_v41  ;;  %v6993_v14 = vrot.slane %v6992_v42, 4  ;;  %v6974_v38 = vrot.slane %v6973_v22, 2 }
 0x463   : > { %12878 = vrcp.f32 %v6970_v20  ;;  %v6963_v46 = vadd.f32 %v6962_v19, %v6961_v7  ;;  %v5963_v28 = vmax.f32 %v5961_v35, %v5962_v17  ;;  %v6693_v48 = vmul.f32 1.442695, %v6568_v31 }
 0x464   : > { %21301 = vst [vmem:[#allocation156_spill] sm:$0xff] %v16749_v18  ;;  %v6983_v58 = vrot.slane %v6982_v63, 1  ;;  %v6994_v37 = vadd.f32 %v6993_v14, %v6992_v42  ;;  %v6975_v4 = vadd.f32 %v6974_v38, %v6973_v22  ;;  %12880 = vpow2.f32 %v6687_v33  ;;  %v16757_v14 = vld [vmem:[%s20180_s9] ss:$0 sm:$0xff] }
 0x465   : > { %v5982_v50 = vmax.f32 %v16706_v52, %v5981_v13  ;;  %12882 = vrcp.f32 %v6963_v46  ;;  %v5964_v24 = vrot.slane %v5963_v28, 1  ;;  %v5974_v30 = vrot.slane %v16720_v34, 4 }
 0x466   : > { %v6984_v43 = vadd.f32 %v6983_v58, %v6982_v63  ;;  %v6995_v18 = vrot.slane %v6994_v37, 2  ;;  %v6976_v41 = vrot.slane %v6975_v4, 1  ;;  %12884 = vpow2.f32 %v6693_v48 }
 0x467   : > { %v5983_v45 = vrot.slane %v5982_v50, 2  ;;  %v5965_v7 = vmax.f32 %v5963_v28, %v5964_v24  ;;  %v16761_v52 = vadd.f32 %v16757_v14, %v16470_v29  ;;  %v5975_v10 = vmax.f32 %v16720_v34, %v5974_v30  ;;  %v21302_v29 = vld [vmem:[#allocation21_spill] sm:$0xff] }
 0x468   : > { %12886 = vrcp.f32 %v6984_v43  ;;  %v6996_v26 = vadd.f32 %v6995_v18, %v6994_v37  ;;  %v6977_v35 = vadd.f32 %v6976_v41, %v6975_v4  ;;  %v16772_v18 = vadd.f32 %v16757_v14, %v16472_v27 }
 0x469   : > { %v12877_v20 = vpop.eup %12876  ;;  %v5984_v17 = vmax.f32 %v5982_v50, %v5983_v45  ;;  %v6567_v42 = vsub.f32 %v16688_v55, %v5965_v7  ;;  %v5994_v24 = vsel %vm2106_vm4, %v16761_v52, -inf  ;;  %v5976_v63 = vrot.slane %v5975_v10, 2 }
 0x46a   : > { %v16764_v13 = vmul.f32 %v12877_v20, %v16665_v40  ;;  %v6997_v22 = vrot.slane %v6996_v26, 1  ;;  %12888 = vrcp.f32 %v6977_v35  ;;  %v5995_v34 = vrot.slane %v5994_v24, 4 }
 0x46b   : > { %v5985_v40 = vrot.slane %v5984_v17, 1  ;;  %v6691_v33 = vmul.f32 1.442695, %v6567_v42  ;;  %v5987_v55 = vsel %vm2106_vm4, %v16772_v18, -inf  ;;  %v5977_v58 = vmax.f32 %v5975_v10, %v5976_v63 }
 0x46c   : > { %v16776_v19 = vmul.f32 %v21302_v29, %v16764_v13  ;;  %v6998_v38 = vadd.f32 %v6997_v22, %v6996_v26  ;;  %v5988_v37 = vrot.slane %v5987_v55, 4  ;;  %v16782_v27 = vadd.f32 %v16757_v14, %v16484_v51 }
 0x46d   : > { %v12879_v31 = vpop.eup %12878  ;;  %v5986_v46 = vmax.f32 %v5984_v17, %v5985_v40  ;;  %v16785_v28 = vadd.f32 %v8074_v5, %v16736_v47  ;;  %v5996_v4 = vmax.f32 %v5994_v24, %v5995_v34  ;;  %v16789_v48 = vadd.f32 %v16757_v14, %v16486_v11  ;;  %v16807_v17 = vpop.f32.mrb[120].mxu1 }
 0x46e   : > { %12890 = vrcp.f32 %v6998_v38  ;;  %v16791_v50 = vpop.eup %12880  ;;  %v5978_v41 = vrot.slane %v5977_v58, 1  ;;  %v5989_v45 = vmax.f32 %v5987_v55, %v5988_v37  ;;  %v16795_v51 = vmul.f32 %v12879_v31, %v16694_v32  ;;  %v16811_v29 = vpop.f32.mrb[121].mxu1  ;;  %v21304_v37 = vld [vmem:[#allocation20_spill] sm:$0xff] }
 0x46f   : > { %12892 = vpow2.f32 %v6691_v33  ;;  %v6570_v43 = vsub.f32 %v16692_v21, %v5986_v46  ;;  %v12883_v30 = vpop.eup %12882  ;;  %v6985_v47 = vsel %vm2106_vm4, %v16791_v50, 0.0  ;;  %v5997_v5 = vrot.slane %v5996_v4, 2 }
 0x470   : > { %v6008_v20 = vsel %vm2106_vm4, %v16782_v27, -inf  ;;  %v16801_v11 = vpop.eup %12884  ;;  %v6986_v26 = vrot.slane %v6985_v47, 4  ;;  %v5979_v35 = vmax.f32 %v5977_v58, %v5978_v41  ;;  %v16805_v21 = vsel %vm2106_vm4, %v16789_v48, -inf }
 0x471   : > { %v6697_v7 = vmul.f32 1.442695, %v6570_v43  ;;  %v7006_v10 = vsel %vm2106_vm4, %v16801_v11, 0.0  ;;  %v5998_v22 = vmax.f32 %v5996_v4, %v5997_v5  ;;  %v5990_v42 = vrot.slane %v5989_v45, 2 }
 0x472   : > { %v12887_v32 = vpop.eup %12886  ;;  %v6009_v24 = vrot.slane %v6008_v20, 4  ;;  %v6987_v63 = vadd.f32 %v6986_v26, %v6985_v47  ;;  %v7007_v38 = vrot.slane %v7006_v10, 4  ;;  %v6569_v33 = vsub.f32 %v16700_v39, %v5979_v35 }
 0x473   : > { %v16814_v40 = vmul.f32 %v12887_v32, %v16722_v6  ;;  %12894 = vpow2.f32 %v6697_v7  ;;  %v5999_v34 = vrot.slane %v5998_v22, 1  ;;  %v5991_v55 = vmax.f32 %v5989_v45, %v5990_v42 }
 0x474   : > { %v6010_v31 = vmax.f32 %v6008_v20, %v6009_v24  ;;  %v12889_v46 = vpop.eup %12888  ;;  %v16818_v58 = vmul.f32 %v12883_v30, %v16710_v9  ;;  %v6988_v43 = vrot.slane %v6987_v63, 2  ;;  %v7008_v41 = vadd.f32 %v7007_v38, %v7006_v10  ;;  %v21306_v9 = vld [vmem:[#allocation104_spill] sm:$0xff] }
 0x475   : > { %21303 = vst [vmem:[#allocation73_spill] sm:$0xff] %v16814_v40  ;;  %v7916_v4 = vmul.f32 %v21304_v37, %v16814_v40  ;;  %v16823_v6 = vmul.f32 %v12889_v46, %v16727_v59  ;;  %v6695_v47 = vmul.f32 1.442695, %v6569_v33  ;;  %v6000_v5 = vmax.f32 %v5998_v22, %v5999_v34 }
 0x476   : > { %v5992_v26 = vrot.slane %v5991_v55, 1  ;;  %v6989_v7 = vadd.f32 %v6988_v43, %v6987_v63  ;;  %v7009_v45 = vrot.slane %v7008_v41, 2  ;;  %v6011_v20 = vrot.slane %v6010_v31, 2 }
 0x477   : > { %21305 = vst [vmem:[#allocation157_spill] sm:$0xff] %v16823_v6  ;;  %v8122_v39 = vsel %vm2106_vm4, %v7916_v4, 0.0  ;;  %v7915_v30 = vmul.f32 %v21306_v9, %v16823_v6  ;;  %12896 = vpow2.f32 %v6695_v47  ;;  %v6572_v42 = vsub.f32 %v16761_v52, %v6000_v5  ;;  %v21309_v4 = vld [vmem:[#allocation23_spill] sm:$0xff] }
 0x478   : > { %v12891_v35 = vpop.eup %12890  ;;  %v8123_v32 = vrot.slane %v8122_v39, 4  ;;  %v6990_v22 = vrot.slane %v6989_v7, 1  ;;  %v7010_v24 = vadd.f32 %v7009_v45, %v7008_v41  ;;  %v5993_v38 = vmax.f32 %v5991_v55, %v5992_v26 }
 0x479   : > { %v16829_v10 = vpop.eup %12892  ;;  %v16832_v59 = vmul.f32 %v12891_v35, %v16739_v2  ;;  %v8115_v63 = vsel %vm2106_vm4, %v7915_v30, 0.0  ;;  %v6701_v46 = vmul.f32 1.442695, %v6572_v42  ;;  %v6002_v55 = vrot.slane %v16805_v21, 4 }
 0x47a   : > { %v16834_v33 = vadd.f32 %v8123_v32, %v8122_v39  ;;  %v6999_v34 = vsel %vm2106_vm4, %v16829_v10, 0.0  ;;  %v8116_v37 = vrot.slane %v8115_v63, 4  ;;  %v6991_v43 = vadd.f32 %v6990_v22, %v6989_v7 }
 0x47b   : > { %21307 = vst [vmem:[#allocation78_spill] sm:$0xff] %v16832_v59  ;;  %v7918_v52 = vmul.f32 %v21309_v4, %v16832_v59  ;;  %v7011_v47 = vrot.slane %v7010_v24, 1  ;;  %v7000_v5 = vrot.slane %v6999_v34, 4  ;;  %12898 = vpow2.f32 %v6701_v46 }
 0x47c   : > { %21308 = vst [vmem:[#allocation7_spill] sm:$0xff] %v16834_v33  ;;  %v6571_v2 = vsub.f32 %v16772_v18, %v5993_v38  ;;  %v16845_v26 = vadd.f32 %v8116_v37, %v8115_v63  ;;  %12900 = vrcp.f32 %v6991_v43  ;;  %v6012_v42 = vmax.f32 %v6010_v31, %v6011_v20 }
 0x47d   : > { %v16843_v41 = vpop.eup %12894  ;;  %v16848_v39 = vsel %vm2106_vm4, %v7918_v52, 0.0  ;;  %v7012_v45 = vadd.f32 %v7011_v47, %v7010_v24  ;;  %v7001_v32 = vadd.f32 %v7000_v5, %v6999_v34  ;;  %v6003_v38 = vmax.f32 %v16805_v21, %v6002_v55 }
 0x47e   : > { %21310 = vst [vmem:[#allocation75_spill] sm:$0xff] %v16845_v26  ;;  %21311 = vst [vmem:[#allocation158_spill] sm:$0xff] %v16848_v39  ;;  %v7020_v7 = vsel %vm2106_vm4, %v16843_v41, 0.0  ;;  %v6699_v9 = vmul.f32 1.442695, %v6571_v2  ;;  %v16857_v63 = vadd.f32 %v16757_v14, %v16503_v44  ;;  %v6013_v46 = vrot.slane %v6012_v42, 1 }
 0x47f   : > { %12902 = vrcp.f32 %v7012_v45  ;;  %v7021_v30 = vrot.slane %v7020_v7, 4  ;;  %v7002_v22 = vrot.slane %v7001_v32, 2  ;;  %v16862_v37 = vadd.f32 %v16757_v14, %v16509_v54 }
 0x480   : > { %12904 = vpow2.f32 %v6699_v9  ;;  %v6004_v31 = vrot.slane %v6003_v38, 2  ;;  %v6022_v20 = vsel %vm2106_vm4, %v16857_v63, -inf  ;;  %v16870_v21 = vadd.f32 %v16757_v14, %v16525_v56 }
 0x481   : > { %v7022_v34 = vadd.f32 %v7021_v30, %v7020_v7  ;;  %v16864_v4 = vpop.eup %12896  ;;  %v7003_v52 = vadd.f32 %v7002_v22, %v7001_v32  ;;  %v6014_v47 = vmax.f32 %v6012_v42, %v6013_v46  ;;  %v6023_v5 = vrot.slane %v6022_v20, 4 }
 0x482   : > { %v7013_v43 = vsel %vm2106_vm4, %v16864_v4, 0.0  ;;  %v6005_v55 = vmax.f32 %v6003_v38, %v6004_v31  ;;  %v6015_v45 = vsel %vm2106_vm4, %v16862_v37, -inf  ;;  %v16879_v56 = vadd.f32 %v16757_v14, %v16529_v15 }
 0x483   : > { %v7023_v44 = vrot.slane %v7022_v34, 2  ;;  %v7004_v2 = vrot.slane %v7003_v52, 1  ;;  %v7014_v54 = vrot.slane %v7013_v43, 4  ;;  %v6574_v7 = vsub.f32 %v16782_v27, %v6014_v47 }
 0x484   : > { %v6024_v9 = vmax.f32 %v6022_v20, %v6023_v5  ;;  %v6006_v42 = vrot.slane %v6005_v55, 1  ;;  %v6016_v46 = vrot.slane %v6015_v45, 4 }
 0x485   : > { %v7024_v32 = vadd.f32 %v7023_v44, %v7022_v34  ;;  %v16881_v30 = vpop.eup %12898  ;;  %v7005_v22 = vadd.f32 %v7004_v2, %v7003_v52  ;;  %v7015_v18 = vadd.f32 %v7014_v54, %v7013_v43  ;;  %v6705_v31 = vmul.f32 1.442695, %v6574_v7  ;;  %v21312_v2 = vld [vmem:[#allocation105_spill] sm:$0xff] }
 0x486   : > { %v12901_v35 = vpop.eup %12900  ;;  %v7034_v38 = vsel %vm2106_vm4, %v16881_v30, 0.0  ;;  %v6025_v34 = vrot.slane %v6024_v9, 2  ;;  %v6007_v52 = vmax.f32 %v6005_v55, %v6006_v42 }
 0x487   : > { %v7025_v24 = vrot.slane %v7024_v32, 1  ;;  %v16886_v27 = vmul.f32 %v12901_v35, %v16791_v50  ;;  %12906 = vrcp.f32 %v7005_v22  ;;  %v7016_v20 = vrot.slane %v7015_v18, 2 }
 0x488   : > { %v7035_v15 = vrot.slane %v7034_v38, 4  ;;  %12908 = vpow2.f32 %v6705_v31  ;;  %v6026_v43 = vmax.f32 %v6024_v9, %v6025_v34  ;;  %v6573_v35 = vsub.f32 %v16789_v48, %v6007_v52 }
 0x489   : > { %v12903_v44 = vpop.eup %12902  ;;  %v7026_v47 = vadd.f32 %v7025_v24, %v7024_v32  ;;  %v7917_v54 = vmul.f32 %v21312_v2, %v16886_v27  ;;  %v7017_v7 = vadd.f32 %v7016_v20, %v7015_v18  ;;  %v6036_v24 = vsel %vm2106_vm4, %v16870_v21, -inf  ;;  %v21314_v32 = vld [vmem:[#allocation22_spill] sm:$0xff] }
 0x48a   : > { %v16888_v5 = vpop.eup %12904  ;;  %v16893_v39 = vmul.f32 %v12903_v44, %v16801_v11  ;;  %v7036_v33 = vadd.f32 %v7035_v15, %v7034_v38  ;;  %v6027_v22 = vrot.slane %v6026_v43, 1  ;;  %v6703_v38 = vmul.f32 1.442695, %v6573_v35 }
 0x48b   : > { %v7027_v50 = vsel %vm2106_vm4, %v16888_v5, 0.0  ;;  %v8129_v55 = vsel %vm2106_vm4, %v7917_v54, 0.0  ;;  %v7018_v42 = vrot.slane %v7017_v7, 1  ;;  %12910 = vrcp.f32 %v7026_v47 }
 0x48c   : > { %21313 = vst [vmem:[#allocation79_spill] sm:$0xff] %v16893_v39  ;;  %v16903_v9 = vmul.f32 %v21314_v32, %v16893_v39  ;;  %v7037_v11 = vrot.slane %v7036_v33, 2  ;;  %v8130_v31 = vrot.slane %v8129_v55, 4  ;;  %v7028_v18 = vrot.slane %v7027_v50, 4  ;;  %v16908_v39 = vpop.f32.mrb[122].mxu1 }
 0x48d   : > { %v6028_v34 = vmax.f32 %v6026_v43, %v6027_v22  ;;  %v6017_v15 = vmax.f32 %v6015_v45, %v6016_v46  ;;  %v6037_v48 = vrot.slane %v6036_v24, 4  ;;  %v7019_v44 = vadd.f32 %v7018_v42, %v7017_v7  ;;  %v16916_v45 = vpop.f32.mrb[123].mxu1 }
 0x48e   : > { %21315 = vst [vmem:[#allocation159_spill] sm:$0xff] %v16903_v9  ;;  %v7038_v20 = vadd.f32 %v7037_v11, %v7036_v33  ;;  %v7029_v52 = vadd.f32 %v7028_v18, %v7027_v50  ;;  %12912 = vpow2.f32 %v6703_v38  ;;  %v16906_v54 = vadd.f32 %v8130_v31, %v8129_v55 }
 0x48f   : > { %v6576_v2 = vsub.f32 %v16857_v63, %v6028_v34  ;;  %v6018_v32 = vrot.slane %v6017_v15, 2  ;;  %v6038_v9 = vmax.f32 %v6036_v24, %v6037_v48  ;;  %v6029_v47 = vsel %vm2106_vm4, %v16879_v56, -inf }
 0x490   : > { %21316 = vst [vmem:[#allocation77_spill] sm:$0xff] %v16906_v54  ;;  %v7039_v26 = vrot.slane %v7038_v20, 1  ;;  %v7030_v40 = vrot.slane %v7029_v52, 2  ;;  %v16914_v33 = vadd.f32 %v16757_v14, %v16541_v3  ;;  %v6030_v50 = vrot.slane %v6029_v47, 4 }
 0x491   : > { %v6709_v59 = vmul.f32 1.442695, %v6576_v2  ;;  %v12907_v46 = vpop.eup %12906  ;;  %v6019_v43 = vmax.f32 %v6017_v15, %v6018_v32  ;;  %v6039_v7 = vrot.slane %v6038_v9, 2 }
 0x492   : > { %v7040_v63 = vadd.f32 %v7039_v26, %v7038_v20  ;;  %v16918_v35 = vpop.eup %12908  ;;  %v16921_v22 = vmul.f32 %v12907_v46, %v16829_v10  ;;  %v7031_v24 = vadd.f32 %v7030_v40, %v7029_v52  ;;  %v6050_v55 = vsel %vm2106_vm4, %v16914_v33, -inf  ;;  %v16927_v26 = vpop.f32.mrb[124].mxu1 }
 0x493   : > { %12914 = vpow2.f32 %v6709_v59  ;;  %v7048_v3 = vsel %vm2106_vm4, %v16918_v35, 0.0  ;;  %v6020_v42 = vrot.slane %v6019_v43, 1  ;;  %v6040_v11 = vmax.f32 %v6038_v9, %v6039_v7  ;;  %v16933_v40 = vpop.f32.mrb[125].mxu1 }
 0x494   : > { %21317 = vst [vmem:[#allocation160_spill] sm:$0xff] %v16921_v22  ;;  %12916 = vrcp.f32 %v7040_v63  ;;  %v16931_v31 = vmul.f32 %v15993_v36, %v16921_v22  ;;  %v7032_v18 = vrot.slane %v7031_v24, 1  ;;  %v7049_v10 = vrot.slane %v7048_v3, 4  ;;  %v21381_v22 = vld [vmem:[#allocation70_spill] sm:$0xff] }
 0x495   : > { %v6031_v38 = vmax.f32 %v6029_v47, %v6030_v50  ;;  %12918 = vrcp.f32 %v7019_v44  ;;  %v6021_v59 = vmax.f32 %v6019_v43, %v6020_v42  ;;  %v6041_v34 = vrot.slane %v6040_v11, 1  ;;  %v12911_v2 = vpop.eup %12910 }
 0x496   : > { %21318 = vst [vmem:[#allocation8_spill] sm:$0xff] %v16931_v31  ;;  %v6051_v20 = vrot.slane %v6050_v55, 4  ;;  %v7033_v15 = vadd.f32 %v7032_v18, %v7031_v24  ;;  %v7050_v48 = vadd.f32 %v7049_v10, %v7048_v3  ;;  %v16937_v9 = vadd.f32 %v16757_v14, %v16545_v0 }
 0x497   : > { %v6032_v52 = vrot.slane %v6031_v38, 2  ;;  %v6575_v36 = vsub.f32 %v16862_v37, %v6021_v59  ;;  %v6042_v32 = vmax.f32 %v6040_v11, %v6041_v34  ;;  %v16942_v47 = vadd.f32 %v16757_v14, %v16561_v23 }
 0x498   : > { %v6052_v46 = vmax.f32 %v6050_v55, %v6051_v20  ;;  %v16944_v44 = vpop.eup %12912  ;;  %12920 = vrcp.f32 %v7033_v15  ;;  %v7051_v63 = vrot.slane %v7050_v48, 2  ;;  %v6043_v7 = vsel %vm2106_vm4, %v16937_v9, -inf }
 0x499   : > { %v6033_v43 = vmax.f32 %v6031_v38, %v6032_v52  ;;  %v7041_v0 = vsel %vm2106_vm4, %v16944_v44, 0.0  ;;  %v6707_v50 = vmul.f32 1.442695, %v6575_v36  ;;  %v6578_v37 = vsub.f32 %v16870_v21, %v6042_v32 }
 0x49a   : > { %v6053_v24 = vrot.slane %v6052_v46, 2  ;;  %v16952_v55 = vmul.f32 %v12911_v2, %v16843_v41  ;;  %v7052_v23 = vadd.f32 %v7051_v63, %v7050_v48  ;;  %v7042_v3 = vrot.slane %v7041_v0, 4  ;;  %v16960_v2 = vpop.f32.mrb[126].mxu1 }
 0x49b   : > { %v6034_v42 = vrot.slane %v6033_v43, 1  ;;  %12922 = vpow2.f32 %v6707_v50  ;;  %v6713_v11 = vmul.f32 1.442695, %v6578_v37  ;;  %v6044_v10 = vrot.slane %v6043_v7, 4 }
 0x49c   : > { %21319 = vst [vmem:[#allocation161_spill] sm:$0xff] %v16952_v55  ;;  %v6054_v18 = vmax.f32 %v6052_v46, %v6053_v24  ;;  %v7053_v59 = vrot.slane %v7052_v23, 1  ;;  %v7043_v34 = vadd.f32 %v7042_v3, %v7041_v0  ;;  %v6064_v15 = vsel %vm2106_vm4, %v16942_v47, -inf  ;;  %v16965_v0 = vpop.f32.mrb[127].mxu1 }
 0x49d   : > { %v16954_v38 = vpop.eup %12914  ;;  %v6035_v20 = vmax.f32 %v6033_v43, %v6034_v42  ;;  %12924 = vpow2.f32 %v6713_v11  ;;  %v6045_v52 = vmax.f32 %v6043_v7, %v6044_v10  ;;  %v6065_v3 = vrot.slane %v6064_v15, 4 }
 0x49e   : > { %v12917_v21 = vpop.eup %12916  ;;  %v7062_v41 = vsel %vm2106_vm4, %v16954_v38, 0.0  ;;  %v6055_v48 = vrot.slane %v6054_v18, 1  ;;  %v7054_v32 = vadd.f32 %v7053_v59, %v7052_v23  ;;  %v7044_v46 = vrot.slane %v7043_v34, 2 }
 0x49f   : > { %v16963_v36 = vmul.f32 %v12917_v21, %v16881_v30  ;;  %v7063_v63 = vrot.slane %v7062_v41, 4  ;;  %v12919_v43 = vpop.eup %12918  ;;  %v6577_v50 = vsub.f32 %v16879_v56, %v6035_v20  ;;  %v6046_v24 = vrot.slane %v6045_v52, 2 }
 0x4a0   : > { %v6056_v37 = vmax.f32 %v6054_v18, %v6055_v48  ;;  %12926 = vrcp.f32 %v7054_v32  ;;  %v7045_v7 = vadd.f32 %v7044_v46, %v7043_v34  ;;  %v6066_v59 = vmax.f32 %v6064_v15, %v6065_v3  ;;  %v21323_v32 = vld [vmem:[#allocation107_spill] sm:$0xff] }
 0x4a1   : > { %21320 = vst [vmem:[#allocation80_spill] sm:$0xff] %v16963_v36  ;;  %v7924_v42 = vmul.f32 %v16005_v8, %v16963_v36  ;;  %v7064_v11 = vadd.f32 %v7063_v63, %v7062_v41  ;;  %v6711_v10 = vmul.f32 1.442695, %v6577_v50  ;;  %v6047_v23 = vmax.f32 %v6045_v52, %v6046_v24 }
 0x4a2   : > { %v6580_v30 = vsub.f32 %v16914_v33, %v6056_v37  ;;  %v12921_v21 = vpop.eup %12920  ;;  %v7046_v54 = vrot.slane %v7045_v7, 1  ;;  %v16974_v56 = vadd.f32 %v16757_v14, %v16567_v25  ;;  %v6067_v48 = vrot.slane %v6066_v59, 2 }
 0x4a3   : > { %v8178_v31 = vsel %vm2106_vm4, %v7924_v42, 0.0  ;;  %v7065_v55 = vrot.slane %v7064_v11, 2  ;;  %v16977_v8 = vmul.f32 %v12921_v21, %v16888_v5  ;;  %12928 = vpow2.f32 %v6711_v10 }
 0x4a4   : > { %v8179_v18 = vrot.slane %v8178_v31, 4  ;;  %v6717_v34 = vmul.f32 1.442695, %v6580_v30  ;;  %v7047_v20 = vadd.f32 %v7046_v54, %v7045_v7  ;;  %v6048_v33 = vrot.slane %v6047_v23, 1 }
 0x4a5   : > { %21321 = vst [vmem:[#allocation162_spill] sm:$0xff] %v16977_v8  ;;  %v7066_v41 = vadd.f32 %v7065_v55, %v7064_v11  ;;  %v16979_v15 = vpop.eup %12922  ;;  %v16982_v52 = vmul.f32 %v12919_v43, %v16864_v4  ;;  %v7923_v46 = vmul.f32 %v21323_v32, %v16977_v8  ;;  %v6057_v25 = vsel %vm2106_vm4, %v16974_v56, -inf }
 0x4a6   : > { %12930 = vpow2.f32 %v6717_v34  ;;  %v7055_v54 = vsel %vm2106_vm4, %v16979_v15, 0.0  ;;  %v6049_v55 = vmax.f32 %v6047_v23, %v6048_v33  ;;  %v16992_v50 = vadd.f32 %v8179_v18, %v8178_v31  ;;  %v16998_v23 = vpop.f32.mrb[128].mxu1 }
 0x4a7   : > { %21322 = vst [vmem:[#allocation9_spill] sm:$0xff] %v16982_v52  ;;  %12932 = vrcp.f32 %v7047_v20  ;;  %v7067_v5 = vrot.slane %v7066_v41, 1  ;;  %v16990_v63 = vpop.eup %12924  ;;  %v8171_v4 = vsel %vm2106_vm4, %v7923_v46, 0.0  ;;  %v7056_v43 = vrot.slane %v7055_v54, 4  ;;  %v17006_v20 = vpop.f32.mrb[129].mxu1  ;;  %v21382_v52 = vld [vmem:[#allocation151_spill] sm:$0xff] }
 0x4a8   : > { %21324 = vst [vmem:[#allocation163_spill] sm:$0xff] %v16992_v50  ;;  %v6068_v37 = vmax.f32 %v6066_v59, %v6067_v48  ;;  %v8172_v24 = vrot.slane %v8171_v4, 4  ;;  %v7076_v42 = vsel %vm2106_vm4, %v16990_v63, 0.0  ;;  %v6579_v7 = vsub.f32 %v16937_v9, %v6049_v55  ;;  %v21330_v50 = vld [vmem:[#allocation108_spill] sm:$0xff] }
 0x4a9   : > { %v7068_v3 = vadd.f32 %v7067_v5, %v7066_v41  ;;  %v7057_v11 = vadd.f32 %v7056_v43, %v7055_v54  ;;  %v7077_v10 = vrot.slane %v7076_v42, 4  ;;  %v6058_v21 = vrot.slane %v6057_v25, 4 }
 0x4aa   : > { %v6069_v30 = vrot.slane %v6068_v37, 1  ;;  %v12927_v34 = vpop.eup %12926  ;;  %v17000_v31 = vadd.f32 %v8172_v24, %v8171_v4  ;;  %v6715_v18 = vmul.f32 1.442695, %v6579_v7  ;;  %v17004_v59 = vadd.f32 %v16757_v14, %v16585_v49  ;;  %v21327_v49 = vld [vmem:[#allocation24_spill] sm:$0xff] }
 0x4ab   : > { %12934 = vrcp.f32 %v7068_v3  ;;  %v17009_v41 = vmul.f32 %v12927_v34, %v16918_v35  ;;  %v7058_v9 = vrot.slane %v7057_v11, 2  ;;  %v7078_v33 = vadd.f32 %v7077_v10, %v7076_v42 }
 0x4ac   : > { %21325 = vst [vmem:[#allocation81_spill] sm:$0xff] %v17000_v31  ;;  %v6070_v48 = vmax.f32 %v6068_v37, %v6069_v30  ;;  %12936 = vpow2.f32 %v6715_v18  ;;  %v6059_v46 = vmax.f32 %v6057_v25, %v6058_v21  ;;  %v6078_v5 = vsel %vm2106_vm4, %v17004_v59, -inf }
 0x4ad   : > { %21326 = vst [vmem:[#allocation164_spill] sm:$0xff] %v17009_v41  ;;  %v17014_v54 = vpop.eup %12928  ;;  %v7926_v55 = vmul.f32 %v21327_v49, %v17009_v41  ;;  %v7059_v4 = vadd.f32 %v7058_v9, %v7057_v11  ;;  %v7079_v43 = vrot.slane %v7078_v33, 2  ;;  %v6079_v42 = vrot.slane %v6078_v5, 4 }
 0x4ae   : > { %v6582_v35 = vsub.f32 %v16942_v47, %v6070_v48  ;;  %v7069_v37 = vsel %vm2106_vm4, %v17014_v54, 0.0  ;;  %v6060_v3 = vrot.slane %v6059_v46, 2  ;;  %v17026_v21 = vadd.f32 %v16757_v14, %v16596_v53 }
 0x4af   : > { %v7060_v7 = vrot.slane %v7059_v4, 1  ;;  %v7080_v10 = vadd.f32 %v7079_v43, %v7078_v33  ;;  %v7070_v30 = vrot.slane %v7069_v37, 4  ;;  %v17029_v34 = vsel %vm2106_vm4, %v7926_v55, 0.0 }
 0x4b0   : > { %v17022_v25 = vpop.eup %12930  ;;  %21328 = vst [vmem:[#allocation82_spill] sm:$0xff] %v17029_v34  ;;  %v6721_v18 = vmul.f32 1.442695, %v6582_v35  ;;  %v6061_v9 = vmax.f32 %v6059_v46, %v6060_v3  ;;  %v6080_v53 = vmax.f32 %v6078_v5, %v6079_v42 }
 0x4b1   : > { %v12933_v11 = vpop.eup %12932  ;;  %v7090_v47 = vsel %vm2106_vm4, %v17022_v25, 0.0  ;;  %v7061_v49 = vadd.f32 %v7060_v7, %v7059_v4  ;;  %v7081_v32 = vrot.slane %v7080_v10, 1  ;;  %v7071_v33 = vadd.f32 %v7070_v30, %v7069_v37 }
 0x4b2   : > { %v17034_v48 = vmul.f32 %v12933_v11, %v16944_v44  ;;  %v7091_v43 = vrot.slane %v7090_v47, 4  ;;  %12938 = vpow2.f32 %v6721_v18  ;;  %v6062_v24 = vrot.slane %v6061_v9, 1 }
 0x4b3   : > { %12940 = vrcp.f32 %v7061_v49  ;;  %v7082_v55 = vadd.f32 %v7081_v32, %v7080_v10  ;;  %v7072_v36 = vrot.slane %v7071_v33, 2  ;;  %v6081_v46 = vrot.slane %v6080_v53, 2 }
 0x4b4   : > { %21329 = vst [vmem:[#allocation165_spill] sm:$0xff] %v17034_v48  ;;  %v7925_v31 = vmul.f32 %v21330_v50, %v17034_v48  ;;  %v7092_v8 = vadd.f32 %v7091_v43, %v7090_v47  ;;  %v6063_v35 = vmax.f32 %v6061_v9, %v6062_v24  ;;  %v6071_v44 = vsel %vm2106_vm4, %v17026_v21, -inf  ;;  %v21332_v24 = vld [vmem:[#allocation27_spill] sm:$0xff] }
 0x4b5   : > { %v12935_v41 = vpop.eup %12934  ;;  %v7073_v5 = vadd.f32 %v7072_v36, %v7071_v33  ;;  %v6082_v10 = vmax.f32 %v6080_v53, %v6081_v46  ;;  %12942 = vrcp.f32 %v7082_v55  ;;  %v17062_v53 = vadd.f32 %v16757_v14, %v16622_v62 }
 0x4b6   : > { %v8185_v37 = vsel %vm2106_vm4, %v7925_v31, 0.0  ;;  %v17043_v3 = vmul.f32 %v12935_v41, %v16954_v38  ;;  %v17045_v42 = vpop.eup %12936  ;;  %v7093_v32 = vrot.slane %v7092_v8, 2  ;;  %v6581_v7 = vsub.f32 %v16974_v56, %v6063_v35 }
 0x4b7   : > { %v8186_v50 = vrot.slane %v8185_v37, 4  ;;  %v7074_v11 = vrot.slane %v7073_v5, 1  ;;  %v7083_v47 = vsel %vm2106_vm4, %v17045_v42, 0.0  ;;  %v6072_v31 = vrot.slane %v6071_v44, 4 }
 0x4b8   : > { %21331 = vst [vmem:[#allocation10_spill] sm:$0xff] %v17043_v3  ;;  %v17050_v30 = vmul.f32 %v21332_v24, %v17043_v3  ;;  %v7094_v38 = vadd.f32 %v7093_v32, %v7092_v8  ;;  %v7084_v41 = vrot.slane %v7083_v47, 4  ;;  %v6719_v36 = vmul.f32 1.442695, %v6581_v7 }
 0x4b9   : > { %v17054_v18 = vadd.f32 %v8186_v50, %v8185_v37  ;;  %v6083_v9 = vrot.slane %v6082_v10, 1  ;;  %v6073_v49 = vmax.f32 %v6071_v44, %v6072_v31  ;;  %v17058_v56 = vadd.f32 %v16757_v14, %v16616_v12 }
 0x4ba   : > { %21333 = vst [vmem:[#allocation83_spill] sm:$0xff] %v17050_v30  ;;  %v7095_v33 = vrot.slane %v7094_v38, 1  ;;  %v7085_v43 = vadd.f32 %v7084_v41, %v7083_v47  ;;  %12944 = vpow2.f32 %v6719_v36  ;;  %v7075_v35 = vadd.f32 %v7074_v11, %v7073_v5 }
 0x4bb   : > { %21334 = vst [vmem:[#allocation166_spill] sm:$0xff] %v17054_v18  ;;  %v6084_v55 = vmax.f32 %v6082_v10, %v6083_v9  ;;  %v6074_v8 = vrot.slane %v6073_v49, 2  ;;  %v6092_v46 = vsel %vm2106_vm4, %v17058_v56, -inf  ;;  %v6085_v12 = vsel %vm2106_vm4, %v17062_v53, -inf }
 0x4bc   : > { %v17066_v37 = vpop.eup %12938  ;;  %v7096_v44 = vadd.f32 %v7095_v33, %v7094_v38  ;;  %v7086_v50 = vrot.slane %v7085_v43, 2  ;;  %v6093_v32 = vrot.slane %v6092_v46, 4  ;;  %v6086_v10 = vrot.slane %v6085_v12, 4  ;;  %v21336_v33 = vld [vmem:[#allocation109_spill] sm:$0xff] }
 0x4bd   : > { %v12941_v7 = vpop.eup %12940  ;;  %v7104_v24 = vsel %vm2106_vm4, %v17066_v37, 0.0  ;;  %v6584_v62 = vsub.f32 %v17004_v59, %v6084_v55  ;;  %v6075_v5 = vmax.f32 %v6073_v49, %v6074_v8 }
 0x4be   : > { %v17074_v11 = vmul.f32 %v12941_v7, %v16979_v15  ;;  %12946 = vrcp.f32 %v7096_v44  ;;  %v7087_v47 = vadd.f32 %v7086_v50, %v7085_v43  ;;  %v7105_v31 = vrot.slane %v7104_v24, 4  ;;  %v21339_v7 = vld [vmem:[#allocation147_spill] sm:$0xff] }
 0x4bf   : > { %v6725_v38 = vmul.f32 1.442695, %v6584_v62  ;;  %v6076_v41 = vrot.slane %v6075_v5, 1  ;;  %v6094_v36 = vmax.f32 %v6092_v46, %v6093_v32  ;;  %v6087_v9 = vmax.f32 %v6085_v12, %v6086_v10  ;;  %v12943_v15 = vpop.eup %12942  ;;  %v21340_v10 = vld [vmem:[#allocation12_spill] sm:$0xff] }
 0x4c0   : > { %21335 = vst [vmem:[#allocation84_spill] sm:$0xff] %v17074_v11  ;;  %v17078_v4 = vmul.f32 %v21336_v33, %v17074_v11  ;;  %12948 = vrcp.f32 %v7075_v35  ;;  %v7088_v30 = vrot.slane %v7087_v47, 1  ;;  %v7106_v34 = vadd.f32 %v7105_v31, %v7104_v24  ;;  %v21338_v35 = vld [vmem:[#allocation65_spill] sm:$0xff] }
 0x4c1   : > { %12950 = vpow2.f32 %v6725_v38  ;;  %v6077_v59 = vmax.f32 %v6075_v5, %v6076_v41  ;;  %v6095_v49 = vrot.slane %v6094_v36, 2  ;;  %v6088_v55 = vrot.slane %v6087_v9, 2 }
 0x4c2   : > { %21337 = vst [vmem:[#allocation167_spill] sm:$0xff] %v17078_v4  ;;  %v7089_v8 = vadd.f32 %v7088_v30, %v7087_v47  ;;  %v7107_v44 = vrot.slane %v7106_v34, 2  ;;  %v9126_v43 = vcombine.low %v16501_v60, %v16523_v61  ;;  %v9142_v46 = vcombine.low %v16494_v57, %v16519_v16 }
 0x4c3   : > { %v6583_v50 = vsub.f32 %v17026_v21, %v6077_v59  ;;  %v6096_v32 = vmax.f32 %v6094_v36, %v6095_v49  ;;  %v6089_v12 = vmax.f32 %v6087_v9, %v6088_v55  ;;  %v9158_v24 = vcombine.low %v21339_v7, %v21338_v35  ;;  %v21342_v55 = vld [vmem:[#allocation68_spill] sm:$0xff] }
 0x4c4   : > { %v17087_v62 = vpop.eup %12944  ;;  %12952 = vrcp.f32 %v7089_v8  ;;  %v7108_v5 = vadd.f32 %v7107_v44, %v7106_v34  ;;  %v9134_v30 = vrot.slane %v9126_v43, %v21340_v10  ;;  %v9150_v47 = vrot.slane %v9142_v46, %v21340_v10  ;;  %v21343_v8 = vld [vmem:[#allocation66_spill] sm:$0xff] }
 0x4c5   : > { %v7097_v31 = vsel %vm2106_vm4, %v17087_v62, 0.0  ;;  %v6723_v38 = vmul.f32 1.442695, %v6583_v50  ;;  %v6097_v41 = vrot.slane %v6096_v32, 1  ;;  %v6090_v33 = vrot.slane %v6089_v12, 1 }
 0x4c6   : > { %v17094_v21 = vmul.f32 %v12943_v15, %v16990_v63  ;;  %v7109_v36 = vrot.slane %v7108_v5, 1  ;;  %v7098_v9 = vrot.slane %v7097_v31, 4  ;;  %v9166_v59 = vrot.slane %v9158_v24, %v21340_v10 }
 0x4c7   : > { %12954 = vpow2.f32 %v6723_v38  ;;  %v6098_v49 = vmax.f32 %v6096_v32, %v6097_v41  ;;  %v6091_v34 = vmax.f32 %v6089_v12, %v6090_v33  ;;  %v9174_v44 = vcombine.low %v21343_v8, %v21342_v55  ;;  %v21345_v12 = vld [vmem:[#allocation16_spill] sm:$0xff] }
 0x4c8   : > { %21341 = vst [vmem:[#allocation168_spill] sm:$0xff] %v17094_v21  ;;  %v12947_v43 = vpop.eup %12946  ;;  %v7110_v46 = vadd.f32 %v7109_v36, %v7108_v5  ;;  %v7099_v4 = vadd.f32 %v7098_v9, %v7097_v31  ;;  %v9191_v18 = vcombine.high %v9134_v30, %v9150_v47  ;;  %v9190_v50 = vcombine.low %v9134_v30, %v9150_v47 }
 0x4c9   : > { %v17100_v3 = vmul.f32 %v12947_v43, %v17022_v25  ;;  %v6586_v63 = vsub.f32 %v17058_v56, %v6098_v49  ;;  %v6585_v15 = vsub.f32 %v17062_v53, %v6091_v34  ;;  %v9182_v24 = vrot.slane %v9174_v44, %v21340_v10  ;;  %v21347_v25 = vld [vmem:[#allocation29_spill] sm:$0xff]  ;;  %v17125_v43 = vpop.f32.mrb[130].mxu1 }
 0x4ca   : > { %v12949_v38 = vpop.eup %12948  ;;  %12956 = vrcp.f32 %v7110_v46  ;;  %v7100_v32 = vrot.slane %v7099_v4, 2  ;;  %v17106_v41 = vrot.slane %v9191_v18, %v21345_v12  ;;  %v17109_v5 = vrot.slane %v9190_v50, %v21345_v12 }
 0x4cb   : > { %21344 = vst [vmem:[#allocation169_spill] sm:$0xff] %v17100_v3  ;;  %v17111_v31 = vpop.eup %12950  ;;  %v7932_v30 = vmul.f32 %v21347_v25, %v17100_v3  ;;  %v6729_v47 = vmul.f32 1.442695, %v6586_v63  ;;  %v6727_v56 = vmul.f32 1.442695, %v6585_v15  ;;  %v9223_v33 = vcombine.high %v9166_v59, %v9182_v24  ;;  %v17136_v15 = vpop.f32.mrb[131].mxu1 }
 0x4cc   : > { %21346 = vst [vmem:[#allocation170_spill] sm:$0xff] %v17109_v5  ;;  %v7101_v53 = vadd.f32 %v7100_v32, %v7099_v4  ;;  %v7118_v36 = vsel %vm2106_vm4, %v17111_v31, 0.0  ;;  %v9222_v9 = vcombine.low %v9166_v59, %v9182_v24  ;;  %v17119_v18 = vadd.f32 %v16757_v14, %v16708_v1  ;;  %v8733_v1 = vld [vmem:[%s20181_s10 + $0x10] sm:$0xff]  ;;  %v8734_v59 = vld [vmem:[%s20181_s10 + $0x18] sm:$0xff] }
 0x4cd   : > { %v8234_v49 = vsel %vm2106_vm4, %v7932_v30, 0.0  ;;  %v7119_v34 = vrot.slane %v7118_v36, 4  ;;  %12958 = vpow2.f32 %v6729_v47  ;;  %v17123_v44 = vrot.slane %v9223_v33, %v21345_v12 }
 0x4ce   : > { %v12953_v46 = vpop.eup %12952  ;;  %v8235_v50 = vrot.slane %v8234_v49, 4  ;;  %v7102_v4 = vrot.slane %v7101_v53, 1  ;;  %12960 = vpow2.f32 %v6727_v56  ;;  %v17128_v63 = vrot.slane %v9222_v9, %v21345_v12 }
 0x4cf   : > { %v17139_v24 = vmul.f32 %v12953_v46, %v17045_v42  ;;  %v7120_v32 = vadd.f32 %v7119_v34, %v7118_v36  ;;  %v9256_v25 = vcombine.low %v17106_v41, %v17123_v44  ;;  %v6106_v30 = vsel %vm2106_vm4, %v17119_v18, -inf  ;;  %v21351_v42 = vld [vmem:[#allocation111_spill] sm:$0xff] }
 0x4d0   : > { %21348 = vst [vmem:[#allocation86_spill] sm:$0xff] %v17128_v63  ;;  %v17146_v47 = vmul.f32 %v12949_v38, %v17014_v54  ;;  %v7103_v56 = vadd.f32 %v7102_v4, %v7101_v53  ;;  %v9255_v33 = vcombine.high %v17109_v5, %v17128_v63  ;;  %v6107_v9 = vrot.slane %v6106_v30, 4  ;;  %v21352_v34 = vld [vmem:[#allocation71_spill] sm:$0xff]  ;;  %v17159_v54 = vpop.f32.mrb[132].mxu1 }
 0x4d1   : > { %21349 = vst [vmem:[#allocation171_spill] sm:$0xff] %v17139_v24  ;;  %v17150_v3 = vpop.eup %12954  ;;  %v7931_v46 = vmul.f32 %v21351_v42, %v17139_v24  ;;  %v7121_v36 = vrot.slane %v7120_v32, 2  ;;  %10959 = vrot.lane.b32.xlu0 %v9256_v25, %s13315_s23  ;;  %v17157_v21 = vadd.f32 %v16757_v14, %v21352_v34  ;;  %v12755_v11 = vpack.c.bf16 %v8734_v59, %v8733_v1  ;;  %v17166_v42 = vpop.f32.mrb[133].mxu1 }
 0x4d2   : > { %21350 = vst [vmem:[#allocation85_spill] sm:$0xff] %v17146_v47  ;;  %v17161_v38 = vadd.f32 %v8235_v50, %v8234_v49  ;;  %12962 = vrcp.f32 %v7103_v56  ;;  %v7111_v53 = vsel %vm2106_vm4, %v17150_v3, 0.0  ;;  %10907 = vrot.lane.b32.xlu1 %v9255_v33, %s13316_s30  ;;  %v6108_v4 = vmax.f32 %v6106_v30, %v6107_v9  ;;  %v21356_v47 = vld [vmem:[#allocation28_spill] sm:$0xff] }
 0x4d3   : > { %v8227_v25 = vsel %vm2106_vm4, %v7931_v46, 0.0  ;;  %v7122_v5 = vadd.f32 %v7121_v36, %v7120_v32  ;;  %v7112_v63 = vrot.slane %v7111_v53, 4  ;;  %v6099_v14 = vsel %vm2106_vm4, %v17157_v21, -inf  ;;  %12756 = vmatpush3.bf16.msra.mxu0 %v12755_v11 }
 0x4d4   : > { %21353 = vst [vmem:[#allocation172_spill] sm:$0xff] %v17161_v38  ;;  %v12957_v1 = vpop.eup %12956  ;;  %v8228_v49 = vrot.slane %v8227_v25, 4  ;;  %v6109_v50 = vrot.slane %v6108_v4, 2  ;;  %v6100_v59 = vrot.slane %v6099_v14, 4  ;;  %v9127_v56 = vcombine.high %v16501_v60, %v16523_v61 }
 0x4d5   : > { %v17174_v33 = vmul.f32 %v12957_v1, %v17066_v37  ;;  %v7123_v30 = vrot.slane %v7122_v5, 1  ;;  %v7113_v9 = vadd.f32 %v7112_v63, %v7111_v53  ;;  %v9143_v32 = vcombine.high %v16494_v57, %v16519_v16 }
 0x4d6   : > { %v17179_v36 = vadd.f32 %v8228_v49, %v8227_v25  ;;  %v6110_v11 = vmax.f32 %v6108_v4, %v6109_v50  ;;  %v6101_v34 = vmax.f32 %v6099_v14, %v6100_v59  ;;  %v17186_v37 = vrot.slane %v9127_v56, %v21340_v10 }
 0x4d7   : > { %21354 = vst [vmem:[#allocation173_spill] sm:$0xff] %v17174_v33  ;;  %v17181_v24 = vpop.eup %12958  ;;  %v7934_v48 = vmul.f32 %v21356_v47, %v17174_v33  ;;  %v7124_v60 = vadd.f32 %v7123_v30, %v7122_v5  ;;  %v7114_v61 = vrot.slane %v7113_v9, 2  ;;  %v17193_v4 = vrot.slane %v9143_v32, %v21340_v10 }
 0x4d8   : > { %21355 = vst [vmem:[#allocation89_spill] sm:$0xff] %v17179_v36  ;;  %v17188_v63 = vpop.eup %12960  ;;  %v7132_v57 = vsel %vm2106_vm4, %v17181_v24, 0.0  ;;  %v6111_v16 = vrot.slane %v6110_v11, 1  ;;  %v6102_v53 = vrot.slane %v6101_v34, 2  ;;  %v9159_v32 = vcombine.high %v21339_v7, %v21338_v35 }
 0x4d9   : > { %12964 = vrcp.f32 %v7124_v60  ;;  %v7115_v14 = vadd.f32 %v7114_v61, %v7113_v9  ;;  %v7133_v47 = vrot.slane %v7132_v57, 4  ;;  %v17197_v5 = vsel %vm2106_vm4, %v7934_v48, 0.0 }
 0x4da   : > { %21357 = vst [vmem:[#allocation11_spill] sm:$0xff] %v17197_v5  ;;  %v7125_v1 = vsel %vm2106_vm4, %v17188_v63, 0.0  ;;  %v6112_v49 = vmax.f32 %v6110_v11, %v6111_v16  ;;  %v6103_v50 = vmax.f32 %v6101_v34, %v6102_v53  ;;  %v9175_v9 = vcombine.high %v21343_v8, %v21342_v55 }
 0x4db   : > { %v7116_v59 = vrot.slane %v7115_v14, 1  ;;  %v7134_v56 = vadd.f32 %v7133_v47, %v7132_v57  ;;  %v7126_v30 = vrot.slane %v7125_v1, 4  ;;  %v9206_v48 = vcombine.low %v17186_v37, %v17193_v4 }
 0x4dc   : > { %v12963_v46 = vpop.eup %12962  ;;  %v6588_v25 = vsub.f32 %v17119_v18, %v6112_v49  ;;  %v6104_v60 = vrot.slane %v6103_v50, 1  ;;  %v17212_v35 = vrot.slane %v9159_v32, %v21340_v10  ;;  %v17215_v7 = vrot.slane %v9175_v9, %v21340_v10  ;;  %v21359_v18 = vld [vmem:[#allocation112_spill] sm:$0xff]  ;;  %v17219_v49 = vpop.f32.mrb[134].mxu1 }
 0x4dd   : > { %v17209_v61 = vmul.f32 %v12963_v46, %v17087_v62  ;;  %v7117_v11 = vadd.f32 %v7116_v59, %v7115_v14  ;;  %v7135_v34 = vrot.slane %v7134_v56, 2  ;;  %v7127_v57 = vadd.f32 %v7126_v30, %v7125_v1  ;;  %21360 = vst [vmem:[#allocation174_spill] sm:$0xff] %v17219_v49  ;;  %v17225_v14 = vpop.f32.mrb[135].mxu1  ;;  %v21376_v62 = vld [vmem:[#allocation67_spill] sm:$0xff] }
 0x4de   : > { %v6733_v16 = vmul.f32 1.442695, %v6588_v25  ;;  %v6105_v53 = vmax.f32 %v6103_v50, %v6104_v60  ;;  %v9238_v25 = vcombine.low %v17212_v35, %v17215_v7  ;;  %21361 = vst [vmem:[#allocation91_spill] sm:$0xff] %v17225_v14  ;;  %v17231_v32 = vrot.slane %v9206_v48, %v21345_v12 }
 0x4df   : > { %21358 = vst [vmem:[#allocation87_spill] sm:$0xff] %v17209_v61  ;;  %v7933_v55 = vmul.f32 %v21359_v18, %v17209_v61  ;;  %12966 = vrcp.f32 %v7117_v11  ;;  %v7136_v8 = vadd.f32 %v7135_v34, %v7134_v56  ;;  %v7128_v47 = vrot.slane %v7127_v57, 2 }
 0x4e0   : > { %12968 = vpow2.f32 %v6733_v16  ;;  %v6587_v46 = vsub.f32 %v17157_v21, %v6105_v53  ;;  %v9257_v56 = vcombine.high %v17106_v41, %v17123_v44  ;;  %21362 = vst [vmem:[#allocation175_spill] sm:$0xff] %v17231_v32  ;;  %v17234_v60 = vrot.slane %v9238_v25, %v21345_v12  ;;  %v17239_v21 = vld [vmem:[%s20180_s9] ss:$0 sm:$0xff] }
 0x4e1   : > { %v8241_v1 = vsel %vm2106_vm4, %v7933_v55, 0.0  ;;  %v7137_v50 = vrot.slane %v7136_v8, 1  ;;  %v7129_v59 = vadd.f32 %v7128_v47, %v7127_v57  ;;  %v17243_v9 = vadd.f32 %v17239_v21, %v16807_v17  ;;  %v21366_v53 = vld [vmem:[#allocation5_spill] sm:$0xff] }
 0x4e2   : > { %v6731_v30 = vmul.f32 1.442695, %v6587_v46  ;;  %21363 = vst [vmem:[#allocation88_spill] sm:$0xff] %v17234_v60  ;;  %v8242_v34 = vrot.slane %v8241_v1, 4  ;;  %11011 = vrot.lane.b32.xlu1 %v9257_v56, %s21364_s22  ;;  %v17248_v44 = vadd.f32 %v17239_v21, %v16811_v29  ;;  %v9259_v16 = vcombine.high %v17231_v32, %v17234_v60 }
 0x4e3   : > { %v12965_v11 = vpop.eup %12964  ;;  %v7138_v57 = vadd.f32 %v7137_v50, %v7136_v8  ;;  %v7130_v41 = vrot.slane %v7129_v59, 1  ;;  %v21367_v17 = vrot.slane %v21366_v53, 1  ;;  %v6120_v8 = vsel %vm2106_vm4, %v17243_v9, -inf  ;;  %v21370_v50 = vld [vmem:[#allocation63_spill] sm:$0xff] }
 0x4e4   : > { %v17251_v48 = vmul.f32 %v12965_v11, %v17111_v31  ;;  %12970 = vpow2.f32 %v6731_v30  ;;  %v6113_v29 = vsel %vm2106_vm4, %v17248_v44, -inf  ;;  %v21368_v31 = vld [vmem:[#allocation31_spill] sm:$0xff]  ;;  %11063 = vrot.lane.b32.xlu0 %v9259_v16, %s13316_s30  ;;  %v6121_v46 = vrot.slane %v6120_v8, 4 }
 0x4e5   : > { %v17258_v18 = vadd.f32 %v21367_v17, %v21366_v53  ;;  %12972 = vrcp.f32 %v7138_v57  ;;  %v7131_v55 = vadd.f32 %v7130_v41, %v7129_v59  ;;  %v6114_v25 = vrot.slane %v6113_v29, 4  ;;  %v21373_v59 = vld [vmem:[#allocation152_spill] sm:$0xff]  ;;  %v21374_v41 = vld [vmem:[#allocation149_spill] sm:$0xff] }
 0x4e6   : > { %21365 = vst [vmem:[#allocation176_spill] sm:$0xff] %v17251_v48  ;;  %v17266_v47 = vmul.f32 %v21368_v31, %v17251_v48  ;;  %v21371_v56 = vrot.slane %v21370_v50, 2  ;;  %v17272_v11 = vadd.f32 %v8242_v34, %v8241_v1  ;;  %v8034_v57 = vrot.slane %v21373_v59, 2  ;;  %v21377_v1 = vld [vmem:[#allocation150_spill] sm:$0xff] }
 0x4e7   : > { %v21375_v53 = vrot.slane %v21374_v41, 4  ;;  %v8045_v31 = vsel %vm2106_vm4, %v21376_v62, 0.0  ;;  %12974 = vrcp.f32 %v7131_v55  ;;  %v6122_v32 = vmax.f32 %v6120_v8, %v6121_v46  ;;  %v21379_v46 = vld [vmem:[#allocation113_spill] sm:$0xff] }
 0x4e8   : > { %21369 = vst [vmem:[#allocation93_spill] sm:$0xff] %v17266_v47  ;;  %v8028_v30 = vadd.f32 %v21371_v56, %v21370_v50  ;;  %21372 = vst [vmem:[#allocation177_spill] sm:$0xff] %v17272_v11  ;;  %v6115_v16 = vmax.f32 %v6113_v29, %v6114_v25  ;;  %v8046_v60 = vrot.slane %v8045_v31, 4  ;;  %v8035_v38 = vadd.f32 %v8034_v57, %v21373_v59 }
 0x4e9   : > { %v8040_v17 = vadd.f32 %v21375_v53, %v21374_v41  ;;  %v12967_v47 = vpop.eup %12966  ;;  %v8052_v34 = vsel %vm2106_vm4, %v21377_v1, 0.0  ;;  %v6123_v41 = vrot.slane %v6122_v32, 2 }
 0x4ea   : > { %v8029_v5 = vrot.slane %v8028_v30, 1  ;;  %v17283_v56 = vpop.eup %12968  ;;  %v17286_v11 = vmul.f32 %v12967_v47, %v17150_v3  ;;  %v6116_v53 = vrot.slane %v6115_v16, 2  ;;  %v8036_v55 = vrot.slane %v8035_v38, 1 }
 0x4eb   : > { %v8041_v50 = vrot.slane %v8040_v17, 2  ;;  %v7146_v62 = vsel %vm2106_vm4, %v17283_v56, 0.0  ;;  %v8047_v29 = vadd.f32 %v8046_v60, %v8045_v31  ;;  %v6124_v57 = vmax.f32 %v6122_v32, %v6123_v41 }
 0x4ec   : > { %21378 = vst [vmem:[#allocation90_spill] sm:$0xff] %v17286_v11  ;;  %v17292_v25 = vmul.f32 %v21379_v46, %v17286_v11  ;;  %v7147_v59 = vrot.slane %v7146_v62, 4  ;;  %v6117_v1 = vmax.f32 %v6115_v16, %v6116_v53  ;;  %v8030_v36 = vadd.f32 %v8029_v5, %v8028_v30 }
 0x4ed   : > { %v8042_v8 = vadd.f32 %v8041_v50, %v8040_v17  ;;  %v8048_v3 = vrot.slane %v8047_v29, 2  ;;  %v8053_v47 = vrot.slane %v8052_v34, 4  ;;  %v6125_v14 = vrot.slane %v6124_v57, 1  ;;  %v17299_v17 = vpop.f32.mrb[136].mxu1 }
 0x4ee   : > { %21380 = vst [vmem:[#allocation178_spill] sm:$0xff] %v17292_v25  ;;  %v17294_v33 = vpop.eup %12970  ;;  %v7148_v61 = vadd.f32 %v7147_v59, %v7146_v62  ;;  %v6118_v49 = vrot.slane %v6117_v1, 1  ;;  %v8847_v60 = vsel %vm8846_vm5, %v21382_v52, %v21381_v22  ;;  %21383 = vst [vmem:[#allocation179_spill] sm:$0xff] %v17299_v17  ;;  %v8037_v16 = vadd.f32 %v8036_v55, %v8035_v38  ;;  %v17303_v50 = vpop.f32.mrb[137].mxu1 }
 0x4ef   : > { %v8043_v48 = vrot.slane %v8042_v8, 1  ;;  %v12973_v31 = vpop.eup %12972  ;;  %v7139_v32 = vsel %vm2106_vm4, %v17294_v33, 0.0  ;;  %v8049_v5 = vadd.f32 %v8048_v3, %v8047_v29  ;;  %v8054_v30 = vadd.f32 %v8053_v47, %v8052_v34  ;;  %21384 = vst [vmem:[#allocation92_spill] sm:$0xff] %v17303_v50 }
 0x4f0   : > { %v7149_v41 = vrot.slane %v7148_v61, 2  ;;  %v7140_v53 = vrot.slane %v7139_v32, 4  ;;  %v6126_v62 = vmax.f32 %v6124_v57, %v6125_v14  ;;  %v6119_v59 = vmax.f32 %v6117_v1, %v6118_v49 }
 0x4f1   : > { %v8044_v46 = vadd.f32 %v8043_v48, %v8042_v8  ;;  %v8050_v25 = vrot.slane %v8049_v5, 1  ;;  %v8055_v11 = vrot.slane %v8054_v30, 2  ;;  %v17305_v22 = vpop.eup %12974  ;;  %v17308_v52 = vmul.f32 %v12973_v31, %v17181_v24 }
 0x4f2   : > { %v7150_v17 = vadd.f32 %v7149_v41, %v7148_v61  ;;  %v7141_v6 = vadd.f32 %v7140_v53, %v7139_v32  ;;  %v6590_v38 = vsub.f32 %v17243_v9, %v6126_v62  ;;  %v6589_v34 = vsub.f32 %v17248_v44, %v6119_v59  ;;  %v21388_v59 = vld [vmem:[#allocation69_spill] sm:$0xff] }
 0x4f3   : > { %21385 = vst [vmem:[#allocation180_spill] sm:$0xff] %v17308_v52  ;;  %v8051_v55 = vadd.f32 %v8050_v25, %v8049_v5  ;;  %v8056_v29 = vadd.f32 %v8055_v11, %v8054_v30  ;;  %v8849_v14 = vsel %vm8848_vm6, %v17258_v18, %v8847_v60  ;;  %v17324_v47 = vadd.f32 %v17239_v21, %v16908_v39 }
 0x4f4   : > { %v7151_v49 = vrot.slane %v7150_v17, 1  ;;  %v7142_v48 = vrot.slane %v7141_v6, 2  ;;  %v6737_v8 = vmul.f32 1.442695, %v6590_v38  ;;  %v6735_v57 = vmul.f32 1.442695, %v6589_v34 }
 0x4f5   : > { %v8057_v1 = vrot.slane %v8056_v29, 1  ;;  %v8851_v24 = vsel %vm8850_vm7, %v8030_v36, %v8849_v14  ;;  %v9207_v36 = vcombine.high %v17186_v37, %v17193_v4  ;;  %v17329_v31 = vadd.f32 %v17239_v21, %v16916_v45  ;;  %v21389_v34 = vld [vmem:[#allocation74_spill] sm:$0xff] }
 0x4f6   : > { %v7152_v61 = vadd.f32 %v7151_v49, %v7150_v17  ;;  %v7143_v3 = vadd.f32 %v7142_v48, %v7141_v6  ;;  %12976 = vpow2.f32 %v6737_v8  ;;  %v8853_v9 = vsel %vm8852_vm8, %v8037_v16, %v8851_v24 }
 0x4f7   : > { %12978 = vpow2.f32 %v6735_v57  ;;  %v8058_v44 = vadd.f32 %v8057_v1, %v8056_v29  ;;  %v8855_v11 = vsel %vm8854_vm9, %v8044_v46, %v8853_v9  ;;  %v9239_v6 = vcombine.high %v17212_v35, %v17215_v7  ;;  %v21387_v46 = vld [vmem:[#allocation155_spill] sm:$0xff] }
 0x4f8   : > { %12980 = vrcp.f32 %v7152_v61  ;;  %v7144_v18 = vrot.slane %v7143_v3, 1  ;;  %v8857_v25 = vsel %vm8856_vm10, %v8051_v55, %v8855_v11  ;;  %v17333_v32 = vadd.f32 %v17239_v21, %v16927_v26  ;;  %v21390_v55 = vld [vmem:[#allocation72_spill] sm:$0xff] }
 0x4f9   : > { %v8859_v17 = vsel %vm8858_vm11, %v8058_v44, %v8857_v25  ;;  %v9221_v37 = vrot.slane %v9207_v36, %v21345_v12  ;;  %v9253_v4 = vrot.slane %v9239_v6, %v21345_v12  ;;  %v6134_v39 = vsel %vm2106_vm4, %v17324_v47, -inf }
 0x4fa   : > { %v7145_v60 = vadd.f32 %v7144_v18, %v7143_v3  ;;  %12690 = vmatmul.mubr.msk.f32.vlgmr.msra.gmra.mrb[156].mxu0 %vm2106_vm4, %v8859_v17  ;;  %v17342_v35 = vadd.f32 %v17239_v21, %v16933_v40  ;;  %v6135_v45 = vrot.slane %v6134_v39, 4  ;;  %v6127_v7 = vsel %vm2106_vm4, %v17329_v31, -inf  ;;  %v21391_v3 = vld [vmem:[#allocation76_spill] sm:$0xff] }
 0x4fb   : > { %v6148_v26 = vsel %vm2106_vm4, %v17333_v32, -inf  ;;  %v21386_v16 = vmov 0.0   ;;  %v9261_v5 = vcombine.high %v9221_v37, %v9253_v4  ;;  %v9260_v30 = vcombine.low %v9221_v37, %v9253_v4 }
 0x4fc   : > { %12982 = vrcp.f32 %v7145_v60  ;;  %12692 = vmatprep.mubr.msk.f32.mxu0 %vm13313_vm0, %v21386_v16  ;;  %v6128_v41 = vrot.slane %v6127_v7, 4  ;;  %v6149_v53 = vrot.slane %v6148_v26, 4  ;;  %v6136_v62 = vmax.f32 %v6134_v39, %v6135_v45 }
 0x4fd   : > { %v6141_v40 = vsel %vm2106_vm4, %v17342_v35, -inf  ;;  %v9262_v38 = vcombine.low %v21388_v59, %v21387_v46  ;;  %v9278_v29 = vcombine.low %v21390_v55, %v21389_v34  ;;  %11167 = vrot.lane.b32.xlu0 %v9261_v5, %s21364_s22  ;;  %11115 = vrot.lane.b32.xlu1 %v9260_v30, %s13315_s23  ;;  %v9294_v8 = vcombine.low %v16764_v13, %v16818_v58 }
 0x4fe   : > { %v6129_v14 = vmax.f32 %v6127_v7, %v6128_v41  ;;  %v6150_v49 = vmax.f32 %v6148_v26, %v6149_v53  ;;  %v6142_v48 = vrot.slane %v6141_v40, 4  ;;  %v6137_v1 = vrot.slane %v6136_v62, 2 }
 0x4ff   : > { %v17363_v24 = vrot.slane %v9262_v38, %v21340_v10  ;;  %v17366_v61 = vrot.slane %v9278_v29, %v21340_v10  ;;  %v9310_v9 = vcombine.low %v21391_v3, %v16795_v51  ;;  %v9302_v4 = vrot.slane %v9294_v8, %v21340_v10 }
 0x500   : > { %v17360_v57 = vpop.eup %12976  ;;  %v6130_v11 = vrot.slane %v6129_v14, 2  ;;  %v6151_v25 = vrot.slane %v6150_v49, 2  ;;  %v6143_v36 = vmax.f32 %v6141_v40, %v6142_v48  ;;  %v6138_v37 = vmax.f32 %v6136_v62, %v6137_v1  ;;  %v21393_v40 = vld [vmem:[#allocation33_spill] sm:$0xff] }
 0x501   : > { %v17370_v44 = vpop.eup %12978  ;;  %v7160_v18 = vsel %vm2106_vm4, %v17360_v57, 0.0  ;;  %v9318_v53 = vrot.slane %v9310_v9, %v21340_v10 }
 0x502   : > { %v12981_v6 = vpop.eup %12980  ;;  %v7161_v60 = vrot.slane %v7160_v18, 4  ;;  %v7153_v17 = vsel %vm2106_vm4, %v17370_v44, 0.0  ;;  %v6131_v7 = vmax.f32 %v6129_v14, %v6130_v11  ;;  %v6152_v26 = vmax.f32 %v6150_v49, %v6151_v25 }
 0x503   : > { %v17378_v39 = vmul.f32 %v12981_v6, %v17283_v56  ;;  %v7154_v45 = vrot.slane %v7153_v17, 4  ;;  %v6139_v30 = vrot.slane %v6138_v37, 1  ;;  %v6144_v41 = vrot.slane %v6143_v36, 2 }
 0x504   : > { %v7162_v5 = vadd.f32 %v7161_v60, %v7160_v18  ;;  %v6132_v48 = vrot.slane %v6131_v7, 1  ;;  %v6153_v52 = vrot.slane %v6152_v26, 1  ;;  %v9327_v56 = vcombine.high %v17363_v24, %v17366_v61 }
 0x505   : > { %21392 = vst [vmem:[#allocation97_spill] sm:$0xff] %v17378_v39  ;;  %v7940_v38 = vmul.f32 %v21393_v40, %v17378_v39  ;;  %v7155_v29 = vadd.f32 %v7154_v45, %v7153_v17  ;;  %v6140_v8 = vmax.f32 %v6138_v37, %v6139_v30  ;;  %v6145_v50 = vmax.f32 %v6143_v36, %v6144_v41  ;;  %v21394_v17 = vld [vmem:[#allocation115_spill] sm:$0xff] }
 0x506   : > { %v12983_v62 = vpop.eup %12982  ;;  %v7163_v1 = vrot.slane %v7162_v5, 2  ;;  %v6133_v9 = vmax.f32 %v6131_v7, %v6132_v48  ;;  %v6154_v60 = vmax.f32 %v6152_v26, %v6153_v52  ;;  %v17399_v52 = vmul.f32 %v17305_v22, %v17188_v63 }
 0x507   : > { %v8290_v14 = vsel %vm2106_vm4, %v7940_v38, 0.0  ;;  %v17387_v49 = vmul.f32 %v12983_v62, %v17294_v33  ;;  %v7156_v18 = vrot.slane %v7155_v29, 2  ;;  %v6592_v6 = vsub.f32 %v17324_v47, %v6140_v8 }
 0x508   : > { %v8291_v11 = vrot.slane %v8290_v14, 4  ;;  %v7164_v25 = vadd.f32 %v7163_v1, %v7162_v5  ;;  %v6591_v36 = vsub.f32 %v17329_v31, %v6133_v9  ;;  %v6146_v30 = vrot.slane %v6145_v50, 1 }
 0x509   : > { %v7939_v45 = vmul.f32 %v21394_v17, %v17387_v49  ;;  %v7157_v37 = vadd.f32 %v7156_v18, %v7155_v29  ;;  %v6741_v38 = vmul.f32 1.442695, %v6592_v6  ;;  %v6594_v33 = vsub.f32 %v17333_v32, %v6154_v60  ;;  %v17435_v17 = vpop.f32.mrb[138].mxu1 }
 0x50a   : > { %v17393_v41 = vadd.f32 %v8291_v11, %v8290_v14  ;;  %v7165_v40 = vrot.slane %v7164_v25, 1  ;;  %v6739_v5 = vmul.f32 1.442695, %v6591_v36  ;;  %v6147_v62 = vmax.f32 %v6145_v50, %v6146_v30 }
 0x50b   : > { %v8283_v7 = vsel %vm2106_vm4, %v7939_v45, 0.0  ;;  %v7158_v48 = vrot.slane %v7157_v37, 1  ;;  %12984 = vpow2.f32 %v6741_v38  ;;  %v6745_v29 = vmul.f32 1.442695, %v6594_v33 }
 0x50c   : > { %21395 = vst [vmem:[#allocation95_spill] sm:$0xff] %v17393_v41  ;;  %v8284_v47 = vrot.slane %v8283_v7, 4  ;;  %v7166_v26 = vadd.f32 %v7165_v40, %v7164_v25  ;;  %12986 = vpow2.f32 %v6739_v5  ;;  %v6593_v1 = vsub.f32 %v17342_v35, %v6147_v62 }
 0x50d   : > { %v7159_v31 = vadd.f32 %v7158_v48, %v7157_v37  ;;  %v9359_v14 = vcombine.high %v9302_v4, %v9318_v53  ;;  %v9326_v63 = vcombine.low %v17363_v24, %v17366_v61  ;;  %v9358_v22 = vcombine.low %v9302_v4, %v9318_v53 }
 0x50e   : > { %v17403_v32 = vadd.f32 %v8284_v47, %v8283_v7  ;;  %12988 = vrcp.f32 %v7166_v26  ;;  %v6743_v50 = vmul.f32 1.442695, %v6593_v1  ;;  %v9341_v18 = vrot.slane %v9327_v56, %v21345_v12  ;;  %v21399_v47 = vld [vmem:[#allocation148_spill] sm:$0xff] }
 0x50f   : > { %12990 = vrcp.f32 %v7159_v31  ;;  %v9373_v9 = vrot.slane %v9359_v14, %v21345_v12  ;;  %v17411_v35 = vadd.f32 %v17239_v21, %v16960_v2  ;;  %v17414_v11 = vrot.slane %v9326_v63, %v21345_v12 }
 0x510   : > { %21396 = vst [vmem:[#allocation94_spill] sm:$0xff] %v17403_v32  ;;  %12992 = vpow2.f32 %v6745_v29  ;;  %v17417_v25 = vrot.slane %v9358_v22, %v21345_v12  ;;  %v17421_v24 = vadd.f32 %v17239_v21, %v16965_v0  ;;  %v9263_v53 = vcombine.high %v21388_v59, %v21387_v46 }
 0x511   : > { %12994 = vpow2.f32 %v6743_v50  ;;  %21397 = vst [vmem:[#allocation181_spill] sm:$0xff] %v17414_v11  ;;  %v9392_v61 = vcombine.low %v9341_v18, %v9373_v9  ;;  %v6162_v4 = vsel %vm2106_vm4, %v17411_v35, -inf  ;;  %v9279_v2 = vcombine.high %v21390_v55, %v21389_v34  ;;  %v17446_v55 = vpop.f32.mrb[139].mxu1 }
 0x512   : > { %21398 = vst [vmem:[#allocation99_spill] sm:$0xff] %v17417_v25  ;;  %v9391_v56 = vcombine.high %v17414_v11, %v17417_v25  ;;  %v6163_v6 = vrot.slane %v6162_v4, 4  ;;  %v6155_v60 = vsel %vm2106_vm4, %v17421_v24, -inf  ;;  %v9295_v0 = vcombine.high %v16764_v13, %v16818_v58  ;;  %v17476_v31 = vpop.f32.mrb[140].mxu1 }
 0x513   : > { %10961 = vrot.lane.b32.xlu1 %v9392_v61, %s13315_s23  ;;  %v6156_v45 = vrot.slane %v6155_v60, 4  ;;  %v17439_v46 = vrot.slane %v9263_v53, %v21340_v10  ;;  %v17442_v59 = vrot.slane %v9279_v2, %v21340_v10  ;;  %v9311_v34 = vcombine.high %v21391_v3, %v16795_v51  ;;  %v17482_v22 = vpop.f32.mrb[141].mxu1 }
 0x514   : > { %10909 = vrot.lane.b32.xlu0 %v9391_v56, %s13316_s30  ;;  %v6164_v37 = vmax.f32 %v6162_v4, %v6163_v6  ;;  %v17450_v13 = vrot.slane %v9295_v0, %v21340_v10  ;;  %v9393_v36 = vcombine.high %v9341_v18, %v9373_v9  ;;  %v17454_v30 = vadd.f32 %v17239_v21, %v16998_v23 }
 0x515   : > { %v17456_v40 = vpop.eup %12984  ;;  %v6157_v33 = vmax.f32 %v6155_v60, %v6156_v45  ;;  %v17460_v3 = vrot.slane %v9311_v34, %v21340_v10  ;;  %v9342_v7 = vcombine.low %v17439_v46, %v17442_v59  ;;  %v17470_v23 = vadd.f32 %v17239_v21, %v17006_v20 }
 0x516   : > { %v17464_v48 = vpop.eup %12986  ;;  %v7174_v5 = vsel %vm2106_vm4, %v17456_v40, 0.0  ;;  %v6165_v62 = vrot.slane %v6164_v37, 2  ;;  %v17474_v26 = vmul.f32 %v21399_v47, %v16818_v58  ;;  %v6176_v63 = vsel %vm2106_vm4, %v17454_v30, -inf }
 0x517   : > { %v7175_v1 = vrot.slane %v7174_v5, 4  ;;  %v7167_v14 = vsel %vm2106_vm4, %v17464_v48, 0.0  ;;  %v6158_v50 = vrot.slane %v6157_v33, 2  ;;  %v9374_v61 = vcombine.low %v17450_v13, %v17460_v3 }
 0x518   : > { %v12989_v29 = vpop.eup %12988  ;;  %v7168_v9 = vrot.slane %v7167_v14, 4  ;;  %v6166_v58 = vmax.f32 %v6164_v37, %v6165_v62  ;;  %11013 = vrot.lane.b32.xlu0 %v9393_v36, %s21364_s22  ;;  %v17496_v6 = vrot.slane %v9342_v7, %v21345_v12  ;;  %v21402_v36 = vld [vmem:[#allocation116_spill] sm:$0xff] }
 0x519   : > { %v12991_v18 = vpop.eup %12990  ;;  %v17485_v20 = vmul.f32 %v12989_v29, %v17360_v57  ;;  %v7176_v2 = vadd.f32 %v7175_v1, %v7174_v5  ;;  %v6159_v56 = vmax.f32 %v6157_v33, %v6158_v50  ;;  %v21401_v57 = vld [vmem:[#allocation32_spill] sm:$0xff] }
 0x51a   : > { %v17490_v4 = vpop.eup %12992  ;;  %v17493_v53 = vmul.f32 %v12991_v18, %v17370_v44  ;;  %21400 = vst [vmem:[#allocation182_spill] sm:$0xff] %v17496_v6  ;;  %v7169_v45 = vadd.f32 %v7168_v9, %v7167_v14  ;;  %v6167_v37 = vrot.slane %v6166_v58, 1  ;;  %v6177_v9 = vrot.slane %v6176_v63, 4 }
 0x51b   : > { %v17498_v60 = vpop.eup %12994  ;;  %v7942_v0 = vmul.f32 %v21401_v57, %v17485_v20  ;;  %v7188_v34 = vsel %vm2106_vm4, %v17490_v4, 0.0  ;;  %v7177_v44 = vrot.slane %v7176_v2, 2  ;;  %v6160_v41 = vrot.slane %v6159_v56, 1 }
 0x51c   : > { %v7941_v62 = vmul.f32 %v21402_v36, %v17493_v53  ;;  %v7189_v47 = vrot.slane %v7188_v34, 4  ;;  %v7181_v33 = vsel %vm2106_vm4, %v17498_v60, 0.0  ;;  %v7170_v5 = vrot.slane %v7169_v45, 2 }
 0x51d   : > { %v17509_v7 = vsel %vm2106_vm4, %v7942_v0, 0.0  ;;  %v7182_v29 = vrot.slane %v7181_v33, 4  ;;  %v6168_v1 = vmax.f32 %v6166_v58, %v6167_v37  ;;  %v7178_v50 = vadd.f32 %v7177_v44, %v7176_v2 }
 0x51e   : > { %21403 = vst [vmem:[#allocation96_spill] sm:$0xff] %v17509_v7  ;;  %v8297_v14 = vsel %vm2106_vm4, %v7941_v62, 0.0  ;;  %v7190_v18 = vadd.f32 %v7189_v47, %v7188_v34  ;;  %v7171_v8 = vadd.f32 %v7170_v5, %v7169_v45  ;;  %v17515_v0 = vrot.slane %v9374_v61, %v21345_v12  ;;  %v17519_v45 = vpop.f32.mrb[142].mxu1 }
 0x51f   : > { %v7183_v36 = vadd.f32 %v7182_v29, %v7181_v33  ;;  %v6596_v38 = vsub.f32 %v17411_v35, %v6168_v1  ;;  %v7179_v11 = vrot.slane %v7178_v50, 1  ;;  %v8298_v32 = vrot.slane %v8297_v14, 4  ;;  %v17521_v5 = vpop.f32.mrb[143].mxu1  ;;  %v21406_v1 = vld [vmem:[#allocation154_spill] sm:$0xff] }
 0x520   : > { %v7191_v25 = vrot.slane %v7190_v18, 2  ;;  %21404 = vst [vmem:[#allocation183_spill] sm:$0xff] %v17515_v0  ;;  %v7172_v39 = vrot.slane %v7171_v8, 1  ;;  %v6161_v34 = vmax.f32 %v6159_v56, %v6160_v41  ;;  %v9395_v44 = vcombine.high %v17496_v6, %v17515_v0 }
 0x521   : > { %v7184_v58 = vrot.slane %v7183_v36, 2  ;;  %v6749_v37 = vmul.f32 1.442695, %v6596_v38  ;;  %v7180_v62 = vadd.f32 %v7179_v11, %v7178_v50  ;;  %v6178_v33 = vmax.f32 %v6176_v63, %v6177_v9 }
 0x522   : > { %v7192_v2 = vadd.f32 %v7191_v25, %v7190_v18  ;;  %v7173_v47 = vadd.f32 %v7172_v39, %v7171_v8  ;;  %v6595_v29 = vsub.f32 %v17421_v24, %v6161_v34  ;;  %11065 = vrot.lane.b32.xlu1 %v9395_v44, %s13316_s30  ;;  %v6169_v41 = vsel %vm2106_vm4, %v17470_v23, -inf  ;;  %v21405_v8 = vld [vmem:[#allocation103_spill] sm:$0xff] }
 0x523   : > { %v7185_v35 = vadd.f32 %v7184_v58, %v7183_v36  ;;  %12996 = vpow2.f32 %v6749_v37  ;;  %v6179_v25 = vrot.slane %v6178_v33, 2  ;;  %v6170_v38 = vrot.slane %v6169_v41, 4  ;;  %v21408_v58 = vld [vmem:[#allocation153_spill] sm:$0xff] }
 0x524   : > { %12998 = vrcp.f32 %v7180_v62  ;;  %v7193_v61 = vrot.slane %v7192_v2, 1  ;;  %v6747_v39 = vmul.f32 1.442695, %v6595_v29  ;;  %v7914_v63 = vmul.f32 %v21405_v8, %v16795_v51 }
 0x525   : > { %13000 = vrcp.f32 %v7173_v47  ;;  %v7186_v11 = vrot.slane %v7185_v35, 1  ;;  %v21407_v50 = vrot.slane %v21406_v1, 2  ;;  %v6180_v24 = vmax.f32 %v6178_v33, %v6179_v25 }
 0x526   : > { %v7194_v56 = vadd.f32 %v7193_v61, %v7192_v2  ;;  %v6171_v36 = vmax.f32 %v6169_v41, %v6170_v38  ;;  %v21409_v37 = vrot.slane %v21408_v58, 2  ;;  %v8076_v44 = vrot.slane %v16785_v28, 2  ;;  %v21410_v2 = vld [vmem:[#allocation6_spill] sm:$0xff] }
 0x527   : > { %v8063_v18 = vadd.f32 %v21407_v50, %v21406_v1  ;;  %v7187_v9 = vadd.f32 %v7186_v11, %v7185_v35  ;;  %v21411_v47 = vrot.slane %v21410_v2, 4  ;;  %v6181_v51 = vrot.slane %v6180_v24, 1 }
 0x528   : > { %v8070_v62 = vadd.f32 %v21409_v37, %v21408_v58  ;;  %13002 = vrcp.f32 %v7194_v56  ;;  %v6172_v29 = vrot.slane %v6171_v36, 2  ;;  %v17539_v1 = vadd.f32 %v8298_v32, %v8297_v14  ;;  %v21412_v37 = vld [vmem:[#allocation156_spill] sm:$0xff] }
 0x529   : > { %v8064_v34 = vrot.slane %v8063_v18, 1  ;;  %v8082_v61 = vadd.f32 %v21411_v47, %v21410_v2  ;;  %13004 = vrcp.f32 %v7187_v9  ;;  %v8077_v35 = vadd.f32 %v8076_v44, %v16785_v28 }
 0x52a   : > { %v8071_v8 = vrot.slane %v8070_v62, 1  ;;  %13006 = vpow2.f32 %v6747_v39  ;;  %v6182_v41 = vmax.f32 %v6180_v24, %v6181_v51  ;;  %v6173_v11 = vmax.f32 %v6171_v36, %v6172_v29 }
 0x52b   : > { %v8083_v33 = vrot.slane %v8082_v61, 2  ;;  %v8065_v25 = vadd.f32 %v8064_v34, %v8063_v18  ;;  %v8087_v38 = vsel %vm2106_vm4, %v16776_v19, 0.0  ;;  %v8078_v56 = vrot.slane %v8077_v35, 1 }
 0x52c   : > { %v8088_v58 = vrot.slane %v8087_v38, 4  ;;  %v8094_v9 = vsel %vm2106_vm4, %v21412_v37, 0.0  ;;  %v6598_v32 = vsub.f32 %v17454_v30, %v6182_v41  ;;  %v6174_v14 = vrot.slane %v6173_v11, 1  ;;  %v21415_v41 = vld [vmem:[#allocation35_spill] sm:$0xff] }
 0x52d   : > { %v8084_v50 = vadd.f32 %v8083_v33, %v8082_v61  ;;  %v17546_v2 = vpop.eup %12996  ;;  %v8072_v39 = vadd.f32 %v8071_v8, %v8070_v62  ;;  %v8095_v28 = vrot.slane %v8094_v9, 4  ;;  %v8101_v19 = vsel %vm2106_vm4, %v17474_v26, 0.0 }
 0x52e   : > { %v12999_v44 = vpop.eup %12998  ;;  %v7202_v18 = vsel %vm2106_vm4, %v17546_v2, 0.0  ;;  %v8089_v36 = vadd.f32 %v8088_v58, %v8087_v38  ;;  %v6753_v51 = vmul.f32 1.442695, %v6598_v32  ;;  %v6175_v29 = vmax.f32 %v6173_v11, %v6174_v14 }
 0x52f   : > { %v8085_v24 = vrot.slane %v8084_v50, 1  ;;  %v13001_v34 = vpop.eup %13000  ;;  %v17554_v47 = vmul.f32 %v12999_v44, %v17456_v40  ;;  %v7203_v61 = vrot.slane %v7202_v18, 4  ;;  %v8079_v62 = vadd.f32 %v8078_v56, %v8077_v35  ;;  %v21417_v40 = vld [vmem:[#allocation117_spill] sm:$0xff] }
 0x530   : > { %v17557_v30 = vmul.f32 %v13001_v34, %v17464_v48  ;;  %v8090_v8 = vrot.slane %v8089_v36, 2  ;;  %v8096_v33 = vadd.f32 %v8095_v28, %v8094_v9  ;;  %13008 = vpow2.f32 %v6753_v51  ;;  %v17571_v34 = vpop.f32.mrb[144].mxu1 }
 0x531   : > { %21413 = vst [vmem:[#allocation100_spill] sm:$0xff] %v17554_v47  ;;  %v17561_v37 = vmul.f32 %v21415_v41, %v17554_v47  ;;  %v7204_v38 = vadd.f32 %v7203_v61, %v7202_v18  ;;  %v6597_v26 = vsub.f32 %v17470_v23, %v6175_v29  ;;  %v8102_v48 = vrot.slane %v8101_v19, 4 }
 0x532   : > { %21414 = vst [vmem:[#allocation184_spill] sm:$0xff] %v17557_v30  ;;  %v13003_v58 = vpop.eup %13002  ;;  %v17566_v44 = vmul.f32 %v21417_v40, %v17557_v30  ;;  %v8091_v11 = vadd.f32 %v8090_v8, %v8089_v36  ;;  %v8097_v32 = vrot.slane %v8096_v33, 2  ;;  %v8086_v9 = vadd.f32 %v8085_v24, %v8084_v50  ;;  %v17578_v36 = vpop.f32.mrb[145].mxu1 }
 0x533   : > { %21416 = vst [vmem:[#allocation98_spill] sm:$0xff] %v17561_v37  ;;  %v17568_v14 = vpop.eup %13004  ;;  %v7205_v35 = vrot.slane %v7204_v38, 2  ;;  %v6751_v56 = vmul.f32 1.442695, %v6597_v26  ;;  %v8108_v28 = vsel %vm2106_vm4, %v7914_v63, 0.0  ;;  %v17576_v23 = vmul.f32 %v13003_v58, %v17490_v4 }
 0x534   : > { %21418 = vst [vmem:[#allocation185_spill] sm:$0xff] %v17566_v44  ;;  %v17573_v18 = vpop.eup %13006  ;;  %v8092_v61 = vrot.slane %v8091_v11, 1  ;;  %v8098_v51 = vadd.f32 %v8097_v32, %v8096_v33  ;;  %v8103_v29 = vadd.f32 %v8102_v48, %v8101_v19  ;;  %v8109_v50 = vrot.slane %v8108_v28, 4 }
 0x535   : > { %21419 = vst [vmem:[#allocation13_spill] sm:$0xff] %v17576_v23  ;;  %v7206_v8 = vadd.f32 %v7205_v35, %v7204_v38  ;;  %v7195_v41 = vsel %vm2106_vm4, %v17573_v18, 0.0  ;;  %13010 = vpow2.f32 %v6751_v56  ;;  %v8860_v4 = vsel %vm8846_vm5, %v8072_v39, %v8065_v25 }
 0x536   : > { %v7196_v24 = vrot.slane %v7195_v41, 4  ;;  %v8093_v63 = vadd.f32 %v8092_v61, %v8091_v11  ;;  %v8099_v26 = vrot.slane %v8098_v51, 1  ;;  %v8104_v40 = vrot.slane %v8103_v29, 2 }
 0x537   : > { %v7207_v57 = vrot.slane %v7206_v8, 1  ;;  %v8110_v6 = vadd.f32 %v8109_v50, %v8108_v28  ;;  %v9343_v33 = vcombine.high %v17439_v46, %v17442_v59  ;;  %v8861_v38 = vsel %vm8848_vm6, %v8079_v62, %v8860_v4 }
 0x538   : > { %v7197_v19 = vadd.f32 %v7196_v24, %v7195_v41  ;;  %v8100_v58 = vadd.f32 %v8099_v26, %v8098_v51  ;;  %v8105_v32 = vadd.f32 %v8104_v40, %v8103_v29  ;;  %v8862_v56 = vsel %vm8850_vm7, %v8086_v9, %v8861_v38 }
 0x539   : > { %v7208_v48 = vadd.f32 %v7207_v57, %v7206_v8  ;;  %v8111_v35 = vrot.slane %v8110_v6, 2  ;;  %v9357_v11 = vrot.slane %v9343_v33, %v21345_v12  ;;  %v8863_v28 = vsel %vm8852_vm8, %v8093_v63, %v8862_v56 }
 0x53a   : > { %v7198_v61 = vrot.slane %v7197_v19, 2  ;;  %v8106_v0 = vrot.slane %v8105_v32, 1  ;;  %v9375_v25 = vcombine.high %v17450_v13, %v17460_v3  ;;  %v17591_v39 = vpop.eup %13008  ;;  %v8864_v59 = vsel %vm8854_vm9, %v8100_v58, %v8863_v28 }
 0x53b   : > { %13012 = vrcp.f32 %v7208_v48  ;;  %v8112_v46 = vadd.f32 %v8111_v35, %v8110_v6  ;;  %v17596_v57 = vadd.f32 %v17239_v21, %v17125_v43  ;;  %v7216_v9 = vsel %vm2106_vm4, %v17591_v39, 0.0 }
 0x53c   : > { %v7199_v62 = vadd.f32 %v7198_v61, %v7197_v19  ;;  %v8107_v51 = vadd.f32 %v8106_v0, %v8105_v32  ;;  %v9389_v29 = vrot.slane %v9375_v25, %v21345_v12  ;;  %v7217_v8 = vrot.slane %v7216_v9, 4 }
 0x53d   : > { %v8113_v41 = vrot.slane %v8112_v46, 1  ;;  %v6190_v13 = vsel %vm2106_vm4, %v17596_v57, -inf  ;;  %v17605_v3 = vadd.f32 %v17239_v21, %v17136_v15  ;;  %v17618_v58 = vadd.f32 %v17239_v21, %v17159_v54 }
 0x53e   : > { %v7200_v6 = vrot.slane %v7199_v62, 1  ;;  %v8865_v43 = vsel %vm8856_vm10, %v8107_v51, %v8864_v59  ;;  %v9396_v50 = vcombine.low %v9357_v11, %v9389_v29  ;;  %v9397_v24 = vcombine.high %v9357_v11, %v9389_v29  ;;  %v21421_v29 = vld [vmem:[#allocation78_spill] sm:$0xff] }
 0x53f   : > { %v17608_v63 = vpop.eup %13010  ;;  %v7218_v26 = vadd.f32 %v7217_v8, %v7216_v9  ;;  %v8114_v0 = vadd.f32 %v8113_v41, %v8112_v46  ;;  %v6191_v40 = vrot.slane %v6190_v13, 4  ;;  %v6183_v4 = vsel %vm2106_vm4, %v17605_v3, -inf  ;;  %v21420_v9 = vld [vmem:[#allocation157_spill] sm:$0xff] }
 0x540   : > { %v7201_v33 = vadd.f32 %v7200_v6, %v7199_v62  ;;  %v7209_v19 = vsel %vm2106_vm4, %v17608_v63, 0.0  ;;  %11117 = vrot.lane.b32.xlu0 %v9396_v50, %s13315_s23  ;;  %11169 = vrot.lane.b32.xlu1 %v9397_v24, %s21364_s22  ;;  %v6184_v15 = vrot.slane %v6183_v4, 4  ;;  %v6204_v11 = vsel %vm2106_vm4, %v17618_v58, -inf  ;;  %v21422_v8 = vld [vmem:[#allocation73_spill] sm:$0xff] }
 0x541   : > { %v7219_v32 = vrot.slane %v7218_v26, 2  ;;  %v7210_v38 = vrot.slane %v7209_v19, 4  ;;  %v8866_v48 = vsel %vm8858_vm11, %v8114_v0, %v8865_v43  ;;  %v6192_v35 = vmax.f32 %v6190_v13, %v6191_v40 }
 0x542   : > { %13014 = vrcp.f32 %v7201_v33  ;;  %12693 = vmatmul.mubr.msk.f32.gmra.mrb[158].mxu0 %vm2106_vm4, %v8866_v48  ;;  %v6185_v56 = vmax.f32 %v6183_v4, %v6184_v15  ;;  %v17626_v61 = vadd.f32 %v17239_v21, %v17166_v42  ;;  %v6205_v46 = vrot.slane %v6204_v11, 4 }
 0x543   : > { %v7220_v28 = vadd.f32 %v7219_v32, %v7218_v26  ;;  %v7211_v25 = vadd.f32 %v7210_v38, %v7209_v19  ;;  %v6193_v54 = vrot.slane %v6192_v35, 2  ;;  %12695 = vmatprep.mubr.msk.f32.mxu0 %vm13313_vm0, %v21386_v16  ;;  %v9398_v51 = vcombine.low %v21420_v9, %v16886_v27  ;;  %v21424_v32 = vld [vmem:[#allocation37_spill] sm:$0xff] }
 0x544   : > { %v6186_v59 = vrot.slane %v6185_v56, 2  ;;  %v6197_v62 = vsel %vm2106_vm4, %v17626_v61, -inf  ;;  %v9414_v41 = vcombine.low %v21422_v8, %v21421_v29  ;;  %v6206_v50 = vmax.f32 %v6204_v11, %v6205_v46 }
 0x545   : > { %v13013_v13 = vpop.eup %13012  ;;  %v7221_v42 = vrot.slane %v7220_v28, 1  ;;  %v7212_v6 = vrot.slane %v7211_v25, 2  ;;  %v6194_v43 = vmax.f32 %v6192_v35, %v6193_v54  ;;  %v6198_v0 = vrot.slane %v6197_v62, 4 }
 0x546   : > { %v17637_v24 = vmul.f32 %v13013_v13, %v17546_v2  ;;  %v6187_v26 = vmax.f32 %v6185_v56, %v6186_v59  ;;  %v9406_v40 = vrot.slane %v9398_v51, %v21340_v10  ;;  %v6207_v15 = vrot.slane %v6206_v50, 2  ;;  %v21425_v59 = vld [vmem:[#allocation9_spill] sm:$0xff] }
 0x547   : > { %v7222_v4 = vadd.f32 %v7221_v42, %v7220_v28  ;;  %v7213_v33 = vadd.f32 %v7212_v6, %v7211_v25  ;;  %v6195_v19 = vrot.slane %v6194_v43, 1  ;;  %v6199_v37 = vmax.f32 %v6197_v62, %v6198_v0  ;;  %v21426_v28 = vld [vmem:[#allocation160_spill] sm:$0xff] }
 0x548   : > { %21423 = vst [vmem:[#allocation14_spill] sm:$0xff] %v17637_v24  ;;  %v7948_v38 = vmul.f32 %v21424_v32, %v17637_v24  ;;  %v6188_v48 = vrot.slane %v6187_v26, 1  ;;  %v9422_v44 = vrot.slane %v9414_v41, %v21340_v10  ;;  %v6208_v2 = vmax.f32 %v6206_v50, %v6207_v15  ;;  %v21428_v50 = vld [vmem:[#allocation79_spill] sm:$0xff] }
 0x549   : > { %13016 = vrcp.f32 %v7222_v4  ;;  %v7214_v35 = vrot.slane %v7213_v33, 1  ;;  %v6196_v11 = vmax.f32 %v6194_v43, %v6195_v19  ;;  %v6200_v46 = vrot.slane %v6199_v37, 2  ;;  %v21427_v43 = vld [vmem:[#allocation161_spill] sm:$0xff] }
 0x54a   : > { %v8346_v56 = vsel %vm2106_vm4, %v7948_v38, 0.0  ;;  %v6189_v54 = vmax.f32 %v6187_v26, %v6188_v48  ;;  %v9430_v25 = vcombine.low %v21426_v28, %v21425_v59  ;;  %v6209_v6 = vrot.slane %v6208_v2, 1  ;;  %v21432_v48 = vld [vmem:[#allocation119_spill] sm:$0xff] }
 0x54b   : > { %v8347_v51 = vrot.slane %v8346_v56, 4  ;;  %v7215_v13 = vadd.f32 %v7214_v35, %v7213_v33  ;;  %v6600_v42 = vsub.f32 %v17596_v57, %v6196_v11  ;;  %v6201_v41 = vmax.f32 %v6199_v37, %v6200_v46 }
 0x54c   : > { %v13015_v32 = vpop.eup %13014  ;;  %v6599_v62 = vsub.f32 %v17605_v3, %v6189_v54  ;;  %v9438_v0 = vrot.slane %v9430_v25, %v21340_v10  ;;  %v9446_v4 = vcombine.low %v21428_v50, %v21427_v43  ;;  %v17653_v26 = vmul.f32 %v17568_v14, %v17498_v60 }
 0x54d   : > { %v17656_v19 = vmul.f32 %v13015_v32, %v17573_v18  ;;  %13018 = vrcp.f32 %v7215_v13  ;;  %v6757_v33 = vmul.f32 1.442695, %v6600_v42  ;;  %v6210_v15 = vmax.f32 %v6208_v2, %v6209_v6 }
 0x54e   : > { %21429 = vst [vmem:[#allocation15_spill] sm:$0xff] %v17653_v26  ;;  %v6755_v57 = vmul.f32 1.442695, %v6599_v62  ;;  %v6202_v38 = vrot.slane %v6201_v41, 1  ;;  %v9454_v3 = vrot.slane %v9446_v4, %v21340_v10  ;;  %v17659_v37 = vadd.f32 %v8347_v51, %v8346_v56  ;;  %v21435_v62 = vld [vmem:[#allocation174_spill] sm:$0xff] }
 0x54f   : > { %21430 = vst [vmem:[#allocation17_spill] sm:$0xff] %v17656_v19  ;;  %v7947_v35 = vmul.f32 %v21432_v48, %v17656_v19  ;;  %13020 = vpow2.f32 %v6757_v33  ;;  %v9463_v11 = vcombine.high %v9406_v40, %v9422_v44  ;;  %v6602_v60 = vsub.f32 %v17618_v58, %v6210_v15 }
 0x550   : > { %21431 = vst [vmem:[#allocation19_spill] sm:$0xff] %v17659_v37  ;;  %13022 = vpow2.f32 %v6755_v57  ;;  %v6203_v14 = vmax.f32 %v6201_v41, %v6202_v38  ;;  %v9495_v18 = vcombine.high %v9438_v0, %v9454_v3  ;;  %v9462_v2 = vcombine.low %v9406_v40, %v9422_v44  ;;  %v21436_v44 = vld [vmem:[#allocation91_spill] sm:$0xff] }
 0x551   : > { %v8339_v54 = vsel %vm2106_vm4, %v7947_v35, 0.0  ;;  %v17666_v46 = vrot.slane %v9463_v11, %v21345_v12  ;;  %v9494_v25 = vcombine.low %v9438_v0, %v9454_v3  ;;  %v6761_v56 = vmul.f32 1.442695, %v6602_v60  ;;  %v21439_v3 = vld [vmem:[#allocation36_spill] sm:$0xff]  ;;  %v17702_v35 = vpop.f32.mrb[146].mxu1 }
 0x552   : > { %v8340_v13 = vrot.slane %v8339_v54, 4  ;;  %v6601_v51 = vsub.f32 %v17626_v61, %v6203_v14  ;;  %v17670_v42 = vrot.slane %v9495_v18, %v21345_v12  ;;  %v17673_v32 = vrot.slane %v9462_v2, %v21345_v12  ;;  %v17712_v2 = vpop.f32.mrb[147].mxu1 }
 0x553   : > { %v13017_v6 = vpop.eup %13016  ;;  %v17676_v58 = vrot.slane %v9494_v25, %v21345_v12  ;;  %v17680_v41 = vadd.f32 %v17239_v21, %v21435_v62  ;;  %v17684_v40 = vadd.f32 %v17239_v21, %v21436_v44  ;;  %13024 = vpow2.f32 %v6761_v56 }
 0x554   : > { %21433 = vst [vmem:[#allocation101_spill] sm:$0xff] %v17673_v32  ;;  %v17686_v0 = vadd.f32 %v8340_v13, %v8339_v54  ;;  %v17689_v61 = vmul.f32 %v13017_v6, %v17591_v39  ;;  %v6759_v4 = vmul.f32 1.442695, %v6601_v51  ;;  %v9528_v33 = vcombine.low %v17666_v46, %v17670_v42 }
 0x555   : > { %21434 = vst [vmem:[#allocation18_spill] sm:$0xff] %v17676_v58  ;;  %v9527_v57 = vcombine.high %v17673_v32, %v17676_v58  ;;  %v6218_v15 = vsel %vm2106_vm4, %v17680_v41, -inf  ;;  %v6211_v21 = vsel %vm2106_vm4, %v17684_v40, -inf  ;;  %v9399_v14 = vcombine.high %v21420_v9, %v16886_v27 }
 0x556   : > { %21437 = vst [vmem:[#allocation102_spill] sm:$0xff] %v17686_v0  ;;  %21438 = vst [vmem:[#allocation21_spill] sm:$0xff] %v17689_v61  ;;  %v7950_v39 = vmul.f32 %v21439_v3, %v17689_v61  ;;  %13026 = vpow2.f32 %v6759_v4  ;;  %v6219_v48 = vrot.slane %v6218_v15, 4  ;;  %10963 = vrot.lane.b32.xlu0 %v9528_v33, %s13315_s23  ;;  %v6212_v60 = vrot.slane %v6211_v21, 4  ;;  %v17740_v33 = vpop.f32.mrb[148].mxu1 }
 0x557   : > { %v13019_v11 = vpop.eup %13018  ;;  %10911 = vrot.lane.b32.xlu1 %v9527_v57, %s13316_s30  ;;  %v9415_v18 = vcombine.high %v21422_v8, %v21421_v29  ;;  %v9431_v54 = vcombine.high %v21426_v28, %v21425_v59  ;;  %v9447_v51 = vcombine.high %v21428_v50, %v21427_v43  ;;  %v17726_v29 = vrot.slane %v9399_v14, %v21340_v10 }
 0x558   : > { %v17716_v13 = vmul.f32 %v13019_v11, %v17608_v63  ;;  %v6220_v56 = vmax.f32 %v6218_v15, %v6219_v48  ;;  %v17723_v27 = vsel %vm2106_vm4, %v7950_v39, 0.0  ;;  %v6213_v9 = vmax.f32 %v6211_v21, %v6212_v60  ;;  %v21442_v63 = vld [vmem:[#allocation120_spill] sm:$0xff]  ;;  %v17747_v39 = vpop.f32.mrb[149].mxu1 }
 0x559   : > { %v17720_v6 = vpop.eup %13020  ;;  %21441 = vst [vmem:[#allocation104_spill] sm:$0xff] %v17723_v27  ;;  %v17729_v8 = vrot.slane %v9415_v18, %v21340_v10  ;;  %v17738_v4 = vrot.slane %v9431_v54, %v21340_v10  ;;  %v17745_v3 = vrot.slane %v9447_v51, %v21340_v10 }
 0x55a   : > { %21440 = vst [vmem:[#allocation20_spill] sm:$0xff] %v17716_v13  ;;  %v17731_v28 = vpop.eup %13022  ;;  %v7949_v62 = vmul.f32 %v21442_v63, %v17716_v13  ;;  %v7230_v50 = vsel %vm2106_vm4, %v17720_v6, 0.0  ;;  %v6221_v44 = vrot.slane %v6220_v56, 2  ;;  %v6214_v21 = vrot.slane %v6213_v9, 2 }
 0x55b   : > { %v7231_v57 = vrot.slane %v7230_v50, 4  ;;  %v7223_v15 = vsel %vm2106_vm4, %v17731_v28, 0.0  ;;  %v9478_v14 = vcombine.low %v17726_v29, %v17729_v8  ;;  %v9510_v38 = vcombine.low %v17738_v4, %v17745_v3 }
 0x55c   : > { %v17750_v48 = vsel %vm2106_vm4, %v7949_v62, 0.0  ;;  %v7224_v11 = vrot.slane %v7223_v15, 4  ;;  %v6222_v60 = vmax.f32 %v6220_v56, %v6221_v44  ;;  %v6215_v63 = vmax.f32 %v6213_v9, %v6214_v21 }
 0x55d   : > { %v7232_v54 = vadd.f32 %v7231_v57, %v7230_v50  ;;  %v17757_v25 = vpop.eup %13024  ;;  %v9529_v62 = vcombine.high %v17666_v46, %v17670_v42  ;;  %v17765_v50 = vrot.slane %v9478_v14, %v21345_v12  ;;  %v17770_v51 = vrot.slane %v9510_v38, %v21345_v12  ;;  %v21445_v14 = vld [vmem:[#allocation179_spill] sm:$0xff] }
 0x55e   : > { %v7225_v32 = vadd.f32 %v7224_v11, %v7223_v15  ;;  %v6223_v58 = vrot.slane %v6222_v60, 1  ;;  %v7244_v44 = vsel %vm2106_vm4, %v17757_v25, 0.0  ;;  %v6216_v37 = vrot.slane %v6215_v63, 1  ;;  %v17778_v11 = vld [vmem:[%s20180_s9] ss:$0 sm:$0xff] }
 0x55f   : > { %v7233_v56 = vrot.slane %v7232_v54, 2  ;;  %21443 = vst [vmem:[#allocation23_spill] sm:$0xff] %v17765_v50  ;;  %v7245_v21 = vrot.slane %v7244_v44, 4  ;;  %21444 = vst [vmem:[#allocation105_spill] sm:$0xff] %v17770_v51  ;;  %11015 = vrot.lane.b32.xlu1 %v9529_v62, %s21364_s22  ;;  %v17782_v27 = vadd.f32 %v17778_v11, %v21445_v14 }
 0x560   : > { %v17767_v9 = vpop.eup %13026  ;;  %v7226_v57 = vrot.slane %v7225_v32, 2  ;;  %v6224_v18 = vmax.f32 %v6222_v60, %v6223_v58  ;;  %v6217_v42 = vmax.f32 %v6215_v63, %v6216_v37  ;;  %v9531_v37 = vcombine.high %v17765_v50, %v17770_v51  ;;  %v21451_v50 = vld [vmem:[#allocation7_spill] sm:$0xff] }
 0x561   : > { %v7234_v15 = vadd.f32 %v7233_v56, %v7232_v54  ;;  %v7237_v46 = vsel %vm2106_vm4, %v17767_v9, 0.0  ;;  %v7246_v60 = vadd.f32 %v7245_v21, %v7244_v44  ;;  %v6232_v63 = vsel %vm2106_vm4, %v17782_v27, -inf  ;;  %v21446_v44 = vld [vmem:[#allocation92_spill] sm:$0xff]  ;;  %v17795_v21 = vpop.f32.mrb[150].mxu1 }
 0x562   : > { %v7227_v58 = vadd.f32 %v7226_v57, %v7225_v32  ;;  %v7238_v38 = vrot.slane %v7237_v46, 4  ;;  %v6604_v0 = vsub.f32 %v17680_v41, %v6224_v18  ;;  %v6603_v54 = vsub.f32 %v17684_v40, %v6217_v42  ;;  %11067 = vrot.lane.b32.xlu0 %v9531_v37, %s13316_s30 }
 0x563   : > { %v7235_v62 = vrot.slane %v7234_v15, 1  ;;  %v7247_v24 = vrot.slane %v7246_v60, 2  ;;  %v6233_v32 = vrot.slane %v6232_v63, 4  ;;  %v17793_v41 = vadd.f32 %v17778_v11, %v21446_v44 }
 0x564   : > { %v7228_v56 = vrot.slane %v7227_v58, 1  ;;  %v7239_v61 = vadd.f32 %v7238_v38, %v7237_v46  ;;  %v6765_v19 = vmul.f32 1.442695, %v6604_v0  ;;  %v6763_v13 = vmul.f32 1.442695, %v6603_v54  ;;  %v17801_v38 = vpop.f32.mrb[151].mxu1 }
 0x565   : > { %v7236_v14 = vadd.f32 %v7235_v62, %v7234_v15  ;;  %v7248_v18 = vadd.f32 %v7247_v24, %v7246_v60  ;;  %v6234_v42 = vmax.f32 %v6232_v63, %v6233_v32  ;;  %v6225_v0 = vsel %vm2106_vm4, %v17793_v41, -inf  ;;  %v21447_v15 = vld [vmem:[#allocation25_spill] sm:$0xff]  ;;  %v21449_v60 = vld [vmem:[#allocation75_spill] sm:$0xff] }
 0x566   : > { %v7229_v40 = vadd.f32 %v7228_v56, %v7227_v58  ;;  %v7240_v57 = vrot.slane %v7239_v61, 2  ;;  %13028 = vpow2.f32 %v6765_v19  ;;  %v7921_v46 = vmul.f32 %v21447_v15, %v21425_v59  ;;  %v21448_v19 = vld [vmem:[#allocation106_spill] sm:$0xff] }
 0x567   : > { %13030 = vrcp.f32 %v7236_v14  ;;  %v7249_v62 = vrot.slane %v7248_v18, 1  ;;  %v6226_v37 = vrot.slane %v6225_v0, 4  ;;  %v6235_v24 = vrot.slane %v6234_v42, 2 }
 0x568   : > { %13032 = vrcp.f32 %v7229_v40  ;;  %v7241_v54 = vadd.f32 %v7240_v57, %v7239_v61  ;;  %v7922_v58 = vmul.f32 %v21448_v19, %v21427_v43  ;;  %v21450_v63 = vrot.slane %v21449_v60, 2  ;;  %v21453_v61 = vld [vmem:[#allocation77_spill] sm:$0xff] }
 0x569   : > { %13034 = vpow2.f32 %v6763_v13  ;;  %v7250_v14 = vadd.f32 %v7249_v62, %v7248_v18  ;;  %v6227_v44 = vmax.f32 %v6225_v0, %v6226_v37  ;;  %v21452_v59 = vrot.slane %v21451_v50, 2  ;;  %v21454_v13 = vld [vmem:[#allocation158_spill] sm:$0xff] }
 0x56a   : > { %v8119_v56 = vadd.f32 %v21450_v63, %v21449_v60  ;;  %v7242_v32 = vrot.slane %v7241_v54, 1  ;;  %v6236_v40 = vmax.f32 %v6234_v42, %v6235_v24  ;;  %v8132_v57 = vrot.slane %v21453_v61, 2  ;;  %v21458_v60 = vld [vmem:[#allocation8_spill] sm:$0xff] }
 0x56b   : > { %v8126_v15 = vadd.f32 %v21452_v59, %v21451_v50  ;;  %v21455_v7 = vrot.slane %v21454_v13, 4  ;;  %13036 = vrcp.f32 %v7250_v14  ;;  %v6228_v19 = vrot.slane %v6227_v44, 2 }
 0x56c   : > { %v8120_v51 = vrot.slane %v8119_v56, 1  ;;  %v7243_v43 = vadd.f32 %v7242_v32, %v7241_v54  ;;  %v21456_v18 = vrot.slane %v17750_v48, 4  ;;  %v6237_v62 = vrot.slane %v6236_v40, 1 }
 0x56d   : > { %v8138_v47 = vadd.f32 %v21455_v7, %v21454_v13  ;;  %v8127_v23 = vrot.slane %v8126_v15, 1  ;;  %v8133_v50 = vadd.f32 %v8132_v57, %v21453_v61  ;;  %v6229_v37 = vmax.f32 %v6227_v44, %v6228_v19 }
 0x56e   : > { %v17818_v0 = vadd.f32 %v21456_v18, %v17750_v48  ;;  %13038 = vrcp.f32 %v7243_v43  ;;  %v8121_v24 = vadd.f32 %v8120_v51, %v8119_v56  ;;  %v8143_v63 = vsel %vm2106_vm4, %v21458_v60, 0.0  ;;  %v21459_v48 = vld [vmem:[#allocation159_spill] sm:$0xff] }
 0x56f   : > { %v8139_v42 = vrot.slane %v8138_v47, 2  ;;  %v6238_v7 = vmax.f32 %v6236_v40, %v6237_v62  ;;  %v8134_v14 = vrot.slane %v8133_v50, 1  ;;  %v8144_v32 = vrot.slane %v8143_v63, 4 }
 0x570   : > { %21457 = vst [vmem:[#allocation22_spill] sm:$0xff] %v17818_v0  ;;  %v17823_v59 = vpop.eup %13028  ;;  %v6230_v13 = vrot.slane %v6229_v37, 1  ;;  %v8128_v30 = vadd.f32 %v8127_v23, %v8126_v15  ;;  %v8150_v18 = vsel %vm2106_vm4, %v21459_v48, 0.0  ;;  %v8157_v61 = vsel %vm2106_vm4, %v7921_v46, 0.0 }
 0x571   : > { %v8140_v54 = vadd.f32 %v8139_v42, %v8138_v47  ;;  %v13031_v57 = vpop.eup %13030  ;;  %v7258_v51 = vsel %vm2106_vm4, %v17823_v59, 0.0  ;;  %v6606_v56 = vsub.f32 %v17782_v27, %v6238_v7  ;;  %v8135_v44 = vadd.f32 %v8134_v14, %v8133_v50  ;;  %v21462_v27 = vld [vmem:[#allocation39_spill] sm:$0xff] }
 0x572   : > { %v8164_v40 = vsel %vm2106_vm4, %v7922_v58, 0.0  ;;  %v13033_v47 = vpop.eup %13032  ;;  %v17833_v43 = vmul.f32 %v13031_v57, %v17720_v6  ;;  %v7259_v19 = vrot.slane %v7258_v51, 4  ;;  %v6231_v23 = vmax.f32 %v6229_v37, %v6230_v13  ;;  %v21464_v37 = vld [vmem:[#allocation121_spill] sm:$0xff] }
 0x573   : > { %v8145_v15 = vadd.f32 %v8144_v32, %v8143_v63  ;;  %v17835_v62 = vpop.eup %13034  ;;  %v17838_v46 = vmul.f32 %v13033_v47, %v17731_v28  ;;  %v6769_v42 = vmul.f32 1.442695, %v6606_v56  ;;  %v8141_v60 = vrot.slane %v8140_v54, 1 }
 0x574   : > { %21460 = vst [vmem:[#allocation107_spill] sm:$0xff] %v17833_v43  ;;  %v8151_v48 = vrot.slane %v8150_v18, 4  ;;  %v17842_v50 = vmul.f32 %v21462_v27, %v17833_v43  ;;  %v7260_v58 = vadd.f32 %v7259_v19, %v7258_v51  ;;  %v7251_v6 = vsel %vm2106_vm4, %v17835_v62, 0.0  ;;  %v17851_v27 = vpop.f32.mrb[152].mxu1 }
 0x575   : > { %21461 = vst [vmem:[#allocation24_spill] sm:$0xff] %v17838_v46  ;;  %v6605_v7 = vsub.f32 %v17793_v41, %v6231_v23  ;;  %v17849_v63 = vmul.f32 %v21464_v37, %v17838_v46  ;;  %v7252_v14 = vrot.slane %v7251_v6, 4  ;;  %13040 = vpow2.f32 %v6769_v42  ;;  %v13037_v32 = vpop.eup %13036  ;;  %v17853_v43 = vpop.f32.mrb[153].mxu1 }
 0x576   : > { %21463 = vst [vmem:[#allocation108_spill] sm:$0xff] %v17842_v50  ;;  %v8146_v28 = vrot.slane %v8145_v15, 2  ;;  %v7261_v13 = vrot.slane %v7260_v58, 2  ;;  %v8152_v56 = vadd.f32 %v8151_v48, %v8150_v18  ;;  %v8158_v47 = vrot.slane %v8157_v61, 4 }
 0x577   : > { %21465 = vst [vmem:[#allocation27_spill] sm:$0xff] %v17849_v63  ;;  %v6767_v57 = vmul.f32 1.442695, %v6605_v7  ;;  %v7253_v51 = vadd.f32 %v7252_v14, %v7251_v6  ;;  %v8142_v19 = vadd.f32 %v8141_v60, %v8140_v54  ;;  %v8165_v0 = vrot.slane %v8164_v40, 4 }
 0x578   : > { %v8147_v50 = vadd.f32 %v8146_v28, %v8145_v15  ;;  %v17855_v41 = vpop.eup %13038  ;;  %v7262_v23 = vadd.f32 %v7261_v13, %v7260_v58  ;;  %v8153_v37 = vrot.slane %v8152_v56, 2  ;;  %v8159_v42 = vadd.f32 %v8158_v47, %v8157_v61 }
 0x579   : > { %13042 = vpow2.f32 %v6767_v57  ;;  %v17858_v63 = vmul.f32 %v13037_v32, %v17757_v25  ;;  %v7254_v7 = vrot.slane %v7253_v51, 2  ;;  %v8166_v48 = vadd.f32 %v8165_v0, %v8164_v40 }
 0x57a   : > { %v8148_v18 = vrot.slane %v8147_v50, 1  ;;  %v7263_v46 = vrot.slane %v7262_v23, 1  ;;  %v8154_v26 = vadd.f32 %v8153_v37, %v8152_v56  ;;  %v8160_v6 = vrot.slane %v8159_v42, 2 }
 0x57b   : > { %21466 = vst [vmem:[#allocation109_spill] sm:$0xff] %v17858_v63  ;;  %v8867_v54 = vsel %vm8846_vm5, %v8128_v30, %v8121_v24  ;;  %v7255_v15 = vadd.f32 %v7254_v7, %v7253_v51  ;;  %v8167_v14 = vrot.slane %v8166_v48, 2  ;;  %v9479_v0 = vcombine.high %v17726_v29, %v17729_v8 }
 0x57c   : > { %v8149_v60 = vadd.f32 %v8148_v18, %v8147_v50  ;;  %v8868_v28 = vsel %vm8848_vm6, %v8135_v44, %v8867_v54  ;;  %v7264_v58 = vadd.f32 %v7263_v46, %v7262_v23  ;;  %v8155_v13 = vrot.slane %v8154_v26, 1 }
 0x57d   : > { %v8161_v57 = vadd.f32 %v8160_v6, %v8159_v42  ;;  %v8869_v61 = vsel %vm8850_vm7, %v8142_v19, %v8868_v28  ;;  %v7256_v25 = vrot.slane %v7255_v15, 1  ;;  %v8168_v32 = vadd.f32 %v8167_v14, %v8166_v48 }
 0x57e   : > { %v8870_v47 = vsel %vm8852_vm8, %v8149_v60, %v8869_v61  ;;  %13044 = vrcp.f32 %v7264_v58  ;;  %v8156_v40 = vadd.f32 %v8155_v13, %v8154_v26  ;;  %v9511_v24 = vcombine.high %v17738_v4, %v17745_v3  ;;  %v21468_v61 = vld [vmem:[#allocation162_spill] sm:$0xff] }
 0x57f   : > { %v8162_v30 = vrot.slane %v8161_v57, 1  ;;  %v17868_v50 = vpop.eup %13040  ;;  %v7257_v44 = vadd.f32 %v7256_v25, %v7255_v15  ;;  %v8169_v46 = vrot.slane %v8168_v32, 1  ;;  %v9493_v56 = vrot.slane %v9479_v0, %v21345_v12 }
 0x580   : > { %v17873_v51 = vadd.f32 %v17778_v11, %v17435_v17  ;;  %v7272_v19 = vsel %vm2106_vm4, %v17868_v50, 0.0  ;;  %v8871_v26 = vsel %vm8854_vm9, %v8156_v40, %v8870_v47  ;;  %v9525_v8 = vrot.slane %v9511_v24, %v21345_v12  ;;  %v21470_v47 = vld [vmem:[#allocation80_spill] sm:$0xff] }
 0x581   : > { %v8163_v29 = vadd.f32 %v8162_v30, %v8161_v57  ;;  %13046 = vrcp.f32 %v7257_v44  ;;  %v7273_v4 = vrot.slane %v7272_v19, 4  ;;  %v8170_v3 = vadd.f32 %v8169_v46, %v8168_v32  ;;  %v21467_v57 = vld [vmem:[#allocation165_spill] sm:$0xff]  ;;  %v21469_v32 = vld [vmem:[#allocation164_spill] sm:$0xff] }
 0x582   : > { %v6246_v23 = vsel %vm2106_vm4, %v17873_v51, -inf  ;;  %v9533_v17 = vcombine.high %v9493_v56, %v9525_v8  ;;  %v9532_v7 = vcombine.low %v9493_v56, %v9525_v8  ;;  %v17889_v15 = vadd.f32 %v17778_v11, %v17446_v55 }
 0x583   : > { %v17881_v37 = vpop.eup %13042  ;;  %v8872_v42 = vsel %vm8856_vm10, %v8163_v29, %v8871_v26  ;;  %v6247_v18 = vrot.slane %v6246_v23, 4  ;;  %v7274_v48 = vadd.f32 %v7273_v4, %v7272_v19  ;;  %v17895_v28 = vadd.f32 %v17778_v11, %v17476_v31 }
 0x584   : > { %v7265_v6 = vsel %vm2106_vm4, %v17881_v37, 0.0  ;;  %v8873_v54 = vsel %vm8858_vm11, %v8170_v3, %v8872_v42  ;;  %11171 = vrot.lane.b32.xlu0 %v9533_v17, %s21364_s22  ;;  %v17899_v58 = vadd.f32 %v17778_v11, %v17482_v22  ;;  %11119 = vrot.lane.b32.xlu1 %v9532_v7, %s13315_s23  ;;  %v6239_v55 = vsel %vm2106_vm4, %v17889_v15, -inf }
 0x585   : > { %v7266_v60 = vrot.slane %v7265_v6, 4  ;;  %12696 = vmatmul.mubr.msk.f32.gmra.mrb[160].mxu0 %vm2106_vm4, %v8873_v54  ;;  %v6248_v14 = vmax.f32 %v6246_v23, %v6247_v18  ;;  %v7275_v13 = vrot.slane %v7274_v48, 2  ;;  %v9534_v25 = vcombine.low %v21468_v61, %v21467_v57 }
 0x586   : > { %v9550_v0 = vcombine.low %v21470_v47, %v21469_v32  ;;  %12698 = vmatprep.mubr.msk.f32.mxu0 %vm13313_vm0, %v21386_v16  ;;  %v6240_v30 = vrot.slane %v6239_v55, 4  ;;  %v6260_v22 = vsel %vm2106_vm4, %v17895_v28, -inf  ;;  %v6253_v46 = vsel %vm2106_vm4, %v17899_v58, -inf }
 0x587   : > { %v7267_v31 = vadd.f32 %v7266_v60, %v7265_v6  ;;  %v6249_v40 = vrot.slane %v6248_v14, 2  ;;  %v7276_v24 = vadd.f32 %v7275_v13, %v7274_v48  ;;  %v6261_v44 = vrot.slane %v6260_v22, 4  ;;  %v21472_v60 = vld [vmem:[#allocation41_spill] sm:$0xff] }
 0x588   : > { %v9542_v56 = vrot.slane %v9534_v25, %v21340_v10  ;;  %v13045_v19 = vpop.eup %13044  ;;  %v6241_v8 = vmax.f32 %v6239_v55, %v6240_v30  ;;  %v6254_v4 = vrot.slane %v6253_v46, 4  ;;  %v9558_v17 = vrot.slane %v9550_v0, %v21340_v10  ;;  %v21474_v55 = vld [vmem:[#allocation84_spill] sm:$0xff] }
 0x589   : > { %v7268_v29 = vrot.slane %v7267_v31, 2  ;;  %v6250_v26 = vmax.f32 %v6248_v14, %v6249_v40  ;;  %v17916_v3 = vmul.f32 %v13045_v19, %v17823_v59  ;;  %v7277_v23 = vrot.slane %v7276_v24, 1  ;;  %v21473_v14 = vld [vmem:[#allocation85_spill] sm:$0xff] }
 0x58a   : > { %v6262_v42 = vmax.f32 %v6260_v22, %v6261_v44  ;;  %v6242_v48 = vrot.slane %v6241_v8, 2  ;;  %v6255_v6 = vmax.f32 %v6253_v46, %v6254_v4  ;;  %v9566_v40 = vcombine.low %v21474_v55, %v21473_v14 }
 0x58b   : > { %21471 = vst [vmem:[#allocation65_spill] sm:$0xff] %v17916_v3  ;;  %v7269_v7 = vadd.f32 %v7268_v29, %v7267_v31  ;;  %v6251_v18 = vrot.slane %v6250_v26, 1  ;;  %v13047_v54 = vpop.eup %13046  ;;  %v7956_v13 = vmul.f32 %v21472_v60, %v17916_v3  ;;  %v7278_v25 = vadd.f32 %v7277_v23, %v7276_v24  ;;  %v21476_v29 = vld [vmem:[#allocation123_spill] sm:$0xff]  ;;  %v21497_v3 = vld [vmem:[#allocation166_spill] sm:$0xff] }
 0x58c   : > { %v6263_v63 = vrot.slane %v6262_v42, 2  ;;  %v17924_v59 = vmul.f32 %v13047_v54, %v17835_v62  ;;  %v6243_v44 = vmax.f32 %v6241_v8, %v6242_v48  ;;  %v6256_v46 = vrot.slane %v6255_v6, 2 }
 0x58d   : > { %v7270_v30 = vrot.slane %v7269_v7, 1  ;;  %v6252_v22 = vmax.f32 %v6250_v26, %v6251_v18  ;;  %v8402_v0 = vsel %vm2106_vm4, %v7956_v13, 0.0  ;;  %13048 = vrcp.f32 %v7278_v25 }
 0x58e   : > { %21475 = vst [vmem:[#allocation147_spill] sm:$0xff] %v17924_v59  ;;  %v6264_v31 = vmax.f32 %v6262_v42, %v6263_v63  ;;  %v8403_v19 = vrot.slane %v8402_v0, 4  ;;  %v7955_v4 = vmul.f32 %v21476_v29, %v17924_v59  ;;  %v17932_v60 = vmul.f32 %v17855_v41, %v17767_v9 }
 0x58f   : > { %v7271_v24 = vadd.f32 %v7270_v30, %v7269_v7  ;;  %v6608_v23 = vsub.f32 %v17873_v51, %v6252_v22  ;;  %v6244_v62 = vrot.slane %v6243_v44, 1  ;;  %v6257_v26 = vmax.f32 %v6255_v6, %v6256_v46  ;;  %v21479_v7 = vld [vmem:[#allocation168_spill] sm:$0xff]  ;;  %v21480_v30 = vld [vmem:[#allocation10_spill] sm:$0xff] }
 0x590   : > { %21477 = vst [vmem:[#allocation12_spill] sm:$0xff] %v17932_v60  ;;  %v6265_v54 = vrot.slane %v6264_v31, 1  ;;  %v17934_v8 = vadd.f32 %v8403_v19, %v8402_v0  ;;  %v8395_v18 = vsel %vm2106_vm4, %v7955_v4, 0.0  ;;  %v9574_v51 = vrot.slane %v9566_v40, %v21340_v10 }
 0x591   : > { %13050 = vrcp.f32 %v7271_v24  ;;  %v6773_v63 = vmul.f32 1.442695, %v6608_v23  ;;  %v8396_v42 = vrot.slane %v8395_v18, 4  ;;  %v6245_v48 = vmax.f32 %v6243_v44, %v6244_v62 }
 0x592   : > { %21478 = vst [vmem:[#allocation68_spill] sm:$0xff] %v17934_v8  ;;  %v6266_v13 = vmax.f32 %v6264_v31, %v6265_v54  ;;  %v6258_v25 = vrot.slane %v6257_v26, 1  ;;  %v9582_v9 = vcombine.low %v21480_v30, %v21479_v7  ;;  %v9599_v41 = vcombine.high %v9542_v56, %v9558_v17 }
 0x593   : > { %13052 = vpow2.f32 %v6773_v63  ;;  %v6607_v6 = vsub.f32 %v17889_v15, %v6245_v48  ;;  %v17943_v19 = vadd.f32 %v8396_v42, %v8395_v18  ;;  %v9598_v31 = vcombine.low %v9542_v56, %v9558_v17 }
 0x594   : > { %v6610_v0 = vsub.f32 %v17895_v28, %v6266_v13  ;;  %v6259_v46 = vmax.f32 %v6257_v26, %v6258_v25  ;;  %v9590_v44 = vrot.slane %v9582_v9, %v21340_v10  ;;  %v17948_v29 = vadd.f32 %v17778_v11, %v17519_v45  ;;  %v17972_v25 = vpop.f32.mrb[154].mxu1 }
 0x595   : > { %21481 = vst [vmem:[#allocation66_spill] sm:$0xff] %v17943_v19  ;;  %v6771_v40 = vmul.f32 1.442695, %v6607_v6  ;;  %v9613_v23 = vrot.slane %v9599_v41, %v21345_v12  ;;  %v17953_v15 = vrot.slane %v9598_v31, %v21345_v12  ;;  %v17959_v45 = vadd.f32 %v17778_v11, %v17521_v5 }
 0x596   : > { %v6777_v4 = vmul.f32 1.442695, %v6610_v0  ;;  %v6609_v24 = vsub.f32 %v17899_v58, %v6259_v46  ;;  %v9631_v62 = vcombine.high %v9574_v51, %v9590_v44  ;;  %v9630_v28 = vcombine.low %v9574_v51, %v9590_v44  ;;  %v17978_v0 = vpop.f32.mrb[155].mxu1 }
 0x597   : > { %21482 = vst [vmem:[#allocation16_spill] sm:$0xff] %v17953_v15  ;;  %v6274_v54 = vsel %vm2106_vm4, %v17948_v29, -inf  ;;  %v13049_v26 = vpop.eup %13048  ;;  %13054 = vpow2.f32 %v6771_v40  ;;  %v6267_v48 = vsel %vm2106_vm4, %v17959_v45, -inf  ;;  %v9535_v13 = vcombine.high %v21468_v61, %v21467_v57 }
 0x598   : > { %v6775_v56 = vmul.f32 1.442695, %v6609_v24  ;;  %v6275_v17 = vrot.slane %v6274_v54, 4  ;;  %v17962_v58 = vmul.f32 %v13049_v26, %v17868_v50  ;;  %13056 = vpow2.f32 %v6777_v4  ;;  %v21485_v50 = vld [vmem:[#allocation40_spill] sm:$0xff]  ;;  %v18004_v26 = vpop.f32.mrb[156].mxu1 }
 0x599   : > { %v9645_v18 = vrot.slane %v9631_v62, %v21345_v12  ;;  %v17966_v63 = vrot.slane %v9630_v28, %v21345_v12  ;;  %v6268_v6 = vrot.slane %v6267_v48, 4  ;;  %v17984_v31 = vrot.slane %v9535_v13, %v21340_v10 }
 0x59a   : > { %21483 = vst [vmem:[#allocation29_spill] sm:$0xff] %v17962_v58  ;;  %13058 = vpow2.f32 %v6775_v56  ;;  %v6276_v42 = vmax.f32 %v6274_v54, %v6275_v17  ;;  %v7958_v51 = vmul.f32 %v21485_v50, %v17962_v58  ;;  %v9551_v57 = vcombine.high %v21470_v47, %v21469_v32  ;;  %v21488_v32 = vld [vmem:[#allocation124_spill] sm:$0xff] }
 0x59b   : > { %21484 = vst [vmem:[#allocation111_spill] sm:$0xff] %v17966_v63  ;;  %v13051_v5 = vpop.eup %13050  ;;  %v9664_v9 = vcombine.low %v9613_v23, %v9645_v18  ;;  %v9663_v41 = vcombine.high %v17953_v15, %v17966_v63  ;;  %v6269_v4 = vmax.f32 %v6267_v48, %v6268_v6  ;;  %v9583_v24 = vcombine.high %v21480_v30, %v21479_v7  ;;  %v18012_v30 = vpop.f32.mrb[157].mxu1 }
 0x59c   : > { %v17981_v46 = vmul.f32 %v13051_v5, %v17881_v37  ;;  %v6277_v44 = vrot.slane %v6276_v42, 2  ;;  %v9567_v37 = vcombine.high %v21474_v55, %v21473_v14  ;;  %v17998_v62 = vsel %vm2106_vm4, %v7958_v51, 0.0 }
 0x59d   : > { %v17988_v61 = vpop.eup %13052  ;;  %10965 = vrot.lane.b32.xlu1 %v9664_v9, %s13315_s23  ;;  %10913 = vrot.lane.b32.xlu0 %v9663_v41, %s13316_s30  ;;  %21487 = vst [vmem:[#allocation28_spill] sm:$0xff] %v17998_v62  ;;  %v6270_v17 = vrot.slane %v6269_v4, 2  ;;  %v18007_v48 = vrot.slane %v9551_v57, %v21340_v10  ;;  %v18018_v50 = vrot.slane %v9583_v24, %v21340_v10 }
 0x59e   : > { %21486 = vst [vmem:[#allocation71_spill] sm:$0xff] %v17981_v46  ;;  %v7957_v47 = vmul.f32 %v21488_v32, %v17981_v46  ;;  %v7286_v28 = vsel %vm2106_vm4, %v17988_v61, 0.0  ;;  %v6278_v54 = vmax.f32 %v6276_v42, %v6277_v44  ;;  %v18010_v55 = vrot.slane %v9567_v37, %v21340_v10 }
 0x59f   : > { %v7287_v56 = vrot.slane %v7286_v28, 4  ;;  %v9665_v42 = vcombine.high %v9613_v23, %v9645_v18  ;;  %v6271_v41 = vmax.f32 %v6269_v4, %v6270_v17  ;;  %v9614_v6 = vcombine.low %v17984_v31, %v18007_v48 }
 0x5a0   : > { %v18015_v13 = vsel %vm2106_vm4, %v7957_v47, 0.0  ;;  %v6279_v5 = vrot.slane %v6278_v54, 1  ;;  %v9646_v32 = vcombine.low %v18010_v55, %v18018_v50  ;;  %v18031_v23 = vadd.f32 %v17778_v11, %v17571_v34 }
 0x5a1   : > { %v7288_v9 = vadd.f32 %v7287_v56, %v7286_v28  ;;  %v18023_v44 = vpop.eup %13054  ;;  %11017 = vrot.lane.b32.xlu0 %v9665_v42, %s21364_s22  ;;  %v6272_v47 = vrot.slane %v6271_v41, 1  ;;  %v18039_v28 = vadd.f32 %v17778_v11, %v17578_v36 }
 0x5a2   : > { %v6280_v37 = vmax.f32 %v6278_v54, %v6279_v5  ;;  %v18033_v18 = vpop.eup %13056  ;;  %v7279_v24 = vsel %vm2106_vm4, %v18023_v44, 0.0  ;;  %v18047_v5 = vrot.slane %v9614_v6, %v21345_v12  ;;  %v18052_v63 = vrot.slane %v9646_v32, %v21345_v12 }
 0x5a3   : > { %v7289_v4 = vrot.slane %v7288_v9, 2  ;;  %v7280_v56 = vrot.slane %v7279_v24, 4  ;;  %v7300_v17 = vsel %vm2106_vm4, %v18033_v18, 0.0  ;;  %v6273_v40 = vmax.f32 %v6271_v41, %v6272_v47 }
 0x5a4   : > { %v18041_v54 = vpop.eup %13058  ;;  %v6612_v34 = vsub.f32 %v17948_v29, %v6280_v37  ;;  %21489 = vst [vmem:[#allocation112_spill] sm:$0xff] %v18047_v5  ;;  %v7301_v51 = vrot.slane %v7300_v17, 4  ;;  %21490 = vst [vmem:[#allocation5_spill] sm:$0xff] %v18052_v63  ;;  %v6288_v29 = vsel %vm2106_vm4, %v18031_v23, -inf  ;;  %v9667_v37 = vcombine.high %v18047_v5, %v18052_v63  ;;  %v21493_v63 = vld [vmem:[#allocation81_spill] sm:$0xff] }
 0x5a5   : > { %v7290_v42 = vadd.f32 %v7289_v4, %v7288_v9  ;;  %v7293_v22 = vsel %vm2106_vm4, %v18041_v54, 0.0  ;;  %v7281_v57 = vadd.f32 %v7280_v56, %v7279_v24  ;;  %v6611_v19 = vsub.f32 %v17959_v45, %v6273_v40  ;;  %v21491_v40 = vld [vmem:[#allocation110_spill] sm:$0xff] }
 0x5a6   : > { %v7294_v36 = vrot.slane %v7293_v22, 4  ;;  %v6781_v15 = vmul.f32 1.442695, %v6612_v34  ;;  %v7302_v8 = vadd.f32 %v7301_v51, %v7300_v17  ;;  %v6289_v47 = vrot.slane %v6288_v29, 4  ;;  %11069 = vrot.lane.b32.xlu1 %v9667_v37, %s13316_s30  ;;  %v18064_v17 = vpop.f32.mrb[158].mxu1 }
 0x5a7   : > { %v7291_v62 = vrot.slane %v7290_v42, 1  ;;  %v7282_v6 = vrot.slane %v7281_v57, 2  ;;  %v6779_v24 = vmul.f32 1.442695, %v6611_v19  ;;  %v6281_v45 = vsel %vm2106_vm4, %v18039_v28, -inf }
 0x5a8   : > { %v7295_v9 = vadd.f32 %v7294_v36, %v7293_v22  ;;  %13060 = vpow2.f32 %v6781_v15  ;;  %v7303_v4 = vrot.slane %v7302_v8, 2  ;;  %v7929_v51 = vmul.f32 %v21491_v40, %v21473_v14 }
 0x5a9   : > { %v7292_v41 = vadd.f32 %v7291_v62, %v7290_v42  ;;  %v7283_v56 = vadd.f32 %v7282_v6, %v7281_v57  ;;  %v6290_v15 = vmax.f32 %v6288_v29, %v6289_v47  ;;  %v6282_v34 = vrot.slane %v6281_v45, 4  ;;  %v18066_v62 = vpop.f32.mrb[159].mxu1  ;;  %v21492_v57 = vld [vmem:[#allocation26_spill] sm:$0xff]  ;;  %v21495_v29 = vld [vmem:[#allocation163_spill] sm:$0xff] }
 0x5aa   : > { %v7296_v32 = vrot.slane %v7295_v9, 2  ;;  %v7304_v22 = vadd.f32 %v7303_v4, %v7302_v8  ;;  %v18070_v36 = vmul.f32 %v21492_v57, %v21479_v7  ;;  %v21494_v14 = vrot.slane %v21493_v63, 2 }
 0x5ab   : > { %13062 = vrcp.f32 %v7292_v41  ;;  %v7284_v19 = vrot.slane %v7283_v56, 1  ;;  %v6291_v37 = vrot.slane %v6290_v15, 2  ;;  %v6283_v5 = vmax.f32 %v6281_v45, %v6282_v34 }
 0x5ac   : > { %v7297_v42 = vadd.f32 %v7296_v32, %v7295_v9  ;;  %13064 = vpow2.f32 %v6779_v24  ;;  %v7305_v6 = vrot.slane %v7304_v22, 1  ;;  %v8175_v40 = vadd.f32 %v21494_v14, %v21493_v63 }
 0x5ad   : > { %v7285_v41 = vadd.f32 %v7284_v19, %v7283_v56  ;;  %v21496_v4 = vrot.slane %v21495_v29, 2  ;;  %v8188_v9 = vrot.slane %v21497_v3, 2  ;;  %v6292_v32 = vmax.f32 %v6290_v15, %v6291_v37 }
 0x5ae   : > { %v7298_v8 = vrot.slane %v7297_v42, 1  ;;  %v7306_v24 = vadd.f32 %v7305_v6, %v7304_v22  ;;  %v6284_v58 = vrot.slane %v6283_v5, 2  ;;  %v8176_v7 = vrot.slane %v8175_v40, 1  ;;  %v21500_v6 = vld [vmem:[#allocation82_spill] sm:$0xff] }
 0x5af   : > { %v8182_v47 = vadd.f32 %v21496_v4, %v21495_v29  ;;  %13066 = vrcp.f32 %v7285_v41  ;;  %v8189_v45 = vadd.f32 %v8188_v9, %v21497_v3  ;;  %v21498_v63 = vrot.slane %v18015_v13, 4  ;;  %v21502_v29 = vld [vmem:[#allocation167_spill] sm:$0xff] }
 0x5b0   : > { %v7299_v57 = vadd.f32 %v7298_v8, %v7297_v42  ;;  %13068 = vrcp.f32 %v7306_v24  ;;  %v6293_v34 = vrot.slane %v6292_v32, 1  ;;  %v6285_v19 = vmax.f32 %v6283_v5, %v6284_v58 }
 0x5b1   : > { %v8183_v59 = vrot.slane %v8182_v47, 1  ;;  %v18083_v56 = vadd.f32 %v21498_v63, %v18015_v13  ;;  %v8177_v22 = vadd.f32 %v8176_v7, %v8175_v40  ;;  %v21501_v37 = vrot.slane %v21500_v6, 4 }
 0x5b2   : > { %v18085_v14 = vpop.eup %13060  ;;  %13070 = vrcp.f32 %v7299_v57  ;;  %v6294_v41 = vmax.f32 %v6292_v32, %v6293_v34  ;;  %v6286_v8 = vrot.slane %v6285_v19, 1  ;;  %v8199_v13 = vsel %vm2106_vm4, %v21502_v29, 0.0 }
 0x5b3   : > { %21499 = vst [vmem:[#allocation31_spill] sm:$0xff] %v18083_v56  ;;  %v8184_v15 = vadd.f32 %v8183_v59, %v8182_v47  ;;  %v8194_v42 = vadd.f32 %v21501_v37, %v21500_v6  ;;  %v7314_v3 = vsel %vm2106_vm4, %v18085_v14, 0.0  ;;  %v8190_v9 = vrot.slane %v8189_v45, 1  ;;  %v21503_v47 = vld [vmem:[#allocation83_spill] sm:$0xff] }
 0x5b4   : > { %v7315_v4 = vrot.slane %v7314_v3, 4  ;;  %v8200_v5 = vrot.slane %v8199_v13, 4  ;;  %v6614_v40 = vsub.f32 %v18031_v23, %v6294_v41  ;;  %v6287_v59 = vmax.f32 %v6285_v19, %v6286_v8  ;;  %v21505_v41 = vld [vmem:[#allocation44_spill] sm:$0xff] }
 0x5b5   : > { %v8195_v58 = vrot.slane %v8194_v42, 2  ;;  %v13063_v24 = vpop.eup %13062  ;;  %v8206_v7 = vsel %vm2106_vm4, %v21503_v47, 0.0  ;;  %v8213_v57 = vsel %vm2106_vm4, %v7929_v51, 0.0 }
 0x5b6   : > { %v18098_v63 = vpop.eup %13064  ;;  %v18101_v32 = vmul.f32 %v13063_v24, %v17988_v61  ;;  %v7316_v34 = vadd.f32 %v7315_v4, %v7314_v3  ;;  %v8201_v37 = vadd.f32 %v8200_v5, %v8199_v13  ;;  %v6785_v56 = vmul.f32 1.442695, %v6614_v40 }
 0x5b7   : > { %v8196_v6 = vadd.f32 %v8195_v58, %v8194_v42  ;;  %v7307_v29 = vsel %vm2106_vm4, %v18098_v63, 0.0  ;;  %v6613_v23 = vsub.f32 %v18039_v28, %v6287_v59  ;;  %v8207_v19 = vrot.slane %v8206_v7, 4 }
 0x5b8   : > { %21504 = vst [vmem:[#allocation63_spill] sm:$0xff] %v18101_v32  ;;  %v18108_v8 = vmul.f32 %v21505_v41, %v18101_v32  ;;  %v7317_v51 = vrot.slane %v7316_v34, 2  ;;  %v7308_v47 = vrot.slane %v7307_v29, 4  ;;  %13072 = vpow2.f32 %v6785_v56 }
 0x5b9   : > { %v8197_v46 = vrot.slane %v8196_v6, 1  ;;  %v6783_v61 = vmul.f32 1.442695, %v6613_v23  ;;  %v8202_v24 = vrot.slane %v8201_v37, 2  ;;  %v8208_v3 = vadd.f32 %v8207_v19, %v8206_v7  ;;  %v13067_v42 = vpop.eup %13066 }
 0x5ba   : > { %21506 = vst [vmem:[#allocation152_spill] sm:$0xff] %v18108_v8  ;;  %v7318_v13 = vadd.f32 %v7317_v51, %v7316_v34  ;;  %v7309_v4 = vadd.f32 %v7308_v47, %v7307_v29  ;;  %v8191_v58 = vadd.f32 %v8190_v9, %v8189_v45  ;;  %v8214_v5 = vrot.slane %v8213_v57, 4  ;;  %v13069_v40 = vpop.eup %13068  ;;  %v18113_v8 = vpop.f32.mrb[160].mxu1  ;;  %v21508_v45 = vld [vmem:[#allocation125_spill] sm:$0xff] }
 0x5bb   : > { %v18111_v28 = vmul.f32 %v13067_v42, %v18023_v44  ;;  %13074 = vpow2.f32 %v6783_v61  ;;  %v8203_v59 = vadd.f32 %v8202_v24, %v8201_v37  ;;  %v8209_v41 = vrot.slane %v8208_v3, 2  ;;  %v18117_v19 = vpop.f32.mrb[161].mxu1 }
 0x5bc   : > { %v18115_v32 = vpop.eup %13070  ;;  %v7319_v56 = vrot.slane %v7318_v13, 1  ;;  %v7310_v23 = vrot.slane %v7309_v4, 2  ;;  %v8198_v60 = vadd.f32 %v8197_v46, %v8196_v6  ;;  %v8215_v7 = vadd.f32 %v8214_v5, %v8213_v57 }
 0x5bd   : > { %21507 = vst [vmem:[#allocation149_spill] sm:$0xff] %v18111_v28  ;;  %v18121_v9 = vmul.f32 %v21508_v45, %v18111_v28  ;;  %v18124_v44 = vmul.f32 %v13069_v40, %v18033_v18  ;;  %v8204_v34 = vrot.slane %v8203_v59, 1  ;;  %v8210_v37 = vadd.f32 %v8209_v41, %v8208_v3 }
 0x5be   : > { %v7320_v29 = vadd.f32 %v7319_v56, %v7318_v13  ;;  %v7311_v51 = vadd.f32 %v7310_v23, %v7309_v4  ;;  %v8216_v47 = vrot.slane %v8215_v7, 2  ;;  %v8220_v61 = vsel %vm2106_vm4, %v18070_v36, 0.0 }
 0x5bf   : > { %21509 = vst [vmem:[#allocation67_spill] sm:$0xff] %v18121_v9  ;;  %21510 = vst [vmem:[#allocation150_spill] sm:$0xff] %v18124_v44  ;;  %v8205_v24 = vadd.f32 %v8204_v34, %v8203_v59  ;;  %v8211_v46 = vrot.slane %v8210_v37, 1  ;;  %v8221_v57 = vrot.slane %v8220_v61, 4  ;;  %v8874_v6 = vsel %vm8846_vm5, %v8184_v15, %v8177_v22 }
 0x5c0   : > { %13076 = vrcp.f32 %v7320_v29  ;;  %v7312_v42 = vrot.slane %v7311_v51, 1  ;;  %v8217_v5 = vadd.f32 %v8216_v47, %v8215_v7  ;;  %v8875_v45 = vsel %vm8848_vm6, %v8191_v58, %v8874_v6 }
 0x5c1   : > { %v8212_v18 = vadd.f32 %v8211_v46, %v8210_v37  ;;  %v8222_v40 = vadd.f32 %v8221_v57, %v8220_v61  ;;  %v8876_v3 = vsel %vm8850_vm7, %v8198_v60, %v8875_v45  ;;  %v9615_v13 = vcombine.high %v17984_v31, %v18007_v48  ;;  %v21512_v45 = vld [vmem:[#allocation171_spill] sm:$0xff] }
 0x5c2   : > { %v7313_v4 = vadd.f32 %v7312_v42, %v7311_v51  ;;  %v8218_v41 = vrot.slane %v8217_v5, 1  ;;  %v8877_v36 = vsel %vm8852_vm8, %v8205_v24, %v8876_v3  ;;  %v9647_v59 = vcombine.high %v18010_v55, %v18018_v50  ;;  %v18136_v22 = vpop.eup %13072 }
 0x5c3   : > { %v8223_v15 = vrot.slane %v8222_v40, 2  ;;  %v8878_v56 = vsel %vm8854_vm9, %v8212_v18, %v8877_v36  ;;  %v9629_v58 = vrot.slane %v9615_v13, %v21345_v12  ;;  %v18142_v60 = vadd.f32 %v17778_v11, %v17702_v35 }
 0x5c4   : > { %13078 = vrcp.f32 %v7313_v4  ;;  %v7328_v31 = vsel %vm2106_vm4, %v18136_v22, 0.0  ;;  %v8219_v48 = vadd.f32 %v8218_v41, %v8217_v5  ;;  %v9661_v23 = vrot.slane %v9647_v59, %v21345_v12  ;;  %v21511_v5 = vld [vmem:[#allocation87_spill] sm:$0xff] }
 0x5c5   : > { %v18147_v7 = vpop.eup %13074  ;;  %v7329_v55 = vrot.slane %v7328_v31, 4  ;;  %v8224_v50 = vadd.f32 %v8223_v15, %v8222_v40  ;;  %v6302_v34 = vsel %vm2106_vm4, %v18142_v60, -inf  ;;  %v18153_v37 = vadd.f32 %v17778_v11, %v17712_v2 }
 0x5c6   : > { %v7321_v35 = vsel %vm2106_vm4, %v18147_v7, 0.0  ;;  %v8879_v29 = vsel %vm8856_vm10, %v8219_v48, %v8878_v56  ;;  %v9669_v51 = vcombine.high %v9629_v58, %v9661_v23  ;;  %v9668_v47 = vcombine.low %v9629_v58, %v9661_v23 }
 0x5c7   : > { %v7330_v61 = vadd.f32 %v7329_v55, %v7328_v31  ;;  %v7322_v24 = vrot.slane %v7321_v35, 4  ;;  %v8225_v46 = vrot.slane %v8224_v50, 1  ;;  %v6303_v57 = vrot.slane %v6302_v34, 4 }
 0x5c8   : > { %11173 = vrot.lane.b32.xlu1 %v9669_v51, %s21364_s22  ;;  %11121 = vrot.lane.b32.xlu0 %v9668_v47, %s13315_s23  ;;  %v6295_v6 = vsel %vm2106_vm4, %v18153_v37, -inf  ;;  %v18164_v2 = vadd.f32 %v17778_v11, %v17740_v33  ;;  %v18168_v42 = vadd.f32 %v17778_v11, %v17747_v39  ;;  %v9670_v18 = vcombine.low %v21512_v45, %v21511_v5  ;;  %v21515_v47 = vld [vmem:[#allocation173_spill] sm:$0xff] }
 0x5c9   : > { %v7331_v40 = vrot.slane %v7330_v61, 2  ;;  %v7323_v3 = vadd.f32 %v7322_v24, %v7321_v35  ;;  %v8226_v13 = vadd.f32 %v8225_v46, %v8224_v50  ;;  %v6304_v4 = vmax.f32 %v6302_v34, %v6303_v57  ;;  %v21514_v50 = vld [vmem:[#allocation46_spill] sm:$0xff]  ;;  %v21516_v24 = vld [vmem:[#allocation169_spill] sm:$0xff] }
 0x5ca   : > { %v13077_v41 = vpop.eup %13076  ;;  %v6296_v36 = vrot.slane %v6295_v6, 4  ;;  %v6316_v59 = vsel %vm2106_vm4, %v18164_v2, -inf  ;;  %v6309_v33 = vsel %vm2106_vm4, %v18168_v42, -inf  ;;  %v18177_v15 = vrot.slane %v9670_v18, %v21340_v10 }
 0x5cb   : > { %v18180_v39 = vmul.f32 %v13077_v41, %v18085_v14  ;;  %v7332_v11 = vadd.f32 %v7331_v40, %v7330_v61  ;;  %v7324_v56 = vrot.slane %v7323_v3, 2  ;;  %v8880_v58 = vsel %vm8858_vm11, %v8226_v13, %v8879_v29 }
 0x5cc   : > { %12699 = vmatmul.mubr.msk.f32.gmra.mrb[162].mxu0 %vm2106_vm4, %v8880_v58  ;;  %v6305_v31 = vrot.slane %v6304_v4, 2  ;;  %v6297_v48 = vmax.f32 %v6295_v6, %v6296_v36  ;;  %v6317_v23 = vrot.slane %v6316_v59, 4  ;;  %v6310_v55 = vrot.slane %v6309_v33, 4 }
 0x5cd   : > { %21513 = vst [vmem:[#allocation113_spill] sm:$0xff] %v18180_v39  ;;  %v7964_v34 = vmul.f32 %v21514_v50, %v18180_v39  ;;  %v7333_v35 = vrot.slane %v7332_v11, 1  ;;  %v7325_v51 = vadd.f32 %v7324_v56, %v7323_v3  ;;  %v9686_v46 = vcombine.low %v21516_v24, %v21515_v47  ;;  %12701 = vmatprep.mubr.msk.f32.mxu0 %vm13313_vm0, %v21386_v16  ;;  %v21518_v50 = vld [vmem:[#allocation127_spill] sm:$0xff] }
 0x5ce   : > { %v13079_v14 = vpop.eup %13078  ;;  %v6306_v61 = vmax.f32 %v6304_v4, %v6305_v31  ;;  %v6298_v29 = vrot.slane %v6297_v48, 2  ;;  %v6318_v57 = vmax.f32 %v6316_v59, %v6317_v23  ;;  %v6311_v18 = vmax.f32 %v6309_v33, %v6310_v55 }
 0x5cf   : > { %v8458_v6 = vsel %vm2106_vm4, %v7964_v34, 0.0  ;;  %v18192_v40 = vmul.f32 %v13079_v14, %v18098_v63  ;;  %v7334_v13 = vadd.f32 %v7333_v35, %v7332_v11  ;;  %v7326_v41 = vrot.slane %v7325_v51, 1 }
 0x5d0   : > { %v8459_v36 = vrot.slane %v8458_v6, 4  ;;  %v6307_v3 = vrot.slane %v6306_v61, 1  ;;  %v6299_v56 = vmax.f32 %v6297_v48, %v6298_v29  ;;  %v6319_v58 = vrot.slane %v6318_v57, 2 }
 0x5d1   : > { %21517 = vst [vmem:[#allocation70_spill] sm:$0xff] %v18192_v40  ;;  %v7963_v39 = vmul.f32 %v21518_v50, %v18192_v40  ;;  %13080 = vrcp.f32 %v7334_v13  ;;  %v7327_v9 = vadd.f32 %v7326_v41, %v7325_v51  ;;  %v6312_v4 = vrot.slane %v6311_v18, 2  ;;  %v21523_v13 = vld [vmem:[#allocation176_spill] sm:$0xff] }
 0x5d2   : > { %v18196_v31 = vadd.f32 %v8459_v36, %v8458_v6  ;;  %v6308_v59 = vmax.f32 %v6306_v61, %v6307_v3  ;;  %v6300_v33 = vrot.slane %v6299_v56, 1  ;;  %v6320_v23 = vmax.f32 %v6318_v57, %v6319_v58  ;;  %v21521_v61 = vld [vmem:[#allocation90_spill] sm:$0xff]  ;;  %v21522_v57 = vld [vmem:[#allocation180_spill] sm:$0xff] }
 0x5d3   : > { %v8451_v63 = vsel %vm2106_vm4, %v7963_v39, 0.0  ;;  %13082 = vrcp.f32 %v7327_v9  ;;  %v6313_v11 = vmax.f32 %v6311_v18, %v6312_v4  ;;  %v9694_v55 = vrot.slane %v9686_v46, %v21340_v10 }
 0x5d4   : > { %21519 = vst [vmem:[#allocation151_spill] sm:$0xff] %v18196_v31  ;;  %v18202_v48 = vmul.f32 %v18115_v32, %v18041_v54  ;;  %v8452_v34 = vrot.slane %v8451_v63, 4  ;;  %v6616_v35 = vsub.f32 %v18142_v60, %v6308_v59  ;;  %v6301_v51 = vmax.f32 %v6299_v56, %v6300_v33 }
 0x5d5   : > { %v6321_v14 = vrot.slane %v6320_v23, 1  ;;  %v6314_v29 = vrot.slane %v6313_v11, 1  ;;  %v9702_v6 = vcombine.low %v21521_v61, %v17399_v52  ;;  %v9718_v39 = vcombine.low %v21523_v13, %v21522_v57 }
 0x5d6   : > { %21520 = vst [vmem:[#allocation155_spill] sm:$0xff] %v18202_v48  ;;  %v6789_v18 = vmul.f32 1.442695, %v6616_v35  ;;  %v6615_v46 = vsub.f32 %v18153_v37, %v6301_v51  ;;  %v9735_v54 = vcombine.high %v18177_v15, %v9694_v55  ;;  %v18214_v3 = vadd.f32 %v8452_v34, %v8451_v63 }
 0x5d7   : > { %v6322_v32 = vmax.f32 %v6320_v23, %v6321_v14  ;;  %v6315_v41 = vmax.f32 %v6313_v11, %v6314_v29  ;;  %v9710_v60 = vrot.slane %v9702_v6, %v21340_v10  ;;  %v9726_v36 = vrot.slane %v9718_v39, %v21340_v10  ;;  %v18225_v23 = vld [vmem:[%s20180_s9] ss:$0 sm:$0xff] }
 0x5d8   : > { %21524 = vst [vmem:[#allocation69_spill] sm:$0xff] %v18214_v3  ;;  %13084 = vpow2.f32 %v6789_v18  ;;  %v6787_v56 = vmul.f32 1.442695, %v6615_v46  ;;  %v18217_v58 = vrot.slane %v9735_v54, %v21345_v12  ;;  %v9734_v59 = vcombine.low %v18177_v15, %v9694_v55  ;;  %v21528_v18 = vld [vmem:[#allocation43_spill] sm:$0xff] }
 0x5d9   : > { %v6618_v50 = vsub.f32 %v18164_v2, %v6322_v32  ;;  %v6617_v4 = vsub.f32 %v18168_v42, %v6315_v41  ;;  %v9767_v37 = vcombine.high %v9710_v60, %v9726_v36  ;;  %v9766_v33 = vcombine.low %v9710_v60, %v9726_v36  ;;  %v18257_v32 = vpop.f32.mrb[162].mxu1 }
 0x5da   : > { %13086 = vpow2.f32 %v6787_v56  ;;  %v18229_v63 = vadd.f32 %v18225_v23, %v17795_v21  ;;  %v18233_v11 = vadd.f32 %v18225_v23, %v17801_v38  ;;  %v18237_v55 = vrot.slane %v9734_v59, %v21345_v12 }
 0x5db   : > { %v13081_v2 = vpop.eup %13080  ;;  %v6793_v42 = vmul.f32 1.442695, %v6618_v50  ;;  %v6791_v34 = vmul.f32 1.442695, %v6617_v4  ;;  %v9781_v15 = vrot.slane %v9767_v37, %v21345_v12  ;;  %v18243_v51 = vrot.slane %v9766_v33, %v21345_v12  ;;  %v18264_v50 = vpop.f32.mrb[163].mxu1  ;;  %v21530_v4 = vld [vmem:[#allocation128_spill] sm:$0xff] }
 0x5dc   : > { %21525 = vst [vmem:[#allocation74_spill] sm:$0xff] %v18237_v55  ;;  %v18240_v35 = vmul.f32 %v13081_v2, %v18136_v22  ;;  %v6330_v21 = vsel %vm2106_vm4, %v18229_v63, -inf  ;;  %v6323_v38 = vsel %vm2106_vm4, %v18233_v11, -inf  ;;  %v9671_v36 = vcombine.high %v21512_v45, %v21511_v5 }
 0x5dd   : > { %21527 = vst [vmem:[#allocation76_spill] sm:$0xff] %v18243_v51  ;;  %v13083_v14 = vpop.eup %13082  ;;  %13088 = vpow2.f32 %v6793_v42  ;;  %v9800_v29 = vcombine.low %v18217_v58, %v9781_v15  ;;  %v6331_v6 = vrot.slane %v6330_v21, 4  ;;  %v6324_v39 = vrot.slane %v6323_v38, 4 }
 0x5de   : > { %21526 = vst [vmem:[#allocation72_spill] sm:$0xff] %v18240_v35  ;;  %v7966_v46 = vmul.f32 %v21528_v18, %v18240_v35  ;;  %v18253_v22 = vmul.f32 %v13083_v14, %v18147_v7  ;;  %13090 = vpow2.f32 %v6791_v34  ;;  %v9799_v54 = vcombine.high %v18237_v55, %v18243_v51 }
 0x5df   : > { %10967 = vrot.lane.b32.xlu0 %v9800_v29, %s13315_s23  ;;  %v6332_v41 = vmax.f32 %v6330_v21, %v6331_v6  ;;  %v6325_v60 = vmax.f32 %v6323_v38, %v6324_v39  ;;  %v9687_v56 = vcombine.high %v21516_v24, %v21515_v47  ;;  %v9703_v59 = vcombine.high %v21521_v61, %v17399_v52  ;;  %v18292_v21 = vpop.f32.mrb[164].mxu1 }
 0x5e0   : > { %21529 = vst [vmem:[#allocation33_spill] sm:$0xff] %v18253_v22  ;;  %v7965_v37 = vmul.f32 %v21530_v4, %v18253_v22  ;;  %10915 = vrot.lane.b32.xlu1 %v9799_v54, %s13316_s30  ;;  %v9719_v33 = vcombine.high %v21523_v13, %v21522_v57  ;;  %v18275_v5 = vsel %vm2106_vm4, %v7966_v46, 0.0  ;;  %v18278_v24 = vrot.slane %v9671_v36, %v21340_v10  ;;  %v18296_v39 = vpop.f32.mrb[165].mxu1 }
 0x5e1   : > { %21531 = vst [vmem:[#allocation115_spill] sm:$0xff] %v18275_v5  ;;  %v6333_v45 = vrot.slane %v6332_v41, 2  ;;  %v6326_v47 = vrot.slane %v6325_v60, 2  ;;  %v18284_v34 = vrot.slane %v9687_v56, %v21340_v10  ;;  %v18287_v61 = vrot.slane %v9703_v59, %v21340_v10 }
 0x5e2   : > { %v18280_v2 = vpop.eup %13084  ;;  %v8465_v42 = vsel %vm2106_vm4, %v7965_v37, 0.0  ;;  %v18290_v13 = vrot.slane %v9719_v33, %v21340_v10  ;;  %v9801_v56 = vcombine.high %v18217_v58, %v9781_v15 }
 0x5e3   : > { %v8466_v38 = vrot.slane %v8465_v42, 4  ;;  %v7342_v14 = vsel %vm2106_vm4, %v18280_v2, 0.0  ;;  %v6334_v29 = vmax.f32 %v6332_v41, %v6333_v45  ;;  %v6327_v6 = vmax.f32 %v6325_v60, %v6326_v47 }
 0x5e4   : > { %v18298_v18 = vpop.eup %13086  ;;  %v7343_v46 = vrot.slane %v7342_v14, 4  ;;  %v9750_v54 = vcombine.low %v18278_v24, %v18284_v34  ;;  %v9782_v36 = vcombine.low %v18287_v61, %v18290_v13  ;;  %11019 = vrot.lane.b32.xlu1 %v9801_v56, %s21364_s22 }
 0x5e5   : > { %v18305_v4 = vadd.f32 %v8466_v38, %v8465_v42  ;;  %v7335_v37 = vsel %vm2106_vm4, %v18298_v18, 0.0  ;;  %v6335_v41 = vrot.slane %v6334_v29, 1  ;;  %v6328_v60 = vrot.slane %v6327_v6, 1 }
 0x5e6   : > { %v7344_v59 = vadd.f32 %v7343_v46, %v7342_v14  ;;  %v7336_v33 = vrot.slane %v7335_v37, 4  ;;  %v18310_v45 = vrot.slane %v9750_v54, %v21345_v12  ;;  %v18313_v47 = vrot.slane %v9782_v36, %v21345_v12 }
 0x5e7   : > { %21532 = vst [vmem:[#allocation148_spill] sm:$0xff] %v18305_v4  ;;  %v18316_v9 = vpop.eup %13088  ;;  %v6336_v58 = vmax.f32 %v6334_v29, %v6335_v41  ;;  %v6329_v15 = vmax.f32 %v6327_v6, %v6328_v60  ;;  %v18320_v42 = vadd.f32 %v18225_v23, %v17851_v27  ;;  %v18324_v38 = vadd.f32 %v18225_v23, %v17853_v43 }
 0x5e8   : > { %21533 = vst [vmem:[#allocation32_spill] sm:$0xff] %v18310_v45  ;;  %21534 = vst [vmem:[#allocation116_spill] sm:$0xff] %v18313_v47  ;;  %v18326_v14 = vpop.eup %13090  ;;  %v7345_v46 = vrot.slane %v7344_v59, 2  ;;  %v7337_v54 = vadd.f32 %v7336_v33, %v7335_v37  ;;  %v7356_v36 = vsel %vm2106_vm4, %v18316_v9, 0.0  ;;  %v9803_v56 = vcombine.high %v18310_v45, %v18313_v47 }
 0x5e9   : > { %v7357_v29 = vrot.slane %v7356_v36, 4  ;;  %v7349_v6 = vsel %vm2106_vm4, %v18326_v14, 0.0  ;;  %v6620_v27 = vsub.f32 %v18229_v63, %v6336_v58  ;;  %v6619_v41 = vsub.f32 %v18233_v11, %v6329_v15  ;;  %v18341_v15 = vpop.f32.mrb[166].mxu1 }
 0x5ea   : > { %v7346_v43 = vadd.f32 %v7345_v46, %v7344_v59  ;;  %v7338_v60 = vrot.slane %v7337_v54, 2  ;;  %v7350_v7 = vrot.slane %v7349_v6, 4  ;;  %11071 = vrot.lane.b32.xlu0 %v9803_v56, %s13316_s30  ;;  %v6344_v37 = vsel %vm2106_vm4, %v18320_v42, -inf }
 0x5eb   : > { %v7358_v33 = vadd.f32 %v7357_v29, %v7356_v36  ;;  %v6797_v55 = vmul.f32 1.442695, %v6620_v27  ;;  %v6795_v51 = vmul.f32 1.442695, %v6619_v41  ;;  %v6345_v45 = vrot.slane %v6344_v37, 4  ;;  %v18343_v36 = vpop.f32.mrb[167].mxu1 }
 0x5ec   : > { %v7347_v47 = vrot.slane %v7346_v43, 1  ;;  %v7339_v4 = vadd.f32 %v7338_v60, %v7337_v54  ;;  %v7351_v31 = vadd.f32 %v7350_v7, %v7349_v6  ;;  %v6337_v63 = vsel %vm2106_vm4, %v18324_v38, -inf  ;;  %v21535_v7 = vld [vmem:[#allocation114_spill] sm:$0xff] }
 0x5ed   : > { %v7359_v58 = vrot.slane %v7358_v33, 2  ;;  %13092 = vpow2.f32 %v6797_v55  ;;  %v6346_v11 = vmax.f32 %v6344_v37, %v6345_v45  ;;  %v6338_v59 = vrot.slane %v6337_v63, 4  ;;  %v21536_v45 = vld [vmem:[#allocation30_spill] sm:$0xff] }
 0x5ee   : > { %v7348_v46 = vadd.f32 %v7347_v47, %v7346_v43  ;;  %v7340_v56 = vrot.slane %v7339_v4, 1  ;;  %v7352_v3 = vrot.slane %v7351_v31, 2  ;;  %13094 = vpow2.f32 %v6795_v51  ;;  %v21537_v51 = vld [vmem:[#allocation89_spill] sm:$0xff] }
 0x5ef   : > { %v7360_v29 = vadd.f32 %v7359_v58, %v7358_v33  ;;  %v6347_v27 = vrot.slane %v6346_v11, 2  ;;  %v6339_v41 = vmax.f32 %v6337_v63, %v6338_v59  ;;  %v18347_v54 = vmul.f32 %v21535_v7, %v17399_v52  ;;  %v21539_v58 = vld [vmem:[#allocation172_spill] sm:$0xff] }
 0x5f0   : > { %13096 = vrcp.f32 %v7348_v46  ;;  %v7341_v6 = vadd.f32 %v7340_v56, %v7339_v4  ;;  %v7353_v55 = vadd.f32 %v7352_v3, %v7351_v31  ;;  %v18351_v60 = vmul.f32 %v21536_v45, %v21522_v57  ;;  %v21541_v46 = vld [vmem:[#allocation177_spill] sm:$0xff] }
 0x5f1   : > { %v7361_v47 = vrot.slane %v7360_v29, 1  ;;  %v6348_v43 = vmax.f32 %v6346_v11, %v6347_v27  ;;  %v6340_v37 = vrot.slane %v6339_v41, 2  ;;  %v21538_v35 = vrot.slane %v21537_v51, 2  ;;  %v21542_v27 = vld [vmem:[#allocation11_spill] sm:$0xff] }
 0x5f2   : > { %13098 = vrcp.f32 %v7341_v6  ;;  %v7354_v63 = vrot.slane %v7353_v55, 1  ;;  %v21540_v52 = vrot.slane %v21539_v58, 2  ;;  %v8244_v4 = vrot.slane %v21541_v46, 2 }
 0x5f3   : > { %v8231_v33 = vadd.f32 %v21538_v35, %v21537_v51  ;;  %v7362_v31 = vadd.f32 %v7361_v47, %v7360_v29  ;;  %v6349_v3 = vrot.slane %v6348_v43, 1  ;;  %v6341_v56 = vmax.f32 %v6339_v41, %v6340_v37  ;;  %v21544_v47 = vld [vmem:[#allocation178_spill] sm:$0xff] }
 0x5f4   : > { %v8238_v59 = vadd.f32 %v21540_v52, %v21539_v58  ;;  %v7355_v7 = vadd.f32 %v7354_v63, %v7353_v55  ;;  %v8245_v11 = vadd.f32 %v8244_v4, %v21541_v46  ;;  %v21543_v40 = vrot.slane %v21542_v27, 4  ;;  %v21545_v63 = vld [vmem:[#allocation93_spill] sm:$0xff] }
 0x5f5   : > { %v8232_v57 = vrot.slane %v8231_v33, 1  ;;  %13100 = vrcp.f32 %v7362_v31  ;;  %v6350_v6 = vmax.f32 %v6348_v43, %v6349_v3  ;;  %v6342_v51 = vrot.slane %v6341_v56, 1 }
 0x5f6   : > { %v8239_v45 = vrot.slane %v8238_v59, 1  ;;  %v8250_v35 = vadd.f32 %v21543_v40, %v21542_v27  ;;  %13102 = vrcp.f32 %v7355_v7  ;;  %v8246_v52 = vrot.slane %v8245_v11, 1 }
 0x5f7   : > { %v8233_v22 = vadd.f32 %v8232_v57, %v8231_v33  ;;  %v18364_v29 = vpop.eup %13092  ;;  %v6622_v41 = vsub.f32 %v18320_v42, %v6350_v6  ;;  %v6343_v55 = vmax.f32 %v6341_v56, %v6342_v51  ;;  %v8255_v37 = vsel %vm2106_vm4, %v21544_v47, 0.0 }
 0x5f8   : > { %v8240_v58 = vadd.f32 %v8239_v45, %v8238_v59  ;;  %v8251_v44 = vrot.slane %v8250_v35, 2  ;;  %v8262_v46 = vsel %vm2106_vm4, %v21545_v63, 0.0  ;;  %v18371_v40 = vpop.eup %13094  ;;  %v7370_v43 = vsel %vm2106_vm4, %v18364_v29, 0.0 }
 0x5f9   : > { %v8247_v33 = vadd.f32 %v8246_v52, %v8245_v11  ;;  %v8256_v4 = vrot.slane %v8255_v37, 4  ;;  %v7371_v31 = vrot.slane %v7370_v43, 4  ;;  %v7363_v3 = vsel %vm2106_vm4, %v18371_v40, 0.0 }
 0x5fa   : > { %v8252_v59 = vadd.f32 %v8251_v44, %v8250_v35  ;;  %v6801_v42 = vmul.f32 1.442695, %v6622_v41  ;;  %v6621_v56 = vsub.f32 %v18324_v38, %v6343_v55  ;;  %v13097_v57 = vpop.eup %13096  ;;  %v7364_v7 = vrot.slane %v7363_v3, 4  ;;  %v18381_v44 = vpop.f32.mrb[168].mxu1  ;;  %v21547_v38 = vld [vmem:[#allocation48_spill] sm:$0xff] }
 0x5fb   : > { %v8257_v27 = vadd.f32 %v8256_v4, %v8255_v37  ;;  %v8263_v6 = vrot.slane %v8262_v46, 4  ;;  %v18379_v51 = vmul.f32 %v13097_v57, %v18280_v2  ;;  %v7372_v47 = vadd.f32 %v7371_v31, %v7370_v43  ;;  %v18383_v48 = vpop.f32.mrb[169].mxu1 }
 0x5fc   : > { %v8253_v45 = vrot.slane %v8252_v59, 1  ;;  %13104 = vpow2.f32 %v6801_v42  ;;  %v6799_v11 = vmul.f32 1.442695, %v6621_v56  ;;  %v13099_v35 = vpop.eup %13098  ;;  %v7365_v52 = vadd.f32 %v7364_v7, %v7363_v3 }
 0x5fd   : > { %21546 = vst [vmem:[#allocation103_spill] sm:$0xff] %v18379_v51  ;;  %v8258_v28 = vrot.slane %v8257_v27, 2  ;;  %v8264_v41 = vadd.f32 %v8263_v6, %v8262_v46  ;;  %v18387_v55 = vmul.f32 %v21547_v38, %v18379_v51  ;;  %v18390_v37 = vmul.f32 %v13099_v35, %v18298_v18  ;;  %v21549_v46 = vld [vmem:[#allocation129_spill] sm:$0xff] }
 0x5fe   : > { %v8254_v63 = vadd.f32 %v8253_v45, %v8252_v59  ;;  %v7373_v2 = vrot.slane %v7372_v47, 2  ;;  %13106 = vpow2.f32 %v6799_v11  ;;  %v7366_v43 = vrot.slane %v7365_v52, 2 }
 0x5ff   : > { %21548 = vst [vmem:[#allocation154_spill] sm:$0xff] %v18387_v55  ;;  %v8259_v4 = vadd.f32 %v8258_v28, %v8257_v27  ;;  %v8265_v31 = vrot.slane %v8264_v41, 2  ;;  %v8269_v3 = vsel %vm2106_vm4, %v18347_v54, 0.0  ;;  %v13101_v59 = vpop.eup %13100  ;;  %v18396_v42 = vmul.f32 %v21549_v46, %v18390_v37 }
 0x600   : > { %v7374_v56 = vadd.f32 %v7373_v2, %v7372_v47  ;;  %v8270_v57 = vrot.slane %v8269_v3, 4  ;;  %v8276_v7 = vsel %vm2106_vm4, %v18351_v60, 0.0  ;;  %v13103_v18 = vpop.eup %13102  ;;  %v18401_v45 = vmul.f32 %v13101_v59, %v18316_v9 }
 0x601   : > { %21550 = vst [vmem:[#allocation153_spill] sm:$0xff] %v18396_v42  ;;  %v7367_v6 = vadd.f32 %v7366_v43, %v7365_v52  ;;  %v8260_v28 = vrot.slane %v8259_v4, 1  ;;  %v8266_v27 = vadd.f32 %v8265_v31, %v8264_v41  ;;  %v18404_v11 = vmul.f32 %v13103_v18, %v18326_v14 }
 0x602   : > { %v7375_v54 = vrot.slane %v7374_v56, 1  ;;  %v8271_v35 = vadd.f32 %v8270_v57, %v8269_v3  ;;  %v8277_v38 = vrot.slane %v8276_v7, 4  ;;  %v8881_v2 = vsel %vm8846_vm5, %v8240_v58, %v8233_v22 }
 0x603   : > { %v7368_v46 = vrot.slane %v7367_v6, 1  ;;  %v8261_v55 = vadd.f32 %v8260_v28, %v8259_v4  ;;  %v8267_v47 = vrot.slane %v8266_v27, 1  ;;  %v8882_v9 = vsel %vm8848_vm6, %v8247_v33, %v8881_v2 }
 0x604   : > { %v7376_v42 = vadd.f32 %v7375_v54, %v7374_v56  ;;  %v8272_v60 = vrot.slane %v8271_v35, 2  ;;  %v8278_v51 = vadd.f32 %v8277_v38, %v8276_v7  ;;  %v8883_v41 = vsel %vm8850_vm7, %v8254_v63, %v8882_v9 }
 0x605   : > { %v7369_v59 = vadd.f32 %v7368_v46, %v7367_v6  ;;  %v8268_v52 = vadd.f32 %v8267_v47, %v8266_v27  ;;  %v9751_v14 = vcombine.high %v18278_v24, %v18284_v34  ;;  %v8884_v3 = vsel %vm8852_vm8, %v8261_v55, %v8883_v41 }
 0x606   : > { %v18411_v43 = vpop.eup %13104  ;;  %13108 = vrcp.f32 %v7376_v42  ;;  %v8273_v31 = vadd.f32 %v8272_v60, %v8271_v35  ;;  %v8279_v4 = vrot.slane %v8278_v51, 2  ;;  %v9783_v34 = vcombine.high %v18287_v61, %v18290_v13 }
 0x607   : > { %13110 = vrcp.f32 %v7369_v59  ;;  %v7384_v22 = vsel %vm2106_vm4, %v18411_v43, 0.0  ;;  %v8885_v58 = vsel %vm8854_vm9, %v8268_v52, %v8884_v3  ;;  %v9765_v33 = vrot.slane %v9751_v14, %v21345_v12 }
 0x608   : > { %v18418_v56 = vpop.eup %13106  ;;  %v7385_v63 = vrot.slane %v7384_v22, 4  ;;  %v8274_v57 = vrot.slane %v8273_v31, 1  ;;  %v8280_v24 = vadd.f32 %v8279_v4, %v8278_v51  ;;  %v18426_v55 = vadd.f32 %v18225_v23, %v17972_v25 }
 0x609   : > { %v7377_v42 = vsel %vm2106_vm4, %v18418_v56, 0.0  ;;  %v18430_v7 = vadd.f32 %v18225_v23, %v17978_v0  ;;  %v18434_v18 = vadd.f32 %v18225_v23, %v18004_v26  ;;  %v9797_v61 = vrot.slane %v9783_v34, %v21345_v12 }
 0x60a   : > { %v7386_v6 = vadd.f32 %v7385_v63, %v7384_v22  ;;  %v7378_v51 = vrot.slane %v7377_v42, 4  ;;  %v8275_v28 = vadd.f32 %v8274_v57, %v8273_v31  ;;  %v8281_v27 = vrot.slane %v8280_v24, 1 }
 0x60b   : > { %v6358_v13 = vsel %vm2106_vm4, %v18426_v55, -inf  ;;  %v6351_v25 = vsel %vm2106_vm4, %v18430_v7, -inf  ;;  %v6372_v0 = vsel %vm2106_vm4, %v18434_v18, -inf  ;;  %v9805_v46 = vcombine.high %v9765_v33, %v9797_v61 }
 0x60c   : > { %v7387_v54 = vrot.slane %v7386_v6, 2  ;;  %v7379_v35 = vadd.f32 %v7378_v51, %v7377_v42  ;;  %v8282_v38 = vadd.f32 %v8281_v27, %v8280_v24  ;;  %v8886_v26 = vsel %vm8856_vm10, %v8275_v28, %v8885_v58 }
 0x60d   : > { %v9804_v47 = vcombine.low %v9765_v33, %v9797_v61  ;;  %v6359_v2 = vrot.slane %v6358_v13, 4  ;;  %v6352_v60 = vrot.slane %v6351_v25, 4  ;;  %v6373_v41 = vrot.slane %v6372_v0, 4  ;;  %11175 = vrot.lane.b32.xlu0 %v9805_v46, %s21364_s22 }
 0x60e   : > { %v7388_v9 = vadd.f32 %v7387_v54, %v7386_v6  ;;  %v7380_v59 = vrot.slane %v7379_v35, 2  ;;  %v8887_v52 = vsel %vm8858_vm11, %v8282_v38, %v8886_v26  ;;  %v18450_v3 = vadd.f32 %v18225_v23, %v18012_v30 }
 0x60f   : > { %12702 = vmatmul.mubr.msk.f32.gmra.mrb[164].mxu0 %vm2106_vm4, %v8887_v52  ;;  %v6360_v31 = vmax.f32 %v6358_v13, %v6359_v2  ;;  %v6353_v4 = vmax.f32 %v6351_v25, %v6352_v60  ;;  %11123 = vrot.lane.b32.xlu1 %v9804_v47, %s13315_s23  ;;  %v6374_v63 = vmax.f32 %v6372_v0, %v6373_v41  ;;  %v21553_v13 = vld [vmem:[#allocation50_spill] sm:$0xff] }
 0x610   : > { %v13109_v22 = vpop.eup %13108  ;;  %v7389_v58 = vrot.slane %v7388_v9, 1  ;;  %v7381_v33 = vadd.f32 %v7380_v59, %v7379_v35  ;;  %v9806_v57 = vcombine.low %v17387_v49, %v17493_v53  ;;  %12704 = vmatprep.mubr.msk.f32.mxu0 %vm13313_vm0, %v21386_v16  ;;  %v6365_v30 = vsel %vm2106_vm4, %v18450_v3, -inf }
 0x611   : > { %v13111_v24 = vpop.eup %13110  ;;  %v18458_v34 = vmul.f32 %v13109_v22, %v18364_v29  ;;  %v6361_v42 = vrot.slane %v6360_v31, 2  ;;  %v6354_v6 = vrot.slane %v6353_v4, 2  ;;  %v6375_v61 = vrot.slane %v6374_v63, 2  ;;  %v21554_v29 = vld [vmem:[#allocation131_spill] sm:$0xff] }
 0x612   : > { %v18463_v51 = vmul.f32 %v13111_v24, %v18371_v40  ;;  %v7390_v28 = vadd.f32 %v7389_v58, %v7388_v9  ;;  %v7382_v27 = vrot.slane %v7381_v33, 1  ;;  %v6366_v35 = vrot.slane %v6365_v30, 4 }
 0x613   : > { %21551 = vst [vmem:[#allocation6_spill] sm:$0xff] %v18458_v34  ;;  %v7972_v25 = vmul.f32 %v21553_v13, %v18458_v34  ;;  %v6362_v0 = vmax.f32 %v6360_v31, %v6361_v42  ;;  %v6355_v54 = vmax.f32 %v6353_v4, %v6354_v6  ;;  %v6376_v46 = vmax.f32 %v6374_v63, %v6375_v61  ;;  %v21556_v63 = vld [vmem:[#allocation97_spill] sm:$0xff] }
 0x614   : > { %21552 = vst [vmem:[#allocation156_spill] sm:$0xff] %v18463_v51  ;;  %v7971_v38 = vmul.f32 %v21554_v29, %v18463_v51  ;;  %13112 = vrcp.f32 %v7390_v28  ;;  %v7383_v26 = vadd.f32 %v7382_v27, %v7381_v33  ;;  %v6367_v60 = vmax.f32 %v6365_v30, %v6366_v35 }
 0x615   : > { %v8514_v47 = vsel %vm2106_vm4, %v7972_v25, 0.0  ;;  %v6363_v2 = vrot.slane %v6362_v0, 1  ;;  %v6356_v40 = vrot.slane %v6355_v54, 1  ;;  %v6377_v52 = vrot.slane %v6376_v46, 1 }
 0x616   : > { %v8515_v9 = vrot.slane %v8514_v47, 4  ;;  %v8507_v59 = vsel %vm2106_vm4, %v7971_v38, 0.0  ;;  %13114 = vrcp.f32 %v7383_v26  ;;  %v6368_v22 = vrot.slane %v6367_v60, 2 }
 0x617   : > { %v8508_v41 = vrot.slane %v8507_v59, 4  ;;  %v6364_v31 = vmax.f32 %v6362_v0, %v6363_v2  ;;  %v6357_v4 = vmax.f32 %v6355_v54, %v6356_v40  ;;  %v6378_v24 = vmax.f32 %v6376_v46, %v6377_v52  ;;  %v21558_v0 = vld [vmem:[#allocation15_spill] sm:$0xff]  ;;  %v21559_v54 = vld [vmem:[#allocation184_spill] sm:$0xff]  ;;  %v21560_v46 = vld [vmem:[#allocation13_spill] sm:$0xff] }
 0x618   : > { %v18471_v58 = vadd.f32 %v8515_v9, %v8514_v47  ;;  %v9814_v33 = vrot.slane %v9806_v57, %v21340_v10  ;;  %v9822_v42 = vcombine.low %v21556_v63, %v17485_v20  ;;  %v6369_v28 = vmax.f32 %v6367_v60, %v6368_v22  ;;  %v21561_v47 = vld [vmem:[#allocation100_spill] sm:$0xff] }
 0x619   : > { %v6624_v6 = vsub.f32 %v18426_v55, %v6364_v31  ;;  %v6623_v30 = vsub.f32 %v18430_v7, %v6357_v4  ;;  %v18479_v61 = vadd.f32 %v8508_v41, %v8507_v59  ;;  %v6626_v13 = vsub.f32 %v18434_v18, %v6378_v24 }
 0x61a   : > { %21555 = vst [vmem:[#allocation35_spill] sm:$0xff] %v18471_v58  ;;  %v9830_v25 = vrot.slane %v9822_v42, %v21340_v10  ;;  %v9838_v35 = vcombine.low %v21559_v54, %v21558_v0  ;;  %v6370_v26 = vrot.slane %v6369_v28, 1  ;;  %v9854_v2 = vcombine.low %v21561_v47, %v21560_v46 }
 0x61b   : > { %21557 = vst [vmem:[#allocation117_spill] sm:$0xff] %v18479_v61  ;;  %v6805_v29 = vmul.f32 1.442695, %v6624_v6  ;;  %v6803_v38 = vmul.f32 1.442695, %v6623_v30  ;;  %v18491_v9 = vadd.f32 %v18225_v23, %v18064_v17  ;;  %v18497_v31 = vadd.f32 %v18225_v23, %v18066_v62  ;;  %v18510_v62 = vpop.f32.mrb[170].mxu1 }
 0x61c   : > { %v6809_v55 = vmul.f32 1.442695, %v6626_v13  ;;  %v9846_v7 = vrot.slane %v9838_v35, %v21340_v10  ;;  %v9871_v40 = vcombine.high %v9814_v33, %v9830_v25  ;;  %v6371_v60 = vmax.f32 %v6369_v28, %v6370_v26  ;;  %v18517_v35 = vpop.f32.mrb[171].mxu1 }
 0x61d   : > { %13116 = vpow2.f32 %v6805_v29  ;;  %v9870_v18 = vcombine.low %v9814_v33, %v9830_v25  ;;  %v9862_v52 = vrot.slane %v9854_v2, %v21340_v10  ;;  %v6386_v6 = vsel %vm2106_vm4, %v18491_v9, -inf  ;;  %v21568_v2 = vld [vmem:[#allocation132_spill] sm:$0xff] }
 0x61e   : > { %v13113_v59 = vpop.eup %13112  ;;  %13118 = vpow2.f32 %v6803_v38  ;;  %v9885_v41 = vrot.slane %v9871_v40, %v21345_v12  ;;  %v6625_v22 = vsub.f32 %v18450_v3, %v6371_v60  ;;  %v6379_v30 = vsel %vm2106_vm4, %v18497_v31, -inf }
 0x61f   : > { %v18500_v4 = vmul.f32 %v13113_v59, %v18411_v43  ;;  %13120 = vpow2.f32 %v6809_v55  ;;  %v18504_v24 = vrot.slane %v9870_v18, %v21345_v12  ;;  %v9903_v33 = vcombine.high %v9846_v7, %v9862_v52  ;;  %v21564_v43 = vld [vmem:[#allocation47_spill] sm:$0xff] }
 0x620   : > { %v13115_v17 = vpop.eup %13114  ;;  %v9902_v42 = vcombine.low %v9846_v7, %v9862_v52  ;;  %v6807_v3 = vmul.f32 1.442695, %v6625_v22  ;;  %v6387_v25 = vrot.slane %v6386_v6, 4  ;;  %v6380_v26 = vrot.slane %v6379_v30, 4  ;;  %v18533_v22 = vpop.f32.mrb[172].mxu1 }
 0x621   : > { %21562 = vst [vmem:[#allocation157_spill] sm:$0xff] %v18500_v4  ;;  %21563 = vst [vmem:[#allocation78_spill] sm:$0xff] %v18504_v24  ;;  %v7974_v28 = vmul.f32 %v21564_v43, %v18500_v4  ;;  %v18515_v13 = vmul.f32 %v13115_v17, %v18418_v56  ;;  %v9917_v29 = vrot.slane %v9903_v33, %v21345_v12 }
 0x622   : > { %v18521_v38 = vrot.slane %v9902_v42, %v21345_v12  ;;  %v9807_v55 = vcombine.high %v17387_v49, %v17493_v53  ;;  %13122 = vpow2.f32 %v6807_v3  ;;  %v6388_v40 = vmax.f32 %v6386_v6, %v6387_v25  ;;  %v18541_v42 = vpop.f32.mrb[173].mxu1 }
 0x623   : > { %21565 = vst [vmem:[#allocation73_spill] sm:$0xff] %v18515_v13  ;;  %v18526_v7 = vsel %vm2106_vm4, %v7974_v28, 0.0  ;;  %v7973_v56 = vmul.f32 %v21568_v2, %v18515_v13  ;;  %v9936_v18 = vcombine.low %v9885_v41, %v9917_v29  ;;  %v6381_v52 = vmax.f32 %v6379_v30, %v6380_v26  ;;  %v18599_v61 = vpop.f32.mrb[174].mxu1 }
 0x624   : > { %21566 = vst [vmem:[#allocation37_spill] sm:$0xff] %v18521_v38  ;;  %21567 = vst [vmem:[#allocation9_spill] sm:$0xff] %v18526_v7  ;;  %v9935_v59 = vcombine.high %v18504_v24, %v18521_v38  ;;  %v6389_v53 = vrot.slane %v6388_v40, 2  ;;  %v9823_v33 = vcombine.high %v21556_v63, %v17485_v20  ;;  %v18546_v30 = vrot.slane %v9807_v55, %v21340_v10 }
 0x625   : > { %v18537_v49 = vsel %vm2106_vm4, %v7973_v56, 0.0  ;;  %10969 = vrot.lane.b32.xlu1 %v9936_v18, %s13315_s23  ;;  %v6382_v6 = vrot.slane %v6381_v52, 2  ;;  %v9839_v43 = vcombine.high %v21559_v54, %v21558_v0  ;;  %v9855_v28 = vcombine.high %v21561_v47, %v21560_v46 }
 0x626   : > { %10917 = vrot.lane.b32.xlu0 %v9935_v59, %s13316_s30  ;;  %v6390_v63 = vmax.f32 %v6388_v40, %v6389_v53  ;;  %v18556_v25 = vrot.slane %v9823_v33, %v21340_v10  ;;  %v9937_v26 = vcombine.high %v9885_v41, %v9917_v29  ;;  %v18567_v47 = vadd.f32 %v18225_v23, %v18113_v8 }
 0x627   : > { %v18552_v3 = vpop.eup %13116  ;;  %v6383_v56 = vmax.f32 %v6381_v52, %v6382_v6  ;;  %v18563_v54 = vrot.slane %v9839_v43, %v21340_v10  ;;  %v18574_v29 = vrot.slane %v9855_v28, %v21340_v10 }
 0x628   : > { %v18558_v2 = vpop.eup %13118  ;;  %v7398_v55 = vsel %vm2106_vm4, %v18552_v3, 0.0  ;;  %v6391_v41 = vrot.slane %v6390_v63, 1  ;;  %v9886_v6 = vcombine.low %v18546_v30, %v18556_v25  ;;  %v6400_v20 = vsel %vm2106_vm4, %v18567_v47, -inf }
 0x629   : > { %v18569_v18 = vpop.eup %13120  ;;  %v7399_v40 = vrot.slane %v7398_v55, 4  ;;  %v7391_v59 = vsel %vm2106_vm4, %v18558_v2, 0.0  ;;  %v6384_v33 = vrot.slane %v6383_v56, 1  ;;  %v9918_v57 = vcombine.low %v18563_v54, %v18574_v29 }
 0x62a   : > { %v7392_v53 = vrot.slane %v7391_v59, 4  ;;  %v7412_v52 = vsel %vm2106_vm4, %v18569_v18, 0.0  ;;  %11021 = vrot.lane.b32.xlu0 %v9937_v26, %s21364_s22  ;;  %v6392_v17 = vmax.f32 %v6390_v63, %v6391_v41  ;;  %v18584_v28 = vrot.slane %v9886_v6, %v21345_v12 }
 0x62b   : > { %v7400_v8 = vadd.f32 %v7399_v40, %v7398_v55  ;;  %v7413_v43 = vrot.slane %v7412_v52, 4  ;;  %v6385_v14 = vmax.f32 %v6383_v56, %v6384_v33  ;;  %v18592_v55 = vrot.slane %v9918_v57, %v21345_v12 }
 0x62c   : > { %v7393_v60 = vadd.f32 %v7392_v53, %v7391_v59  ;;  %21569 = vst [vmem:[#allocation160_spill] sm:$0xff] %v18584_v28  ;;  %v18588_v27 = vpop.eup %13122  ;;  %v6628_v26 = vsub.f32 %v18491_v9, %v6392_v17  ;;  %v6401_v59 = vrot.slane %v6400_v20, 4 }
 0x62d   : > { %v7401_v24 = vrot.slane %v7400_v8, 2  ;;  %v7414_v38 = vadd.f32 %v7413_v43, %v7412_v52  ;;  %21570 = vst [vmem:[#allocation161_spill] sm:$0xff] %v18592_v55  ;;  %v7405_v40 = vsel %vm2106_vm4, %v18588_v27, 0.0  ;;  %v6627_v56 = vsub.f32 %v18497_v31, %v6385_v14 }
 0x62e   : > { %v7394_v63 = vrot.slane %v7393_v60, 2  ;;  %v7406_v33 = vrot.slane %v7405_v40, 4  ;;  %v6813_v6 = vmul.f32 1.442695, %v6628_v26  ;;  %v9939_v52 = vcombine.high %v18584_v28, %v18592_v55 }
 0x62f   : > { %v7402_v41 = vadd.f32 %v7401_v24, %v7400_v8  ;;  %v7415_v53 = vrot.slane %v7414_v38, 2  ;;  %v6811_v58 = vmul.f32 1.442695, %v6627_v56  ;;  %v6402_v9 = vmax.f32 %v6400_v20, %v6401_v59  ;;  %v18606_v24 = vpop.f32.mrb[175].mxu1  ;;  %v21572_v56 = vld [vmem:[#allocation34_spill] sm:$0xff] }
 0x630   : > { %v7395_v7 = vadd.f32 %v7394_v63, %v7393_v60  ;;  %v7407_v43 = vadd.f32 %v7406_v33, %v7405_v40  ;;  %13124 = vpow2.f32 %v6813_v6  ;;  %11073 = vrot.lane.b32.xlu1 %v9939_v52, %s13316_s30  ;;  %v18604_v31 = vadd.f32 %v18225_v23, %v18117_v19  ;;  %v21573_v6 = vld [vmem:[#allocation94_spill] sm:$0xff] }
 0x631   : > { %v7403_v17 = vrot.slane %v7402_v41, 1  ;;  %v7416_v57 = vadd.f32 %v7415_v53, %v7414_v38  ;;  %13126 = vpow2.f32 %v6811_v58  ;;  %v6403_v14 = vrot.slane %v6402_v9, 2  ;;  %v21571_v38 = vld [vmem:[#allocation118_spill] sm:$0xff] }
 0x632   : > { %v7396_v34 = vrot.slane %v7395_v7, 1  ;;  %v7408_v20 = vrot.slane %v7407_v43, 2  ;;  %v7945_v26 = vmul.f32 %v21571_v38, %v21558_v0  ;;  %v6393_v58 = vsel %vm2106_vm4, %v18604_v31, -inf  ;;  %v21575_v0 = vld [vmem:[#allocation95_spill] sm:$0xff] }
 0x633   : > { %v7404_v60 = vadd.f32 %v7403_v17, %v7402_v41  ;;  %v7417_v8 = vrot.slane %v7416_v57, 1  ;;  %v6404_v40 = vmax.f32 %v6402_v9, %v6403_v14  ;;  %v18614_v59 = vmul.f32 %v21572_v56, %v21560_v46 }
 0x634   : > { %v7397_v63 = vadd.f32 %v7396_v34, %v7395_v7  ;;  %v7409_v53 = vadd.f32 %v7408_v20, %v7407_v43  ;;  %v6394_v33 = vrot.slane %v6393_v58, 4  ;;  %v21574_v52 = vrot.slane %v21573_v6, 2  ;;  %v21578_v20 = vld [vmem:[#allocation96_spill] sm:$0xff] }
 0x635   : > { %13128 = vrcp.f32 %v7404_v60  ;;  %v7418_v19 = vadd.f32 %v7417_v8, %v7416_v57  ;;  %v6405_v41 = vrot.slane %v6404_v40, 1  ;;  %v21576_v34 = vrot.slane %v21575_v0, 2 }
 0x636   : > { %13130 = vrcp.f32 %v7397_v63  ;;  %v8287_v17 = vadd.f32 %v21574_v52, %v21573_v6  ;;  %v7410_v9 = vrot.slane %v7409_v53, 1  ;;  %v6395_v14 = vmax.f32 %v6393_v58, %v6394_v33 }
 0x637   : > { %v8294_v7 = vadd.f32 %v21576_v34, %v21575_v0  ;;  %13132 = vrcp.f32 %v7418_v19  ;;  %v21577_v46 = vrot.slane %v17539_v1, 2  ;;  %v6406_v57 = vmax.f32 %v6404_v40, %v6405_v41  ;;  %v21582_v0 = vld [vmem:[#allocation185_spill] sm:$0xff] }
 0x638   : > { %v8288_v43 = vrot.slane %v8287_v17, 1  ;;  %v21579_v38 = vrot.slane %v21578_v20, 4  ;;  %v21580_v56 = vrot.slane %v18537_v49, 4  ;;  %v7411_v52 = vadd.f32 %v7410_v9, %v7409_v53 }
 0x639   : > { %v8301_v60 = vadd.f32 %v21577_v46, %v17539_v1  ;;  %v8295_v8 = vrot.slane %v8294_v7, 1  ;;  %v6396_v19 = vrot.slane %v6395_v14, 2  ;;  %v8311_v58 = vsel %vm2106_vm4, %v21582_v0, 0.0 }
 0x63a   : > { %v8306_v63 = vadd.f32 %v21579_v38, %v21578_v20  ;;  %v18631_v6 = vadd.f32 %v21580_v56, %v18537_v49  ;;  %v6630_v33 = vsub.f32 %v18567_v47, %v6406_v57  ;;  %v8289_v1 = vadd.f32 %v8288_v43, %v8287_v17  ;;  %v18636_v34 = vpop.eup %13124  ;;  %v21583_v56 = vld [vmem:[#allocation98_spill] sm:$0xff] }
 0x63b   : > { %v8302_v40 = vrot.slane %v8301_v60, 1  ;;  %13134 = vrcp.f32 %v7411_v52  ;;  %v6397_v46 = vmax.f32 %v6395_v14, %v6396_v19  ;;  %v8296_v20 = vadd.f32 %v8295_v8, %v8294_v7  ;;  %v18638_v28 = vpop.eup %13126 }
 0x63c   : > { %21581 = vst [vmem:[#allocation79_spill] sm:$0xff] %v18631_v6  ;;  %v8307_v41 = vrot.slane %v8306_v63, 2  ;;  %v8312_v38 = vrot.slane %v8311_v58, 4  ;;  %v7426_v49 = vsel %vm2106_vm4, %v18636_v34, 0.0  ;;  %v6817_v53 = vmul.f32 1.442695, %v6630_v33 }
 0x63d   : > { %v8318_v0 = vsel %vm2106_vm4, %v21583_v56, 0.0  ;;  %v7427_v47 = vrot.slane %v7426_v49, 4  ;;  %v7419_v17 = vsel %vm2106_vm4, %v18638_v28, 0.0  ;;  %v6398_v57 = vrot.slane %v6397_v46, 1 }
 0x63e   : > { %v8308_v9 = vadd.f32 %v8307_v41, %v8306_v63  ;;  %v8313_v43 = vadd.f32 %v8312_v38, %v8311_v58  ;;  %v7420_v52 = vrot.slane %v7419_v17, 4  ;;  %13136 = vpow2.f32 %v6817_v53 }
 0x63f   : > { %v8319_v14 = vrot.slane %v8318_v0, 4  ;;  %v13129_v8 = vpop.eup %13128  ;;  %v7428_v19 = vadd.f32 %v7427_v47, %v7426_v49  ;;  %v6399_v55 = vmax.f32 %v6397_v46, %v6398_v57  ;;  %v8303_v6 = vadd.f32 %v8302_v40, %v8301_v60  ;;  %v21584_v46 = vld [vmem:[#allocation52_spill] sm:$0xff]  ;;  %v21585_v47 = vld [vmem:[#allocation133_spill] sm:$0xff] }
 0x640   : > { %v8309_v7 = vrot.slane %v8308_v9, 1  ;;  %v8314_v4 = vrot.slane %v8313_v43, 2  ;;  %v13131_v33 = vpop.eup %13130  ;;  %v18647_v63 = vmul.f32 %v13129_v8, %v18552_v3  ;;  %v7421_v41 = vadd.f32 %v7420_v52, %v7419_v17 }
 0x641   : > { %v8320_v56 = vadd.f32 %v8319_v14, %v8318_v0  ;;  %v8325_v51 = vsel %vm2106_vm4, %v7945_v26, 0.0  ;;  %v13133_v13 = vpop.eup %13132  ;;  %v18651_v58 = vmul.f32 %v13131_v33, %v18558_v2  ;;  %v7429_v38 = vrot.slane %v7428_v19, 2 }
 0x642   : > { %v6629_v53 = vsub.f32 %v18604_v31, %v6399_v55  ;;  %v8315_v5 = vadd.f32 %v8314_v4, %v8313_v43  ;;  %v18656_v60 = vmul.f32 %v21584_v46, %v18647_v63  ;;  %v7422_v40 = vrot.slane %v7421_v41, 2 }
 0x643   : > { %v8310_v49 = vadd.f32 %v8309_v7, %v8308_v9  ;;  %v8321_v3 = vrot.slane %v8320_v56, 2  ;;  %v18660_v0 = vmul.f32 %v21585_v47, %v18651_v58  ;;  %v7430_v26 = vadd.f32 %v7429_v38, %v7428_v19 }
 0x644   : > { %v6815_v17 = vmul.f32 1.442695, %v6629_v53  ;;  %v8316_v57 = vrot.slane %v8315_v5, 1  ;;  %v7423_v2 = vadd.f32 %v7422_v40, %v7421_v41  ;;  %v8326_v14 = vrot.slane %v8325_v51, 4 }
 0x645   : > { %v8322_v52 = vadd.f32 %v8321_v3, %v8320_v56  ;;  %v8332_v4 = vsel %vm2106_vm4, %v18614_v59, 0.0  ;;  %v18664_v55 = vpop.eup %13134  ;;  %v18667_v31 = vmul.f32 %v13133_v13, %v18569_v18  ;;  %v7431_v9 = vrot.slane %v7430_v26, 1 }
 0x646   : > { %13138 = vpow2.f32 %v6815_v17  ;;  %v8333_v43 = vrot.slane %v8332_v4, 4  ;;  %v7424_v7 = vrot.slane %v7423_v2, 1  ;;  %v8317_v8 = vadd.f32 %v8316_v57, %v8315_v5 }
 0x647   : > { %v8323_v33 = vrot.slane %v8322_v52, 1  ;;  %v8327_v19 = vadd.f32 %v8326_v14, %v8325_v51  ;;  %v7432_v38 = vadd.f32 %v7431_v9, %v7430_v26  ;;  %v8888_v41 = vsel %vm8846_vm5, %v8296_v20, %v8289_v1 }
 0x648   : > { %v8334_v53 = vadd.f32 %v8333_v43, %v8332_v4  ;;  %v9887_v56 = vcombine.high %v18546_v30, %v18556_v25  ;;  %v18672_v59 = vpop.eup %13136  ;;  %v7425_v46 = vadd.f32 %v7424_v7, %v7423_v2  ;;  %v8889_v18 = vsel %vm8848_vm6, %v8303_v6, %v8888_v41 }
 0x649   : > { %v8324_v40 = vadd.f32 %v8323_v33, %v8322_v52  ;;  %v8328_v13 = vrot.slane %v8327_v19, 2  ;;  %13140 = vrcp.f32 %v7432_v38  ;;  %v7440_v5 = vsel %vm2106_vm4, %v18672_v59, 0.0 }
 0x64a   : > { %v8335_v3 = vrot.slane %v8334_v53, 2  ;;  %v8890_v51 = vsel %vm8850_vm7, %v8310_v49, %v8889_v18  ;;  %13142 = vrcp.f32 %v7425_v46  ;;  %v7441_v47 = vrot.slane %v7440_v5, 4 }
 0x64b   : > { %v8329_v1 = vadd.f32 %v8328_v13, %v8327_v19  ;;  %v8891_v20 = vsel %vm8852_vm8, %v8317_v8, %v8890_v51  ;;  %v9901_v26 = vrot.slane %v9887_v56, %v21345_v12  ;;  %v9919_v6 = vcombine.high %v18563_v54, %v18574_v29  ;;  %v18699_v54 = vld [vmem:[%s20180_s9] ss:$0 sm:$0xff] }
 0x64c   : > { %v8336_v30 = vadd.f32 %v8335_v3, %v8334_v53  ;;  %v8892_v25 = vsel %vm8854_vm9, %v8324_v40, %v8891_v20  ;;  %v7442_v17 = vadd.f32 %v7441_v47, %v7440_v5  ;;  %v18685_v2 = vadd.f32 %v18225_v23, %v18257_v32 }
 0x64d   : > { %v8330_v57 = vrot.slane %v8329_v1, 1  ;;  %v18689_v49 = vadd.f32 %v18225_v23, %v18264_v50  ;;  %v9933_v14 = vrot.slane %v9919_v6, %v21345_v12  ;;  %v18694_v4 = vadd.f32 %v18225_v23, %v18292_v21 }
 0x64e   : > { %v8337_v52 = vrot.slane %v8336_v30, 1  ;;  %v18703_v32 = vadd.f32 %v18699_v54, %v18296_v39  ;;  %v7443_v29 = vrot.slane %v7442_v17, 2  ;;  %v6414_v50 = vsel %vm2106_vm4, %v18685_v2, -inf }
 0x64f   : > { %v8331_v9 = vadd.f32 %v8330_v57, %v8329_v1  ;;  %v6407_v43 = vsel %vm2106_vm4, %v18689_v49, -inf  ;;  %v9941_v21 = vcombine.high %v9901_v26, %v9933_v14  ;;  %v9940_v8 = vcombine.low %v9901_v26, %v9933_v14 }
 0x650   : > { %v18709_v7 = vpop.eup %13138  ;;  %v8338_v23 = vadd.f32 %v8337_v52, %v8336_v30  ;;  %v6415_v33 = vrot.slane %v6414_v50, 4  ;;  %v7444_v19 = vadd.f32 %v7443_v29, %v7442_v17  ;;  %v6408_v53 = vrot.slane %v6407_v43, 4  ;;  %v21586_v30 = vld [vmem:[#allocation20_spill] sm:$0xff] }
 0x651   : > { %v7433_v38 = vsel %vm2106_vm4, %v18709_v7, 0.0  ;;  %v8893_v39 = vsel %vm8856_vm10, %v8331_v9, %v8892_v25  ;;  %11177 = vrot.lane.b32.xlu1 %v9941_v21, %s21364_s22  ;;  %11125 = vrot.lane.b32.xlu0 %v9940_v8, %s13315_s23  ;;  %v6428_v40 = vsel %vm2106_vm4, %v18694_v4, -inf  ;;  %v6421_v3 = vsel %vm2106_vm4, %v18703_v32, -inf  ;;  %v21587_v25 = vld [vmem:[#allocation17_spill] sm:$0xff] }
 0x652   : > { %v7434_v41 = vrot.slane %v7433_v38, 4  ;;  %v8894_v56 = vsel %vm8858_vm11, %v8338_v23, %v8893_v39  ;;  %v6416_v46 = vmax.f32 %v6414_v50, %v6415_v33  ;;  %v7445_v13 = vrot.slane %v7444_v19, 1  ;;  %v21589_v23 = vld [vmem:[#allocation54_spill] sm:$0xff] }
 0x653   : > { %12705 = vmatmul.mubr.msk.f32.gmra.mrb[166].mxu0 %vm2106_vm4, %v8894_v56  ;;  %v6409_v18 = vmax.f32 %v6407_v43, %v6408_v53  ;;  %v6429_v5 = vrot.slane %v6428_v40, 4  ;;  %v13141_v51 = vpop.eup %13140  ;;  %v6422_v20 = vrot.slane %v6421_v3, 4  ;;  %v9942_v26 = vcombine.low %v21587_v25, %v21586_v30 }
 0x654   : > { %v7435_v47 = vadd.f32 %v7434_v41, %v7433_v38  ;;  %v6417_v1 = vrot.slane %v6416_v46, 2  ;;  %12707 = vmatprep.mubr.msk.f32.mxu0 %vm13313_vm0, %v21386_v16  ;;  %v13143_v6 = vpop.eup %13142  ;;  %v18727_v17 = vmul.f32 %v13141_v51, %v18636_v34  ;;  %v7446_v57 = vadd.f32 %v7445_v13, %v7444_v19  ;;  %v21590_v38 = vld [vmem:[#allocation135_spill] sm:$0xff] }
 0x655   : > { %v6410_v52 = vrot.slane %v6409_v18, 2  ;;  %v6430_v14 = vmax.f32 %v6428_v40, %v6429_v5  ;;  %v18730_v29 = vmul.f32 %v13143_v6, %v18638_v28  ;;  %v6423_v43 = vmax.f32 %v6421_v3, %v6422_v20 }
 0x656   : > { %21588 = vst [vmem:[#allocation119_spill] sm:$0xff] %v18727_v17  ;;  %v7436_v9 = vrot.slane %v7435_v47, 2  ;;  %v6418_v50 = vmax.f32 %v6416_v46, %v6417_v1  ;;  %v7980_v21 = vmul.f32 %v21589_v23, %v18727_v17  ;;  %13144 = vrcp.f32 %v7446_v57 }
 0x657   : > { %v6411_v8 = vmax.f32 %v6409_v18, %v6410_v52  ;;  %v6431_v33 = vrot.slane %v6430_v14, 2  ;;  %v7979_v39 = vmul.f32 %v21590_v38, %v18730_v29  ;;  %v6424_v19 = vrot.slane %v6423_v43, 2  ;;  %v21592_v52 = vld [vmem:[#allocation21_spill] sm:$0xff] }
 0x658   : > { %v7437_v34 = vadd.f32 %v7436_v9, %v7435_v47  ;;  %v6419_v53 = vrot.slane %v6418_v50, 1  ;;  %v8570_v41 = vsel %vm2106_vm4, %v7980_v21, 0.0  ;;  %v9950_v40 = vrot.slane %v9942_v26, %v21340_v10  ;;  %v21593_v9 = vld [vmem:[#allocation14_spill] sm:$0xff] }
 0x659   : > { %v6412_v56 = vrot.slane %v6411_v8, 1  ;;  %v6432_v28 = vmax.f32 %v6430_v14, %v6431_v33  ;;  %v8571_v46 = vrot.slane %v8570_v41, 4  ;;  %v8563_v13 = vsel %vm2106_vm4, %v7979_v39, 0.0 }
 0x65a   : > { %v7438_v5 = vrot.slane %v7437_v34, 1  ;;  %v6420_v3 = vmax.f32 %v6418_v50, %v6419_v53  ;;  %v8564_v51 = vrot.slane %v8563_v13, 4  ;;  %v6425_v20 = vmax.f32 %v6423_v43, %v6424_v19  ;;  %v21595_v53 = vld [vmem:[#allocation12_spill] sm:$0xff]  ;;  %v21597_v19 = vld [vmem:[#allocation109_spill] sm:$0xff] }
 0x65b   : > { %v6413_v18 = vmax.f32 %v6411_v8, %v6412_v56  ;;  %v6433_v1 = vrot.slane %v6432_v28, 1  ;;  %v18739_v6 = vadd.f32 %v8571_v46, %v8570_v41  ;;  %v9958_v23 = vcombine.low %v21593_v9, %v21592_v52 }
 0x65c   : > { %v7439_v47 = vadd.f32 %v7438_v5, %v7437_v34  ;;  %v6632_v57 = vsub.f32 %v18685_v2, %v6420_v3  ;;  %v18746_v26 = vmul.f32 %v18664_v55, %v18588_v27  ;;  %v6426_v50 = vrot.slane %v6425_v20, 1  ;;  %v21596_v27 = vld [vmem:[#allocation24_spill] sm:$0xff] }
 0x65d   : > { %21591 = vst [vmem:[#allocation174_spill] sm:$0xff] %v18739_v6  ;;  %v6631_v14 = vsub.f32 %v18689_v49, %v6413_v18  ;;  %v6434_v21 = vmax.f32 %v6432_v28, %v6433_v1  ;;  %v18749_v33 = vadd.f32 %v8564_v51, %v8563_v13  ;;  %v9966_v8 = vrot.slane %v9958_v23, %v21340_v10  ;;  %v21598_v49 = vld [vmem:[#allocation107_spill] sm:$0xff] }
 0x65e   : > { %13146 = vrcp.f32 %v7439_v47  ;;  %v6821_v43 = vmul.f32 1.442695, %v6632_v57  ;;  %v6427_v34 = vmax.f32 %v6425_v20, %v6426_v50  ;;  %v9974_v55 = vcombine.low %v21596_v27, %v21595_v53 }
 0x65f   : > { %21594 = vst [vmem:[#allocation91_spill] sm:$0xff] %v18749_v33  ;;  %v6819_v2 = vmul.f32 1.442695, %v6631_v14  ;;  %v6634_v39 = vsub.f32 %v18694_v4, %v6434_v21  ;;  %v9990_v41 = vcombine.low %v21598_v49, %v21597_v19  ;;  %v10007_v56 = vcombine.high %v9950_v40, %v9966_v8 }
 0x660   : > { %13148 = vpow2.f32 %v6821_v43  ;;  %v13145_v28 = vpop.eup %13144  ;;  %v6633_v13 = vsub.f32 %v18703_v32, %v6427_v34  ;;  %v10006_v5 = vcombine.low %v9950_v40, %v9966_v8  ;;  %v9982_v4 = vrot.slane %v9974_v55, %v21340_v10  ;;  %v21600_v32 = vld [vmem:[#allocation51_spill] sm:$0xff] }
 0x661   : > { %13150 = vpow2.f32 %v6819_v2  ;;  %v6825_v46 = vmul.f32 1.442695, %v6634_v39  ;;  %v18761_v51 = vmul.f32 %v13145_v28, %v18672_v59  ;;  %v9998_v18 = vrot.slane %v9990_v41, %v21340_v10 }
 0x662   : > { %v6823_v1 = vmul.f32 1.442695, %v6633_v13  ;;  %v10021_v20 = vrot.slane %v10007_v56, %v21345_v12  ;;  %v18768_v47 = vadd.f32 %v18699_v54, %v18341_v15  ;;  %v18774_v59 = vadd.f32 %v18699_v54, %v18343_v36 }
 0x663   : > { %21599 = vst [vmem:[#allocation36_spill] sm:$0xff] %v18761_v51  ;;  %13152 = vpow2.f32 %v6825_v46  ;;  %v7982_v40 = vmul.f32 %v21600_v32, %v18761_v51  ;;  %v10039_v57 = vcombine.high %v9982_v4, %v9998_v18  ;;  %v10038_v23 = vcombine.low %v9982_v4, %v9998_v18 }
 0x664   : > { %13154 = vpow2.f32 %v6823_v1  ;;  %v6442_v14 = vsel %vm2106_vm4, %v18768_v47, -inf  ;;  %v9943_v21 = vcombine.high %v21587_v25, %v21586_v30  ;;  %v9959_v15 = vcombine.high %v21593_v9, %v21592_v52 }
 0x665   : > { %v10053_v50 = vrot.slane %v10039_v57, %v21345_v12  ;;  %v18784_v43 = vrot.slane %v10006_v5, %v21345_v12  ;;  %v18787_v8 = vrot.slane %v10038_v23, %v21345_v12  ;;  %v6443_v36 = vrot.slane %v6442_v14, 4  ;;  %v18811_v5 = vpop.f32.mrb[176].mxu1 }
 0x666   : > { %v18790_v2 = vsel %vm2106_vm4, %v7982_v40, 0.0  ;;  %v6435_v39 = vsel %vm2106_vm4, %v18774_v59, -inf  ;;  %v18795_v30 = vrot.slane %v9943_v21, %v21340_v10  ;;  %v18798_v25 = vrot.slane %v9959_v15, %v21340_v10  ;;  %v18862_v17 = vpop.f32.mrb[177].mxu1 }
 0x667   : > { %21601 = vst [vmem:[#allocation120_spill] sm:$0xff] %v18784_v43  ;;  %21602 = vst [vmem:[#allocation179_spill] sm:$0xff] %v18787_v8  ;;  %v10072_v9 = vcombine.low %v10021_v20, %v10053_v50  ;;  %v10071_v34 = vcombine.high %v18784_v43, %v18787_v8  ;;  %v6444_v55 = vmax.f32 %v6442_v14, %v6443_v36  ;;  %v6436_v41 = vrot.slane %v6435_v39, 4 }
 0x668   : > { %21603 = vst [vmem:[#allocation92_spill] sm:$0xff] %v18790_v2  ;;  %v13147_v52 = vpop.eup %13146  ;;  %v9975_v28 = vcombine.high %v21596_v27, %v21595_v53  ;;  %v9991_v46 = vcombine.high %v21598_v49, %v21597_v19  ;;  %v10022_v13 = vcombine.low %v18795_v30, %v18798_v25  ;;  %v10073_v32 = vcombine.high %v10021_v20, %v10053_v50  ;;  %v21604_v49 = vld [vmem:[#allocation136_spill] sm:$0xff] }
 0x669   : > { %v18803_v56 = vmul.f32 %v13147_v52, %v18709_v7  ;;  %10971 = vrot.lane.b32.xlu0 %v10072_v9, %s13315_s23  ;;  %10919 = vrot.lane.b32.xlu1 %v10071_v34, %s13316_s30  ;;  %v6445_v7 = vrot.slane %v6444_v55, 2  ;;  %v6437_v1 = vmax.f32 %v6435_v39, %v6436_v41  ;;  %v18841_v34 = vadd.f32 %v18699_v54, %v18381_v44 }
 0x66a   : > { %v18813_v4 = vpop.eup %13148  ;;  %v18825_v23 = vrot.slane %v9975_v28, %v21340_v10  ;;  %v18828_v14 = vrot.slane %v9991_v46, %v21340_v10 }
 0x66b   : > { %v18818_v27 = vpop.eup %13150  ;;  %v7981_v40 = vmul.f32 %v21604_v49, %v18803_v56  ;;  %v7454_v57 = vsel %vm2106_vm4, %v18813_v4, 0.0  ;;  %v6446_v36 = vmax.f32 %v6444_v55, %v6445_v7  ;;  %v6438_v20 = vrot.slane %v6437_v1, 2 }
 0x66c   : > { %v7455_v21 = vrot.slane %v7454_v57, 4  ;;  %v7447_v15 = vsel %vm2106_vm4, %v18818_v27, 0.0  ;;  %v10054_v9 = vcombine.low %v18825_v23, %v18828_v14  ;;  %v18846_v55 = vrot.slane %v10022_v13, %v21345_v12 }
 0x66d   : > { %v18832_v50 = vpop.eup %13152  ;;  %v18835_v39 = vsel %vm2106_vm4, %v7981_v40, 0.0  ;;  %v7448_v52 = vrot.slane %v7447_v15, 4  ;;  %v6447_v46 = vrot.slane %v6446_v36, 1  ;;  %11023 = vrot.lane.b32.xlu1 %v10073_v32, %s21364_s22  ;;  %v6439_v18 = vmax.f32 %v6437_v1, %v6438_v20 }
 0x66e   : > { %v7456_v41 = vadd.f32 %v7455_v21, %v7454_v57  ;;  %v7468_v28 = vsel %vm2106_vm4, %v18832_v50, 0.0  ;;  %21605 = vst [vmem:[#allocation25_spill] sm:$0xff] %v18846_v55  ;;  %v18849_v7 = vpop.eup %13154  ;;  %v18852_v38 = vrot.slane %v10054_v9, %v21345_v12  ;;  %v8578_v44 = vrot.slane %v18835_v39, 4 }
 0x66f   : > { %v7449_v49 = vadd.f32 %v7448_v52, %v7447_v15  ;;  %v7469_v40 = vrot.slane %v7468_v28, 4  ;;  %v7461_v21 = vsel %vm2106_vm4, %v18849_v7, 0.0  ;;  %v6448_v3 = vmax.f32 %v6446_v36, %v6447_v46 }
 0x670   : > { %21606 = vst [vmem:[#allocation106_spill] sm:$0xff] %v18852_v38  ;;  %v7457_v57 = vrot.slane %v7456_v41, 2  ;;  %v7462_v8 = vrot.slane %v7461_v21, 4  ;;  %v6440_v2 = vrot.slane %v6439_v18, 1  ;;  %v10075_v1 = vcombine.high %v18846_v55, %v18852_v38  ;;  %v21618_v38 = vld [vmem:[#allocation108_spill] sm:$0xff] }
 0x671   : > { %v7450_v43 = vrot.slane %v7449_v49, 2  ;;  %v7470_v13 = vadd.f32 %v7469_v40, %v7468_v28  ;;  %v6636_v6 = vsub.f32 %v18768_v47, %v6448_v3  ;;  %v6456_v15 = vsel %vm2106_vm4, %v18841_v34, -inf }
 0x672   : > { %v7458_v32 = vadd.f32 %v7457_v57, %v7456_v41  ;;  %v7463_v9 = vadd.f32 %v7462_v8, %v7461_v21  ;;  %v6441_v33 = vmax.f32 %v6439_v18, %v6440_v2  ;;  %11075 = vrot.lane.b32.xlu0 %v10075_v1, %s13316_s30  ;;  %v6457_v28 = vrot.slane %v6456_v15, 4  ;;  %v18872_v1 = vpop.f32.mrb[178].mxu1 }
 0x673   : > { %v7451_v20 = vadd.f32 %v7450_v43, %v7449_v49  ;;  %v7471_v52 = vrot.slane %v7470_v13, 2  ;;  %v6829_v46 = vmul.f32 1.442695, %v6636_v6  ;;  %v18867_v3 = vadd.f32 %v18699_v54, %v18383_v48 }
 0x674   : > { %v7459_v36 = vrot.slane %v7458_v32, 1  ;;  %v7464_v40 = vrot.slane %v7463_v9, 2  ;;  %v6635_v57 = vsub.f32 %v18774_v59, %v6441_v33  ;;  %v6458_v8 = vmax.f32 %v6456_v15, %v6457_v28 }
 0x675   : > { %v7452_v47 = vrot.slane %v7451_v20, 1  ;;  %v7472_v41 = vadd.f32 %v7471_v52, %v7470_v13  ;;  %13156 = vpow2.f32 %v6829_v46  ;;  %v6449_v2 = vsel %vm2106_vm4, %v18867_v3, -inf  ;;  %v21607_v13 = vld [vmem:[#allocation122_spill] sm:$0xff] }
 0x676   : > { %v7460_v43 = vadd.f32 %v7459_v36, %v7458_v32  ;;  %v7465_v49 = vadd.f32 %v7464_v40, %v7463_v9  ;;  %v6827_v21 = vmul.f32 1.442695, %v6635_v57  ;;  %v6459_v48 = vrot.slane %v6458_v8, 2  ;;  %v21608_v32 = vld [vmem:[#allocation38_spill] sm:$0xff]  ;;  %v21611_v40 = vld [vmem:[#allocation19_spill] sm:$0xff] }
 0x677   : > { %v7453_v18 = vadd.f32 %v7452_v47, %v7451_v20  ;;  %v7473_v6 = vrot.slane %v7472_v41, 1  ;;  %v6450_v55 = vrot.slane %v6449_v2, 4  ;;  %v7953_v52 = vmul.f32 %v21607_v13, %v21595_v53  ;;  %v21609_v9 = vld [vmem:[#allocation102_spill] sm:$0xff] }
 0x678   : > { %13158 = vrcp.f32 %v7460_v43  ;;  %v7466_v59 = vrot.slane %v7465_v49, 1  ;;  %v18878_v15 = vmul.f32 %v21608_v32, %v21597_v19  ;;  %v6460_v20 = vmax.f32 %v6458_v8, %v6459_v48  ;;  %v21613_v43 = vld [vmem:[#allocation22_spill] sm:$0xff]  ;;  %v21614_v19 = vld [vmem:[#allocation104_spill] sm:$0xff] }
 0x679   : > { %13160 = vrcp.f32 %v7453_v18  ;;  %v7474_v33 = vadd.f32 %v7473_v6, %v7472_v41  ;;  %v6451_v36 = vmax.f32 %v6449_v2, %v6450_v55  ;;  %v21610_v46 = vrot.slane %v21609_v9, 2 }
 0x67a   : > { %13162 = vpow2.f32 %v6827_v21  ;;  %v7467_v47 = vadd.f32 %v7466_v59, %v7465_v49  ;;  %v21612_v57 = vrot.slane %v21611_v40, 2  ;;  %v8356_v41 = vrot.slane %v21613_v43, 2  ;;  %v21617_v49 = vld [vmem:[#allocation27_spill] sm:$0xff] }
 0x67b   : > { %v8343_v28 = vadd.f32 %v21610_v46, %v21609_v9  ;;  %13164 = vrcp.f32 %v7474_v33  ;;  %v6461_v18 = vrot.slane %v6460_v20, 1  ;;  %v6452_v6 = vrot.slane %v6451_v36, 2 }
 0x67c   : > { %v8350_v53 = vadd.f32 %v21612_v57, %v21611_v40  ;;  %v21615_v21 = vrot.slane %v21614_v19, 4  ;;  %v18891_v55 = vadd.f32 %v8578_v44, %v18835_v39  ;;  %v8357_v48 = vadd.f32 %v8356_v41, %v21613_v43 }
 0x67d   : > { %v8344_v13 = vrot.slane %v8343_v28, 1  ;;  %v8367_v33 = vsel %vm2106_vm4, %v21617_v49, 0.0  ;;  %13166 = vrcp.f32 %v7467_v47  ;;  %v6462_v59 = vmax.f32 %v6460_v20, %v6461_v18 }
 0x67e   : > { %v8362_v8 = vadd.f32 %v21615_v21, %v21614_v19  ;;  %21616 = vst [vmem:[#allocation75_spill] sm:$0xff] %v18891_v55  ;;  %v8351_v2 = vrot.slane %v8350_v53, 1  ;;  %v6453_v32 = vmax.f32 %v6451_v36, %v6452_v6  ;;  %v8368_v57 = vrot.slane %v8367_v33, 4 }
 0x67f   : > { %v8345_v46 = vadd.f32 %v8344_v13, %v8343_v28  ;;  %v8374_v51 = vsel %vm2106_vm4, %v21618_v38, 0.0  ;;  %v18898_v19 = vpop.eup %13156  ;;  %v6638_v39 = vsub.f32 %v18841_v34, %v6462_v59  ;;  %v8358_v47 = vrot.slane %v8357_v48, 1 }
 0x680   : > { %v8363_v9 = vrot.slane %v8362_v8, 2  ;;  %v8352_v40 = vadd.f32 %v8351_v2, %v8350_v53  ;;  %v6454_v44 = vrot.slane %v6453_v32, 1  ;;  %v8375_v43 = vrot.slane %v8374_v51, 4 }
 0x681   : > { %v7482_v41 = vsel %vm2106_vm4, %v18898_v19, 0.0  ;;  %v8369_v20 = vadd.f32 %v8368_v57, %v8367_v33  ;;  %v8381_v36 = vsel %vm2106_vm4, %v7953_v52, 0.0  ;;  %v6833_v18 = vmul.f32 1.442695, %v6638_v39 }
 0x682   : > { %v8364_v21 = vadd.f32 %v8363_v9, %v8362_v8  ;;  %v13159_v28 = vpop.eup %13158  ;;  %v7483_v53 = vrot.slane %v7482_v41, 4  ;;  %v6455_v6 = vmax.f32 %v6453_v32, %v6454_v44  ;;  %v8376_v49 = vadd.f32 %v8375_v43, %v8374_v51  ;;  %v21621_v32 = vld [vmem:[#allocation56_spill] sm:$0xff]  ;;  %v21623_v43 = vld [vmem:[#allocation137_spill] sm:$0xff] }
 0x683   : > { %v13161_v38 = vpop.eup %13160  ;;  %v18905_v2 = vmul.f32 %v13159_v28, %v18813_v4  ;;  %v8370_v34 = vrot.slane %v8369_v20, 2  ;;  %v8382_v8 = vrot.slane %v8381_v36, 4  ;;  %13168 = vpow2.f32 %v6833_v18 }
 0x684   : > { %v8365_v13 = vrot.slane %v8364_v21, 1  ;;  %v18907_v59 = vpop.eup %13162  ;;  %v18910_v9 = vmul.f32 %v13161_v38, %v18818_v27  ;;  %v7484_v33 = vadd.f32 %v7483_v53, %v7482_v41  ;;  %v6637_v52 = vsub.f32 %v18867_v3, %v6455_v6 }
 0x685   : > { %21619 = vst [vmem:[#allocation7_spill] sm:$0xff] %v18905_v2  ;;  %v13165_v57 = vpop.eup %13164  ;;  %v18915_v39 = vmul.f32 %v21621_v32, %v18905_v2  ;;  %v7475_v4 = vsel %vm2106_vm4, %v18907_v59, 0.0  ;;  %v8359_v44 = vadd.f32 %v8358_v47, %v8357_v48  ;;  %v8371_v51 = vadd.f32 %v8370_v34, %v8369_v20 }
 0x686   : > { %21620 = vst [vmem:[#allocation77_spill] sm:$0xff] %v18910_v9  ;;  %v18921_v28 = vmul.f32 %v21623_v43, %v18910_v9  ;;  %v7485_v27 = vrot.slane %v7484_v33, 2  ;;  %v7476_v38 = vrot.slane %v7475_v4, 4  ;;  %v8366_v41 = vadd.f32 %v8365_v13, %v8364_v21 }
 0x687   : > { %21622 = vst [vmem:[#allocation158_spill] sm:$0xff] %v18915_v39  ;;  %v6831_v53 = vmul.f32 1.442695, %v6637_v52  ;;  %v8372_v18 = vrot.slane %v8371_v51, 1  ;;  %v8377_v3 = vrot.slane %v8376_v49, 2  ;;  %v8383_v6 = vadd.f32 %v8382_v8, %v8381_v36  ;;  %v18923_v55 = vpop.eup %13166 }
 0x688   : > { %21624 = vst [vmem:[#allocation8_spill] sm:$0xff] %v18921_v28  ;;  %v18926_v32 = vmul.f32 %v13165_v57, %v18832_v50  ;;  %v7486_v39 = vadd.f32 %v7485_v27, %v7484_v33  ;;  %v7477_v2 = vadd.f32 %v7476_v38, %v7475_v4  ;;  %v8388_v48 = vsel %vm2106_vm4, %v18878_v15, 0.0 }
 0x689   : > { %13170 = vpow2.f32 %v6831_v53  ;;  %v8373_v47 = vadd.f32 %v8372_v18, %v8371_v51  ;;  %v8378_v20 = vadd.f32 %v8377_v3, %v8376_v49  ;;  %v8384_v34 = vrot.slane %v8383_v6, 2 }
 0x68a   : > { %21625 = vst [vmem:[#allocation159_spill] sm:$0xff] %v18926_v32  ;;  %v7487_v43 = vrot.slane %v7486_v39, 1  ;;  %v7478_v21 = vrot.slane %v7477_v2, 2  ;;  %v8389_v13 = vrot.slane %v8388_v48, 4  ;;  %v8895_v52 = vsel %vm8846_vm5, %v8352_v40, %v8345_v46 }
 0x68b   : > { %v8379_v36 = vrot.slane %v8378_v20, 1  ;;  %v8385_v8 = vadd.f32 %v8384_v34, %v8383_v6  ;;  %v8896_v28 = vsel %vm8848_vm6, %v8359_v44, %v8895_v52  ;;  %v10023_v50 = vcombine.high %v18795_v30, %v18798_v25  ;;  %v18941_v30 = vpop.f32.mrb[179].mxu1 }
 0x68c   : > { %v7488_v33 = vadd.f32 %v7487_v43, %v7486_v39  ;;  %v7479_v57 = vadd.f32 %v7478_v21, %v7477_v2  ;;  %v8390_v4 = vadd.f32 %v8389_v13, %v8388_v48  ;;  %v8897_v15 = vsel %vm8850_vm7, %v8366_v41, %v8896_v28  ;;  %v18951_v48 = vpop.f32.mrb[180].mxu1 }
 0x68d   : > { %v8380_v51 = vadd.f32 %v8379_v36, %v8378_v20  ;;  %v8386_v49 = vrot.slane %v8385_v8, 1  ;;  %v8898_v27 = vsel %vm8852_vm8, %v8373_v47, %v8897_v15  ;;  %v10037_v38 = vrot.slane %v10023_v50, %v21345_v12  ;;  %v18937_v53 = vpop.eup %13168  ;;  %v18964_v20 = vpop.f32.mrb[181].mxu1 }
 0x68e   : > { %13172 = vrcp.f32 %v7488_v33  ;;  %v7480_v46 = vrot.slane %v7479_v57, 1  ;;  %v8391_v40 = vrot.slane %v8390_v4, 2  ;;  %v10055_v44 = vcombine.high %v18825_v23, %v18828_v14 }
 0x68f   : > { %v7496_v25 = vsel %vm2106_vm4, %v18937_v53, 0.0  ;;  %v8387_v2 = vadd.f32 %v8386_v49, %v8385_v8  ;;  %v8899_v39 = vsel %vm8854_vm9, %v8380_v51, %v8898_v27  ;;  %v18948_v28 = vadd.f32 %v18699_v54, %v18510_v62 }
 0x690   : > { %v7481_v41 = vadd.f32 %v7480_v46, %v7479_v57  ;;  %v7497_v18 = vrot.slane %v7496_v25, 4  ;;  %v8392_v3 = vadd.f32 %v8391_v40, %v8390_v4  ;;  %v10069_v6 = vrot.slane %v10055_v44, %v21345_v12  ;;  %v21626_v40 = vld [vmem:[#allocation71_spill] sm:$0xff] }
 0x691   : > { %v8900_v23 = vsel %vm8856_vm10, %v8387_v2, %v8899_v39  ;;  %v6470_v14 = vsel %vm2106_vm4, %v18948_v28, -inf  ;;  %v18958_v47 = vadd.f32 %v18699_v54, %v18517_v35  ;;  %v18962_v62 = vadd.f32 %v18699_v54, %v18533_v22  ;;  %v21627_v44 = vld [vmem:[#allocation147_spill] sm:$0xff] }
 0x692   : > { %13174 = vrcp.f32 %v7481_v41  ;;  %v7498_v34 = vadd.f32 %v7497_v18, %v7496_v25  ;;  %v8393_v43 = vrot.slane %v8392_v3, 1  ;;  %v10077_v21 = vcombine.high %v10037_v38, %v10069_v6 }
 0x693   : > { %v18966_v13 = vpop.eup %13170  ;;  %v10076_v52 = vcombine.low %v10037_v38, %v10069_v6  ;;  %v6471_v36 = vrot.slane %v6470_v14, 4  ;;  %v6463_v8 = vsel %vm2106_vm4, %v18958_v47, -inf  ;;  %v6484_v35 = vsel %vm2106_vm4, %v18962_v62, -inf }
 0x694   : > { %v7499_v50 = vrot.slane %v7498_v34, 2  ;;  %v7489_v22 = vsel %vm2106_vm4, %v18966_v13, 0.0  ;;  %v8394_v33 = vadd.f32 %v8393_v43, %v8392_v3  ;;  %11179 = vrot.lane.b32.xlu0 %v10077_v21, %s21364_s22  ;;  %v6464_v57 = vrot.slane %v6463_v8, 4 }
 0x695   : > { %v7490_v4 = vrot.slane %v7489_v22, 4  ;;  %11127 = vrot.lane.b32.xlu1 %v10076_v52, %s13315_s23  ;;  %v6472_v15 = vmax.f32 %v6470_v14, %v6471_v36  ;;  %v6485_v51 = vrot.slane %v6484_v35, 4  ;;  %v18978_v49 = vadd.f32 %v18699_v54, %v18541_v42 }
 0x696   : > { %v7500_v27 = vadd.f32 %v7499_v50, %v7498_v34  ;;  %v8901_v38 = vsel %vm8858_vm11, %v8394_v33, %v8900_v23  ;;  %v6465_v46 = vmax.f32 %v6463_v8, %v6464_v57  ;;  %v10078_v25 = vcombine.low %v21627_v44, %v21626_v40  ;;  %v21629_v50 = vld [vmem:[#allocation29_spill] sm:$0xff]  ;;  %v21631_v57 = vld [vmem:[#allocation58_spill] sm:$0xff] }
 0x697   : > { %v7491_v2 = vadd.f32 %v7490_v4, %v7489_v22  ;;  %12708 = vmatmul.mubr.msk.f32.gmra.mrb[168].mxu0 %vm2106_vm4, %v8901_v38  ;;  %v6473_v39 = vrot.slane %v6472_v15, 2  ;;  %v6486_v41 = vmax.f32 %v6484_v35, %v6485_v51  ;;  %v6477_v18 = vsel %vm2106_vm4, %v18978_v49, -inf  ;;  %v21630_v22 = vld [vmem:[#allocation65_spill] sm:$0xff] }
 0x698   : > { %v13173_v3 = vpop.eup %13172  ;;  %v7501_v6 = vrot.slane %v7500_v27, 1  ;;  %v6466_v14 = vrot.slane %v6465_v46, 2  ;;  %v6478_v42 = vrot.slane %v6477_v18, 4  ;;  %v10086_v34 = vrot.slane %v10078_v25, %v21340_v10  ;;  %12710 = vmatprep.mubr.msk.f32.mxu0 %vm13313_vm0, %v21386_v16 }
 0x699   : > { %v18990_v23 = vmul.f32 %v13173_v3, %v18898_v19  ;;  %v7492_v43 = vrot.slane %v7491_v2, 2  ;;  %v6474_v21 = vmax.f32 %v6472_v15, %v6473_v39  ;;  %v6487_v52 = vrot.slane %v6486_v41, 2 }
 0x69a   : > { %v7502_v36 = vadd.f32 %v7501_v6, %v7500_v27  ;;  %v6467_v8 = vmax.f32 %v6465_v46, %v6466_v14  ;;  %v6479_v35 = vmax.f32 %v6477_v18, %v6478_v42  ;;  %v10094_v33 = vcombine.low %v21630_v22, %v21629_v50 }
 0x69b   : > { %21628 = vst [vmem:[#allocation39_spill] sm:$0xff] %v18990_v23  ;;  %v7988_v4 = vmul.f32 %v21631_v57, %v18990_v23  ;;  %v7493_v51 = vadd.f32 %v7492_v43, %v7491_v2  ;;  %v6475_v38 = vrot.slane %v6474_v21, 1  ;;  %v6488_v25 = vmax.f32 %v6486_v41, %v6487_v52  ;;  %v21632_v2 = vld [vmem:[#allocation139_spill] sm:$0xff]  ;;  %v21634_v57 = vld [vmem:[#allocation149_spill] sm:$0xff] }
 0x69c   : > { %v13175_v32 = vpop.eup %13174  ;;  %13176 = vrcp.f32 %v7502_v36  ;;  %v6468_v9 = vrot.slane %v6467_v8, 1  ;;  %v6480_v19 = vrot.slane %v6479_v35, 2  ;;  %v10102_v3 = vrot.slane %v10094_v33, %v21340_v10  ;;  %v21633_v36 = vld [vmem:[#allocation155_spill] sm:$0xff] }
 0x69d   : > { %v8626_v15 = vsel %vm2106_vm4, %v7988_v4, 0.0  ;;  %v18999_v27 = vmul.f32 %v13175_v32, %v18907_v59  ;;  %v7494_v46 = vrot.slane %v7493_v51, 1  ;;  %v6476_v39 = vmax.f32 %v6474_v21, %v6475_v38 }
 0x69e   : > { %v8627_v18 = vrot.slane %v8626_v15, 4  ;;  %v6469_v6 = vmax.f32 %v6467_v8, %v6468_v9  ;;  %v6489_v14 = vrot.slane %v6488_v25, 1  ;;  %v6481_v42 = vmax.f32 %v6479_v35, %v6480_v19 }
 0x69f   : > { %v7987_v41 = vmul.f32 %v21632_v2, %v18999_v27  ;;  %v7495_v43 = vadd.f32 %v7494_v46, %v7493_v51  ;;  %v6640_v52 = vsub.f32 %v18948_v28, %v6476_v39  ;;  %v10110_v33 = vcombine.low %v21634_v57, %v21633_v36 }
 0x6a0   : > { %v19006_v23 = vadd.f32 %v8627_v18, %v8626_v15  ;;  %v6639_v59 = vsub.f32 %v18958_v47, %v6469_v6  ;;  %v6490_v32 = vmax.f32 %v6488_v25, %v6489_v14  ;;  %v6482_v4 = vrot.slane %v6481_v42, 1  ;;  %v21636_v15 = vld [vmem:[#allocation150_spill] sm:$0xff]  ;;  %v21637_v47 = vld [vmem:[#allocation63_spill] sm:$0xff] }
 0x6a1   : > { %v19011_v9 = vmul.f32 %v18923_v55, %v18849_v7  ;;  %v8619_v21 = vsel %vm2106_vm4, %v7987_v41, 0.0  ;;  %13178 = vrcp.f32 %v7495_v43  ;;  %v6837_v8 = vmul.f32 1.442695, %v6640_v52 }
 0x6a2   : > { %21635 = vst [vmem:[#allocation121_spill] sm:$0xff] %v19006_v23  ;;  %v8620_v35 = vrot.slane %v8619_v21, 4  ;;  %v6835_v51 = vmul.f32 1.442695, %v6639_v59  ;;  %v6642_v28 = vsub.f32 %v18962_v62, %v6490_v32  ;;  %v10118_v38 = vrot.slane %v10110_v33, %v21340_v10  ;;  %v21640_v32 = vld [vmem:[#allocation86_spill] sm:$0xff]  ;;  %v10960_v23 = vpop.permute.xlu0 %10959 }
 0x6a3   : > { %13180 = vpow2.f32 %v6837_v8  ;;  %v6483_v19 = vmax.f32 %v6481_v42, %v6482_v4  ;;  %v10126_v25 = vcombine.low %v21637_v47, %v21636_v15  ;;  %v10143_v46 = vcombine.high %v10086_v34, %v10102_v3  ;;  %v21641_v4 = vld [vmem:[#allocation170_spill] sm:$0xff]  ;;  %v21642_v8 = vld [vmem:[#allocation55_spill] sm:$0xff] }
 0x6a4   : > { %13182 = vpow2.f32 %v6835_v51  ;;  %v6841_v7 = vmul.f32 1.442695, %v6642_v28  ;;  %v10142_v55 = vcombine.low %v10086_v34, %v10102_v3  ;;  %v19019_v18 = vadd.f32 %v8620_v35, %v8619_v21 }
 0x6a5   : > { %v6641_v6 = vsub.f32 %v18978_v49, %v6483_v19  ;;  %v10134_v14 = vrot.slane %v10126_v25, %v21340_v10  ;;  %v19025_v62 = vadd.f32 %v18699_v54, %v18599_v61  ;;  %v19028_v2 = vrot.slane %v10143_v46, %v21345_v12  ;;  %v10908_v61 = vpop.permute.xlu1 %10907 }
 0x6a6   : > { %21638 = vst [vmem:[#allocation165_spill] sm:$0xff] %v19019_v18  ;;  %v13177_v42 = vpop.eup %13176  ;;  %13184 = vpow2.f32 %v6841_v7  ;;  %v19031_v41 = vrot.slane %v10142_v55, %v21345_v12  ;;  %v19035_v34 = vadd.f32 %v18699_v54, %v18606_v24  ;;  %v9254_v21 = vcombine.low %v21641_v4, %v21640_v32 }
 0x6a7   : > { %v19038_v49 = vmul.f32 %v13177_v42, %v18937_v53  ;;  %v6839_v3 = vmul.f32 1.442695, %v6641_v6  ;;  %v10175_v43 = vcombine.high %v10118_v38, %v10134_v14  ;;  %v10174_v52 = vcombine.low %v10118_v38, %v10134_v14 }
 0x6a8   : > { %21639 = vst [vmem:[#allocation162_spill] sm:$0xff] %v19031_v41  ;;  %v6498_v33 = vsel %vm2106_vm4, %v19025_v62, -inf  ;;  %v6491_v59 = vsel %vm2106_vm4, %v19035_v34, -inf  ;;  %v10079_v24 = vcombine.high %v21627_v44, %v21626_v40  ;;  %v19058_v25 = vsel %vm2106_vm4, %v9254_v21, %v10908_v61 }
 0x6a9   : > { %v7990_v53 = vmul.f32 %v21642_v8, %v19038_v49  ;;  %13186 = vpow2.f32 %v6839_v3  ;;  %v19051_v35 = vrot.slane %v10175_v43, %v21345_v12  ;;  %v19054_v51 = vrot.slane %v10174_v52, %v21345_v12 }
 0x6aa   : > { %v6499_v38 = vrot.slane %v6498_v33, 4  ;;  %v6492_v19 = vrot.slane %v6491_v59, 4  ;;  %v10095_v55 = vcombine.high %v21630_v22, %v21629_v50  ;;  %v19073_v3 = vrot.slane %v10079_v24, %v21340_v10 }
 0x6ab   : > { %21643 = vst [vmem:[#allocation164_spill] sm:$0xff] %v19054_v51  ;;  %v13179_v46 = vpop.eup %13178  ;;  %v19061_v40 = vsel %vm2106_vm4, %v7990_v53, 0.0  ;;  %v10208_v44 = vcombine.low %v19028_v2, %v19051_v35  ;;  %v10207_v7 = vcombine.high %v19031_v41, %v19054_v51  ;;  %v10127_v50 = vcombine.high %v21637_v47, %v21636_v15 }
 0x6ac   : > { %21644 = vst [vmem:[#allocation80_spill] sm:$0xff] %v19061_v40  ;;  %v19070_v6 = vmul.f32 %v13179_v46, %v18966_v13  ;;  %v6500_v14 = vmax.f32 %v6498_v33, %v6499_v38  ;;  %v6493_v42 = vmax.f32 %v6491_v59, %v6492_v19  ;;  %v19081_v61 = vrot.slane %v10095_v55, %v21340_v10  ;;  %v21645_v33 = vld [vmem:[#allocation140_spill] sm:$0xff] }
 0x6ad   : > { %v19075_v43 = vpop.eup %13180  ;;  %10973 = vrot.lane.b32.xlu1 %v10208_v44, %s13315_s23  ;;  %10921 = vrot.lane.b32.xlu0 %v10207_v7, %s13316_s30  ;;  %v10111_v13 = vcombine.high %v21634_v57, %v21633_v36  ;;  %v19099_v57 = vrot.slane %v10127_v50, %v21340_v10  ;;  %v10209_v18 = vcombine.high %v19028_v2, %v19051_v35 }
 0x6ae   : > { %v19087_v22 = vpop.eup %13182  ;;  %v7989_v59 = vmul.f32 %v21645_v33, %v19070_v6  ;;  %v7510_v32 = vsel %vm2106_vm4, %v19075_v43, 0.0  ;;  %v6501_v4 = vrot.slane %v6500_v14, 2  ;;  %v6494_v21 = vrot.slane %v6493_v42, 2 }
 0x6af   : > { %v7511_v24 = vrot.slane %v7510_v32, 4  ;;  %v7503_v8 = vsel %vm2106_vm4, %v19087_v22, 0.0  ;;  %v19096_v53 = vrot.slane %v10111_v13, %v21340_v10  ;;  %v10158_v52 = vcombine.low %v19073_v3, %v19081_v61 }
 0x6b0   : > { %v19101_v47 = vpop.eup %13184  ;;  %v8633_v38 = vsel %vm2106_vm4, %v7989_v59, 0.0  ;;  %v7504_v19 = vrot.slane %v7503_v8, 4  ;;  %v6502_v46 = vmax.f32 %v6500_v14, %v6501_v4  ;;  %v6495_v44 = vmax.f32 %v6493_v42, %v6494_v21 }
 0x6b1   : > { %v8634_v7 = vrot.slane %v8633_v38, 4  ;;  %v7512_v55 = vadd.f32 %v7511_v24, %v7510_v32  ;;  %v7524_v33 = vsel %vm2106_vm4, %v19101_v47, 0.0  ;;  %v19113_v14 = vrot.slane %v10158_v52, %v21345_v12  ;;  %11025 = vrot.lane.b32.xlu0 %v10209_v18, %s21364_s22 }
 0x6b2   : > { %v7505_v13 = vadd.f32 %v7504_v19, %v7503_v8  ;;  %v7525_v39 = vrot.slane %v7524_v33, 4  ;;  %v6503_v28 = vrot.slane %v6502_v46, 1  ;;  %v6496_v50 = vrot.slane %v6495_v44, 1 }
 0x6b3   : > { %v19108_v41 = vpop.eup %13186  ;;  %v19110_v51 = vadd.f32 %v8634_v7, %v8633_v38  ;;  %v7513_v59 = vrot.slane %v7512_v55, 2  ;;  %21647 = vst [vmem:[#allocation85_spill] sm:$0xff] %v19113_v14  ;;  %v10190_v42 = vcombine.low %v19096_v53, %v19099_v57 }
 0x6b4   : > { %v7506_v32 = vrot.slane %v7505_v13, 2  ;;  %v7526_v4 = vadd.f32 %v7525_v39, %v7524_v33  ;;  %v7517_v21 = vsel %vm2106_vm4, %v19108_v41, 0.0  ;;  %v6504_v24 = vmax.f32 %v6502_v46, %v6503_v28 }
 0x6b5   : > { %21646 = vst [vmem:[#allocation41_spill] sm:$0xff] %v19110_v51  ;;  %v7514_v8 = vadd.f32 %v7513_v59, %v7512_v55  ;;  %v7518_v19 = vrot.slane %v7517_v21, 4  ;;  %v6497_v40 = vmax.f32 %v6495_v44, %v6496_v50  ;;  %v19120_v38 = vrot.slane %v10190_v42, %v21345_v12 }
 0x6b6   : > { %v7507_v7 = vadd.f32 %v7506_v32, %v7505_v13  ;;  %v7527_v51 = vrot.slane %v7526_v4, 2  ;;  %v6644_v52 = vsub.f32 %v19025_v62, %v6504_v24  ;;  %v19132_v62 = vadd.f32 %v18699_v54, %v18811_v5  ;;  %v11064_v32 = vpop.permute.xlu0 %11063 }
 0x6b7   : > { %21648 = vst [vmem:[#allocation84_spill] sm:$0xff] %v19120_v38  ;;  %v7515_v39 = vrot.slane %v7514_v8, 1  ;;  %v7519_v33 = vadd.f32 %v7518_v19, %v7517_v21  ;;  %v6643_v28 = vsub.f32 %v19035_v34, %v6497_v40  ;;  %v10211_v46 = vcombine.high %v19113_v14, %v19120_v38 }
 0x6b8   : > { %v7508_v44 = vrot.slane %v7507_v7, 1  ;;  %v7528_v55 = vadd.f32 %v7527_v51, %v7526_v4  ;;  %v6845_v50 = vmul.f32 1.442695, %v6644_v52  ;;  %v19137_v34 = vadd.f32 %v18699_v54, %v18862_v17  ;;  %v21649_v54 = vld [vmem:[#allocation88_spill] sm:$0xff]  ;;  %v21650_v17 = vld [vmem:[#allocation175_spill] sm:$0xff] }
 0x6b9   : > { %v7516_v13 = vadd.f32 %v7515_v39, %v7514_v8  ;;  %v7520_v2 = vrot.slane %v7519_v33, 2  ;;  %v6843_v35 = vmul.f32 1.442695, %v6643_v28  ;;  %11077 = vrot.lane.b32.xlu1 %v10211_v46, %s13316_s30  ;;  %v6512_v18 = vsel %vm2106_vm4, %v19132_v62, -inf  ;;  %v11012_v8 = vpop.permute.xlu1 %11011 }
 0x6ba   : > { %v7509_v40 = vadd.f32 %v7508_v44, %v7507_v7  ;;  %v7529_v51 = vrot.slane %v7528_v55, 1  ;;  %13188 = vpow2.f32 %v6845_v50  ;;  %v6513_v59 = vrot.slane %v6512_v18, 4 }
 0x6bb   : > { %13190 = vrcp.f32 %v7516_v13  ;;  %v7521_v5 = vadd.f32 %v7520_v2, %v7519_v33  ;;  %v6505_v42 = vsel %vm2106_vm4, %v19137_v34, -inf  ;;  %v9258_v24 = vcombine.low %v21650_v17, %v21649_v54  ;;  %v21653_v2 = vld [vmem:[#allocation66_spill] sm:$0xff] }
 0x6bc   : > { %13192 = vrcp.f32 %v7509_v40  ;;  %v7530_v4 = vadd.f32 %v7529_v51, %v7528_v55  ;;  %v6506_v21 = vrot.slane %v6505_v42, 4  ;;  %v6514_v7 = vmax.f32 %v6512_v18, %v6513_v59  ;;  %v21651_v55 = vld [vmem:[#allocation126_spill] sm:$0xff]  ;;  %v21655_v51 = vld [vmem:[#allocation68_spill] sm:$0xff] }
 0x6bd   : > { %v7522_v19 = vrot.slane %v7521_v5, 1  ;;  %13194 = vpow2.f32 %v6843_v35  ;;  %v11220_v52 = vsel %vm11219_vm12, %v19058_v25, %v10960_v23  ;;  %v19150_v33 = vsel %vm2106_vm4, %v9258_v24, %v11064_v32  ;;  %v21652_v23 = vld [vmem:[#allocation42_spill] sm:$0xff]  ;;  %v21658_v32 = vld [vmem:[#allocation28_spill] sm:$0xff] }
 0x6be   : > { %13196 = vrcp.f32 %v7530_v4  ;;  %v6507_v39 = vmax.f32 %v6505_v42, %v6506_v21  ;;  %v6515_v46 = vrot.slane %v6514_v7, 2  ;;  %v11234_v44 = vsel %vm11233_vm13, %v11220_v52, %v11012_v8  ;;  %v21657_v42 = vld [vmem:[#allocation31_spill] sm:$0xff] }
 0x6bf   : > { %v7523_v28 = vadd.f32 %v7522_v19, %v7521_v5  ;;  %v7961_v50 = vmul.f32 %v21651_v55, %v21633_v36  ;;  %11286 = vst [vmem:[%s19155_s15] sm:$0xff] %v11234_v44  ;;  %v7962_v25 = vmul.f32 %v21652_v23, %v21636_v15  ;;  %v21654_v35 = vrot.slane %v21653_v2, 2  ;;  %v21660_v15 = vld [vmem:[#allocation67_spill] sm:$0xff] }
 0x6c0   : > { %v6508_v13 = vrot.slane %v6507_v39, 2  ;;  %v21656_v18 = vrot.slane %v21655_v51, 2  ;;  %v6516_v59 = vmax.f32 %v6514_v7, %v6515_v46  ;;  %v8412_v36 = vrot.slane %v21657_v42, 2 }
 0x6c1   : > { %v8399_v40 = vadd.f32 %v21654_v35, %v21653_v2  ;;  %13198 = vrcp.f32 %v7523_v28  ;;  %v21659_v4 = vrot.slane %v21658_v32, 4  ;;  %v8423_v8 = vsel %vm2106_vm4, %v21660_v15, 0.0  ;;  %v21661_v2 = vld [vmem:[#allocation152_spill] sm:$0xff] }
 0x6c2   : > { %v8406_v5 = vadd.f32 %v21656_v18, %v21655_v51  ;;  %v6509_v54 = vmax.f32 %v6507_v39, %v6508_v13  ;;  %v6517_v19 = vrot.slane %v6516_v59, 1  ;;  %v8413_v52 = vadd.f32 %v8412_v36, %v21657_v42 }
 0x6c3   : > { %v8418_v21 = vadd.f32 %v21659_v4, %v21658_v32  ;;  %v8400_v17 = vrot.slane %v8399_v40, 1  ;;  %v8424_v55 = vrot.slane %v8423_v8, 4  ;;  %v8430_v35 = vsel %vm2106_vm4, %v21661_v2, 0.0 }
 0x6c4   : > { %v8407_v24 = vrot.slane %v8406_v5, 1  ;;  %v19173_v23 = vpop.eup %13188  ;;  %v6510_v7 = vrot.slane %v6509_v54, 1  ;;  %v6518_v13 = vmax.f32 %v6516_v59, %v6517_v19  ;;  %v8414_v18 = vrot.slane %v8413_v52, 1  ;;  %v21662_v59 = vld [vmem:[#allocation60_spill] sm:$0xff] }
 0x6c5   : > { %v8419_v44 = vrot.slane %v8418_v21, 2  ;;  %v8401_v28 = vadd.f32 %v8400_v17, %v8399_v40  ;;  %v13191_v51 = vpop.eup %13190  ;;  %v7538_v39 = vsel %vm2106_vm4, %v19173_v23, 0.0  ;;  %v8425_v14 = vadd.f32 %v8424_v55, %v8423_v8  ;;  %v21664_v8 = vld [vmem:[#allocation141_spill] sm:$0xff] }
 0x6c6   : > { %v8408_v46 = vadd.f32 %v8407_v24, %v8406_v5  ;;  %v13193_v4 = vpop.eup %13192  ;;  %v19180_v42 = vmul.f32 %v13191_v51, %v19075_v43  ;;  %v7539_v36 = vrot.slane %v7538_v39, 4  ;;  %v6511_v15 = vmax.f32 %v6509_v54, %v6510_v7 }
 0x6c7   : > { %v8420_v32 = vadd.f32 %v8419_v44, %v8418_v21  ;;  %v19182_v38 = vpop.eup %13194  ;;  %v19185_v40 = vmul.f32 %v13193_v4, %v19087_v22  ;;  %v6646_v5 = vsub.f32 %v19132_v62, %v6518_v13  ;;  %v8415_v17 = vadd.f32 %v8414_v18, %v8413_v52 }
 0x6c8   : > { %v13197_v2 = vpop.eup %13196  ;;  %v19190_v21 = vmul.f32 %v21662_v59, %v19180_v42  ;;  %v7540_v19 = vadd.f32 %v7539_v36, %v7538_v39  ;;  %v7531_v43 = vsel %vm2106_vm4, %v19182_v38, 0.0  ;;  %v6645_v54 = vsub.f32 %v19137_v34, %v6511_v15 }
 0x6c9   : > { %v8421_v24 = vrot.slane %v8420_v32, 1  ;;  %v19197_v44 = vmul.f32 %v21664_v8, %v19185_v40  ;;  %v19200_v22 = vmul.f32 %v13197_v2, %v19101_v47  ;;  %v7532_v62 = vrot.slane %v7531_v43, 4 }
 0x6ca   : > { %21663 = vst [vmem:[#allocation123_spill] sm:$0xff] %v19190_v21  ;;  %v6849_v52 = vmul.f32 1.442695, %v6646_v5  ;;  %v7541_v55 = vrot.slane %v7540_v19, 2  ;;  %v6847_v7 = vmul.f32 1.442695, %v6645_v54 }
 0x6cb   : > { %v8422_v51 = vadd.f32 %v8421_v24, %v8420_v32  ;;  %v8426_v13 = vrot.slane %v8425_v14, 2  ;;  %v13199_v18 = vpop.eup %13198  ;;  %v7533_v39 = vadd.f32 %v7532_v62, %v7531_v43  ;;  %v8431_v4 = vrot.slane %v8430_v35, 4 }
 0x6cc   : > { %13200 = vpow2.f32 %v6849_v52  ;;  %v8437_v36 = vsel %vm2106_vm4, %v7961_v50, 0.0  ;;  %v19204_v34 = vmul.f32 %v13199_v18, %v19108_v41  ;;  %v7542_v15 = vadd.f32 %v7541_v55, %v7540_v19 }
 0x6cd   : > { %13202 = vpow2.f32 %v6847_v7  ;;  %v8427_v59 = vadd.f32 %v8426_v13, %v8425_v14  ;;  %v7534_v47 = vrot.slane %v7533_v39, 2  ;;  %v8432_v2 = vadd.f32 %v8431_v4, %v8430_v35 }
 0x6ce   : > { %v8438_v8 = vrot.slane %v8437_v36, 4  ;;  %v8444_v5 = vsel %vm2106_vm4, %v7962_v25, 0.0  ;;  %v7543_v54 = vrot.slane %v7542_v15, 1  ;;  %v8902_v43 = vsel %vm8846_vm5, %v8408_v46, %v8401_v28 }
 0x6cf   : > { %v8428_v32 = vrot.slane %v8427_v59, 1  ;;  %v8445_v24 = vrot.slane %v8444_v5, 4  ;;  %v7535_v62 = vadd.f32 %v7534_v47, %v7533_v39  ;;  %v8433_v52 = vrot.slane %v8432_v2, 2  ;;  %v11116_v39 = vpop.permute.xlu1 %11115 }
 0x6d0   : > { %v8439_v21 = vadd.f32 %v8438_v8, %v8437_v36  ;;  %v8903_v50 = vsel %vm8848_vm6, %v8415_v17, %v8902_v43  ;;  %v7544_v41 = vadd.f32 %v7543_v54, %v7542_v15  ;;  %v10159_v25 = vcombine.high %v19073_v3, %v19081_v61  ;;  %v13234_v3 = vld [vmem:[%s20180_s9] ss:$0 sm:$0xff] }
 0x6d1   : > { %v8429_v18 = vadd.f32 %v8428_v32, %v8427_v59  ;;  %v8446_v19 = vadd.f32 %v8445_v24, %v8444_v5  ;;  %v8904_v14 = vsel %vm8850_vm7, %v8422_v51, %v8903_v50  ;;  %v7536_v55 = vrot.slane %v7535_v62, 1 }
 0x6d2   : > { %v8434_v35 = vadd.f32 %v8433_v52, %v8432_v2  ;;  %v8440_v7 = vrot.slane %v8439_v21, 2  ;;  %13204 = vrcp.f32 %v7544_v41  ;;  %v10191_v46 = vcombine.high %v19096_v53, %v19099_v57  ;;  %v11168_v52 = vpop.permute.xlu0 %11167 }
 0x6d3   : > { %v8447_v13 = vrot.slane %v8446_v19, 2  ;;  %v8905_v28 = vsel %vm8852_vm8, %v8429_v18, %v8904_v14  ;;  %v7537_v17 = vadd.f32 %v7536_v55, %v7535_v62  ;;  %v10173_v15 = vrot.slane %v10159_v25, %v21345_v12 }
 0x6d4   : > { %v8435_v4 = vrot.slane %v8434_v35, 1  ;;  %v8441_v36 = vadd.f32 %v8440_v7, %v8439_v21  ;;  %v10205_v59 = vrot.slane %v10191_v46, %v21345_v12  ;;  %v19221_v61 = vadd.f32 %v13234_v3, %v18872_v1 }
 0x6d5   : > { %v8448_v51 = vadd.f32 %v8447_v13, %v8446_v19  ;;  %v19224_v47 = vadd.f32 %v13234_v3, %v18941_v30  ;;  %13206 = vrcp.f32 %v7537_v17  ;;  %v11260_v2 = vsel %vm11219_vm12, %v19150_v33, %v11116_v39 }
 0x6d6   : > { %v19226_v53 = vpop.eup %13200  ;;  %v8436_v57 = vadd.f32 %v8435_v4, %v8434_v35  ;;  %v8442_v21 = vrot.slane %v8441_v36, 1  ;;  %v10213_v32 = vcombine.high %v10173_v15, %v10205_v59  ;;  %v10212_v1 = vcombine.low %v10173_v15, %v10205_v59  ;;  %v21665_v59 = vld [vmem:[#allocation33_spill] sm:$0xff] }
 0x6d7   : > { %v19230_v8 = vpop.eup %13202  ;;  %v7552_v5 = vsel %vm2106_vm4, %v19226_v53, 0.0  ;;  %v8449_v54 = vrot.slane %v8448_v51, 1  ;;  %v6526_v33 = vsel %vm2106_vm4, %v19221_v61, -inf  ;;  %v6519_v18 = vsel %vm2106_vm4, %v19224_v47, -inf }
 0x6d8   : > { %v7553_v24 = vrot.slane %v7552_v5, 4  ;;  %v7545_v30 = vsel %vm2106_vm4, %v19230_v8, 0.0  ;;  %v8443_v43 = vadd.f32 %v8442_v21, %v8441_v36  ;;  %v8906_v62 = vsel %vm8854_vm9, %v8436_v57, %v8905_v28  ;;  %11181 = vrot.lane.b32.xlu1 %v10213_v32, %s21364_s22  ;;  %11129 = vrot.lane.b32.xlu0 %v10212_v1, %s13315_s23  ;;  %v21666_v57 = vld [vmem:[#allocation70_spill] sm:$0xff] }
 0x6d9   : > { %v7546_v50 = vrot.slane %v7545_v30, 4  ;;  %v8450_v41 = vadd.f32 %v8449_v54, %v8448_v51  ;;  %v6527_v55 = vrot.slane %v6526_v33, 4  ;;  %v6520_v35 = vrot.slane %v6519_v18, 4 }
 0x6da   : > { %v7554_v19 = vadd.f32 %v7553_v24, %v7552_v5  ;;  %v8907_v14 = vsel %vm8856_vm10, %v8443_v43, %v8906_v62  ;;  %v11273_v13 = vsel %vm11233_vm13, %v11260_v2, %v11168_v52  ;;  %v19247_v28 = vadd.f32 %v13234_v3, %v18951_v48  ;;  %v21667_v2 = vld [vmem:[#allocation72_spill] sm:$0xff]  ;;  %v21668_v48 = vld [vmem:[#allocation113_spill] sm:$0xff]  ;;  %v21670_v52 = vld [vmem:[#allocation62_spill] sm:$0xff] }
 0x6db   : > { %v7547_v7 = vadd.f32 %v7546_v50, %v7545_v30  ;;  %v8908_v25 = vsel %vm8858_vm11, %v8450_v41, %v8907_v14  ;;  %v6528_v39 = vmax.f32 %v6526_v33, %v6527_v55  ;;  %v6521_v17 = vmax.f32 %v6519_v18, %v6520_v35  ;;  %11287 = vst [vmem:[%s19155_s15 + $0x8] sm:$0xff] %v11273_v13 }
 0x6dc   : > { %v7555_v46 = vrot.slane %v7554_v19, 2  ;;  %12711 = vmatmul.mubr.msk.f32.gmra.mrb[170].mxu0 %vm2106_vm4, %v8908_v25  ;;  %v19252_v4 = vadd.f32 %v13234_v3, %v18964_v20  ;;  %v13205_v36 = vpop.eup %13204  ;;  %v6540_v51 = vsel %vm2106_vm4, %v19247_v28, -inf  ;;  %v10214_v21 = vcombine.low %v21666_v57, %v21665_v59 }
 0x6dd   : > { %v7548_v15 = vrot.slane %v7547_v7, 2  ;;  %v10230_v5 = vcombine.low %v21668_v48, %v21667_v2  ;;  %12713 = vmatprep.mubr.msk.f32.mxu0 %vm13313_vm0, %v21386_v16  ;;  %v19263_v54 = vmul.f32 %v13205_v36, %v19173_v23  ;;  %v6529_v20 = vrot.slane %v6528_v39, 2  ;;  %v21672_v36 = vld [vmem:[#allocation143_spill] sm:$0xff] }
 0x6de   : > { %v7556_v32 = vadd.f32 %v7555_v46, %v7554_v19  ;;  %v6522_v3 = vrot.slane %v6521_v17, 2  ;;  %v6541_v24 = vrot.slane %v6540_v51, 4  ;;  %v6533_v30 = vsel %vm2106_vm4, %v19252_v4, -inf }
 0x6df   : > { %21669 = vst [vmem:[#allocation168_spill] sm:$0xff] %v19263_v54  ;;  %v7549_v1 = vadd.f32 %v7548_v15, %v7547_v7  ;;  %v10222_v43 = vrot.slane %v10214_v21, %v21340_v10  ;;  %v13207_v62 = vpop.eup %13206  ;;  %v7996_v50 = vmul.f32 %v21670_v52, %v19263_v54  ;;  %v6530_v33 = vmax.f32 %v6528_v39, %v6529_v20 }
 0x6e0   : > { %v7557_v41 = vrot.slane %v7556_v32, 1  ;;  %v6523_v18 = vmax.f32 %v6521_v17, %v6522_v3  ;;  %v19271_v23 = vmul.f32 %v13207_v62, %v19182_v38  ;;  %v6542_v14 = vmax.f32 %v6540_v51, %v6541_v24 }
 0x6e1   : > { %v7550_v19 = vrot.slane %v7549_v1, 1  ;;  %v6534_v55 = vrot.slane %v6533_v30, 4  ;;  %v8682_v35 = vsel %vm2106_vm4, %v7996_v50, 0.0  ;;  %v6531_v25 = vrot.slane %v6530_v33, 1 }
 0x6e2   : > { %21671 = vst [vmem:[#allocation10_spill] sm:$0xff] %v19271_v23  ;;  %v7558_v7 = vadd.f32 %v7557_v41, %v7556_v32  ;;  %v6524_v13 = vrot.slane %v6523_v18, 1  ;;  %v8683_v46 = vrot.slane %v8682_v35, 4  ;;  %v7995_v15 = vmul.f32 %v21672_v36, %v19271_v23  ;;  %v10910_v36 = vpop.permute.xlu0 %10909 }
 0x6e3   : > { %v7551_v21 = vadd.f32 %v7550_v19, %v7549_v1  ;;  %v6543_v52 = vrot.slane %v6542_v14, 2  ;;  %v6532_v39 = vmax.f32 %v6530_v33, %v6531_v25  ;;  %v6535_v20 = vmax.f32 %v6533_v30, %v6534_v55 }
 0x6e4   : > { %13208 = vrcp.f32 %v7558_v7  ;;  %v6525_v17 = vmax.f32 %v6523_v18, %v6524_v13  ;;  %v19276_v38 = vadd.f32 %v8683_v46, %v8682_v35  ;;  %v8675_v51 = vsel %vm2106_vm4, %v7995_v15, 0.0  ;;  %v21700_v13 = vld [vmem:[#allocation153_spill] sm:$0xff] }
 0x6e5   : > { %13210 = vrcp.f32 %v7551_v21  ;;  %v6544_v3 = vmax.f32 %v6542_v14, %v6543_v52  ;;  %v8676_v24 = vrot.slane %v8675_v51, 4  ;;  %v6648_v32 = vsub.f32 %v19221_v61, %v6532_v39  ;;  %v21675_v61 = vld [vmem:[#allocation103_spill] sm:$0xff] }
 0x6e6   : > { %21673 = vst [vmem:[#allocation40_spill] sm:$0xff] %v19276_v38  ;;  %v6647_v62 = vsub.f32 %v19224_v47, %v6525_v17  ;;  %v6536_v50 = vrot.slane %v6535_v20, 2  ;;  %v10238_v19 = vrot.slane %v10230_v5, %v21340_v10  ;;  %v10246_v30 = vcombine.low %v18390_v37, %v18404_v11 }
 0x6e7   : > { %v6545_v1 = vrot.slane %v6544_v3, 1  ;;  %v19285_v33 = vadd.f32 %v8676_v24, %v8675_v51  ;;  %v6853_v18 = vmul.f32 1.442695, %v6648_v32  ;;  %v10262_v47 = vcombine.low %v21675_v61, %v18401_v45  ;;  %v21678_v51 = vld [vmem:[#allocation181_spill] sm:$0xff]  ;;  %v10962_v24 = vpop.permute.xlu1 %10961 }
 0x6e8   : > { %v6851_v55 = vmul.f32 1.442695, %v6647_v62  ;;  %v6537_v35 = vmax.f32 %v6535_v20, %v6536_v50  ;;  %v10254_v7 = vrot.slane %v10246_v30, %v21340_v10  ;;  %v10279_v25 = vcombine.high %v10222_v43, %v10238_v19  ;;  %v21677_v20 = vld [vmem:[#allocation99_spill] sm:$0xff] }
 0x6e9   : > { %21674 = vst [vmem:[#allocation124_spill] sm:$0xff] %v19285_v33  ;;  %v6546_v14 = vmax.f32 %v6544_v3, %v6545_v1  ;;  %13212 = vpow2.f32 %v6853_v18  ;;  %v10278_v5 = vcombine.low %v10222_v43, %v10238_v19  ;;  %v10270_v21 = vrot.slane %v10262_v47, %v21340_v10  ;;  %v21681_v47 = vld [vmem:[#allocation59_spill] sm:$0xff] }
 0x6ea   : > { %v6538_v46 = vrot.slane %v6537_v35, 1  ;;  %13214 = vpow2.f32 %v6851_v55  ;;  %v10293_v52 = vrot.slane %v10279_v25, %v21345_v12  ;;  %v9390_v3 = vcombine.low %v21678_v51, %v21677_v20 }
 0x6eb   : > { %v6650_v15 = vsub.f32 %v19247_v28, %v6546_v14  ;;  %v19295_v17 = vrot.slane %v10278_v5, %v21345_v12  ;;  %v10215_v32 = vcombine.high %v21666_v57, %v21665_v59  ;;  %v10311_v62 = vcombine.high %v10254_v7, %v10270_v21 }
 0x6ec   : > { %v6539_v39 = vmax.f32 %v6537_v35, %v6538_v46  ;;  %v10310_v50 = vcombine.low %v10254_v7, %v10270_v21  ;;  %v10231_v28 = vcombine.high %v21668_v48, %v21667_v2  ;;  %v11207_v30 = vsel %vm2106_vm4, %v9390_v3, %v10910_v36 }
 0x6ed   : > { %21676 = vst [vmem:[#allocation110_spill] sm:$0xff] %v19295_v17  ;;  %v6857_v43 = vmul.f32 1.442695, %v6650_v15  ;;  %v19306_v18 = vrot.slane %v10215_v32, %v21340_v10  ;;  %v10247_v55 = vcombine.high %v18390_v37, %v18404_v11  ;;  %v10325_v57 = vrot.slane %v10311_v62, %v21345_v12  ;;  %v11014_v37 = vpop.permute.xlu0 %11013  ;;  %v21685_v32 = vld [vmem:[#allocation182_spill] sm:$0xff] }
 0x6ee   : > { %v13209_v1 = vpop.eup %13208  ;;  %v6649_v19 = vsub.f32 %v19252_v4, %v6539_v39  ;;  %v19315_v2 = vrot.slane %v10310_v50, %v21345_v12  ;;  %v11221_v14 = vsel %vm11219_vm12, %v11207_v30, %v10962_v24  ;;  %v19322_v7 = vrot.slane %v10231_v28, %v21340_v10  ;;  %v11066_v39 = vpop.permute.xlu1 %11065  ;;  %v21684_v24 = vld [vmem:[#allocation183_spill] sm:$0xff] }
 0x6ef   : > { %v13211_v35 = vpop.eup %13210  ;;  %v19311_v59 = vmul.f32 %v13209_v1, %v19226_v53  ;;  %13216 = vpow2.f32 %v6857_v43  ;;  %v10344_v25 = vcombine.low %v10293_v52, %v10325_v57  ;;  %v19329_v5 = vrot.slane %v10247_v55, %v21340_v10 }
 0x6f0   : > { %21680 = vst [vmem:[#allocation81_spill] sm:$0xff] %v19315_v2  ;;  %v19318_v4 = vmul.f32 %v13211_v35, %v19230_v8  ;;  %v6855_v48 = vmul.f32 1.442695, %v6649_v19  ;;  %v10343_v46 = vcombine.high %v19295_v17, %v19315_v2  ;;  %v21682_v8 = vld [vmem:[#allocation144_spill] sm:$0xff]  ;;  %v10263_v15 = vcombine.high %v21675_v61, %v18401_v45  ;;  %v21687_v35 = vld [vmem:[#allocation130_spill] sm:$0xff] }
 0x6f1   : > { %21679 = vst [vmem:[#allocation26_spill] sm:$0xff] %v19311_v59  ;;  %v7998_v53 = vmul.f32 %v21681_v47, %v19311_v59  ;;  %v10294_v21 = vcombine.low %v19306_v18, %v19322_v7  ;;  %10975 = vrot.lane.b32.xlu0 %v10344_v25, %s13315_s23  ;;  %v10345_v51 = vcombine.high %v10293_v52, %v10325_v57  ;;  %v21688_v47 = vld [vmem:[#allocation45_spill] sm:$0xff]  ;;  %v19373_v25 = vpop.f32.mrb[156].mxu0 }
 0x6f2   : > { %v7997_v36 = vmul.f32 %v21682_v8, %v19318_v4  ;;  %13218 = vpow2.f32 %v6855_v48  ;;  %10923 = vrot.lane.b32.xlu1 %v10343_v46, %s13316_s30  ;;  %v11235_v3 = vsel %vm11233_vm13, %v11221_v14, %v11014_v37  ;;  %v9394_v43 = vcombine.low %v21685_v32, %v21684_v24  ;;  %21689 = vst [vmem:[#allocation82_spill] sm:$0xff] %v19373_v25  ;;  %v12691_v24 = vpop.f32.mrb[157].mxu0 }
 0x6f3   : > { %v19338_v20 = vsel %vm2106_vm4, %v7998_v53, 0.0  ;;  %v19345_v62 = vpop.eup %13212  ;;  %v19350_v28 = vrot.slane %v10263_v15, %v21340_v10  ;;  %v19353_v1 = vrot.slane %v10294_v21, %v21345_v12  ;;  %11288 = vst [vmem:[%s19155_s15 + $0x10] sm:$0xff] %v11235_v3  ;;  %v7969_v57 = vmul.f32 %v21687_v35, %v18404_v11  ;;  %v21693_v21 = vld [vmem:[#allocation151_spill] sm:$0xff] }
 0x6f4   : > { %21683 = vst [vmem:[#allocation163_spill] sm:$0xff] %v19338_v20  ;;  %v8689_v50 = vsel %vm2106_vm4, %v7997_v36, 0.0  ;;  %v19356_v19 = vpop.eup %13214  ;;  %v7566_v30 = vsel %vm2106_vm4, %v19345_v62, 0.0  ;;  %v19361_v55 = vsel %vm2106_vm4, %v9394_v43, %v11066_v39  ;;  %v19371_v53 = vmul.f32 %v21688_v47, %v18401_v45  ;;  %v21691_v36 = vld [vmem:[#allocation69_spill] sm:$0xff]  ;;  %v21696_v43 = vld [vmem:[#allocation148_spill] sm:$0xff] }
 0x6f5   : > { %21686 = vst [vmem:[#allocation166_spill] sm:$0xff] %v19353_v1  ;;  %v8690_v52 = vrot.slane %v8689_v50, 4  ;;  %v7567_v48 = vrot.slane %v7566_v30, 4  ;;  %v7559_v14 = vsel %vm2106_vm4, %v19356_v19, 0.0  ;;  %v10326_v37 = vcombine.low %v19329_v5, %v19350_v28 }
 0x6f6   : > { %v7560_v8 = vrot.slane %v7559_v14, 4  ;;  %11027 = vrot.lane.b32.xlu1 %v10345_v51, %s21364_s22  ;;  %v21692_v11 = vrot.slane %v21691_v36, 2  ;;  %v21694_v39 = vrot.slane %v21693_v21, 2  ;;  %v8468_v35 = vrot.slane %v21696_v43, 2  ;;  %v19391_v51 = vpop.f32.mrb[158].mxu0 }
 0x6f7   : > { %v19375_v46 = vadd.f32 %v8690_v52, %v8689_v50  ;;  %v7568_v32 = vadd.f32 %v7567_v48, %v7566_v30  ;;  %v19385_v45 = vrot.slane %v10326_v37, %v21345_v12  ;;  %v21697_v50 = vld [vmem:[#allocation115_spill] sm:$0xff]  ;;  %21699 = vst [vmem:[#allocation44_spill] sm:$0xff] %v19391_v51  ;;  %v12694_v24 = vpop.f32.mrb[159].mxu0 }
 0x6f8   : > { %v8455_v15 = vadd.f32 %v21692_v11, %v21691_v36  ;;  %v8462_v3 = vadd.f32 %v21694_v39, %v21693_v21  ;;  %v21698_v52 = vrot.slane %v21697_v50, 4  ;;  %v7561_v36 = vadd.f32 %v7560_v8, %v7559_v14  ;;  %v19402_v14 = vpop.f32.mrb[160].mxu0 }
 0x6f9   : > { %21690 = vst [vmem:[#allocation167_spill] sm:$0xff] %v19375_v46  ;;  %21695 = vst [vmem:[#allocation83_spill] sm:$0xff] %v19385_v45  ;;  %v19393_v61 = vpop.eup %13216  ;;  %v8479_v21 = vsel %vm2106_vm4, %v21700_v13, 0.0  ;;  %v7569_v30 = vrot.slane %v7568_v32, 2  ;;  %v10347_v37 = vcombine.high %v19353_v1, %v19385_v45  ;;  %v8469_v39 = vadd.f32 %v8468_v35, %v21696_v43  ;;  %v12697_v46 = vpop.f32.mrb[161].mxu0  ;;  %v21702_v35 = vld [vmem:[#allocation154_spill] sm:$0xff] }
 0x6fa   : > { %v8474_v47 = vadd.f32 %v21698_v52, %v21697_v50  ;;  %v8456_v11 = vrot.slane %v8455_v15, 1  ;;  %v8463_v41 = vrot.slane %v8462_v3, 1  ;;  %v7580_v48 = vsel %vm2106_vm4, %v19393_v61, 0.0  ;;  %21701 = vst [vmem:[#allocation125_spill] sm:$0xff] %v19402_v14 }
 0x6fb   : > { %v7562_v50 = vrot.slane %v7561_v36, 2  ;;  %v7581_v52 = vrot.slane %v7580_v48, 4  ;;  %v7570_v51 = vadd.f32 %v7569_v30, %v7568_v32  ;;  %11079 = vrot.lane.b32.xlu0 %v10347_v37, %s13316_s30  ;;  %v8470_v13 = vrot.slane %v8469_v39, 1 }
 0x6fc   : > { %v8457_v17 = vadd.f32 %v8456_v11, %v8455_v15  ;;  %v8464_v2 = vadd.f32 %v8463_v41, %v8462_v3  ;;  %v19404_v8 = vpop.eup %13218  ;;  %v8475_v25 = vrot.slane %v8474_v47, 2  ;;  %v8480_v20 = vrot.slane %v8479_v21, 4 }
 0x6fd   : > { %v7563_v38 = vadd.f32 %v7562_v50, %v7561_v36  ;;  %v7582_v1 = vadd.f32 %v7581_v52, %v7580_v48  ;;  %v7573_v43 = vsel %vm2106_vm4, %v19404_v8, 0.0  ;;  %v8486_v15 = vsel %vm2106_vm4, %v21702_v35, 0.0 }
 0x6fe   : > { %v7571_v41 = vrot.slane %v7570_v51, 1  ;;  %v7574_v3 = vrot.slane %v7573_v43, 4  ;;  %v8471_v11 = vadd.f32 %v8470_v13, %v8469_v39  ;;  %v8476_v24 = vadd.f32 %v8475_v25, %v8474_v47 }
 0x6ff   : > { %v7564_v45 = vrot.slane %v7563_v38, 1  ;;  %v7583_v32 = vrot.slane %v7582_v1, 2  ;;  %v8481_v30 = vadd.f32 %v8480_v20, %v8479_v21  ;;  %v8487_v37 = vrot.slane %v8486_v15, 4 }
 0x700   : > { %v7572_v14 = vadd.f32 %v7571_v41, %v7570_v51  ;;  %v7575_v33 = vadd.f32 %v7574_v3, %v7573_v43  ;;  %v8477_v54 = vrot.slane %v8476_v24, 1  ;;  %v8493_v46 = vsel %vm2106_vm4, %v7969_v57, 0.0 }
 0x701   : > { %v7565_v36 = vadd.f32 %v7564_v45, %v7563_v38  ;;  %v7584_v48 = vadd.f32 %v7583_v32, %v7582_v1  ;;  %v8482_v50 = vrot.slane %v8481_v30, 2  ;;  %v8488_v52 = vadd.f32 %v8487_v37, %v8486_v15 }
 0x702   : > { %13220 = vrcp.f32 %v7572_v14  ;;  %v7576_v59 = vrot.slane %v7575_v33, 2  ;;  %v8478_v35 = vadd.f32 %v8477_v54, %v8476_v24  ;;  %v8494_v23 = vrot.slane %v8493_v46, 4  ;;  %v11170_v24 = vpop.permute.xlu1 %11169 }
 0x703   : > { %13222 = vrcp.f32 %v7565_v36  ;;  %v7585_v39 = vrot.slane %v7584_v48, 1  ;;  %v8483_v25 = vadd.f32 %v8482_v50, %v8481_v30  ;;  %v8489_v47 = vrot.slane %v8488_v52, 2  ;;  %v21704_v36 = vld [vmem:[#allocation156_spill] sm:$0xff] }
 0x704   : > { %v7577_v13 = vadd.f32 %v7576_v59, %v7575_v33  ;;  %v8495_v20 = vadd.f32 %v8494_v23, %v8493_v46  ;;  %v8500_v51 = vsel %vm2106_vm4, %v19371_v53, 0.0  ;;  %v8909_v21 = vsel %vm8846_vm5, %v8464_v2, %v8457_v17  ;;  %v11118_v59 = vpop.permute.xlu0 %11117  ;;  %v21703_v46 = vld [vmem:[#allocation73_spill] sm:$0xff] }
 0x705   : > { %v7586_v57 = vadd.f32 %v7585_v39, %v7584_v48  ;;  %v8484_v38 = vrot.slane %v8483_v25, 1  ;;  %v8490_v1 = vadd.f32 %v8489_v47, %v8488_v52  ;;  %v8501_v45 = vrot.slane %v8500_v51, 4 }
 0x706   : > { %v7578_v43 = vrot.slane %v7577_v13, 1  ;;  %v8496_v14 = vrot.slane %v8495_v20, 2  ;;  %v8910_v54 = vsel %vm8848_vm6, %v8471_v11, %v8909_v21  ;;  %v10295_v15 = vcombine.high %v19306_v18, %v19322_v7 }
 0x707   : > { %13224 = vrcp.f32 %v7586_v57  ;;  %v8485_v41 = vadd.f32 %v8484_v38, %v8483_v25  ;;  %v8491_v33 = vrot.slane %v8490_v1, 1  ;;  %v8502_v23 = vadd.f32 %v8501_v45, %v8500_v51 }
 0x708   : > { %v7579_v3 = vadd.f32 %v7578_v43, %v7577_v13  ;;  %v8497_v53 = vadd.f32 %v8496_v14, %v8495_v20  ;;  %v8911_v17 = vsel %vm8850_vm7, %v8478_v35, %v8910_v54  ;;  %v10309_v2 = vrot.slane %v10295_v15, %v21345_v12  ;;  %v21706_v13 = vld [vmem:[#allocation6_spill] sm:$0xff]  ;;  %v10964_v45 = vpop.permute.xlu0 %10963  ;;  %v10912_v43 = vpop.permute.xlu1 %10911 }
 0x709   : > { %v8492_v32 = vadd.f32 %v8491_v33, %v8490_v1  ;;  %v8503_v30 = vrot.slane %v8502_v23, 2  ;;  %v8912_v11 = vsel %vm8852_vm8, %v8485_v41, %v8911_v17  ;;  %v10327_v18 = vcombine.high %v19329_v5, %v19350_v28  ;;  %v21705_v28 = vld [vmem:[#allocation157_spill] sm:$0xff]  ;;  %v21707_v33 = vld [vmem:[#allocation64_spill] sm:$0xff] }
 0x70a   : > { %13226 = vrcp.f32 %v7579_v3  ;;  %v8498_v7 = vrot.slane %v8497_v53, 1  ;;  %v11261_v37 = vsel %vm11219_vm12, %v19361_v55, %v11118_v59  ;;  %v10350_v48 = vcombine.low %v21704_v36, %v21703_v46 }
 0x70b   : > { %v8504_v50 = vadd.f32 %v8503_v30, %v8502_v23  ;;  %v8913_v52 = vsel %vm8854_vm9, %v8492_v32, %v8912_v11  ;;  %v10341_v35 = vrot.slane %v10327_v18, %v21345_v12  ;;  %v11274_v39 = vsel %vm11233_vm13, %v11261_v37, %v11170_v24  ;;  %v21710_v32 = vld [vmem:[#allocation18_spill] sm:$0xff]  ;;  %v21711_v30 = vld [vmem:[#allocation101_spill] sm:$0xff] }
 0x70c   : > { %v13221_v25 = vpop.eup %13220  ;;  %v8499_v47 = vadd.f32 %v8498_v7, %v8497_v53  ;;  %11289 = vst [vmem:[%s19155_s15 + $0x18] sm:$0xff] %v11274_v39  ;;  %v10358_v5 = vrot.slane %v10350_v48, %v21340_v10  ;;  %v10366_v20 = vcombine.low %v21706_v13, %v21705_v28  ;;  %v10382_v55 = vcombine.low %v18651_v58, %v18746_v26  ;;  %v21709_v53 = vld [vmem:[#allocation145_spill] sm:$0xff] }
 0x70d   : > { %v13223_v51 = vpop.eup %13222  ;;  %v19437_v21 = vmul.f32 %v13221_v25, %v19345_v62  ;;  %v8505_v57 = vrot.slane %v8504_v50, 1  ;;  %v10349_v38 = vcombine.high %v10309_v2, %v10341_v35  ;;  %v10348_v1 = vcombine.low %v10309_v2, %v10341_v35 }
 0x70e   : > { %v19440_v14 = vmul.f32 %v13223_v51, %v19356_v19  ;;  %v8914_v54 = vsel %vm8856_vm10, %v8499_v47, %v8913_v52  ;;  %v10374_v15 = vrot.slane %v10366_v20, %v21340_v10  ;;  %v10390_v41 = vrot.slane %v10382_v55, %v21340_v10  ;;  %v21708_v19 = vld [vmem:[#allocation79_spill] sm:$0xff]  ;;  %v19466_v52 = vpop.f32.mrb[162].mxu0 }
 0x70f   : > { %v19447_v23 = vmul.f32 %v21707_v33, %v19437_v21  ;;  %v8506_v62 = vadd.f32 %v8505_v57, %v8504_v50  ;;  %11183 = vrot.lane.b32.xlu0 %v10349_v38, %s21364_s22  ;;  %11131 = vrot.lane.b32.xlu1 %v10348_v1, %s13315_s23  ;;  %v10398_v59 = vcombine.low %v18647_v63, %v18667_v31  ;;  %v8524_v3 = vrot.slane %v21708_v19, 2  ;;  %v21712_v38 = vld [vmem:[#allocation105_spill] sm:$0xff]  ;;  %v21713_v1 = vld [vmem:[#allocation23_spill] sm:$0xff] }
 0x710   : > { %v19456_v17 = vmul.f32 %v21709_v53, %v19440_v14  ;;  %v10415_v2 = vcombine.high %v10358_v5, %v10374_v15  ;;  %v10414_v24 = vcombine.low %v10358_v5, %v10374_v15  ;;  %v9526_v11 = vcombine.low %v21711_v30, %v21710_v32  ;;  %v12700_v5 = vpop.f32.mrb[163].mxu0  ;;  %v21714_v30 = vld [vmem:[#allocation134_spill] sm:$0xff] }
 0x711   : > { %v13225_v18 = vpop.eup %13224  ;;  %v8915_v7 = vsel %vm8858_vm11, %v8506_v62, %v8914_v54  ;;  %v10406_v37 = vrot.slane %v10398_v59, %v21340_v10  ;;  %v10351_v48 = vcombine.high %v21704_v36, %v21703_v46  ;;  %v10367_v50 = vcombine.high %v21706_v13, %v21705_v28  ;;  %v11016_v13 = vpop.permute.xlu1 %11015 }
 0x712   : > { %v19469_v35 = vmul.f32 %v13225_v18, %v19393_v61  ;;  %12714 = vmatmul.mubr.msk.f32.gmra.mrb[172].mxu0 %vm2106_vm4, %v8915_v7  ;;  %v10429_v39 = vrot.slane %v10415_v2, %v21345_v12  ;;  %v19474_v25 = vrot.slane %v10414_v24, %v21345_v12  ;;  %v11208_v47 = vsel %vm2106_vm4, %v9526_v11, %v10912_v43  ;;  %v11068_v61 = vpop.permute.xlu0 %11067  ;;  %v21715_v18 = vld [vmem:[#allocation49_spill] sm:$0xff] }
 0x713   : > { %v10447_v20 = vcombine.high %v10390_v41, %v10406_v37  ;;  %v10446_v46 = vcombine.low %v10390_v41, %v10406_v37  ;;  %v19478_v36 = vrot.slane %v10351_v48, %v21340_v10  ;;  %v19481_v28 = vrot.slane %v10367_v50, %v21340_v10  ;;  %12716 = vmatprep.mubr.msk.f32.mxu0 %vm13313_vm0, %v21386_v16  ;;  %v21716_v37 = vld [vmem:[#allocation117_spill] sm:$0xff] }
 0x714   : > { %v13227_v55 = vpop.eup %13226  ;;  %v10383_v51 = vcombine.high %v18651_v58, %v18746_v26  ;;  %v10399_v57 = vcombine.high %v18647_v63, %v18667_v31  ;;  %v9530_v43 = vcombine.low %v21713_v1, %v21712_v38  ;;  %v11222_v54 = vsel %vm11219_vm12, %v11208_v47, %v10964_v45  ;;  %v21718_v47 = vld [vmem:[#allocation35_spill] sm:$0xff] }
 0x715   : > { %v19493_v15 = vmul.f32 %v13227_v55, %v19404_v8  ;;  %v10461_v41 = vrot.slane %v10447_v20, %v21345_v12  ;;  %v19497_v33 = vrot.slane %v10446_v46, %v21345_v12  ;;  %v10430_v58 = vcombine.low %v19478_v36, %v19481_v28  ;;  %v21720_v46 = vld [vmem:[#allocation9_spill] sm:$0xff] }
 0x716   : > { %v19502_v62 = vrot.slane %v10383_v51, %v21340_v10  ;;  %v19505_v63 = vrot.slane %v10399_v57, %v21340_v10  ;;  %v11249_v59 = vsel %vm2106_vm4, %v9530_v43, %v11068_v61  ;;  %v11236_v45 = vsel %vm11233_vm13, %v11222_v54, %v11016_v13 }
 0x717   : > { %v10480_v8 = vcombine.low %v10429_v39, %v10461_v41  ;;  %v10479_v53 = vcombine.high %v19474_v25, %v19497_v33  ;;  %v19512_v2 = vrot.slane %v10430_v58, %v21345_v12  ;;  %v10481_v24 = vcombine.high %v10429_v39, %v10461_v41  ;;  %11290 = vst [vmem:[%s19155_s15 + $0x20] sm:$0xff] %v11236_v45 }
 0x718   : > { %v10462_v32 = vcombine.low %v19502_v62, %v19505_v63  ;;  %v7977_v11 = vmul.f32 %v21714_v30, %v18746_v26  ;;  %v7978_v7 = vmul.f32 %v21715_v18, %v18667_v31  ;;  %v21717_v48 = vrot.slane %v21716_v37, 2 }
 0x719   : > { %10977 = vrot.lane.b32.xlu1 %v10480_v8, %s13315_s23  ;;  %10925 = vrot.lane.b32.xlu0 %v10479_v53, %s13316_s30  ;;  %v21719_v39 = vrot.slane %v21718_v47, 2  ;;  %v8525_v20 = vadd.f32 %v8524_v3, %v21708_v19  ;;  %v21721_v26 = vrot.slane %v21720_v46, 4  ;;  %v8535_v31 = vsel %vm2106_vm4, %v18660_v0, 0.0  ;;  %v11120_v0 = vpop.permute.xlu1 %11119 }
 0x71a   : > { %v8511_v50 = vadd.f32 %v21717_v48, %v21716_v37  ;;  %v19536_v13 = vrot.slane %v10462_v32, %v21345_v12  ;;  %v8536_v51 = vrot.slane %v8535_v31, 4  ;;  %v8542_v57 = vsel %vm2106_vm4, %v18656_v60, 0.0 }
 0x71b   : > { %v8518_v5 = vadd.f32 %v21719_v39, %v21718_v47  ;;  %v8530_v61 = vadd.f32 %v21721_v26, %v21720_v46  ;;  %v8526_v1 = vrot.slane %v8525_v20, 1  ;;  %v8543_v54 = vrot.slane %v8542_v57, 4  ;;  %v11172_v46 = vpop.permute.xlu0 %11171 }
 0x71c   : > { %v8512_v55 = vrot.slane %v8511_v50, 1  ;;  %v10483_v19 = vcombine.high %v19512_v2, %v19536_v13  ;;  %v8537_v41 = vadd.f32 %v8536_v51, %v8535_v31  ;;  %v8549_v58 = vsel %vm2106_vm4, %v7977_v11, 0.0 }
 0x71d   : > { %v8519_v38 = vrot.slane %v8518_v5, 1  ;;  %v8531_v43 = vrot.slane %v8530_v61, 2  ;;  %11029 = vrot.lane.b32.xlu0 %v10481_v24, %s21364_s22  ;;  %v8527_v8 = vadd.f32 %v8526_v1, %v8525_v20  ;;  %v8544_v32 = vadd.f32 %v8543_v54, %v8542_v57  ;;  %v10966_v26 = vpop.permute.xlu1 %10965 }
 0x71e   : > { %v8513_v3 = vadd.f32 %v8512_v55, %v8511_v50  ;;  %11081 = vrot.lane.b32.xlu1 %v10483_v19, %s13316_s30  ;;  %v8538_v60 = vrot.slane %v8537_v41, 2  ;;  %v8550_v30 = vrot.slane %v8549_v58, 4  ;;  %v8556_v18 = vsel %vm2106_vm4, %v7978_v7, 0.0 }
 0x71f   : > { %v8520_v45 = vadd.f32 %v8519_v38, %v8518_v5  ;;  %v8532_v53 = vadd.f32 %v8531_v43, %v8530_v61  ;;  %v10431_v37 = vcombine.high %v19478_v36, %v19481_v28  ;;  %v8545_v50 = vrot.slane %v8544_v32, 2 }
 0x720   : > { %v8557_v47 = vrot.slane %v8556_v18, 4  ;;  %v8539_v39 = vadd.f32 %v8538_v60, %v8537_v41  ;;  %v8551_v24 = vadd.f32 %v8550_v30, %v8549_v58  ;;  %v10463_v7 = vcombine.high %v19502_v62, %v19505_v63  ;;  %v10914_v63 = vpop.permute.xlu0 %10913  ;;  %v21723_v60 = vld [vmem:[#allocation119_spill] sm:$0xff] }
 0x721   : > { %v8533_v48 = vrot.slane %v8532_v53, 1  ;;  %v8916_v11 = vsel %vm8846_vm5, %v8520_v45, %v8513_v3  ;;  %v10445_v20 = vrot.slane %v10431_v37, %v21345_v12  ;;  %v8546_v31 = vadd.f32 %v8545_v50, %v8544_v32  ;;  %v21722_v32 = vld [vmem:[#allocation36_spill] sm:$0xff] }
 0x722   : > { %v8917_v5 = vsel %vm8848_vm6, %v8527_v8, %v8916_v11  ;;  %v8558_v55 = vadd.f32 %v8557_v47, %v8556_v18  ;;  %v8540_v36 = vrot.slane %v8539_v39, 1  ;;  %v8552_v28 = vrot.slane %v8551_v24, 2  ;;  %v21724_v18 = vld [vmem:[#allocation77_spill] sm:$0xff]  ;;  %v21725_v11 = vld [vmem:[#allocation159_spill] sm:$0xff] }
 0x723   : > { %v8534_v61 = vadd.f32 %v8533_v48, %v8532_v53  ;;  %v11262_v51 = vsel %vm11219_vm12, %v11249_v59, %v11120_v0  ;;  %v10486_v57 = vcombine.low %v18730_v29, %v18803_v56  ;;  %v8547_v38 = vrot.slane %v8546_v31, 1  ;;  %v11070_v48 = vpop.permute.xlu1 %11069 }
 0x724   : > { %v8559_v1 = vrot.slane %v8558_v55, 2  ;;  %v10477_v54 = vrot.slane %v10463_v7, %v21345_v12  ;;  %v8541_v19 = vadd.f32 %v8540_v36, %v8539_v39  ;;  %v8553_v3 = vadd.f32 %v8552_v28, %v8551_v24  ;;  %v21726_v39 = vld [vmem:[#allocation7_spill] sm:$0xff] }
 0x725   : > { %v8918_v43 = vsel %vm8850_vm7, %v8534_v61, %v8917_v5  ;;  %v11275_v41 = vsel %vm11233_vm13, %v11262_v51, %v11172_v46  ;;  %v10494_v62 = vrot.slane %v10486_v57, %v21340_v10  ;;  %v8548_v58 = vadd.f32 %v8547_v38, %v8546_v31  ;;  %v21727_v5 = vld [vmem:[#allocation111_spill] sm:$0xff] }
 0x726   : > { %v8560_v45 = vadd.f32 %v8559_v1, %v8558_v55  ;;  %v10485_v8 = vcombine.high %v10445_v20, %v10477_v54  ;;  %v10484_v59 = vcombine.low %v10445_v20, %v10477_v54  ;;  %11291 = vst [vmem:[%s19155_s15 + $0x28] sm:$0xff] %v11275_v41  ;;  %v8554_v0 = vrot.slane %v8553_v3, 1  ;;  %v21728_v20 = vld [vmem:[#allocation16_spill] sm:$0xff] }
 0x727   : > { %v8919_v53 = vsel %vm8852_vm8, %v8541_v19, %v8918_v43  ;;  %v10502_v30 = vcombine.low %v21723_v60, %v21722_v32  ;;  %v10518_v37 = vcombine.low %v21724_v18, %v19011_v9  ;;  %v10534_v24 = vcombine.low %v21726_v39, %v21725_v11  ;;  %v11018_v19 = vpop.permute.xlu0 %11017 }
 0x728   : > { %v8561_v50 = vrot.slane %v8560_v45, 1  ;;  %v8920_v47 = vsel %vm8854_vm9, %v8548_v58, %v8919_v53  ;;  %11185 = vrot.lane.b32.xlu1 %v10485_v8, %s21364_s22  ;;  %11133 = vrot.lane.b32.xlu0 %v10484_v59, %s13315_s23  ;;  %v9662_v46 = vcombine.low %v21728_v20, %v21727_v5  ;;  %v8555_v61 = vadd.f32 %v8554_v0, %v8553_v3  ;;  %v19583_v3 = vpop.f32.mrb[164].mxu0  ;;  %v19599_v59 = vpop.permute.xlu1 %11173 }
 0x729   : > { %v10510_v31 = vrot.slane %v10502_v30, %v21340_v10  ;;  %v10526_v55 = vrot.slane %v10518_v37, %v21340_v10  ;;  %v10487_v7 = vcombine.high %v18730_v29, %v18803_v56  ;;  %v10542_v28 = vrot.slane %v10534_v24, %v21340_v10  ;;  %v21729_v37 = vld [vmem:[#allocation5_spill] sm:$0xff]  ;;  %v21731_v24 = vld [vmem:[#allocation138_spill] sm:$0xff] }
 0x72a   : > { %v8562_v36 = vadd.f32 %v8561_v50, %v8560_v45  ;;  %v11209_v51 = vsel %vm2106_vm4, %v9662_v46, %v10914_v63  ;;  %v10503_v57 = vcombine.high %v21723_v60, %v21722_v32  ;;  %v8921_v38 = vsel %vm8856_vm10, %v8555_v61, %v8920_v47  ;;  %v12703_v63 = vpop.f32.mrb[165].mxu0  ;;  %v21730_v50 = vld [vmem:[#allocation112_spill] sm:$0xff] }
 0x72b   : > { %v10551_v1 = vcombine.high %v10494_v62, %v10510_v31  ;;  %v10550_v43 = vcombine.low %v10494_v62, %v10510_v31  ;;  %v11223_v54 = vsel %vm11219_vm12, %v11209_v51, %v10966_v26  ;;  %v10583_v29 = vcombine.high %v10526_v55, %v10542_v28 }
 0x72c   : > { %v8922_v41 = vsel %vm8858_vm11, %v8562_v36, %v8921_v38  ;;  %v10582_v56 = vcombine.low %v10526_v55, %v10542_v28  ;;  %v19587_v58 = vrot.slane %v10487_v7, %v21340_v10  ;;  %v19595_v26 = vrot.slane %v10503_v57, %v21340_v10  ;;  %v21733_v7 = vld [vmem:[#allocation53_spill] sm:$0xff]  ;;  %v21734_v28 = vld [vmem:[#allocation91_spill] sm:$0xff] }
 0x72d   : > { %12717 = vmatmul.mubr.msk.f32.gmra.mrb[174].mxu0 %vm2106_vm4, %v8922_v41  ;;  %v10565_v45 = vrot.slane %v10551_v1, %v21345_v12  ;;  %v19592_v62 = vrot.slane %v10550_v43, %v21345_v12  ;;  %v10519_v8 = vcombine.high %v21724_v18, %v19011_v9  ;;  %v10597_v0 = vrot.slane %v10583_v29, %v21345_v12  ;;  %v21736_v1 = vld [vmem:[#allocation174_spill] sm:$0xff]  ;;  %v21739_v41 = vld [vmem:[#allocation92_spill] sm:$0xff] }
 0x72e   : > { %v19603_v53 = vrot.slane %v10582_v56, %v21345_v12  ;;  %v10535_v32 = vcombine.high %v21726_v39, %v21725_v11  ;;  %v11237_v60 = vsel %vm11233_vm13, %v11223_v54, %v11018_v19  ;;  %12719 = vmatprep.mubr.msk.f32.mxu0 %vm13313_vm0, %v21386_v16  ;;  %v10566_v18 = vcombine.low %v19587_v58, %v19595_v26  ;;  %v11122_v56 = vpop.permute.xlu0 %11121 }
 0x72f   : > { %v19611_v30 = vrot.slane %v10519_v8, %v21340_v10  ;;  %11292 = vst [vmem:[%s19155_s15 + $0x30] sm:$0xff] %v11237_v60  ;;  %v9666_v47 = vcombine.low %v21730_v50, %v21729_v37  ;;  %v7985_v5 = vmul.f32 %v21731_v24, %v19011_v9  ;;  %v10616_v20 = vcombine.low %v10565_v45, %v10597_v0  ;;  %v19632_v9 = vpop.permute.xlu1 %10915 }
 0x730   : > { %v10615_v39 = vcombine.high %v19592_v62, %v19603_v53  ;;  %v10549_v46 = vrot.slane %v10535_v32, %v21340_v10  ;;  %v10617_v61 = vcombine.high %v10565_v45, %v10597_v0  ;;  %v19624_v31 = vrot.slane %v10566_v18, %v21345_v12  ;;  %v21741_v45 = vld [vmem:[#allocation8_spill] sm:$0xff]  ;;  %v21742_v0 = vld [vmem:[#allocation158_spill] sm:$0xff] }
 0x731   : > { %v11250_v55 = vsel %vm2106_vm4, %v9666_v47, %v11070_v48  ;;  %v7986_v36 = vmul.f32 %v21733_v7, %v21725_v11  ;;  %v21735_v51 = vrot.slane %v21734_v28, 2  ;;  %10979 = vrot.lane.b32.xlu0 %v10616_v20, %s13315_s23  ;;  %v21737_v43 = vrot.slane %v21736_v1, 2  ;;  %v21738_v48 = vld [vmem:[#allocation75_spill] sm:$0xff] }
 0x732   : > { %21732 = vst [vmem:[#allocation87_spill] sm:$0xff] %v19624_v31  ;;  %10927 = vrot.lane.b32.xlu1 %v10615_v39, %s13316_s30  ;;  %v10598_v38 = vcombine.low %v19611_v30, %v10549_v46  ;;  %v8580_v19 = vrot.slane %v21738_v48, 2  ;;  %v21740_v11 = vrot.slane %v21739_v41, 4  ;;  %v8591_v8 = vsel %vm2106_vm4, %v21741_v45, 0.0 }
 0x733   : > { %v8567_v57 = vadd.f32 %v21735_v51, %v21734_v28  ;;  %v8574_v54 = vadd.f32 %v21737_v43, %v21736_v1  ;;  %v8598_v32 = vsel %vm2106_vm4, %v21742_v0, 0.0  ;;  %v8605_v60 = vsel %vm2106_vm4, %v7985_v5, 0.0  ;;  %v19656_v5 = vpop.permute.xlu0 %10967 }
 0x734   : > { %v8586_v29 = vadd.f32 %v21740_v11, %v21739_v41  ;;  %v19650_v18 = vrot.slane %v10598_v38, %v21345_v12  ;;  %v8581_v50 = vadd.f32 %v8580_v19, %v21738_v48  ;;  %v8592_v20 = vrot.slane %v8591_v8, 4  ;;  %v19659_v19 = vpop.permute.xlu1 %11019 }
 0x735   : > { %v8568_v63 = vrot.slane %v8567_v57, 1  ;;  %v8575_v37 = vrot.slane %v8574_v54, 1  ;;  %v8599_v39 = vrot.slane %v8598_v32, 4  ;;  %v8606_v7 = vrot.slane %v8605_v60, 4 }
 0x736   : > { %21743 = vst [vmem:[#allocation171_spill] sm:$0xff] %v19650_v18  ;;  %v8587_v47 = vrot.slane %v8586_v29, 2  ;;  %v10619_v28 = vcombine.high %v19624_v31, %v19650_v18  ;;  %11031 = vrot.lane.b32.xlu1 %v10617_v61, %s21364_s22  ;;  %v8582_v1 = vrot.slane %v8581_v50, 1  ;;  %v8593_v38 = vadd.f32 %v8592_v20, %v8591_v8 }
 0x737   : > { %v8569_v24 = vadd.f32 %v8568_v63, %v8567_v57  ;;  %v8576_v51 = vadd.f32 %v8575_v37, %v8574_v54  ;;  %v8600_v41 = vadd.f32 %v8599_v39, %v8598_v32  ;;  %v8607_v11 = vadd.f32 %v8606_v7, %v8605_v60 }
 0x738   : > { %v8588_v43 = vadd.f32 %v8587_v47, %v8586_v29  ;;  %v8612_v48 = vsel %vm2106_vm4, %v7986_v36, 0.0  ;;  %11083 = vrot.lane.b32.xlu0 %v10619_v28, %s13316_s30  ;;  %v8583_v57 = vadd.f32 %v8582_v1, %v8581_v50  ;;  %v8594_v61 = vrot.slane %v8593_v38, 2 }
 0x739   : > { %v8613_v45 = vrot.slane %v8612_v48, 4  ;;  %v8923_v0 = vsel %vm8846_vm5, %v8576_v51, %v8569_v24  ;;  %v8601_v54 = vrot.slane %v8600_v41, 2  ;;  %v8608_v37 = vrot.slane %v8607_v11, 2 }
 0x73a   : > { %v8589_v63 = vrot.slane %v8588_v43, 1  ;;  %v10567_v29 = vcombine.high %v19587_v58, %v19595_v26  ;;  %v8924_v60 = vsel %vm8848_vm6, %v8583_v57, %v8923_v0  ;;  %v10599_v36 = vcombine.high %v19611_v30, %v10549_v46  ;;  %v19671_v58 = vpop.permute.xlu0 %11071  ;;  %v19675_v46 = vpop.permute.xlu1 %11123 }
 0x73b   : > { %v8614_v32 = vadd.f32 %v8613_v45, %v8612_v48  ;;  %v8595_v47 = vadd.f32 %v8594_v61, %v8593_v38  ;;  %v8602_v20 = vadd.f32 %v8601_v54, %v8600_v41  ;;  %v8609_v50 = vadd.f32 %v8608_v37, %v8607_v11 }
 0x73c   : > { %v8590_v8 = vadd.f32 %v8589_v63, %v8588_v43  ;;  %v10581_v39 = vrot.slane %v10567_v29, %v21345_v12  ;;  %v10613_v28 = vrot.slane %v10599_v36, %v21345_v12  ;;  %v11263_v51 = vsel %vm11219_vm12, %v11250_v55, %v11122_v56  ;;  %v21744_v56 = vld [vmem:[#allocation39_spill] sm:$0xff] }
 0x73d   : > { %v8615_v7 = vrot.slane %v8614_v32, 2  ;;  %v8596_v26 = vrot.slane %v8595_v47, 1  ;;  %v8603_v1 = vrot.slane %v8602_v20, 1  ;;  %v8610_v43 = vrot.slane %v8609_v50, 1 }
 0x73e   : > { %v8925_v24 = vsel %vm8850_vm7, %v8590_v8, %v8924_v60  ;;  %v11276_v30 = vsel %vm11233_vm13, %v11263_v51, %v19599_v59  ;;  %v10621_v41 = vcombine.high %v10581_v39, %v10613_v28  ;;  %v10620_v11 = vcombine.low %v10581_v39, %v10613_v28  ;;  %v21745_v8 = vld [vmem:[#allocation76_spill] sm:$0xff]  ;;  %v19700_v28 = vpop.permute.xlu0 %11175 }
 0x73f   : > { %v8616_v38 = vadd.f32 %v8615_v7, %v8614_v32  ;;  %11293 = vst [vmem:[%s19155_s15 + $0x38] sm:$0xff] %v11276_v30  ;;  %v10622_v48 = vcombine.low %v18999_v27, %v19070_v6  ;;  %v8597_v57 = vadd.f32 %v8596_v26, %v8595_v47  ;;  %v8604_v63 = vadd.f32 %v8603_v1, %v8602_v20  ;;  %v21746_v32 = vld [vmem:[#allocation74_spill] sm:$0xff]  ;;  %v19695_v47 = vpop.permute.xlu1 %10969 }
 0x740   : > { %v8611_v55 = vadd.f32 %v8610_v43, %v8609_v50  ;;  %v10638_v45 = vcombine.low %v21744_v56, %v19038_v49  ;;  %11187 = vrot.lane.b32.xlu0 %v10621_v41, %s21364_s22  ;;  %11135 = vrot.lane.b32.xlu1 %v10620_v11, %s13315_s23  ;;  %v10654_v61 = vcombine.low %v19185_v40, %v19204_v34  ;;  %v19705_v43 = vpop.f32.mrb[166].mxu0 }
 0x741   : > { %v8617_v0 = vrot.slane %v8616_v38, 1  ;;  %v10630_v59 = vrot.slane %v10622_v48, %v21340_v10  ;;  %v10670_v54 = vcombine.low %v19180_v42, %v19200_v22  ;;  %v8926_v37 = vsel %vm8852_vm8, %v8597_v57, %v8925_v24  ;;  %v12706_v41 = vpop.f32.mrb[167].mxu0 }
 0x742   : > { %v10646_v29 = vrot.slane %v10638_v45, %v21340_v10  ;;  %v9798_v60 = vcombine.low %v21746_v32, %v21745_v8  ;;  %v10623_v36 = vcombine.high %v18999_v27, %v19070_v6  ;;  %v8927_v50 = vsel %vm8854_vm9, %v8604_v63, %v8926_v37  ;;  %v21749_v37 = vld [vmem:[#allocation142_spill] sm:$0xff] }
 0x743   : > { %v8618_v20 = vadd.f32 %v8617_v0, %v8616_v38  ;;  %v10662_v39 = vrot.slane %v10654_v61, %v21340_v10  ;;  %v10678_v7 = vrot.slane %v10670_v54, %v21340_v10  ;;  %v8928_v24 = vsel %vm8856_vm10, %v8611_v55, %v8927_v50  ;;  %v21747_v0 = vld [vmem:[#allocation116_spill] sm:$0xff]  ;;  %v19730_v54 = vpop.permute.xlu0 %10917 }
 0x744   : > { %v10687_v51 = vcombine.high %v10630_v59, %v10646_v29  ;;  %v10686_v26 = vcombine.low %v10630_v59, %v10646_v29  ;;  %v11210_v1 = vsel %vm2106_vm4, %v9798_v60, %v19632_v9  ;;  %v19709_v38 = vrot.slane %v10623_v36, %v21340_v10  ;;  %v21748_v59 = vld [vmem:[#allocation32_spill] sm:$0xff]  ;;  %v19740_v29 = vpop.permute.xlu1 %11073 }
 0x745   : > { %v8929_v27 = vsel %vm8858_vm11, %v8618_v20, %v8928_v24  ;;  %v10719_v6 = vcombine.high %v10662_v39, %v10678_v7  ;;  %v10718_v30 = vcombine.low %v10662_v39, %v10678_v7  ;;  %v10639_v9 = vcombine.high %v21744_v56, %v19038_v49  ;;  %v21750_v39 = vld [vmem:[#allocation57_spill] sm:$0xff] }
 0x746   : > { %12720 = vmatmul.mubr.msk.f32.gmra.mrb[176].mxu0 %vm2106_vm4, %v8929_v27  ;;  %v10701_v11 = vrot.slane %v10687_v51, %v21345_v12  ;;  %v19714_v48 = vrot.slane %v10686_v26, %v21345_v12  ;;  %v10655_v57 = vcombine.high %v19185_v40, %v19204_v34  ;;  %v10671_v45 = vcombine.high %v19180_v42, %v19200_v22  ;;  %v21751_v24 = vld [vmem:[#allocation165_spill] sm:$0xff] }
 0x747   : > { %v10733_v63 = vrot.slane %v10719_v6, %v21345_v12  ;;  %v19722_v55 = vrot.slane %v10718_v30, %v21345_v12  ;;  %v9802_v61 = vcombine.low %v21748_v59, %v21747_v0  ;;  %12722 = vmatprep.mubr.msk.f32.mxu0 %vm13313_vm0, %v21386_v16  ;;  %v10653_v49 = vrot.slane %v10639_v9, %v21340_v10  ;;  %v21755_v6 = vld [vmem:[#allocation41_spill] sm:$0xff] }
 0x748   : > { %v19734_v40 = vrot.slane %v10655_v57, %v21340_v10  ;;  %v11224_v56 = vsel %vm11219_vm12, %v11210_v1, %v19656_v5  ;;  %v7993_v42 = vmul.f32 %v21749_v37, %v19204_v34  ;;  %v10685_v60 = vrot.slane %v10671_v45, %v21340_v10  ;;  %v21753_v1 = vld [vmem:[#allocation121_spill] sm:$0xff]  ;;  %v21758_v57 = vld [vmem:[#allocation123_spill] sm:$0xff] }
 0x749   : > { %v10752_v8 = vcombine.low %v10701_v11, %v10733_v63  ;;  %v10751_v32 = vcombine.high %v19714_v48, %v19722_v55  ;;  %v10753_v36 = vcombine.high %v10701_v11, %v10733_v63  ;;  %v10702_v20 = vcombine.low %v19709_v38, %v10653_v49 }
 0x74a   : > { %v11251_v50 = vsel %vm2106_vm4, %v9802_v61, %v19671_v58  ;;  %v11238_v5 = vsel %vm11233_vm13, %v11224_v56, %v19659_v19  ;;  %v7994_v34 = vmul.f32 %v21750_v39, %v19200_v22  ;;  %v10734_v7 = vcombine.low %v19734_v40, %v10685_v60  ;;  %v21756_v22 = vld [vmem:[#allocation80_spill] sm:$0xff]  ;;  %v19777_v56 = vpop.permute.xlu0 %11021 }
 0x74b   : > { %10981 = vrot.lane.b32.xlu1 %v10752_v8, %s13315_s23  ;;  %10929 = vrot.lane.b32.xlu0 %v10751_v32, %s13316_s30  ;;  %11294 = vst [vmem:[%s19155_s15 + $0x40] sm:$0xff] %v11238_v5  ;;  %v21752_v51 = vrot.slane %v21751_v24, 2  ;;  %v21754_v58 = vrot.slane %v21753_v1, 2  ;;  %v8636_v19 = vrot.slane %v21755_v6, 2  ;;  %v19764_v30 = vrot.slane %v10702_v20, %v21345_v12  ;;  %v19780_v5 = vpop.permute.xlu1 %11177 }
 0x74c   : > { %v21757_v41 = vrot.slane %v21756_v22, 4  ;;  %v8647_v9 = vsel %vm2106_vm4, %v19197_v44, 0.0  ;;  %v8654_v63 = vsel %vm2106_vm4, %v21758_v57, 0.0  ;;  %v19774_v45 = vrot.slane %v10734_v7, %v21345_v12 }
 0x74d   : > { %v8623_v26 = vadd.f32 %v21752_v51, %v21751_v24  ;;  %v8630_v27 = vadd.f32 %v21754_v58, %v21753_v1  ;;  %v8637_v61 = vadd.f32 %v8636_v19, %v21755_v6  ;;  %v8648_v8 = vrot.slane %v8647_v9, 4 }
 0x74e   : > { %v8642_v11 = vadd.f32 %v21757_v41, %v21756_v22  ;;  %v8655_v32 = vrot.slane %v8654_v63, 4  ;;  %v8661_v20 = vsel %vm2106_vm4, %v7993_v42, 0.0  ;;  %v10755_v44 = vcombine.high %v19764_v30, %v19774_v45 }
 0x74f   : > { %v8624_v0 = vrot.slane %v8623_v26, 1  ;;  %v8631_v59 = vrot.slane %v8630_v27, 1  ;;  %11033 = vrot.lane.b32.xlu0 %v10753_v36, %s21364_s22  ;;  %v8638_v24 = vrot.slane %v8637_v61, 1  ;;  %v8649_v1 = vadd.f32 %v8648_v8, %v8647_v9 }
 0x750   : > { %v8643_v37 = vrot.slane %v8642_v11, 2  ;;  %v8656_v58 = vadd.f32 %v8655_v32, %v8654_v63  ;;  %v8662_v6 = vrot.slane %v8661_v20, 4  ;;  %11085 = vrot.lane.b32.xlu1 %v10755_v44, %s13316_s30  ;;  %v8668_v22 = vsel %vm2106_vm4, %v7994_v34, 0.0  ;;  %v21759_v32 = vld [vmem:[#allocation10_spill] sm:$0xff] }
 0x751   : > { %v8625_v39 = vadd.f32 %v8624_v0, %v8623_v26  ;;  %v8632_v7 = vadd.f32 %v8631_v59, %v8630_v27  ;;  %v8639_v19 = vadd.f32 %v8638_v24, %v8637_v61  ;;  %v10703_v41 = vcombine.high %v19709_v38, %v10653_v49  ;;  %v19789_v26 = vpop.permute.xlu1 %10919  ;;  %v19796_v0 = vpop.permute.xlu0 %11125 }
 0x752   : > { %v8644_v51 = vadd.f32 %v8643_v37, %v8642_v11  ;;  %v8650_v31 = vrot.slane %v8649_v1, 2  ;;  %v8657_v18 = vrot.slane %v8656_v58, 2  ;;  %v8663_v36 = vadd.f32 %v8662_v6, %v8661_v20  ;;  %v21761_v6 = vld [vmem:[#allocation168_spill] sm:$0xff] }
 0x753   : > { %v8930_v42 = vsel %vm8846_vm5, %v8632_v7, %v8625_v39  ;;  %v8669_v27 = vrot.slane %v8668_v22, 4  ;;  %v19793_v9 = vrot.slane %v10703_v41, %v21345_v12  ;;  %v10735_v63 = vcombine.high %v19734_v40, %v10685_v60 }
 0x754   : > { %v8645_v57 = vrot.slane %v8644_v51, 1  ;;  %v8931_v11 = vsel %vm8848_vm6, %v8639_v19, %v8930_v42  ;;  %v8651_v59 = vadd.f32 %v8650_v31, %v8649_v1  ;;  %v8658_v61 = vadd.f32 %v8657_v18, %v8656_v58  ;;  %v21760_v58 = vld [vmem:[#allocation26_spill] sm:$0xff] }
 0x755   : > { %v8664_v38 = vrot.slane %v8663_v36, 2  ;;  %v8670_v49 = vadd.f32 %v8669_v27, %v8668_v22  ;;  %v19799_v37 = vrot.slane %v10735_v63, %v21345_v12  ;;  %v11264_v8 = vsel %vm11219_vm12, %v11251_v50, %v19675_v46  ;;  %v19816_v22 = vpop.permute.xlu1 %11023 }
 0x756   : > { %v8646_v34 = vadd.f32 %v8645_v57, %v8644_v51  ;;  %v10758_v20 = vcombine.low %v21759_v32, %v19318_v4  ;;  %v8652_v44 = vrot.slane %v8651_v59, 1  ;;  %v8659_v39 = vrot.slane %v8658_v61, 1  ;;  %v19811_v51 = vpop.permute.xlu0 %10971  ;;  %v21762_v57 = vld [vmem:[#allocation37_spill] sm:$0xff] }
 0x757   : > { %v8665_v40 = vadd.f32 %v8664_v38, %v8663_v36  ;;  %v8671_v7 = vrot.slane %v8670_v49, 2  ;;  %v10756_v31 = vcombine.low %v19793_v9, %v19799_v37  ;;  %v11277_v18 = vsel %vm11233_vm13, %v11264_v8, %v19700_v28  ;;  %v21763_v36 = vld [vmem:[#allocation78_spill] sm:$0xff] }
 0x758   : > { %v8932_v60 = vsel %vm8850_vm7, %v8646_v34, %v8931_v11  ;;  %v10766_v24 = vrot.slane %v10758_v20, %v21340_v10  ;;  %v8653_v46 = vadd.f32 %v8652_v44, %v8651_v59  ;;  %v8660_v50 = vadd.f32 %v8659_v39, %v8658_v61  ;;  %11295 = vst [vmem:[%s19155_s15 + $0x48] sm:$0xff] %v11277_v18 }
 0x759   : > { %v8666_v1 = vrot.slane %v8665_v40, 1  ;;  %v10774_v19 = vcombine.low %v21761_v6, %v21760_v58  ;;  %v8672_v42 = vadd.f32 %v8671_v7, %v8670_v49  ;;  %11137 = vrot.lane.b32.xlu0 %v10756_v31, %s13315_s23  ;;  %v10790_v41 = vcombine.low %v19440_v14, %v19493_v15 }
 0x75a   : > { %v10806_v28 = vcombine.low %v19437_v21, %v19469_v35  ;;  %v9934_v27 = vcombine.low %v21763_v36, %v21762_v57  ;;  %v8933_v63 = vsel %vm8852_vm8, %v8653_v46, %v8932_v60  ;;  %v10759_v59 = vcombine.high %v21759_v32, %v19318_v4  ;;  %v19837_v32 = vpop.permute.xlu0 %11075  ;;  %v21765_v57 = vld [vmem:[#allocation160_spill] sm:$0xff] }
 0x75b   : > { %v8667_v11 = vadd.f32 %v8666_v1, %v8665_v40  ;;  %v10782_v34 = vrot.slane %v10774_v19, %v21340_v10  ;;  %v8673_v61 = vrot.slane %v8672_v42, 1  ;;  %v8934_v38 = vsel %vm8854_vm9, %v8660_v50, %v8933_v63 }
 0x75c   : > { %v10798_v49 = vrot.slane %v10790_v41, %v21340_v10  ;;  %v10814_v8 = vrot.slane %v10806_v28, %v21340_v10  ;;  %v11211_v40 = vsel %vm2106_vm4, %v9934_v27, %v19730_v54  ;;  %v19844_v50 = vrot.slane %v10759_v59, %v21340_v10  ;;  %v21764_v28 = vld [vmem:[#allocation161_spill] sm:$0xff]  ;;  %v21766_v59 = vld [vmem:[#allocation146_spill] sm:$0xff] }
 0x75d   : > { %v8935_v20 = vsel %vm8856_vm10, %v8667_v11, %v8934_v38  ;;  %v10823_v44 = vcombine.high %v10766_v24, %v10782_v34  ;;  %v10822_v39 = vcombine.low %v10766_v24, %v10782_v34  ;;  %v8674_v60 = vadd.f32 %v8673_v61, %v8672_v42  ;;  %v19848_v24 = vpop.permute.xlu1 %11127 }
 0x75e   : > { %v10855_v7 = vcombine.high %v10798_v49, %v10814_v8  ;;  %v10854_v31 = vcombine.low %v10798_v49, %v10814_v8  ;;  %v11225_v4 = vsel %vm11219_vm12, %v11211_v40, %v19695_v47  ;;  %v10775_v54 = vcombine.high %v21761_v6, %v21760_v58  ;;  %v21767_v49 = vld [vmem:[#allocation61_spill] sm:$0xff]  ;;  %v21768_v8 = vld [vmem:[#allocation124_spill] sm:$0xff]  ;;  %v21772_v40 = vld [vmem:[#allocation167_spill] sm:$0xff] }
 0x75f   : > { %v10837_v18 = vrot.slane %v10823_v44, %v21345_v12  ;;  %v19841_v46 = vrot.slane %v10822_v39, %v21345_v12  ;;  %v8936_v1 = vsel %vm8858_vm11, %v8674_v60, %v8935_v20  ;;  %v10791_v42 = vcombine.high %v19440_v14, %v19493_v15  ;;  %v21770_v44 = vld [vmem:[#allocation40_spill] sm:$0xff] }
 0x760   : > { %v10869_v47 = vrot.slane %v10855_v7, %v21345_v12  ;;  %v19853_v19 = vrot.slane %v10854_v31, %v21345_v12  ;;  %12723 = vmatmul.mubr.msk.f32.gmra.mrb[178].mxu0 %vm2106_vm4, %v8936_v1  ;;  %v19859_v41 = vrot.slane %v10775_v54, %v21340_v10  ;;  %v10807_v58 = vcombine.high %v19437_v21, %v19469_v35 }
 0x761   : > { %v11239_v6 = vsel %vm11233_vm13, %v11225_v4, %v19777_v56  ;;  %v9938_v36 = vcombine.low %v21765_v57, %v21764_v28  ;;  %v10805_v14 = vrot.slane %v10791_v42, %v21340_v10  ;;  %12725 = vmatprep.mubr.msk.f32.mxu0 %vm13313_vm0, %v21386_v16  ;;  %v8001_v61 = vmul.f32 %v21766_v59, %v19493_v15  ;;  %v19880_v38 = vpop.permute.xlu1 %10973  ;;  %v19893_v15 = vpop.permute.xlu0 %11179  ;;  %v21773_v4 = vld [vmem:[#allocation163_spill] sm:$0xff] }
 0x762   : > { %v10888_v27 = vcombine.low %v10837_v18, %v10869_v47  ;;  %v10887_v11 = vcombine.high %v19841_v46, %v19853_v19  ;;  %v10889_v63 = vcombine.high %v10837_v18, %v10869_v47  ;;  %11296 = vst [vmem:[%s19155_s15 + $0x50] sm:$0xff] %v11239_v6  ;;  %v10821_v34 = vrot.slane %v10807_v58, %v21340_v10 }
 0x763   : > { %v10838_v21 = vcombine.low %v19844_v50, %v19859_v41  ;;  %v11252_v56 = vsel %vm2106_vm4, %v9938_v36, %v19740_v29  ;;  %v8002_v16 = vmul.f32 %v21767_v49, %v19469_v35  ;;  %v21769_v10 = vrot.slane %v21768_v8, 2 }
 0x764   : > { %10983 = vrot.lane.b32.xlu0 %v10888_v27, %s13315_s23  ;;  %10931 = vrot.lane.b32.xlu1 %v10887_v11, %s13316_s30  ;;  %v21771_v39 = vrot.slane %v21770_v44, 2  ;;  %v8692_v60 = vrot.slane %v21772_v40, 2  ;;  %v10870_v31 = vcombine.low %v10805_v14, %v10821_v34  ;;  %v21774_v18 = vrot.slane %v21773_v4, 4 }
 0x765   : > { %v8679_v20 = vadd.f32 %v21769_v10, %v21768_v8  ;;  %v19896_v7 = vrot.slane %v10838_v21, %v21345_v12  ;;  %v8703_v54 = vsel %vm2106_vm4, %v19456_v17, 0.0  ;;  %v8710_v57 = vsel %vm2106_vm4, %v19447_v23, 0.0  ;;  %v19911_v59 = vpop.permute.xlu0 %10921 }
 0x766   : > { %v8686_v29 = vadd.f32 %v21771_v39, %v21770_v44  ;;  %v8698_v35 = vadd.f32 %v21774_v18, %v21773_v4  ;;  %v8693_v42 = vadd.f32 %v8692_v60, %v21772_v40  ;;  %v8704_v58 = vrot.slane %v8703_v54, 4  ;;  %v19915_v39 = vpop.permute.xlu1 %11077 }
 0x767   : > { %v8680_v1 = vrot.slane %v8679_v20, 1  ;;  %v19905_v6 = vrot.slane %v10870_v31, %v21345_v12  ;;  %v8717_v36 = vsel %vm2106_vm4, %v8001_v61, 0.0  ;;  %v8711_v10 = vrot.slane %v8710_v57, 4 }
 0x768   : > { %v8687_v47 = vrot.slane %v8686_v29, 1  ;;  %v8699_v28 = vrot.slane %v8698_v35, 2  ;;  %11035 = vrot.lane.b32.xlu1 %v10889_v63, %s21364_s22  ;;  %v8694_v21 = vrot.slane %v8693_v42, 1  ;;  %v8705_v17 = vadd.f32 %v8704_v58, %v8703_v54 }
 0x769   : > { %v8681_v27 = vadd.f32 %v8680_v1, %v8679_v20  ;;  %v10891_v49 = vcombine.high %v19896_v7, %v19905_v6  ;;  %v8718_v44 = vrot.slane %v8717_v36, 4  ;;  %v8724_v61 = vsel %vm2106_vm4, %v8002_v16, 0.0 }
 0x76a   : > { %v8688_v11 = vadd.f32 %v8687_v47, %v8686_v29  ;;  %v8700_v8 = vadd.f32 %v8699_v28, %v8698_v35  ;;  %v8695_v40 = vadd.f32 %v8694_v21, %v8693_v42  ;;  %v8706_v23 = vrot.slane %v8705_v17, 2 }
 0x76b   : > { %11087 = vrot.lane.b32.xlu0 %v10891_v49, %s13316_s30  ;;  %v8712_v29 = vadd.f32 %v8711_v10, %v8710_v57  ;;  %v8719_v60 = vadd.f32 %v8718_v44, %v8717_v36  ;;  %v8725_v31 = vrot.slane %v8724_v61, 4  ;;  %v10839_v35 = vcombine.high %v19844_v50, %v19859_v41  ;;  %v11026_v36 = vpop.permute.xlu0 %11025  ;;  %s21793_s30 = sand.u32 1, %s13302_s26  }
 0x76c   : > { %v8937_v63 = vsel %vm8846_vm5, %v8688_v11, %v8681_v27  ;;  %v8701_v20 = vrot.slane %v8700_v8, 1  ;;  %v8707_v4 = vadd.f32 %v8706_v23, %v8705_v17  ;;  %v10871_v54 = vcombine.high %v10805_v14, %v10821_v34  ;;  %v19927_v11 = vpop.f32.mrb[168].mxu0  ;;  %v11182_v14 = vpop.permute.xlu1 %11181  ;;  %s20112_s24 = scalar_lea.sflag [#allocation3], %s21793_s30 }
 0x76d   : > { %v8938_v18 = vsel %vm8848_vm6, %v8695_v40, %v8937_v63  ;;  %v8713_v47 = vrot.slane %v8712_v29, 2  ;;  %v8720_v42 = vrot.slane %v8719_v60, 2  ;;  %v8726_v58 = vadd.f32 %v8725_v31, %v8724_v61  ;;  %v12709_v34 = vpop.f32.mrb[169].mxu0  ;;  %v21776_v63 = vld [vmem:[#allocation120_spill] sm:$0xff] }
 0x76e   : > { %v8702_v1 = vadd.f32 %v8701_v20, %v8700_v8  ;;  %v8708_v16 = vrot.slane %v8707_v4, 1  ;;  %v10853_v28 = vrot.slane %v10839_v35, %v21345_v12  ;;  %v10885_v27 = vrot.slane %v10871_v54, %v21345_v12  ;;  %v21779_v54 = vld [vmem:[#allocation82_spill] sm:$0xff] }
 0x76f   : > { %v11265_v57 = vsel %vm11219_vm12, %v11252_v56, %v19796_v0  ;;  %v8714_v21 = vadd.f32 %v8713_v47, %v8712_v29  ;;  %v8721_v17 = vadd.f32 %v8720_v42, %v8719_v60  ;;  %v8727_v50 = vrot.slane %v8726_v58, 2  ;;  %v19935_v0 = vld [vmem:[%s20182_s11] ss:$0 sm:$0xff]  ;;  %v21777_v29 = vld [vmem:[#allocation106_spill] sm:$0xff]  ;;  %v21781_v42 = vld [vmem:[#allocation164_spill] sm:$0xff] }
 0x770   : > { %v8939_v41 = vsel %vm8850_vm7, %v8702_v1, %v8938_v18  ;;  %v8709_v49 = vadd.f32 %v8708_v16, %v8707_v4  ;;  %v10893_v8 = vcombine.high %v10853_v28, %v10885_v27  ;;  %v10892_v10 = vcombine.low %v10853_v28, %v10885_v27  ;;  %v21778_v60 = vld [vmem:[#allocation25_spill] sm:$0xff]  ;;  %v21783_v28 = vld [vmem:[#allocation84_spill] sm:$0xff] }
 0x771   : > { %v11278_v12 = vsel %vm11233_vm13, %v11265_v57, %v19780_v5  ;;  %v8715_v56 = vrot.slane %v8714_v21, 1  ;;  %v8722_v44 = vrot.slane %v8721_v17, 1  ;;  %v8728_v40 = vadd.f32 %v8727_v50, %v8726_v58  ;;  %v21775_v5 = vld [vmem:[#allocation179_spill] sm:$0xff]  ;;  %v21782_v58 = vld [vmem:[#allocation162_spill] sm:$0xff]  ;;  %v21784_v27 = vld [vmem:[#allocation85_spill] sm:$0xff] }
 0x772   : > { %11297 = vst [vmem:[%s19155_s15 + $0x58] sm:$0xff] %v11278_v12  ;;  %v10757_v23 = vcombine.high %v19793_v9, %v19799_v37  ;;  %v8940_v61 = vsel %vm8852_vm8, %v8709_v49, %v8939_v41  ;;  %11191 = vrot.lane.b32.xlu0 %v10893_v8, %s21364_s22  ;;  %11139 = vrot.lane.b32.xlu1 %v10892_v10, %s13315_s23  ;;  %v10924_v9 = vpop.permute.xlu1 %10923  ;;  %s11336_s23 = sshll.u32 %s19155_s15, 4  ;;  %s20098_s23 = int_to_ptr.vmem [resolvable:$true] %s11336_s23 }
 0x773   : > { %v10070_v20 = vcombine.low %v21776_v63, %v21775_v5  ;;  %v10074_v31 = vcombine.low %v21778_v60, %v21777_v29  ;;  %v8716_v4 = vadd.f32 %v8715_v56, %v8714_v21  ;;  %v8723_v18 = vadd.f32 %v8722_v44, %v8721_v17  ;;  %v11130_v21 = vpop.permute.xlu0 %11129  ;;  %v21788_v63 = vld [vmem:[#allocation125_spill] sm:$0xff]  ;;  %s13248_s1 = scalar_lea.vmem %s20098_s23, 3328  ;;  %p13255_p1 = scmp.lt.s32.totalorder %s20098_s23, %s13253_s20 }
 0x774   : > { %v8729_v35 = vrot.slane %v8728_v40, 1  ;;  %v9037_v1 = vadd.f32 %v19935_v0, %v21779_v54  ;;  %v10206_v16 = vcombine.low %v21782_v58, %v21781_v42  ;;  %v10210_v57 = vcombine.low %v21784_v27, %v21783_v28  ;;  %v13238_v54 = vld [vmem:[%s13471_s16 + $0x18] sm:$0xff]  ;;  %p13249_p12 = scmp.ne.s32.totalorder %s20098_s23, %s13248_s1 }
 0x775   : > { %v11212_v37 = vsel %vm2106_vm4, %v10070_v20, %v19789_v26  ;;  %v11253_v47 = vsel %vm2106_vm4, %v10074_v31, %v19837_v32  ;;  %v8941_v50 = vsel %vm8854_vm9, %v8716_v4, %v8940_v61  ;;  %v13235_v26 = vld [vmem:[%s13471_s16] sm:$0xff]  ;;  %v21787_v61 = vld [vmem:[#allocation110_spill] sm:$0xff]  ;;  %v9052_v31 = vadd.f32 %v19935_v0, %v19466_v52 }
 0x776   : > { %v8730_v17 = vadd.f32 %v8729_v35, %v8728_v40  ;;  %v11226_v41 = vsel %vm11219_vm12, %v11212_v37, %v19811_v51  ;;  %v9100_v34 = vadd.f32 %v13235_v26, %v9037_v1  ;;  %v8942_v49 = vsel %vm8856_vm10, %v8723_v18, %v8941_v50  ;;  %11189 = vrot.lane.b32.xlu1 %v10757_v23, %s21364_s22  ;;  %v21786_v23 = vld [vmem:[#allocation81_spill] sm:$0xff]  ;;  %v11028_v5 = vpop.permute.xlu1 %11027  ;;  %v13236_v20 = vld [vmem:[%s13471_s16 + $0x8] sm:$0xff]  ;;  %v13237_v18 = vld [vmem:[%s13471_s16 + $0x10] sm:$0xff]  ;;  %p13250_p13 = pnand %p13249_p12, %p13432_p5  ;;  %s13254_s22 = scalar_lea.vmem %s13253_s20, 6656 }
 0x777   : > { %v11240_v32 = vsel %vm11233_vm13, %v11226_v41, %v19816_v22  ;;  %v11266_v8 = vsel %vm11219_vm12, %v11253_v47, %v19848_v24  ;;  %v11213_v10 = vsel %vm2106_vm4, %v10206_v16, %v19911_v59  ;;  %v11254_v56 = vsel %vm2106_vm4, %v10210_v57, %v19915_v39  ;;  %v21785_v59 = vld [vmem:[#allocation44_spill] sm:$0xff]  ;;  %v13240_v57 = vld [vmem:[%s13471_s16 + $0x28] sm:$0xff]  ;;  %v21789_v50 = vld [vmem:[#allocation83_spill] sm:$0xff]  ;;  %p13256_p2 = scmp.lt.s32.totalorder %s13254_s22, %s13248_s1 }
 0x778   : > { %v8943_v12 = vsel %vm8858_vm11, %v8730_v17, %v8942_v49  ;;  %11298 = vst [vmem:[%s19155_s15 + $0x60] sm:$0xff] %v11240_v32  ;;  %9113 = vst.msk [vmem:[%s19954_s0] sm:$0xff] %vm493_vm2, %v9100_v34  ;;  %v11279_v51 = vsel %vm11233_vm13, %v11266_v8, %v19893_v15  ;;  %v11227_v22 = vsel %vm11219_vm12, %v11213_v10, %v19880_v38  ;;  %v10976_v15 = vpop.permute.xlu0 %10975  ;;  %v21790_v41 = vld [vmem:[#allocation166_spill] sm:$0xff]  ;;  %p13251_p0 = pneg %p13250_p13 }
 0x779   : > { %12726 = vmatmul.mubr.msk.f32.gmra.mrb[180].mxu0 %vm2106_vm4, %v8943_v12  ;;  %11299 = vst [vmem:[%s19155_s15 + $0x68] sm:$0xff] %v11279_v51  ;;  %v11241_v24 = vsel %vm11233_vm13, %v11227_v22, %v11026_v36  ;;  %v9042_v44 = vadd.f32 %v19935_v0, %v21785_v59  ;;  %v11267_v40 = vsel %vm11219_vm12, %v11254_v56, %v11130_v21  ;;  %p13257_p3 = por %p13256_p2, %p13255_p1 }
 0x77a   : > { %v10342_v38 = vcombine.low %v21787_v61, %v21786_v23  ;;  %11300 = vst [vmem:[%s19155_s15 + $0x70] sm:$0xff] %v11241_v24  ;;  %v11280_v39 = vsel %vm11233_vm13, %v11267_v40, %v11182_v14  ;;  %v9047_v36 = vadd.f32 %v19935_v0, %v21788_v63  ;;  %v9103_v1 = vadd.f32 %v13238_v54, %v9052_v31 }
 0x77b   : > { %v9101_v29 = vadd.f32 %v13236_v20, %v9042_v44  ;;  %11301 = vst [vmem:[%s19155_s15 + $0x78] sm:$0xff] %v11280_v39  ;;  %v10750_v52 = vcombine.low %v19714_v48, %v19722_v55  ;;  %v10754_v37 = vcombine.low %v19764_v30, %v19774_v45  ;;  %v9062_v47 = vadd.f32 %v19935_v0, %v19705_v43  ;;  %v13241_v43 = vld [vmem:[%s13471_s16 + $0x30] sm:$0xff]  ;;  %p13258_p4 = pnand %p13257_p3, %p13251_p0 }
 0x77c   : > { %v11214_v60 = vsel %vm2106_vm4, %v10342_v38, %v10924_v9  ;;  %v9102_v14 = vadd.f32 %v13237_v18, %v9047_v36  ;;  %v9057_v9 = vadd.f32 %v19935_v0, %v19583_v3  ;;  %v10886_v42 = vcombine.low %v19841_v46, %v19853_v19  ;;  %v11080_v58 = vpop.permute.xlu0 %11079  ;;  %9116 = vst.msk [vmem:[%s19954_s0 + $0x18] sm:$0xff] %vm493_vm2, %v9103_v1  ;;  %v13239_v3 = vld [vmem:[%s13471_s16 + $0x20] sm:$0xff]  ;;  %v13242_v1 = vld [vmem:[%s13471_s16 + $0x38] sm:$0xff] }
 0x77d   : > { %v11228_v4 = vsel %vm11219_vm12, %v11214_v60, %v10976_v15  ;;  %9114 = vst.msk [vmem:[%s19954_s0 + $0x8] sm:$0xff] %vm493_vm2, %v9101_v29  ;;  %v10890_v28 = vcombine.low %v19896_v7, %v19905_v6  ;;  %v9067_v27 = vadd.f32 %v19935_v0, %v19927_v11  ;;  %v9105_v21 = vadd.f32 %v13240_v57, %v9062_v47  ;;  %v21791_v29 = vld [vmem:[#allocation171_spill] sm:$0xff] }
 0x77e   : > { %v11242_v35 = vsel %vm11233_vm13, %v11228_v4, %v11028_v5  ;;  %9115 = vst.msk [vmem:[%s19954_s0 + $0x10] sm:$0xff] %vm493_vm2, %v9102_v14  ;;  %v9104_v16 = vadd.f32 %v13239_v3, %v9057_v9  ;;  %v10346_v26 = vcombine.low %v21790_v41, %v21789_v50  ;;  %v10478_v10 = vcombine.low %v19474_v25, %v19497_v33  ;;  %v21792_v60 = vld [vmem:[#allocation87_spill] sm:$0xff] }
 0x77f   : > { %11302 = vst [vmem:[%s19155_s15 + $0x80] sm:$0xff] %v11242_v35  ;;  %v9106_v17 = vadd.f32 %v13241_v43, %v9067_v27  ;;  %9118 = vst.msk [vmem:[%s19954_s0 + $0x28] sm:$0xff] %vm493_vm2, %v9105_v21  ;;  %v10482_v40 = vcombine.low %v19512_v2, %v19536_v13  ;;  %v10614_v38 = vcombine.low %v19592_v62, %v19603_v53 }
 0x780   : > { %9117 = vst.msk [vmem:[%s19954_s0 + $0x20] sm:$0xff] %vm493_vm2, %v9104_v16  ;;  %v11255_v34 = vsel %vm2106_vm4, %v10346_v26, %v11080_v58  ;;  %v10618_v31 = vcombine.low %v21792_v60, %v21791_v29 }
 0x781   : > { %9119 = vst.msk [vmem:[%s19954_s0 + $0x30] sm:$0xff] %vm493_vm2, %v9106_v17  ;;  %v11184_v49 = vpop.permute.xlu0 %11183  ;;  %v11132_v32 = vpop.permute.xlu1 %11131 }
 0x782   : > { %v11268_v11 = vsel %vm11219_vm12, %v11255_v34, %v11132_v32 }
 0x783   : > { %v11281_v8 = vsel %vm11233_vm13, %v11268_v11, %v11184_v49 }
 0x784   : > { %11303 = vst [vmem:[%s19155_s15 + $0x88] sm:$0xff] %v11281_v8  ;;  %v13243_v8 = vld [vmem:[%s13471_s16 + $0x40] sm:$0xff] }
 0x78b   : > { %v10926_v12 = vpop.permute.xlu0 %10925  ;;  %v10978_v22 = vpop.permute.xlu1 %10977 }
 0x78c   : > { %v11215_v51 = vsel %vm2106_vm4, %v10478_v10, %v10926_v12 }
 0x78d   : > { %v11229_v56 = vsel %vm11219_vm12, %v11215_v51, %v10978_v22 }
 0x78f   : > { %v11030_v24 = vpop.permute.xlu0 %11029 }
 0x790   : > { %v11243_v59 = vsel %vm11233_vm13, %v11229_v56, %v11030_v24  ;;  %v11082_v44 = vpop.permute.xlu1 %11081 }
 0x791   : > { %11304 = vst [vmem:[%s19155_s15 + $0x90] sm:$0xff] %v11243_v59  ;;  %v11256_v15 = vsel %vm2106_vm4, %v10482_v40, %v11082_v44 }
 0x79a   : > { %v11134_v23 = vpop.permute.xlu0 %11133  ;;  %v11186_v61 = vpop.permute.xlu1 %11185 }
 0x79b   : > { %v11269_v25 = vsel %vm11219_vm12, %v11256_v15, %v11134_v23 }
 0x79c   : > { %v11282_v33 = vsel %vm11233_vm13, %v11269_v25, %v11186_v61 }
 0x79d   : > { %11305 = vst [vmem:[%s19155_s15 + $0x98] sm:$0xff] %v11282_v33 }
 0x7a3   : > { %v10980_v5 = vpop.permute.xlu0 %10979 }
 0x7a4   : > { %v10928_v39 = vpop.permute.xlu1 %10927 }
 0x7a5   : > { %v11216_v63 = vsel %vm2106_vm4, %v10614_v38, %v10928_v39 }
 0x7a6   : > { %v11230_v36 = vsel %vm11219_vm12, %v11216_v63, %v10980_v5 }
 0x7a8   : > { %v11032_v2 = vpop.permute.xlu1 %11031 }
 0x7a9   : > { %v11244_v13 = vsel %vm11233_vm13, %v11230_v36, %v11032_v2 }
 0x7aa   : > { %11306 = vst [vmem:[%s19155_s15 + $0xa0] sm:$0xff] %v11244_v13  ;;  %v11084_v20 = vpop.permute.xlu0 %11083 }
 0x7ab   : > { %v11257_v18 = vsel %vm2106_vm4, %v10618_v31, %v11084_v20 }
 0x7af   : > { %v9071_v4 = vpop.f32.mrb[170].mxu0 }
 0x7b0   : > { %v9072_v62 = vadd.f32 %v19935_v0, %v9071_v4  ;;  %v12712_v53 = vpop.f32.mrb[171].mxu0 }
 0x7b2   : > { %v11188_v14 = vpop.permute.xlu0 %11187  ;;  %v11136_v35 = vpop.permute.xlu1 %11135  ;;  %v9107_v9 = vadd.f32 %v13242_v1, %v9072_v62 }
 0x7b3   : > { %v11270_v54 = vsel %vm11219_vm12, %v11257_v18, %v11136_v35 }
 0x7b4   : > { %v11283_v47 = vsel %vm11233_vm13, %v11270_v54, %v11188_v14  ;;  %9120 = vst.msk [vmem:[%s19954_s0 + $0x38] sm:$0xff] %vm493_vm2, %v9107_v9 }
 0x7b5   : > { %11307 = vst [vmem:[%s19155_s15 + $0xa8] sm:$0xff] %v11283_v47 }
 0x7bd   : > { %v10930_v58 = vpop.permute.xlu0 %10929  ;;  %v10982_v16 = vpop.permute.xlu1 %10981 }
 0x7be   : > { %v11217_v3 = vsel %vm2106_vm4, %v10750_v52, %v10930_v58 }
 0x7bf   : > { %v11231_v27 = vsel %vm11219_vm12, %v11217_v3, %v10982_v16 }
 0x7c1   : > { %v11034_v57 = vpop.permute.xlu0 %11033 }
 0x7c2   : > { %v11245_v21 = vsel %vm11233_vm13, %v11231_v27, %v11034_v57  ;;  %v11086_v43 = vpop.permute.xlu1 %11085 }
 0x7c3   : > { %11308 = vst [vmem:[%s19155_s15 + $0xb0] sm:$0xff] %v11245_v21 }
 0x7cb   : > { %v11138_v17 = vpop.permute.xlu0 %11137 }
 0x7d6   : > { %v10932_v50 = vpop.permute.xlu1 %10931  ;;  %v10984_v41 = vpop.permute.xlu0 %10983 }
 0x7d7   : > { %v11218_v48 = vsel %vm2106_vm4, %v10886_v42, %v10932_v50  ;;  %v11258_v42 = vsel %vm2106_vm4, %v10754_v37, %v11086_v43 }
 0x7d8   : > { %v11232_v55 = vsel %vm11219_vm12, %v11218_v48, %v10984_v41  ;;  %v11271_v7 = vsel %vm11219_vm12, %v11258_v42, %v11138_v17 }
 0x7da   : > { %v11036_v52 = vpop.permute.xlu1 %11035 }
 0x7db   : > { %v11246_v26 = vsel %vm11233_vm13, %v11232_v55, %v11036_v52 }
 0x7dc   : > { %11310 = vst [vmem:[%s19155_s15 + $0xc0] sm:$0xff] %v11246_v26 }
 0x7dd   : > { %v11088_v34 = vpop.permute.xlu0 %11087 }
 0x7de   : > { %v11259_v49 = vsel %vm2106_vm4, %v10890_v28, %v11088_v34 }
 0x7e4   : > { %v11192_v32 = vpop.permute.xlu0 %11191  ;;  %v11140_v11 = vpop.permute.xlu1 %11139 }
 0x7e5   : > { %v11272_v46 = vsel %vm11219_vm12, %v11259_v49, %v11140_v11  ;;  %v9076_v28 = vpop.f32.mrb[172].mxu0 }
 0x7e6   : > { %v11285_v19 = vsel %vm11233_vm13, %v11272_v46, %v11192_v32  ;;  %v9077_v45 = vadd.f32 %v19935_v0, %v9076_v28  ;;  %v12715_v37 = vpop.f32.mrb[173].mxu0 }
 0x7e7   : > { %11311 = vst [vmem:[%s19155_s15 + $0xc8] sm:$0xff] %v11285_v19 }
 0x7e8   : > { %v11190_v6 = vpop.permute.xlu1 %11189  ;;  %v9108_v10 = vadd.f32 %v13243_v8, %v9077_v45 }
 0x7e9   : > { %v11284_v30 = vsel %vm11233_vm13, %v11271_v7, %v11190_v6 }
 0x7ea   : > { %11309 = vst [vmem:[%s19155_s15 + $0xb8] sm:$0xff] %v11284_v30 }
 0x7eb   : > { %13261 = shalt.err (!%p13258_p4)
}
 0x7ec   : > { %s13262_s15 = scalar_lea.hbm %s20104_s21, 3328  ;;  %s13266_s29 = scalar_lea.hbm %s20184_s13, 6656 }
 0x7ed   : > { %p13263_p7 = scmp.ne.s32.totalorder %s20104_s21, %s13262_s15  ;;  %p13267_p10 = scmp.lt.u32.totalorder %s20104_s21, %s20184_s13 }
 0x7ee   : > { %p13268_p11 = scmp.lt.u32.totalorder %s13266_s29, %s13262_s15  ;;  %p13270_p13 = scmp.lt.u32.totalorder %s13262_s15, %s20104_s21 }
 0x7ef   : > { %p13264_p8 = pnand %p13263_p7, %p13432_p5 }
 0x7f0   : > { %p13269_p12 = por %p13268_p11, %p13267_p10 }
 0x7f1   : > { %p13265_p9 = pneg %p13264_p8 }
 0x7f2   : > { %p13271_p0 = por %p13270_p13, %p13269_p12 }
 0x7f4   : > { %p13272_p1 = pnand %p13271_p0, %p13265_p9 }
 0x7f6   : > { %13275 = shalt.err (!%p13272_p1)
}
 0x7f7   : > { %s13322_s1 = smov 256   ;;  %s13323_s2 = smov 16   ;;  %9121 = vst.msk [vmem:[%s19954_s0 + $0x40] sm:$0xff] %vm493_vm2, %v9108_v10  ;;  %v13244_v56 = vld [vmem:[%s13471_s16 + $0x48] sm:$0xff]  ;;  %v13245_v15 = vld [vmem:[%s13471_s16 + $0x50] sm:$0xff]  ;;  %v13246_v38 = vld [vmem:[%s13471_s16 + $0x58] sm:$0xff] }
 0x7f8   : > { %12762 = dma.vmem_to_hbm [thread:$0]  (%p13432_p5), %s20098_s23, 3328, %s20104_s21, %s20112_s24, %s13322_s1, %s13322_s1, %s13323_s2  }
 0x7f9   : > { %v13247_v2 = vld [vmem:[%s13471_s16 + $0x60] sm:$0xff] }
 0x800   : > { %v9081_v12 = vpop.f32.mrb[174].mxu0 }
 0x801   : > { %v9082_v51 = vadd.f32 %v19935_v0, %v9081_v12  ;;  %v12718_v22 = vpop.f32.mrb[175].mxu0 }
 0x803   : > { %v9109_v24 = vadd.f32 %v13244_v56, %v9082_v51 }
 0x805   : > { %9122 = vst.msk [vmem:[%s19954_s0 + $0x48] sm:$0xff] %vm493_vm2, %v9109_v24 }
 0x819   : > { %v9086_v59 = vpop.f32.mrb[176].mxu0 }
 0x81a   : > { %v9087_v44 = vadd.f32 %v19935_v0, %v9086_v59  ;;  %v12721_v40 = vpop.f32.mrb[177].mxu0 }
 0x81c   : > { %v9110_v23 = vadd.f32 %v13245_v15, %v9087_v44 }
 0x81e   : > { %9123 = vst.msk [vmem:[%s19954_s0 + $0x50] sm:$0xff] %vm493_vm2, %v9110_v23 }
 0x833   : > { %v9091_v61 = vpop.f32.mrb[178].mxu0 }
 0x834   : > { %v9092_v25 = vadd.f32 %v19935_v0, %v9091_v61  ;;  %v12724_v33 = vpop.f32.mrb[179].mxu0 }
 0x836   : > { %v9111_v39 = vadd.f32 %v13246_v38, %v9092_v25 }
 0x838   : > { %9124 = vst.msk [vmem:[%s19954_s0 + $0x58] sm:$0xff] %vm493_vm2, %v9111_v39 }
 0x84c   : > { %v9096_v5 = vpop.f32.mrb[180].mxu0 }
 0x84d   : > { %v9097_v63 = vadd.f32 %v19935_v0, %v9096_v5  ;;  %v12727_v36 = vpop.f32.mrb[181].mxu0 }
 0x84f   : > { %v9112_v13 = vadd.f32 %v13247_v2, %v9097_v63 }
 0x851   : > { %9125 = vst.msk [vmem:[%s19954_s0 + $0x60] sm:$0xff] %vm493_vm2, %v9112_v13 }
 0x852 PF: > { %p12768_p5 = scmp.ge.s32.totalorder %s13310_s28, 2  ;;  %s11359_s3 = sand.u32 1, %s13298_s25  }
 0x853   : > { %s11360_s18 = scalar_lea.sflag [#allocation3], %s11359_s3 }
 0x854   : > { %p12765_p2 = pnand %p12768_p5, %p13436_p6 }
 0x856   : > { %13293 = dma.done.wait (!%p12765_p2), %s11360_s18, 3328  }
 0x857   : > { %13295 = vsyncadd (!%p12765_p2), %s11360_s18, 4294963968  ;;  %p24_p3 = scmp.ge.s32.totalorder %s13419_s14, 4   ;;  %s21794_s25 = smov %s13302_s26 }
 0x858   : > { %s21795_s26 = smov %s13306_s27  ;;  %s21796_s27 = smov %s13430_s17 }
 0x859   : > { %s21797_s28 = smov %s13419_s14  ;;  %26 = sbr.rel (!%p24_p3) target bundleno = 8 (0x8), region = 118 }
 0x860   :  { %11365 = vsyncpa [#allocation3], 1 }
 0x861   :  { %11367 = vsyncpa [#allocation3 + $0x1], 1 }

</bundles_post_ra>
